<compile_context>
chip_gen: v7x
topology: tpu7x:2x2x1
jax: 0.10.0
libtpu: 0.0.40
codegen_flags: <defaults>
</compile_context>

<pallas_src>
import numpy as np

import jax
import jax.numpy as jnp
from jax.experimental import pallas as pl
from jax.experimental.pallas import tpu as pltpu


# ----------------------------------------------------------------------------
# Parameter init (deterministic, synthetic) — identical to the previous version
# ----------------------------------------------------------------------------
def _init_conv(key, kh, kw, cin, cout):
    w = jax.random.normal(key, (kh, kw, cin, cout), jnp.float32) * 0.02
    b = jnp.zeros((cout,), jnp.float32)
    return w, b


def init_params(key, input_dim=3, dim=8, n_res=2):
    keys = iter(jax.random.split(key, 32))
    p = {}
    # ---- encode_cont ----
    p["enc_c1"] = _init_conv(next(keys), 7, 7, input_dim, dim)            # c7s1-dim
    p["enc_d1"] = _init_conv(next(keys), 4, 4, dim, dim * 2)              # down x2
    p["enc_d2"] = _init_conv(next(keys), 4, 4, dim * 2, dim * 4)          # down x2
    p["enc_res"] = [
        (_init_conv(next(keys), 3, 3, dim * 4, dim * 4),
         _init_conv(next(keys), 3, 3, dim * 4, dim * 4))
        for _ in range(n_res)
    ]
    # ---- dec_cont ----
    p["dec_res"] = [
        (_init_conv(next(keys), 3, 3, dim * 4, dim * 4),
         _init_conv(next(keys), 3, 3, dim * 4, dim * 4))
        for _ in range(n_res)
    ]
    p["dec_u1"] = _init_conv(next(keys), 5, 5, dim * 4, dim * 2)          # up + conv
    p["dec_u2"] = _init_conv(next(keys), 5, 5, dim * 2, dim)              # up + conv
    p["dec_out"] = _init_conv(next(keys), 7, 7, dim, input_dim)           # c7s1-out, tanh
    return p


# ----------------------------------------------------------------------------
# Host-side network packing: fold padding / stride / upsample / taps into
# small dense matrices so each conv becomes a handful of lane-dense GEMMs.
# ----------------------------------------------------------------------------
def _reflect(i, n):
    """ReflectionPad index (matches nn.ReflectionPad2d / jnp.pad 'reflect')."""
    if i < 0:
        return -i
    if i >= n:
        return 2 * n - 2 - i
    return i


def build_network(params, H, W):
    """Precompute per conv layer:
      S : (kh, H_out, H_in) f32  — 0/1 row-selection per vertical tap
           (stride, reflection padding, nearest-upsample folded in)
      B : (kh*W_in*C_in, W_out*C_out) bf16 — banded weight matrix
           (horizontal taps + channel mixing + reflection + upsample folded in)
    plus the channel-pooling matrices G used by the fused InstanceNorm epilogue
    and the bias row for the final (un-normalized) conv.
    """
    p = params
    n_res = len(p["enc_res"])

    # (name, (w,b), stride, pad, upsample, norm, act, save_input, add_saved)
    defs = [("enc_c1", p["enc_c1"], 1, 3, 1, "in", "relu", False, False),
            ("enc_d1", p["enc_d1"], 2, 1, 1, "in", "relu", False, False),
            ("enc_d2", p["enc_d2"], 2, 1, 1, "in", "relu", False, False)]
    for r in range(n_res):
        defs.append((f"enc_res{r}a", p["enc_res"][r][0], 1, 1, 1, "in", "relu", True, False))
        defs.append((f"enc_res{r}b", p["enc_res"][r][1], 1, 1, 1, "in", "none", False, True))
    for r in range(n_res):
        defs.append((f"dec_res{r}a", p["dec_res"][r][0], 1, 1, 1, "in", "relu", True, False))
        defs.append((f"dec_res{r}b", p["dec_res"][r][1], 1, 1, 1, "in", "none", False, True))
    defs.append(("dec_u1", p["dec_u1"], 1, 2, 2, "in", "relu", False, False))
    defs.append(("dec_u2", p["dec_u2"], 1, 2, 2, "in", "relu", False, False))
    defs.append(("dec_out", p["dec_out"], 1, 3, 1, "none", "tanh", False, False))

    metas, consts, bias_rows = [], [], []
    g_map, g_mats = {}, []
    h_in, w_in = H, W
    c_in = int(np.asarray(jax.device_get(p["enc_c1"][0])).shape[2])

    for name, (wt, bi), stride, pad, up, norm, act, save, add in defs:
        wt = np.asarray(jax.device_get(wt), np.float32)      # (kh, kw, cin, cout)
        bi = np.asarray(jax.device_get(bi), np.float32)      # (cout,)
        kh, kw, cin, cout = wt.shape
        assert cin == c_in, (name, cin, c_in)
        he, we = h_in * up, w_in * up                         # effective (upsampled) size
        h_out = (he + 2 * pad - kh) // stride + 1
        w_out = (we + 2 * pad - kw) // stride + 1
        K, M = w_in * cin, w_out * cout

        S = np.zeros((kh, h_out, h_in), np.float32)
        B = np.zeros((kh, K, M), np.float32)
        for ki in range(kh):
            for ho in range(h_out):
                hs = _reflect(ho * stride + ki - pad, he) // up
                S[ki, ho, hs] = 1.0
            for wo in range(w_out):
                for kj in range(kw):
                    ws = _reflect(wo * stride + kj - pad, we) // up
                    B[ki, ws * cin:(ws + 1) * cin, wo * cout:(wo + 1) * cout] += wt[ki, kj]

        g_idx = bias_idx = None
        if norm == "in":
            # Conv bias is a per-channel constant -> removed exactly by the IN
            # mean subtraction, so it is dropped for IN layers.
            gkey = (cout, M)
            if gkey not in g_map:
                col = np.arange(M) % cout
                g_mats.append((col[:, None] == col[None, :]).astype(np.float32))
                g_map[gkey] = len(g_mats) - 1
            g_idx = g_map[gkey]
        else:
            bias_idx = len(bias_rows)
            bias_rows.append(jnp.asarray(np.tile(bi, w_out)[None, :]))  # (1, W_out*Cout)

        consts.append(jnp.asarray(S))                                        # f32 (exact gather)
        consts.append(jnp.asarray(B.reshape(kh * K, M), dtype=jnp.bfloat16))  # bf16 GEMM operand
        metas.append(dict(name=name, kh=kh, h_out=h_out, w_out=w_out, cout=cout,
                          norm=norm, act=act, g_idx=g_idx, bias_idx=bias_idx,
                          save=save, add=add))
        h_in, w_in, c_in = h_out, w_out, cout

    assert len({g.shape for g in g_mats}) == 1   # all IN layers share W*C lane width (128)
    consts.append(jnp.asarray(np.stack(g_mats, axis=0)))   # (n_g, M, M) f32
    consts.extend(bias_rows)
    return dict(metas=metas, consts=tuple(consts), n_bias=len(bias_rows))


# ----------------------------------------------------------------------------
# The single whole-network Pallas kernel (one image per grid step)
# ----------------------------------------------------------------------------
def _make_kernel(metas, n_bias):
    n_layers = len(metas)

    def kernel(*refs):
        # refs = (x, S_0, B_0, ..., S_{L-1}, B_{L-1}, G, bias_0..., out)
        x_ref = refs[0]
        g_ref = refs[1 + 2 * n_layers]
        bias_refs = refs[2 + 2 * n_layers: 2 + 2 * n_layers + n_bias]
        o_ref = refs[-1]

        def conv_layer(X, idx):
            m = metas[idx]
            s_ref = refs[1 + 2 * idx]
            b_ref = refs[2 + 2 * idx]
            # Vertical taps: exact 0/1 row-gather matmuls (f32), concatenated
            # on the lane axis, then ONE lane-dense bf16 GEMM (f32 accumulate)
            # against the banded weight matrix.
            rows = [jnp.dot(s_ref[ki], X, preferred_element_type=jnp.float32)
                    for ki in range(m["kh"])]
            lhs = jnp.concatenate(rows, axis=1).astype(b_ref.dtype)
            acc = jnp.dot(lhs, b_ref[...], preferred_element_type=jnp.float32)

            if m["norm"] == "in":
                # Fused InstanceNorm2d(affine=False): per-channel stats over
                # H*W, biased variance, eps=1e-5.  G pools/broadcasts channel
                # groups along the (w, c) lane axis.
                G = g_ref[m["g_idx"]]
                inv = 1.0 / float(m["h_out"] * m["w_out"])
                mean = jnp.sum(jnp.dot(acc, G, preferred_element_type=jnp.float32),
                               axis=0, keepdims=True) * inv
                xc = acc - mean
                var = jnp.sum(jnp.dot(xc * xc, G, preferred_element_type=jnp.float32),
                              axis=0, keepdims=True) * inv
                acc = xc * jax.lax.rsqrt(var + 1e-5)
            else:
                acc = acc + bias_refs[m["bias_idx"]][...]

            if m["act"] == "relu":
                acc = jnp.maximum(acc, 0.0)
            elif m["act"] == "tanh":
                acc = jnp.tanh(acc)
            return acc

        h = x_ref[0]                       # (H, W*C) f32, stays VMEM/vreg resident
        saved = None
        for idx in range(n_layers):
            m = metas[idx]
            if m["save"]:
                saved = h
            h = conv_layer(h, idx)
            if m["add"]:
                h = h + saved              # residual add, in registers
        o_ref[0] = h.astype(o_ref.dtype)

    return kernel


# ----------------------------------------------------------------------------
# UNIT_Trainer.forward equivalent
# ----------------------------------------------------------------------------
def unit_trainer_forward(x_a_nchw, x_b_nchw, net):
    """forward(x_a, x_b): h_a = gen_a.encode_cont(x_a); return gen_a.dec_cont(h_a).

    x_b is accepted for signature parity but (as in the PyTorch module) unused.
    Inputs/outputs are NCHW (PyTorch convention); compute uses a lane-dense
    (H, W*C) layout internally."""
    del x_b_nchw
    metas, consts, n_bias = net["metas"], net["consts"], net["n_bias"]
    N, C, H, W = x_a_nchw.shape
    x = jnp.transpose(x_a_nchw, (0, 2, 3, 1)).astype(jnp.float32).reshape(N, H, W * C)

    last = metas[-1]
    out_h, out_w, out_c = last["h_out"], last["w_out"], last["cout"]

    in_specs = [pl.BlockSpec((1, H, W * C), lambda b: (b, 0, 0))]
    for arr in consts:
        in_specs.append(pl.BlockSpec(arr.shape, lambda b, _nd=arr.ndim: (0,) * _nd))

    out = pl.pallas_call(
        _make_kernel(metas, n_bias),
        out_shape=jax.ShapeDtypeStruct((N, out_h, out_w * out_c), jnp.float32),
        grid=(N,),
        in_specs=in_specs,
        out_specs=pl.BlockSpec((1, out_h, out_w * out_c), lambda b: (b, 0, 0)),
        compiler_params=pltpu.CompilerParams(dimension_semantics=("parallel",)),
    )(x, *consts)

    out = out.reshape(N, out_h, out_w, out_c)
    return jnp.transpose(out, (0, 3, 1, 2))                     # NHWC -> NCHW


# ----------------------------------------------------------------------------
# Plain-JAX (XLA) reference of the same network, for a numerical cross-check.
# ----------------------------------------------------------------------------
def _reference_forward(x_nchw, params):
    x = jnp.transpose(x_nchw, (0, 2, 3, 1)).astype(jnp.float32)

    def conv(x, w, b, stride, pad, norm, act):
        xp = jnp.pad(x, ((0, 0), (pad, pad), (pad, pad), (0, 0)), mode="reflect")
        y = jax.lax.conv_general_dilated(
            xp, w, (stride, stride), "VALID",
            dimension_numbers=("NHWC", "HWIO", "NHWC")) + b
        if norm == "in":
            m = jnp.mean(y, axis=(1, 2), keepdims=True)
            v = jnp.mean(jnp.square(y - m), axis=(1, 2), keepdims=True)
            y = (y - m) * jax.lax.rsqrt(v + 1e-5)
        if act == "relu":
            y = jnp.maximum(y, 0.0)
        elif act == "tanh":
            y = jnp.tanh(y)
        return y

    def res(x, pr):
        (w1, b1), (w2, b2) = pr
        h = conv(x, w1, b1, 1, 1, "in", "relu")
        h = conv(h, w2, b2, 1, 1, "in", "none")
        return x + h

    up = lambda t: jnp.repeat(jnp.repeat(t, 2, axis=1), 2, axis=2)

    h = conv(x, *params["enc_c1"], 1, 3, "in", "relu")
    h = conv(h, *params["enc_d1"], 2, 1, "in", "relu")
    h = conv(h, *params["enc_d2"], 2, 1, "in", "relu")
    for rp in params["enc_res"]:
        h = res(h, rp)
    for rp in params["dec_res"]:
        h = res(h, rp)
    h = conv(up(h), *params["dec_u1"], 1, 2, "in", "relu")
    h = conv(up(h), *params["dec_u2"], 1, 2, "in", "relu")
    h = conv(h, *params["dec_out"], 1, 3, "none", "tanh")
    return jnp.transpose(h, (0, 3, 1, 2))


# ----------------------------------------------------------------------------
if __name__ == "__main__":
    key = jax.random.PRNGKey(0)
    k_params, k_a, k_b = jax.random.split(key, 3)

    params = init_params(k_params, input_dim=3, dim=8, n_res=2)

    # Small shapes consistent with the module: NCHW images, 3 channels.
    x_a = jax.random.normal(k_a, (2, 3, 16, 16), jnp.float32)
    x_b = jax.random.normal(k_b, (2, 3, 16, 16), jnp.float32)

    net = build_network(params, H=16, W=16)

    fwd = jax.jit(lambda a, b: unit_trainer_forward(a, b, net))
    out = jax.block_until_ready(fwd(x_a, x_b))

    assert out.shape == (2, 3, 16, 16), out.shape
    assert bool(jnp.all(jnp.isfinite(out)))

    # Cross-check the fused Pallas network against the plain-JAX reference
    # (tolerance accounts for the bf16 weight path with f32 accumulation).
    ref = jax.block_until_ready(jax.jit(lambda a: _reference_forward(a, params))(x_a))
    max_diff = float(jnp.max(jnp.abs(out - ref)))
    assert max_diff < 1e-1, f"kernel/reference mismatch: max|diff|={max_diff}"

    print("KERNEL_OK")
</pallas_src>

<mosaic_0001>
module attributes {stable_mosaic.version = 11 : i64} {
  func.func @kernel(%arg0: i32, %arg1: memref<1x16x48xf32, #tpu.memory_space<vmem>>, %arg2: memref<7x16x16xf32, #tpu.memory_space<vmem>>, %arg3: memref<336x128xbf16, #tpu.memory_space<vmem>>, %arg4: memref<4x8x16xf32, #tpu.memory_space<vmem>>, %arg5: memref<512x128xbf16, #tpu.memory_space<vmem>>, %arg6: memref<4x4x8xf32, #tpu.memory_space<vmem>>, %arg7: memref<512x128xbf16, #tpu.memory_space<vmem>>, %arg8: memref<3x4x4xf32, #tpu.memory_space<vmem>>, %arg9: memref<384x128xbf16, #tpu.memory_space<vmem>>, %arg10: memref<3x4x4xf32, #tpu.memory_space<vmem>>, %arg11: memref<384x128xbf16, #tpu.memory_space<vmem>>, %arg12: memref<3x4x4xf32, #tpu.memory_space<vmem>>, %arg13: memref<384x128xbf16, #tpu.memory_space<vmem>>, %arg14: memref<3x4x4xf32, #tpu.memory_space<vmem>>, %arg15: memref<384x128xbf16, #tpu.memory_space<vmem>>, %arg16: memref<3x4x4xf32, #tpu.memory_space<vmem>>, %arg17: memref<384x128xbf16, #tpu.memory_space<vmem>>, %arg18: memref<3x4x4xf32, #tpu.memory_space<vmem>>, %arg19: memref<384x128xbf16, #tpu.memory_space<vmem>>, %arg20: memref<3x4x4xf32, #tpu.memory_space<vmem>>, %arg21: memref<384x128xbf16, #tpu.memory_space<vmem>>, %arg22: memref<3x4x4xf32, #tpu.memory_space<vmem>>, %arg23: memref<384x128xbf16, #tpu.memory_space<vmem>>, %arg24: memref<5x8x4xf32, #tpu.memory_space<vmem>>, %arg25: memref<640x128xbf16, #tpu.memory_space<vmem>>, %arg26: memref<5x16x8xf32, #tpu.memory_space<vmem>>, %arg27: memref<640x128xbf16, #tpu.memory_space<vmem>>, %arg28: memref<7x16x16xf32, #tpu.memory_space<vmem>>, %arg29: memref<896x48xbf16, #tpu.memory_space<vmem>>, %arg30: memref<3x128x128xf32, #tpu.memory_space<vmem>>, %arg31: memref<1x48xf32, #tpu.memory_space<vmem>>, %arg32: memref<1x16x48xf32, #tpu.memory_space<vmem>>) attributes {dimension_semantics = [#tpu.dimension_semantics<parallel>], iteration_bounds = array<i64: 2>, scalar_prefetch = 0 : i64, scratch_operands = 0 : i64, tpu.core_type = #tpu.core_type<tc>, window_params = [{transform_indices = @transform_0, window_bounds = array<i64: 1, 16, 48>}, {pipeline_mode = #tpu.pipeline_mode<synchronous>, transform_indices = @transform_1, window_bounds = array<i64: 7, 16, 16>}, {pipeline_mode = #tpu.pipeline_mode<synchronous>, transform_indices = @transform_2, window_bounds = array<i64: 336, 128>}, {pipeline_mode = #tpu.pipeline_mode<synchronous>, transform_indices = @transform_3, window_bounds = array<i64: 4, 8, 16>}, {pipeline_mode = #tpu.pipeline_mode<synchronous>, transform_indices = @transform_4, window_bounds = array<i64: 512, 128>}, {pipeline_mode = #tpu.pipeline_mode<synchronous>, transform_indices = @transform_5, window_bounds = array<i64: 4, 4, 8>}, {pipeline_mode = #tpu.pipeline_mode<synchronous>, transform_indices = @transform_6, window_bounds = array<i64: 512, 128>}, {pipeline_mode = #tpu.pipeline_mode<synchronous>, transform_indices = @transform_7, window_bounds = array<i64: 3, 4, 4>}, {pipeline_mode = #tpu.pipeline_mode<synchronous>, transform_indices = @transform_8, window_bounds = array<i64: 384, 128>}, {pipeline_mode = #tpu.pipeline_mode<synchronous>, transform_indices = @transform_9, window_bounds = array<i64: 3, 4, 4>}, {pipeline_mode = #tpu.pipeline_mode<synchronous>, transform_indices = @transform_10, window_bounds = array<i64: 384, 128>}, {pipeline_mode = #tpu.pipeline_mode<synchronous>, transform_indices = @transform_11, window_bounds = array<i64: 3, 4, 4>}, {pipeline_mode = #tpu.pipeline_mode<synchronous>, transform_indices = @transform_12, window_bounds = array<i64: 384, 128>}, {pipeline_mode = #tpu.pipeline_mode<synchronous>, transform_indices = @transform_13, window_bounds = array<i64: 3, 4, 4>}, {pipeline_mode = #tpu.pipeline_mode<synchronous>, transform_indices = @transform_14, window_bounds = array<i64: 384, 128>}, {pipeline_mode = #tpu.pipeline_mode<synchronous>, transform_indices = @transform_15, window_bounds = array<i64: 3, 4, 4>}, {pipeline_mode = #tpu.pipeline_mode<synchronous>, transform_indices = @transform_16, window_bounds = array<i64: 384, 128>}, {pipeline_mode = #tpu.pipeline_mode<synchronous>, transform_indices = @transform_17, window_bounds = array<i64: 3, 4, 4>}, {pipeline_mode = #tpu.pipeline_mode<synchronous>, transform_indices = @transform_18, window_bounds = array<i64: 384, 128>}, {pipeline_mode = #tpu.pipeline_mode<synchronous>, transform_indices = @transform_19, window_bounds = array<i64: 3, 4, 4>}, {pipeline_mode = #tpu.pipeline_mode<synchronous>, transform_indices = @transform_20, window_bounds = array<i64: 384, 128>}, {pipeline_mode = #tpu.pipeline_mode<synchronous>, transform_indices = @transform_21, window_bounds = array<i64: 3, 4, 4>}, {pipeline_mode = #tpu.pipeline_mode<synchronous>, transform_indices = @transform_22, window_bounds = array<i64: 384, 128>}, {pipeline_mode = #tpu.pipeline_mode<synchronous>, transform_indices = @transform_23, window_bounds = array<i64: 5, 8, 4>}, {pipeline_mode = #tpu.pipeline_mode<synchronous>, transform_indices = @transform_24, window_bounds = array<i64: 640, 128>}, {pipeline_mode = #tpu.pipeline_mode<synchronous>, transform_indices = @transform_25, window_bounds = array<i64: 5, 16, 8>}, {pipeline_mode = #tpu.pipeline_mode<synchronous>, transform_indices = @transform_26, window_bounds = array<i64: 640, 128>}, {pipeline_mode = #tpu.pipeline_mode<synchronous>, transform_indices = @transform_27, window_bounds = array<i64: 7, 16, 16>}, {pipeline_mode = #tpu.pipeline_mode<synchronous>, transform_indices = @transform_28, window_bounds = array<i64: 896, 48>}, {pipeline_mode = #tpu.pipeline_mode<synchronous>, transform_indices = @transform_29, window_bounds = array<i64: 3, 128, 128>}, {pipeline_mode = #tpu.pipeline_mode<synchronous>, transform_indices = @transform_30, window_bounds = array<i64: 1, 48>}, {transform_indices = @transform_31, window_bounds = array<i64: 1, 16, 48>}]} {
    %c0 = arith.constant 0 : index
    %c0_0 = arith.constant 0 : index
    %c0_1 = arith.constant 0 : index
    %0 = vector.load %arg1[%c0, %c0_0, %c0_1] : memref<1x16x48xf32, #tpu.memory_space<vmem>>, vector<1x16x48xf32>
    %1 = vector.shape_cast %0 : vector<1x16x48xf32> to vector<16x48xf32>
    %c0_2 = arith.constant 0 : index
    %c0_3 = arith.constant 0 : index
    %c0_4 = arith.constant 0 : index
    %2 = vector.load %arg2[%c0_2, %c0_3, %c0_4] : memref<7x16x16xf32, #tpu.memory_space<vmem>>, vector<1x16x16xf32>
    %3 = vector.shape_cast %2 : vector<1x16x16xf32> to vector<16x16xf32>
    %cst = arith.constant dense<0.000000e+00> : vector<16x48xf32>
    %4 = tpu.matmul %3, %1, %cst {dimension_numbers = #tpu.dot_dimension_numbers<[1], [0], [0], [1], [0, 0, 1, 1], [], []>} : vector<16x16xf32>, vector<16x48xf32>, vector<16x48xf32> -> vector<16x48xf32>
    %c1 = arith.constant 1 : index
    %c0_5 = arith.constant 0 : index
    %c0_6 = arith.constant 0 : index
    %5 = vector.load %arg2[%c1, %c0_5, %c0_6] : memref<7x16x16xf32, #tpu.memory_space<vmem>>, vector<1x16x16xf32>
    %6 = vector.shape_cast %5 : vector<1x16x16xf32> to vector<16x16xf32>
    %cst_7 = arith.constant dense<0.000000e+00> : vector<16x48xf32>
    %7 = tpu.matmul %6, %1, %cst_7 {dimension_numbers = #tpu.dot_dimension_numbers<[1], [0], [0], [1], [0, 0, 1, 1], [], []>} : vector<16x16xf32>, vector<16x48xf32>, vector<16x48xf32> -> vector<16x48xf32>
    %c2 = arith.constant 2 : index
    %c0_8 = arith.constant 0 : index
    %c0_9 = arith.constant 0 : index
    %8 = vector.load %arg2[%c2, %c0_8, %c0_9] : memref<7x16x16xf32, #tpu.memory_space<vmem>>, vector<1x16x16xf32>
    %9 = vector.shape_cast %8 : vector<1x16x16xf32> to vector<16x16xf32>
    %cst_10 = arith.constant dense<0.000000e+00> : vector<16x48xf32>
    %10 = tpu.matmul %9, %1, %cst_10 {dimension_numbers = #tpu.dot_dimension_numbers<[1], [0], [0], [1], [0, 0, 1, 1], [], []>} : vector<16x16xf32>, vector<16x48xf32>, vector<16x48xf32> -> vector<16x48xf32>
    %c3 = arith.constant 3 : index
    %c0_11 = arith.constant 0 : index
    %c0_12 = arith.constant 0 : index
    %11 = vector.load %arg2[%c3, %c0_11, %c0_12] : memref<7x16x16xf32, #tpu.memory_space<vmem>>, vector<1x16x16xf32>
    %12 = vector.shape_cast %11 : vector<1x16x16xf32> to vector<16x16xf32>
    %cst_13 = arith.constant dense<0.000000e+00> : vector<16x48xf32>
    %13 = tpu.matmul %12, %1, %cst_13 {dimension_numbers = #tpu.dot_dimension_numbers<[1], [0], [0], [1], [0, 0, 1, 1], [], []>} : vector<16x16xf32>, vector<16x48xf32>, vector<16x48xf32> -> vector<16x48xf32>
    %c4 = arith.constant 4 : index
    %c0_14 = arith.constant 0 : index
    %c0_15 = arith.constant 0 : index
    %14 = vector.load %arg2[%c4, %c0_14, %c0_15] : memref<7x16x16xf32, #tpu.memory_space<vmem>>, vector<1x16x16xf32>
    %15 = vector.shape_cast %14 : vector<1x16x16xf32> to vector<16x16xf32>
    %cst_16 = arith.constant dense<0.000000e+00> : vector<16x48xf32>
    %16 = tpu.matmul %15, %1, %cst_16 {dimension_numbers = #tpu.dot_dimension_numbers<[1], [0], [0], [1], [0, 0, 1, 1], [], []>} : vector<16x16xf32>, vector<16x48xf32>, vector<16x48xf32> -> vector<16x48xf32>
    %c5 = arith.constant 5 : index
    %c0_17 = arith.constant 0 : index
    %c0_18 = arith.constant 0 : index
    %17 = vector.load %arg2[%c5, %c0_17, %c0_18] : memref<7x16x16xf32, #tpu.memory_space<vmem>>, vector<1x16x16xf32>
    %18 = vector.shape_cast %17 : vector<1x16x16xf32> to vector<16x16xf32>
    %cst_19 = arith.constant dense<0.000000e+00> : vector<16x48xf32>
    %19 = tpu.matmul %18, %1, %cst_19 {dimension_numbers = #tpu.dot_dimension_numbers<[1], [0], [0], [1], [0, 0, 1, 1], [], []>} : vector<16x16xf32>, vector<16x48xf32>, vector<16x48xf32> -> vector<16x48xf32>
    %c6 = arith.constant 6 : index
    %c0_20 = arith.constant 0 : index
    %c0_21 = arith.constant 0 : index
    %20 = vector.load %arg2[%c6, %c0_20, %c0_21] : memref<7x16x16xf32, #tpu.memory_space<vmem>>, vector<1x16x16xf32>
    %21 = vector.shape_cast %20 : vector<1x16x16xf32> to vector<16x16xf32>
    %cst_22 = arith.constant dense<0.000000e+00> : vector<16x48xf32>
    %22 = tpu.matmul %21, %1, %cst_22 {dimension_numbers = #tpu.dot_dimension_numbers<[1], [0], [0], [1], [0, 0, 1, 1], [], []>} : vector<16x16xf32>, vector<16x48xf32>, vector<16x48xf32> -> vector<16x48xf32>
    %23 = tpu.concatenate %4, %7, %10, %13, %16, %19, %22 in 1 : vector<16x48xf32>, vector<16x48xf32>, vector<16x48xf32>, vector<16x48xf32>, vector<16x48xf32>, vector<16x48xf32>, vector<16x48xf32> -> vector<16x336xf32>
    %24 = arith.truncf %23 : vector<16x336xf32> to vector<16x336xbf16>
    %c0_23 = arith.constant 0 : index
    %c0_24 = arith.constant 0 : index
    %25 = vector.load %arg3[%c0_23, %c0_24] : memref<336x128xbf16, #tpu.memory_space<vmem>>, vector<336x128xbf16>
    %cst_25 = arith.constant dense<0.000000e+00> : vector<16x128xf32>
    %26 = tpu.matmul %24, %25, %cst_25 {dimension_numbers = #tpu.dot_dimension_numbers<[1], [0], [0], [1], [0, 0, 1, 1], [], []>} : vector<16x336xbf16>, vector<336x128xbf16>, vector<16x128xf32> -> vector<16x128xf32>
    %c0_26 = arith.constant 0 : index
    %c0_27 = arith.constant 0 : index
    %c0_28 = arith.constant 0 : index
    %27 = vector.load %arg30[%c0_26, %c0_27, %c0_28] : memref<3x128x128xf32, #tpu.memory_space<vmem>>, vector<1x128x128xf32>
    %28 = vector.shape_cast %27 : vector<1x128x128xf32> to vector<128x128xf32>
    %cst_29 = arith.constant dense<0.000000e+00> : vector<16x128xf32>
    %29 = tpu.matmul %26, %28, %cst_29 {dimension_numbers = #tpu.dot_dimension_numbers<[1], [0], [0], [1], [0, 0, 1, 1], [], []>} : vector<16x128xf32>, vector<128x128xf32>, vector<16x128xf32> -> vector<16x128xf32>
    %cst_30 = arith.constant dense<0.000000e+00> : vector<128xf32>
    %30 = vector.multi_reduction <add>, %29, %cst_30 [0] : vector<16x128xf32> to vector<128xf32>
    %31 = vector.shape_cast %30 : vector<128xf32> to vector<1x128xf32>
    %cst_31 = arith.constant 3.906250e-03 : f32
    %32 = vector.broadcast %cst_31 : f32 to vector<1x128xf32>
    %33 = arith.mulf %31, %32 : vector<1x128xf32>
    %34 = vector.broadcast %33 : vector<1x128xf32> to vector<16x128xf32>
    %35 = arith.subf %26, %34 : vector<16x128xf32>
    %36 = arith.mulf %35, %35 : vector<16x128xf32>
    %cst_32 = arith.constant dense<0.000000e+00> : vector<16x128xf32>
    %37 = tpu.matmul %36, %28, %cst_32 {dimension_numbers = #tpu.dot_dimension_numbers<[1], [0], [0], [1], [0, 0, 1, 1], [], []>} : vector<16x128xf32>, vector<128x128xf32>, vector<16x128xf32> -> vector<16x128xf32>
    %cst_33 = arith.constant dense<0.000000e+00> : vector<128xf32>
    %38 = vector.multi_reduction <add>, %37, %cst_33 [0] : vector<16x128xf32> to vector<128xf32>
    %39 = vector.shape_cast %38 : vector<128xf32> to vector<1x128xf32>
    %cst_34 = arith.constant 3.906250e-03 : f32
    %40 = vector.broadcast %cst_34 : f32 to vector<1x128xf32>
    %41 = arith.mulf %39, %40 : vector<1x128xf32>
    %cst_35 = arith.constant 9.99999974E-6 : f32
    %42 = vector.broadcast %cst_35 : f32 to vector<1x128xf32>
    %43 = arith.addf %41, %42 : vector<1x128xf32>
    %44 = math.rsqrt %43 : vector<1x128xf32>
    %45 = vector.broadcast %44 : vector<1x128xf32> to vector<16x128xf32>
    %46 = arith.mulf %35, %45 : vector<16x128xf32>
    %cst_36 = arith.constant 0.000000e+00 : f32
    %47 = vector.broadcast %cst_36 : f32 to vector<16x128xf32>
    %48 = arith.maximumf %46, %47 : vector<16x128xf32>
    %c0_37 = arith.constant 0 : index
    %c0_38 = arith.constant 0 : index
    %c0_39 = arith.constant 0 : index
    %49 = vector.load %arg4[%c0_37, %c0_38, %c0_39] : memref<4x8x16xf32, #tpu.memory_space<vmem>>, vector<1x8x16xf32>
    %50 = vector.shape_cast %49 : vector<1x8x16xf32> to vector<8x16xf32>
    %cst_40 = arith.constant dense<0.000000e+00> : vector<8x128xf32>
    %51 = tpu.matmul %50, %48, %cst_40 {dimension_numbers = #tpu.dot_dimension_numbers<[1], [0], [0], [1], [0, 0, 1, 1], [], []>} : vector<8x16xf32>, vector<16x128xf32>, vector<8x128xf32> -> vector<8x128xf32>
    %c1_41 = arith.constant 1 : index
    %c0_42 = arith.constant 0 : index
    %c0_43 = arith.constant 0 : index
    %52 = vector.load %arg4[%c1_41, %c0_42, %c0_43] : memref<4x8x16xf32, #tpu.memory_space<vmem>>, vector<1x8x16xf32>
    %53 = vector.shape_cast %52 : vector<1x8x16xf32> to vector<8x16xf32>
    %cst_44 = arith.constant dense<0.000000e+00> : vector<8x128xf32>
    %54 = tpu.matmul %53, %48, %cst_44 {dimension_numbers = #tpu.dot_dimension_numbers<[1], [0], [0], [1], [0, 0, 1, 1], [], []>} : vector<8x16xf32>, vector<16x128xf32>, vector<8x128xf32> -> vector<8x128xf32>
    %c2_45 = arith.constant 2 : index
    %c0_46 = arith.constant 0 : index
    %c0_47 = arith.constant 0 : index
    %55 = vector.load %arg4[%c2_45, %c0_46, %c0_47] : memref<4x8x16xf32, #tpu.memory_space<vmem>>, vector<1x8x16xf32>
    %56 = vector.shape_cast %55 : vector<1x8x16xf32> to vector<8x16xf32>
    %cst_48 = arith.constant dense<0.000000e+00> : vector<8x128xf32>
    %57 = tpu.matmul %56, %48, %cst_48 {dimension_numbers = #tpu.dot_dimension_numbers<[1], [0], [0], [1], [0, 0, 1, 1], [], []>} : vector<8x16xf32>, vector<16x128xf32>, vector<8x128xf32> -> vector<8x128xf32>
    %c3_49 = arith.constant 3 : index
    %c0_50 = arith.constant 0 : index
    %c0_51 = arith.constant 0 : index
    %58 = vector.load %arg4[%c3_49, %c0_50, %c0_51] : memref<4x8x16xf32, #tpu.memory_space<vmem>>, vector<1x8x16xf32>
    %59 = vector.shape_cast %58 : vector<1x8x16xf32> to vector<8x16xf32>
    %cst_52 = arith.constant dense<0.000000e+00> : vector<8x128xf32>
    %60 = tpu.matmul %59, %48, %cst_52 {dimension_numbers = #tpu.dot_dimension_numbers<[1], [0], [0], [1], [0, 0, 1, 1], [], []>} : vector<8x16xf32>, vector<16x128xf32>, vector<8x128xf32> -> vector<8x128xf32>
    %61 = tpu.concatenate %51, %54, %57, %60 in 1 : vector<8x128xf32>, vector<8x128xf32>, vector<8x128xf32>, vector<8x128xf32> -> vector<8x512xf32>
    %62 = arith.truncf %61 : vector<8x512xf32> to vector<8x512xbf16>
    %c0_53 = arith.constant 0 : index
    %c0_54 = arith.constant 0 : index
    %63 = vector.load %arg5[%c0_53, %c0_54] : memref<512x128xbf16, #tpu.memory_space<vmem>>, vector<512x128xbf16>
    %cst_55 = arith.constant dense<0.000000e+00> : vector<8x128xf32>
    %64 = tpu.matmul %62, %63, %cst_55 {dimension_numbers = #tpu.dot_dimension_numbers<[1], [0], [0], [1], [0, 0, 1, 1], [], []>} : vector<8x512xbf16>, vector<512x128xbf16>, vector<8x128xf32> -> vector<8x128xf32>
    %c1_56 = arith.constant 1 : index
    %c0_57 = arith.constant 0 : index
    %c0_58 = arith.constant 0 : index
    %65 = vector.load %arg30[%c1_56, %c0_57, %c0_58] : memref<3x128x128xf32, #tpu.memory_space<vmem>>, vector<1x128x128xf32>
    %66 = vector.shape_cast %65 : vector<1x128x128xf32> to vector<128x128xf32>
    %cst_59 = arith.constant dense<0.000000e+00> : vector<8x128xf32>
    %67 = tpu.matmul %64, %66, %cst_59 {dimension_numbers = #tpu.dot_dimension_numbers<[1], [0], [0], [1], [0, 0, 1, 1], [], []>} : vector<8x128xf32>, vector<128x128xf32>, vector<8x128xf32> -> vector<8x128xf32>
    %cst_60 = arith.constant dense<0.000000e+00> : vector<128xf32>
    %68 = vector.multi_reduction <add>, %67, %cst_60 [0] : vector<8x128xf32> to vector<128xf32>
    %69 = vector.shape_cast %68 : vector<128xf32> to vector<1x128xf32>
    %cst_61 = arith.constant 1.562500e-02 : f32
    %70 = vector.broadcast %cst_61 : f32 to vector<1x128xf32>
    %71 = arith.mulf %69, %70 : vector<1x128xf32>
    %72 = vector.broadcast %71 : vector<1x128xf32> to vector<8x128xf32>
    %73 = arith.subf %64, %72 : vector<8x128xf32>
    %74 = arith.mulf %73, %73 : vector<8x128xf32>
    %cst_62 = arith.constant dense<0.000000e+00> : vector<8x128xf32>
    %75 = tpu.matmul %74, %66, %cst_62 {dimension_numbers = #tpu.dot_dimension_numbers<[1], [0], [0], [1], [0, 0, 1, 1], [], []>} : vector<8x128xf32>, vector<128x128xf32>, vector<8x128xf32> -> vector<8x128xf32>
    %cst_63 = arith.constant dense<0.000000e+00> : vector<128xf32>
    %76 = vector.multi_reduction <add>, %75, %cst_63 [0] : vector<8x128xf32> to vector<128xf32>
    %77 = vector.shape_cast %76 : vector<128xf32> to vector<1x128xf32>
    %cst_64 = arith.constant 1.562500e-02 : f32
    %78 = vector.broadcast %cst_64 : f32 to vector<1x128xf32>
    %79 = arith.mulf %77, %78 : vector<1x128xf32>
    %cst_65 = arith.constant 9.99999974E-6 : f32
    %80 = vector.broadcast %cst_65 : f32 to vector<1x128xf32>
    %81 = arith.addf %79, %80 : vector<1x128xf32>
    %82 = math.rsqrt %81 : vector<1x128xf32>
    %83 = vector.broadcast %82 : vector<1x128xf32> to vector<8x128xf32>
    %84 = arith.mulf %73, %83 : vector<8x128xf32>
    %cst_66 = arith.constant 0.000000e+00 : f32
    %85 = vector.broadcast %cst_66 : f32 to vector<8x128xf32>
    %86 = arith.maximumf %84, %85 : vector<8x128xf32>
    %c0_67 = arith.constant 0 : index
    %c0_68 = arith.constant 0 : index
    %c0_69 = arith.constant 0 : index
    %87 = vector.load %arg6[%c0_67, %c0_68, %c0_69] : memref<4x4x8xf32, #tpu.memory_space<vmem>>, vector<1x4x8xf32>
    %88 = vector.shape_cast %87 : vector<1x4x8xf32> to vector<4x8xf32>
    %cst_70 = arith.constant dense<0.000000e+00> : vector<4x128xf32>
    %89 = tpu.matmul %88, %86, %cst_70 {dimension_numbers = #tpu.dot_dimension_numbers<[1], [0], [0], [1], [0, 0, 1, 1], [], []>} : vector<4x8xf32>, vector<8x128xf32>, vector<4x128xf32> -> vector<4x128xf32>
    %c1_71 = arith.constant 1 : index
    %c0_72 = arith.constant 0 : index
    %c0_73 = arith.constant 0 : index
    %90 = vector.load %arg6[%c1_71, %c0_72, %c0_73] : memref<4x4x8xf32, #tpu.memory_space<vmem>>, vector<1x4x8xf32>
    %91 = vector.shape_cast %90 : vector<1x4x8xf32> to vector<4x8xf32>
    %cst_74 = arith.constant dense<0.000000e+00> : vector<4x128xf32>
    %92 = tpu.matmul %91, %86, %cst_74 {dimension_numbers = #tpu.dot_dimension_numbers<[1], [0], [0], [1], [0, 0, 1, 1], [], []>} : vector<4x8xf32>, vector<8x128xf32>, vector<4x128xf32> -> vector<4x128xf32>
    %c2_75 = arith.constant 2 : index
    %c0_76 = arith.constant 0 : index
    %c0_77 = arith.constant 0 : index
    %93 = vector.load %arg6[%c2_75, %c0_76, %c0_77] : memref<4x4x8xf32, #tpu.memory_space<vmem>>, vector<1x4x8xf32>
    %94 = vector.shape_cast %93 : vector<1x4x8xf32> to vector<4x8xf32>
    %cst_78 = arith.constant dense<0.000000e+00> : vector<4x128xf32>
    %95 = tpu.matmul %94, %86, %cst_78 {dimension_numbers = #tpu.dot_dimension_numbers<[1], [0], [0], [1], [0, 0, 1, 1], [], []>} : vector<4x8xf32>, vector<8x128xf32>, vector<4x128xf32> -> vector<4x128xf32>
    %c3_79 = arith.constant 3 : index
    %c0_80 = arith.constant 0 : index
    %c0_81 = arith.constant 0 : index
    %96 = vector.load %arg6[%c3_79, %c0_80, %c0_81] : memref<4x4x8xf32, #tpu.memory_space<vmem>>, vector<1x4x8xf32>
    %97 = vector.shape_cast %96 : vector<1x4x8xf32> to vector<4x8xf32>
    %cst_82 = arith.constant dense<0.000000e+00> : vector<4x128xf32>
    %98 = tpu.matmul %97, %86, %cst_82 {dimension_numbers = #tpu.dot_dimension_numbers<[1], [0], [0], [1], [0, 0, 1, 1], [], []>} : vector<4x8xf32>, vector<8x128xf32>, vector<4x128xf32> -> vector<4x128xf32>
    %99 = tpu.concatenate %89, %92, %95, %98 in 1 : vector<4x128xf32>, vector<4x128xf32>, vector<4x128xf32>, vector<4x128xf32> -> vector<4x512xf32>
    %100 = arith.truncf %99 : vector<4x512xf32> to vector<4x512xbf16>
    %c0_83 = arith.constant 0 : index
    %c0_84 = arith.constant 0 : index
    %101 = vector.load %arg7[%c0_83, %c0_84] : memref<512x128xbf16, #tpu.memory_space<vmem>>, vector<512x128xbf16>
    %cst_85 = arith.constant dense<0.000000e+00> : vector<4x128xf32>
    %102 = tpu.matmul %100, %101, %cst_85 {dimension_numbers = #tpu.dot_dimension_numbers<[1], [0], [0], [1], [0, 0, 1, 1], [], []>} : vector<4x512xbf16>, vector<512x128xbf16>, vector<4x128xf32> -> vector<4x128xf32>
    %c2_86 = arith.constant 2 : index
    %c0_87 = arith.constant 0 : index
    %c0_88 = arith.constant 0 : index
    %103 = vector.load %arg30[%c2_86, %c0_87, %c0_88] : memref<3x128x128xf32, #tpu.memory_space<vmem>>, vector<1x128x128xf32>
    %104 = vector.shape_cast %103 : vector<1x128x128xf32> to vector<128x128xf32>
    %cst_89 = arith.constant dense<0.000000e+00> : vector<4x128xf32>
    %105 = tpu.matmul %102, %104, %cst_89 {dimension_numbers = #tpu.dot_dimension_numbers<[1], [0], [0], [1], [0, 0, 1, 1], [], []>} : vector<4x128xf32>, vector<128x128xf32>, vector<4x128xf32> -> vector<4x128xf32>
    %cst_90 = arith.constant dense<0.000000e+00> : vector<128xf32>
    %106 = vector.multi_reduction <add>, %105, %cst_90 [0] : vector<4x128xf32> to vector<128xf32>
    %107 = vector.shape_cast %106 : vector<128xf32> to vector<1x128xf32>
    %cst_91 = arith.constant 6.250000e-02 : f32
    %108 = vector.broadcast %cst_91 : f32 to vector<1x128xf32>
    %109 = arith.mulf %107, %108 : vector<1x128xf32>
    %110 = vector.broadcast %109 : vector<1x128xf32> to vector<4x128xf32>
    %111 = arith.subf %102, %110 : vector<4x128xf32>
    %112 = arith.mulf %111, %111 : vector<4x128xf32>
    %cst_92 = arith.constant dense<0.000000e+00> : vector<4x128xf32>
    %113 = tpu.matmul %112, %104, %cst_92 {dimension_numbers = #tpu.dot_dimension_numbers<[1], [0], [0], [1], [0, 0, 1, 1], [], []>} : vector<4x128xf32>, vector<128x128xf32>, vector<4x128xf32> -> vector<4x128xf32>
    %cst_93 = arith.constant dense<0.000000e+00> : vector<128xf32>
    %114 = vector.multi_reduction <add>, %113, %cst_93 [0] : vector<4x128xf32> to vector<128xf32>
    %115 = vector.shape_cast %114 : vector<128xf32> to vector<1x128xf32>
    %cst_94 = arith.constant 6.250000e-02 : f32
    %116 = vector.broadcast %cst_94 : f32 to vector<1x128xf32>
    %117 = arith.mulf %115, %116 : vector<1x128xf32>
    %cst_95 = arith.constant 9.99999974E-6 : f32
    %118 = vector.broadcast %cst_95 : f32 to vector<1x128xf32>
    %119 = arith.addf %117, %118 : vector<1x128xf32>
    %120 = math.rsqrt %119 : vector<1x128xf32>
    %121 = vector.broadcast %120 : vector<1x128xf32> to vector<4x128xf32>
    %122 = arith.mulf %111, %121 : vector<4x128xf32>
    %cst_96 = arith.constant 0.000000e+00 : f32
    %123 = vector.broadcast %cst_96 : f32 to vector<4x128xf32>
    %124 = arith.maximumf %122, %123 : vector<4x128xf32>
    %c0_97 = arith.constant 0 : index
    %c0_98 = arith.constant 0 : index
    %c0_99 = arith.constant 0 : index
    %125 = vector.load %arg8[%c0_97, %c0_98, %c0_99] : memref<3x4x4xf32, #tpu.memory_space<vmem>>, vector<1x4x4xf32>
    %126 = vector.shape_cast %125 : vector<1x4x4xf32> to vector<4x4xf32>
    %cst_100 = arith.constant dense<0.000000e+00> : vector<4x128xf32>
    %127 = tpu.matmul %126, %124, %cst_100 {dimension_numbers = #tpu.dot_dimension_numbers<[1], [0], [0], [1], [0, 0, 1, 1], [], []>} : vector<4x4xf32>, vector<4x128xf32>, vector<4x128xf32> -> vector<4x128xf32>
    %c1_101 = arith.constant 1 : index
    %c0_102 = arith.constant 0 : index
    %c0_103 = arith.constant 0 : index
    %128 = vector.load %arg8[%c1_101, %c0_102, %c0_103] : memref<3x4x4xf32, #tpu.memory_space<vmem>>, vector<1x4x4xf32>
    %129 = vector.shape_cast %128 : vector<1x4x4xf32> to vector<4x4xf32>
    %cst_104 = arith.constant dense<0.000000e+00> : vector<4x128xf32>
    %130 = tpu.matmul %129, %124, %cst_104 {dimension_numbers = #tpu.dot_dimension_numbers<[1], [0], [0], [1], [0, 0, 1, 1], [], []>} : vector<4x4xf32>, vector<4x128xf32>, vector<4x128xf32> -> vector<4x128xf32>
    %c2_105 = arith.constant 2 : index
    %c0_106 = arith.constant 0 : index
    %c0_107 = arith.constant 0 : index
    %131 = vector.load %arg8[%c2_105, %c0_106, %c0_107] : memref<3x4x4xf32, #tpu.memory_space<vmem>>, vector<1x4x4xf32>
    %132 = vector.shape_cast %131 : vector<1x4x4xf32> to vector<4x4xf32>
    %cst_108 = arith.constant dense<0.000000e+00> : vector<4x128xf32>
    %133 = tpu.matmul %132, %124, %cst_108 {dimension_numbers = #tpu.dot_dimension_numbers<[1], [0], [0], [1], [0, 0, 1, 1], [], []>} : vector<4x4xf32>, vector<4x128xf32>, vector<4x128xf32> -> vector<4x128xf32>
    %134 = tpu.concatenate %127, %130, %133 in 1 : vector<4x128xf32>, vector<4x128xf32>, vector<4x128xf32> -> vector<4x384xf32>
    %135 = arith.truncf %134 : vector<4x384xf32> to vector<4x384xbf16>
    %c0_109 = arith.constant 0 : index
    %c0_110 = arith.constant 0 : index
    %136 = vector.load %arg9[%c0_109, %c0_110] : memref<384x128xbf16, #tpu.memory_space<vmem>>, vector<384x128xbf16>
    %cst_111 = arith.constant dense<0.000000e+00> : vector<4x128xf32>
    %137 = tpu.matmul %135, %136, %cst_111 {dimension_numbers = #tpu.dot_dimension_numbers<[1], [0], [0], [1], [0, 0, 1, 1], [], []>} : vector<4x384xbf16>, vector<384x128xbf16>, vector<4x128xf32> -> vector<4x128xf32>
    %c2_112 = arith.constant 2 : index
    %c0_113 = arith.constant 0 : index
    %c0_114 = arith.constant 0 : index
    %138 = vector.load %arg30[%c2_112, %c0_113, %c0_114] : memref<3x128x128xf32, #tpu.memory_space<vmem>>, vector<1x128x128xf32>
    %139 = vector.shape_cast %138 : vector<1x128x128xf32> to vector<128x128xf32>
    %cst_115 = arith.constant dense<0.000000e+00> : vector<4x128xf32>
    %140 = tpu.matmul %137, %139, %cst_115 {dimension_numbers = #tpu.dot_dimension_numbers<[1], [0], [0], [1], [0, 0, 1, 1], [], []>} : vector<4x128xf32>, vector<128x128xf32>, vector<4x128xf32> -> vector<4x128xf32>
    %cst_116 = arith.constant dense<0.000000e+00> : vector<128xf32>
    %141 = vector.multi_reduction <add>, %140, %cst_116 [0] : vector<4x128xf32> to vector<128xf32>
    %142 = vector.shape_cast %141 : vector<128xf32> to vector<1x128xf32>
    %cst_117 = arith.constant 6.250000e-02 : f32
    %143 = vector.broadcast %cst_117 : f32 to vector<1x128xf32>
    %144 = arith.mulf %142, %143 : vector<1x128xf32>
    %145 = vector.broadcast %144 : vector<1x128xf32> to vector<4x128xf32>
    %146 = arith.subf %137, %145 : vector<4x128xf32>
    %147 = arith.mulf %146, %146 : vector<4x128xf32>
    %cst_118 = arith.constant dense<0.000000e+00> : vector<4x128xf32>
    %148 = tpu.matmul %147, %139, %cst_118 {dimension_numbers = #tpu.dot_dimension_numbers<[1], [0], [0], [1], [0, 0, 1, 1], [], []>} : vector<4x128xf32>, vector<128x128xf32>, vector<4x128xf32> -> vector<4x128xf32>
    %cst_119 = arith.constant dense<0.000000e+00> : vector<128xf32>
    %149 = vector.multi_reduction <add>, %148, %cst_119 [0] : vector<4x128xf32> to vector<128xf32>
    %150 = vector.shape_cast %149 : vector<128xf32> to vector<1x128xf32>
    %cst_120 = arith.constant 6.250000e-02 : f32
    %151 = vector.broadcast %cst_120 : f32 to vector<1x128xf32>
    %152 = arith.mulf %150, %151 : vector<1x128xf32>
    %cst_121 = arith.constant 9.99999974E-6 : f32
    %153 = vector.broadcast %cst_121 : f32 to vector<1x128xf32>
    %154 = arith.addf %152, %153 : vector<1x128xf32>
    %155 = math.rsqrt %154 : vector<1x128xf32>
    %156 = vector.broadcast %155 : vector<1x128xf32> to vector<4x128xf32>
    %157 = arith.mulf %146, %156 : vector<4x128xf32>
    %cst_122 = arith.constant 0.000000e+00 : f32
    %158 = vector.broadcast %cst_122 : f32 to vector<4x128xf32>
    %159 = arith.maximumf %157, %158 : vector<4x128xf32>
    %c0_123 = arith.constant 0 : index
    %c0_124 = arith.constant 0 : index
    %c0_125 = arith.constant 0 : index
    %160 = vector.load %arg10[%c0_123, %c0_124, %c0_125] : memref<3x4x4xf32, #tpu.memory_space<vmem>>, vector<1x4x4xf32>
    %161 = vector.shape_cast %160 : vector<1x4x4xf32> to vector<4x4xf32>
    %cst_126 = arith.constant dense<0.000000e+00> : vector<4x128xf32>
    %162 = tpu.matmul %161, %159, %cst_126 {dimension_numbers = #tpu.dot_dimension_numbers<[1], [0], [0], [1], [0, 0, 1, 1], [], []>} : vector<4x4xf32>, vector<4x128xf32>, vector<4x128xf32> -> vector<4x128xf32>
    %c1_127 = arith.constant 1 : index
    %c0_128 = arith.constant 0 : index
    %c0_129 = arith.constant 0 : index
    %163 = vector.load %arg10[%c1_127, %c0_128, %c0_129] : memref<3x4x4xf32, #tpu.memory_space<vmem>>, vector<1x4x4xf32>
    %164 = vector.shape_cast %163 : vector<1x4x4xf32> to vector<4x4xf32>
    %cst_130 = arith.constant dense<0.000000e+00> : vector<4x128xf32>
    %165 = tpu.matmul %164, %159, %cst_130 {dimension_numbers = #tpu.dot_dimension_numbers<[1], [0], [0], [1], [0, 0, 1, 1], [], []>} : vector<4x4xf32>, vector<4x128xf32>, vector<4x128xf32> -> vector<4x128xf32>
    %c2_131 = arith.constant 2 : index
    %c0_132 = arith.constant 0 : index
    %c0_133 = arith.constant 0 : index
    %166 = vector.load %arg10[%c2_131, %c0_132, %c0_133] : memref<3x4x4xf32, #tpu.memory_space<vmem>>, vector<1x4x4xf32>
    %167 = vector.shape_cast %166 : vector<1x4x4xf32> to vector<4x4xf32>
    %cst_134 = arith.constant dense<0.000000e+00> : vector<4x128xf32>
    %168 = tpu.matmul %167, %159, %cst_134 {dimension_numbers = #tpu.dot_dimension_numbers<[1], [0], [0], [1], [0, 0, 1, 1], [], []>} : vector<4x4xf32>, vector<4x128xf32>, vector<4x128xf32> -> vector<4x128xf32>
    %169 = tpu.concatenate %162, %165, %168 in 1 : vector<4x128xf32>, vector<4x128xf32>, vector<4x128xf32> -> vector<4x384xf32>
    %170 = arith.truncf %169 : vector<4x384xf32> to vector<4x384xbf16>
    %c0_135 = arith.constant 0 : index
    %c0_136 = arith.constant 0 : index
    %171 = vector.load %arg11[%c0_135, %c0_136] : memref<384x128xbf16, #tpu.memory_space<vmem>>, vector<384x128xbf16>
    %cst_137 = arith.constant dense<0.000000e+00> : vector<4x128xf32>
    %172 = tpu.matmul %170, %171, %cst_137 {dimension_numbers = #tpu.dot_dimension_numbers<[1], [0], [0], [1], [0, 0, 1, 1], [], []>} : vector<4x384xbf16>, vector<384x128xbf16>, vector<4x128xf32> -> vector<4x128xf32>
    %c2_138 = arith.constant 2 : index
    %c0_139 = arith.constant 0 : index
    %c0_140 = arith.constant 0 : index
    %173 = vector.load %arg30[%c2_138, %c0_139, %c0_140] : memref<3x128x128xf32, #tpu.memory_space<vmem>>, vector<1x128x128xf32>
    %174 = vector.shape_cast %173 : vector<1x128x128xf32> to vector<128x128xf32>
    %cst_141 = arith.constant dense<0.000000e+00> : vector<4x128xf32>
    %175 = tpu.matmul %172, %174, %cst_141 {dimension_numbers = #tpu.dot_dimension_numbers<[1], [0], [0], [1], [0, 0, 1, 1], [], []>} : vector<4x128xf32>, vector<128x128xf32>, vector<4x128xf32> -> vector<4x128xf32>
    %cst_142 = arith.constant dense<0.000000e+00> : vector<128xf32>
    %176 = vector.multi_reduction <add>, %175, %cst_142 [0] : vector<4x128xf32> to vector<128xf32>
    %177 = vector.shape_cast %176 : vector<128xf32> to vector<1x128xf32>
    %cst_143 = arith.constant 6.250000e-02 : f32
    %178 = vector.broadcast %cst_143 : f32 to vector<1x128xf32>
    %179 = arith.mulf %177, %178 : vector<1x128xf32>
    %180 = vector.broadcast %179 : vector<1x128xf32> to vector<4x128xf32>
    %181 = arith.subf %172, %180 : vector<4x128xf32>
    %182 = arith.mulf %181, %181 : vector<4x128xf32>
    %cst_144 = arith.constant dense<0.000000e+00> : vector<4x128xf32>
    %183 = tpu.matmul %182, %174, %cst_144 {dimension_numbers = #tpu.dot_dimension_numbers<[1], [0], [0], [1], [0, 0, 1, 1], [], []>} : vector<4x128xf32>, vector<128x128xf32>, vector<4x128xf32> -> vector<4x128xf32>
    %cst_145 = arith.constant dense<0.000000e+00> : vector<128xf32>
    %184 = vector.multi_reduction <add>, %183, %cst_145 [0] : vector<4x128xf32> to vector<128xf32>
    %185 = vector.shape_cast %184 : vector<128xf32> to vector<1x128xf32>
    %cst_146 = arith.constant 6.250000e-02 : f32
    %186 = vector.broadcast %cst_146 : f32 to vector<1x128xf32>
    %187 = arith.mulf %185, %186 : vector<1x128xf32>
    %cst_147 = arith.constant 9.99999974E-6 : f32
    %188 = vector.broadcast %cst_147 : f32 to vector<1x128xf32>
    %189 = arith.addf %187, %188 : vector<1x128xf32>
    %190 = math.rsqrt %189 : vector<1x128xf32>
    %191 = vector.broadcast %190 : vector<1x128xf32> to vector<4x128xf32>
    %192 = arith.mulf %181, %191 : vector<4x128xf32>
    %193 = arith.addf %192, %124 : vector<4x128xf32>
    %c0_148 = arith.constant 0 : index
    %c0_149 = arith.constant 0 : index
    %c0_150 = arith.constant 0 : index
    %194 = vector.load %arg12[%c0_148, %c0_149, %c0_150] : memref<3x4x4xf32, #tpu.memory_space<vmem>>, vector<1x4x4xf32>
    %195 = vector.shape_cast %194 : vector<1x4x4xf32> to vector<4x4xf32>
    %cst_151 = arith.constant dense<0.000000e+00> : vector<4x128xf32>
    %196 = tpu.matmul %195, %193, %cst_151 {dimension_numbers = #tpu.dot_dimension_numbers<[1], [0], [0], [1], [0, 0, 1, 1], [], []>} : vector<4x4xf32>, vector<4x128xf32>, vector<4x128xf32> -> vector<4x128xf32>
    %c1_152 = arith.constant 1 : index
    %c0_153 = arith.constant 0 : index
    %c0_154 = arith.constant 0 : index
    %197 = vector.load %arg12[%c1_152, %c0_153, %c0_154] : memref<3x4x4xf32, #tpu.memory_space<vmem>>, vector<1x4x4xf32>
    %198 = vector.shape_cast %197 : vector<1x4x4xf32> to vector<4x4xf32>
    %cst_155 = arith.constant dense<0.000000e+00> : vector<4x128xf32>
    %199 = tpu.matmul %198, %193, %cst_155 {dimension_numbers = #tpu.dot_dimension_numbers<[1], [0], [0], [1], [0, 0, 1, 1], [], []>} : vector<4x4xf32>, vector<4x128xf32>, vector<4x128xf32> -> vector<4x128xf32>
    %c2_156 = arith.constant 2 : index
    %c0_157 = arith.constant 0 : index
    %c0_158 = arith.constant 0 : index
    %200 = vector.load %arg12[%c2_156, %c0_157, %c0_158] : memref<3x4x4xf32, #tpu.memory_space<vmem>>, vector<1x4x4xf32>
    %201 = vector.shape_cast %200 : vector<1x4x4xf32> to vector<4x4xf32>
    %cst_159 = arith.constant dense<0.000000e+00> : vector<4x128xf32>
    %202 = tpu.matmul %201, %193, %cst_159 {dimension_numbers = #tpu.dot_dimension_numbers<[1], [0], [0], [1], [0, 0, 1, 1], [], []>} : vector<4x4xf32>, vector<4x128xf32>, vector<4x128xf32> -> vector<4x128xf32>
    %203 = tpu.concatenate %196, %199, %202 in 1 : vector<4x128xf32>, vector<4x128xf32>, vector<4x128xf32> -> vector<4x384xf32>
    %204 = arith.truncf %203 : vector<4x384xf32> to vector<4x384xbf16>
    %c0_160 = arith.constant 0 : index
    %c0_161 = arith.constant 0 : index
    %205 = vector.load %arg13[%c0_160, %c0_161] : memref<384x128xbf16, #tpu.memory_space<vmem>>, vector<384x128xbf16>
    %cst_162 = arith.constant dense<0.000000e+00> : vector<4x128xf32>
    %206 = tpu.matmul %204, %205, %cst_162 {dimension_numbers = #tpu.dot_dimension_numbers<[1], [0], [0], [1], [0, 0, 1, 1], [], []>} : vector<4x384xbf16>, vector<384x128xbf16>, vector<4x128xf32> -> vector<4x128xf32>
    %c2_163 = arith.constant 2 : index
    %c0_164 = arith.constant 0 : index
    %c0_165 = arith.constant 0 : index
    %207 = vector.load %arg30[%c2_163, %c0_164, %c0_165] : memref<3x128x128xf32, #tpu.memory_space<vmem>>, vector<1x128x128xf32>
    %208 = vector.shape_cast %207 : vector<1x128x128xf32> to vector<128x128xf32>
    %cst_166 = arith.constant dense<0.000000e+00> : vector<4x128xf32>
    %209 = tpu.matmul %206, %208, %cst_166 {dimension_numbers = #tpu.dot_dimension_numbers<[1], [0], [0], [1], [0, 0, 1, 1], [], []>} : vector<4x128xf32>, vector<128x128xf32>, vector<4x128xf32> -> vector<4x128xf32>
    %cst_167 = arith.constant dense<0.000000e+00> : vector<128xf32>
    %210 = vector.multi_reduction <add>, %209, %cst_167 [0] : vector<4x128xf32> to vector<128xf32>
    %211 = vector.shape_cast %210 : vector<128xf32> to vector<1x128xf32>
    %cst_168 = arith.constant 6.250000e-02 : f32
    %212 = vector.broadcast %cst_168 : f32 to vector<1x128xf32>
    %213 = arith.mulf %211, %212 : vector<1x128xf32>
    %214 = vector.broadcast %213 : vector<1x128xf32> to vector<4x128xf32>
    %215 = arith.subf %206, %214 : vector<4x128xf32>
    %216 = arith.mulf %215, %215 : vector<4x128xf32>
    %cst_169 = arith.constant dense<0.000000e+00> : vector<4x128xf32>
    %217 = tpu.matmul %216, %208, %cst_169 {dimension_numbers = #tpu.dot_dimension_numbers<[1], [0], [0], [1], [0, 0, 1, 1], [], []>} : vector<4x128xf32>, vector<128x128xf32>, vector<4x128xf32> -> vector<4x128xf32>
    %cst_170 = arith.constant dense<0.000000e+00> : vector<128xf32>
    %218 = vector.multi_reduction <add>, %217, %cst_170 [0] : vector<4x128xf32> to vector<128xf32>
    %219 = vector.shape_cast %218 : vector<128xf32> to vector<1x128xf32>
    %cst_171 = arith.constant 6.250000e-02 : f32
    %220 = vector.broadcast %cst_171 : f32 to vector<1x128xf32>
    %221 = arith.mulf %219, %220 : vector<1x128xf32>
    %cst_172 = arith.constant 9.99999974E-6 : f32
    %222 = vector.broadcast %cst_172 : f32 to vector<1x128xf32>
    %223 = arith.addf %221, %222 : vector<1x128xf32>
    %224 = math.rsqrt %223 : vector<1x128xf32>
    %225 = vector.broadcast %224 : vector<1x128xf32> to vector<4x128xf32>
    %226 = arith.mulf %215, %225 : vector<4x128xf32>
    %cst_173 = arith.constant 0.000000e+00 : f32
    %227 = vector.broadcast %cst_173 : f32 to vector<4x128xf32>
    %228 = arith.maximumf %226, %227 : vector<4x128xf32>
    %c0_174 = arith.constant 0 : index
    %c0_175 = arith.constant 0 : index
    %c0_176 = arith.constant 0 : index
    %229 = vector.load %arg14[%c0_174, %c0_175, %c0_176] : memref<3x4x4xf32, #tpu.memory_space<vmem>>, vector<1x4x4xf32>
    %230 = vector.shape_cast %229 : vector<1x4x4xf32> to vector<4x4xf32>
    %cst_177 = arith.constant dense<0.000000e+00> : vector<4x128xf32>
    %231 = tpu.matmul %230, %228, %cst_177 {dimension_numbers = #tpu.dot_dimension_numbers<[1], [0], [0], [1], [0, 0, 1, 1], [], []>} : vector<4x4xf32>, vector<4x128xf32>, vector<4x128xf32> -> vector<4x128xf32>
    %c1_178 = arith.constant 1 : index
    %c0_179 = arith.constant 0 : index
    %c0_180 = arith.constant 0 : index
    %232 = vector.load %arg14[%c1_178, %c0_179, %c0_180] : memref<3x4x4xf32, #tpu.memory_space<vmem>>, vector<1x4x4xf32>
    %233 = vector.shape_cast %232 : vector<1x4x4xf32> to vector<4x4xf32>
    %cst_181 = arith.constant dense<0.000000e+00> : vector<4x128xf32>
    %234 = tpu.matmul %233, %228, %cst_181 {dimension_numbers = #tpu.dot_dimension_numbers<[1], [0], [0], [1], [0, 0, 1, 1], [], []>} : vector<4x4xf32>, vector<4x128xf32>, vector<4x128xf32> -> vector<4x128xf32>
    %c2_182 = arith.constant 2 : index
    %c0_183 = arith.constant 0 : index
    %c0_184 = arith.constant 0 : index
    %235 = vector.load %arg14[%c2_182, %c0_183, %c0_184] : memref<3x4x4xf32, #tpu.memory_space<vmem>>, vector<1x4x4xf32>
    %236 = vector.shape_cast %235 : vector<1x4x4xf32> to vector<4x4xf32>
    %cst_185 = arith.constant dense<0.000000e+00> : vector<4x128xf32>
    %237 = tpu.matmul %236, %228, %cst_185 {dimension_numbers = #tpu.dot_dimension_numbers<[1], [0], [0], [1], [0, 0, 1, 1], [], []>} : vector<4x4xf32>, vector<4x128xf32>, vector<4x128xf32> -> vector<4x128xf32>
    %238 = tpu.concatenate %231, %234, %237 in 1 : vector<4x128xf32>, vector<4x128xf32>, vector<4x128xf32> -> vector<4x384xf32>
    %239 = arith.truncf %238 : vector<4x384xf32> to vector<4x384xbf16>
    %c0_186 = arith.constant 0 : index
    %c0_187 = arith.constant 0 : index
    %240 = vector.load %arg15[%c0_186, %c0_187] : memref<384x128xbf16, #tpu.memory_space<vmem>>, vector<384x128xbf16>
    %cst_188 = arith.constant dense<0.000000e+00> : vector<4x128xf32>
    %241 = tpu.matmul %239, %240, %cst_188 {dimension_numbers = #tpu.dot_dimension_numbers<[1], [0], [0], [1], [0, 0, 1, 1], [], []>} : vector<4x384xbf16>, vector<384x128xbf16>, vector<4x128xf32> -> vector<4x128xf32>
    %c2_189 = arith.constant 2 : index
    %c0_190 = arith.constant 0 : index
    %c0_191 = arith.constant 0 : index
    %242 = vector.load %arg30[%c2_189, %c0_190, %c0_191] : memref<3x128x128xf32, #tpu.memory_space<vmem>>, vector<1x128x128xf32>
    %243 = vector.shape_cast %242 : vector<1x128x128xf32> to vector<128x128xf32>
    %cst_192 = arith.constant dense<0.000000e+00> : vector<4x128xf32>
    %244 = tpu.matmul %241, %243, %cst_192 {dimension_numbers = #tpu.dot_dimension_numbers<[1], [0], [0], [1], [0, 0, 1, 1], [], []>} : vector<4x128xf32>, vector<128x128xf32>, vector<4x128xf32> -> vector<4x128xf32>
    %cst_193 = arith.constant dense<0.000000e+00> : vector<128xf32>
    %245 = vector.multi_reduction <add>, %244, %cst_193 [0] : vector<4x128xf32> to vector<128xf32>
    %246 = vector.shape_cast %245 : vector<128xf32> to vector<1x128xf32>
    %cst_194 = arith.constant 6.250000e-02 : f32
    %247 = vector.broadcast %cst_194 : f32 to vector<1x128xf32>
    %248 = arith.mulf %246, %247 : vector<1x128xf32>
    %249 = vector.broadcast %248 : vector<1x128xf32> to vector<4x128xf32>
    %250 = arith.subf %241, %249 : vector<4x128xf32>
    %251 = arith.mulf %250, %250 : vector<4x128xf32>
    %cst_195 = arith.constant dense<0.000000e+00> : vector<4x128xf32>
    %252 = tpu.matmul %251, %243, %cst_195 {dimension_numbers = #tpu.dot_dimension_numbers<[1], [0], [0], [1], [0, 0, 1, 1], [], []>} : vector<4x128xf32>, vector<128x128xf32>, vector<4x128xf32> -> vector<4x128xf32>
    %cst_196 = arith.constant dense<0.000000e+00> : vector<128xf32>
    %253 = vector.multi_reduction <add>, %252, %cst_196 [0] : vector<4x128xf32> to vector<128xf32>
    %254 = vector.shape_cast %253 : vector<128xf32> to vector<1x128xf32>
    %cst_197 = arith.constant 6.250000e-02 : f32
    %255 = vector.broadcast %cst_197 : f32 to vector<1x128xf32>
    %256 = arith.mulf %254, %255 : vector<1x128xf32>
    %cst_198 = arith.constant 9.99999974E-6 : f32
    %257 = vector.broadcast %cst_198 : f32 to vector<1x128xf32>
    %258 = arith.addf %256, %257 : vector<1x128xf32>
    %259 = math.rsqrt %258 : vector<1x128xf32>
    %260 = vector.broadcast %259 : vector<1x128xf32> to vector<4x128xf32>
    %261 = arith.mulf %250, %260 : vector<4x128xf32>
    %262 = arith.addf %261, %193 : vector<4x128xf32>
    %c0_199 = arith.constant 0 : index
    %c0_200 = arith.constant 0 : index
    %c0_201 = arith.constant 0 : index
    %263 = vector.load %arg16[%c0_199, %c0_200, %c0_201] : memref<3x4x4xf32, #tpu.memory_space<vmem>>, vector<1x4x4xf32>
    %264 = vector.shape_cast %263 : vector<1x4x4xf32> to vector<4x4xf32>
    %cst_202 = arith.constant dense<0.000000e+00> : vector<4x128xf32>
    %265 = tpu.matmul %264, %262, %cst_202 {dimension_numbers = #tpu.dot_dimension_numbers<[1], [0], [0], [1], [0, 0, 1, 1], [], []>} : vector<4x4xf32>, vector<4x128xf32>, vector<4x128xf32> -> vector<4x128xf32>
    %c1_203 = arith.constant 1 : index
    %c0_204 = arith.constant 0 : index
    %c0_205 = arith.constant 0 : index
    %266 = vector.load %arg16[%c1_203, %c0_204, %c0_205] : memref<3x4x4xf32, #tpu.memory_space<vmem>>, vector<1x4x4xf32>
    %267 = vector.shape_cast %266 : vector<1x4x4xf32> to vector<4x4xf32>
    %cst_206 = arith.constant dense<0.000000e+00> : vector<4x128xf32>
    %268 = tpu.matmul %267, %262, %cst_206 {dimension_numbers = #tpu.dot_dimension_numbers<[1], [0], [0], [1], [0, 0, 1, 1], [], []>} : vector<4x4xf32>, vector<4x128xf32>, vector<4x128xf32> -> vector<4x128xf32>
    %c2_207 = arith.constant 2 : index
    %c0_208 = arith.constant 0 : index
    %c0_209 = arith.constant 0 : index
    %269 = vector.load %arg16[%c2_207, %c0_208, %c0_209] : memref<3x4x4xf32, #tpu.memory_space<vmem>>, vector<1x4x4xf32>
    %270 = vector.shape_cast %269 : vector<1x4x4xf32> to vector<4x4xf32>
    %cst_210 = arith.constant dense<0.000000e+00> : vector<4x128xf32>
    %271 = tpu.matmul %270, %262, %cst_210 {dimension_numbers = #tpu.dot_dimension_numbers<[1], [0], [0], [1], [0, 0, 1, 1], [], []>} : vector<4x4xf32>, vector<4x128xf32>, vector<4x128xf32> -> vector<4x128xf32>
    %272 = tpu.concatenate %265, %268, %271 in 1 : vector<4x128xf32>, vector<4x128xf32>, vector<4x128xf32> -> vector<4x384xf32>
    %273 = arith.truncf %272 : vector<4x384xf32> to vector<4x384xbf16>
    %c0_211 = arith.constant 0 : index
    %c0_212 = arith.constant 0 : index
    %274 = vector.load %arg17[%c0_211, %c0_212] : memref<384x128xbf16, #tpu.memory_space<vmem>>, vector<384x128xbf16>
    %cst_213 = arith.constant dense<0.000000e+00> : vector<4x128xf32>
    %275 = tpu.matmul %273, %274, %cst_213 {dimension_numbers = #tpu.dot_dimension_numbers<[1], [0], [0], [1], [0, 0, 1, 1], [], []>} : vector<4x384xbf16>, vector<384x128xbf16>, vector<4x128xf32> -> vector<4x128xf32>
    %c2_214 = arith.constant 2 : index
    %c0_215 = arith.constant 0 : index
    %c0_216 = arith.constant 0 : index
    %276 = vector.load %arg30[%c2_214, %c0_215, %c0_216] : memref<3x128x128xf32, #tpu.memory_space<vmem>>, vector<1x128x128xf32>
    %277 = vector.shape_cast %276 : vector<1x128x128xf32> to vector<128x128xf32>
    %cst_217 = arith.constant dense<0.000000e+00> : vector<4x128xf32>
    %278 = tpu.matmul %275, %277, %cst_217 {dimension_numbers = #tpu.dot_dimension_numbers<[1], [0], [0], [1], [0, 0, 1, 1], [], []>} : vector<4x128xf32>, vector<128x128xf32>, vector<4x128xf32> -> vector<4x128xf32>
    %cst_218 = arith.constant dense<0.000000e+00> : vector<128xf32>
    %279 = vector.multi_reduction <add>, %278, %cst_218 [0] : vector<4x128xf32> to vector<128xf32>
    %280 = vector.shape_cast %279 : vector<128xf32> to vector<1x128xf32>
    %cst_219 = arith.constant 6.250000e-02 : f32
    %281 = vector.broadcast %cst_219 : f32 to vector<1x128xf32>
    %282 = arith.mulf %280, %281 : vector<1x128xf32>
    %283 = vector.broadcast %282 : vector<1x128xf32> to vector<4x128xf32>
    %284 = arith.subf %275, %283 : vector<4x128xf32>
    %285 = arith.mulf %284, %284 : vector<4x128xf32>
    %cst_220 = arith.constant dense<0.000000e+00> : vector<4x128xf32>
    %286 = tpu.matmul %285, %277, %cst_220 {dimension_numbers = #tpu.dot_dimension_numbers<[1], [0], [0], [1], [0, 0, 1, 1], [], []>} : vector<4x128xf32>, vector<128x128xf32>, vector<4x128xf32> -> vector<4x128xf32>
    %cst_221 = arith.constant dense<0.000000e+00> : vector<128xf32>
    %287 = vector.multi_reduction <add>, %286, %cst_221 [0] : vector<4x128xf32> to vector<128xf32>
    %288 = vector.shape_cast %287 : vector<128xf32> to vector<1x128xf32>
    %cst_222 = arith.constant 6.250000e-02 : f32
    %289 = vector.broadcast %cst_222 : f32 to vector<1x128xf32>
    %290 = arith.mulf %288, %289 : vector<1x128xf32>
    %cst_223 = arith.constant 9.99999974E-6 : f32
    %291 = vector.broadcast %cst_223 : f32 to vector<1x128xf32>
    %292 = arith.addf %290, %291 : vector<1x128xf32>
    %293 = math.rsqrt %292 : vector<1x128xf32>
    %294 = vector.broadcast %293 : vector<1x128xf32> to vector<4x128xf32>
    %295 = arith.mulf %284, %294 : vector<4x128xf32>
    %cst_224 = arith.constant 0.000000e+00 : f32
    %296 = vector.broadcast %cst_224 : f32 to vector<4x128xf32>
    %297 = arith.maximumf %295, %296 : vector<4x128xf32>
    %c0_225 = arith.constant 0 : index
    %c0_226 = arith.constant 0 : index
    %c0_227 = arith.constant 0 : index
    %298 = vector.load %arg18[%c0_225, %c0_226, %c0_227] : memref<3x4x4xf32, #tpu.memory_space<vmem>>, vector<1x4x4xf32>
    %299 = vector.shape_cast %298 : vector<1x4x4xf32> to vector<4x4xf32>
    %cst_228 = arith.constant dense<0.000000e+00> : vector<4x128xf32>
    %300 = tpu.matmul %299, %297, %cst_228 {dimension_numbers = #tpu.dot_dimension_numbers<[1], [0], [0], [1], [0, 0, 1, 1], [], []>} : vector<4x4xf32>, vector<4x128xf32>, vector<4x128xf32> -> vector<4x128xf32>
    %c1_229 = arith.constant 1 : index
    %c0_230 = arith.constant 0 : index
    %c0_231 = arith.constant 0 : index
    %301 = vector.load %arg18[%c1_229, %c0_230, %c0_231] : memref<3x4x4xf32, #tpu.memory_space<vmem>>, vector<1x4x4xf32>
    %302 = vector.shape_cast %301 : vector<1x4x4xf32> to vector<4x4xf32>
    %cst_232 = arith.constant dense<0.000000e+00> : vector<4x128xf32>
    %303 = tpu.matmul %302, %297, %cst_232 {dimension_numbers = #tpu.dot_dimension_numbers<[1], [0], [0], [1], [0, 0, 1, 1], [], []>} : vector<4x4xf32>, vector<4x128xf32>, vector<4x128xf32> -> vector<4x128xf32>
    %c2_233 = arith.constant 2 : index
    %c0_234 = arith.constant 0 : index
    %c0_235 = arith.constant 0 : index
    %304 = vector.load %arg18[%c2_233, %c0_234, %c0_235] : memref<3x4x4xf32, #tpu.memory_space<vmem>>, vector<1x4x4xf32>
    %305 = vector.shape_cast %304 : vector<1x4x4xf32> to vector<4x4xf32>
    %cst_236 = arith.constant dense<0.000000e+00> : vector<4x128xf32>
    %306 = tpu.matmul %305, %297, %cst_236 {dimension_numbers = #tpu.dot_dimension_numbers<[1], [0], [0], [1], [0, 0, 1, 1], [], []>} : vector<4x4xf32>, vector<4x128xf32>, vector<4x128xf32> -> vector<4x128xf32>
    %307 = tpu.concatenate %300, %303, %306 in 1 : vector<4x128xf32>, vector<4x128xf32>, vector<4x128xf32> -> vector<4x384xf32>
    %308 = arith.truncf %307 : vector<4x384xf32> to vector<4x384xbf16>
    %c0_237 = arith.constant 0 : index
    %c0_238 = arith.constant 0 : index
    %309 = vector.load %arg19[%c0_237, %c0_238] : memref<384x128xbf16, #tpu.memory_space<vmem>>, vector<384x128xbf16>
    %cst_239 = arith.constant dense<0.000000e+00> : vector<4x128xf32>
    %310 = tpu.matmul %308, %309, %cst_239 {dimension_numbers = #tpu.dot_dimension_numbers<[1], [0], [0], [1], [0, 0, 1, 1], [], []>} : vector<4x384xbf16>, vector<384x128xbf16>, vector<4x128xf32> -> vector<4x128xf32>
    %c2_240 = arith.constant 2 : index
    %c0_241 = arith.constant 0 : index
    %c0_242 = arith.constant 0 : index
    %311 = vector.load %arg30[%c2_240, %c0_241, %c0_242] : memref<3x128x128xf32, #tpu.memory_space<vmem>>, vector<1x128x128xf32>
    %312 = vector.shape_cast %311 : vector<1x128x128xf32> to vector<128x128xf32>
    %cst_243 = arith.constant dense<0.000000e+00> : vector<4x128xf32>
    %313 = tpu.matmul %310, %312, %cst_243 {dimension_numbers = #tpu.dot_dimension_numbers<[1], [0], [0], [1], [0, 0, 1, 1], [], []>} : vector<4x128xf32>, vector<128x128xf32>, vector<4x128xf32> -> vector<4x128xf32>
    %cst_244 = arith.constant dense<0.000000e+00> : vector<128xf32>
    %314 = vector.multi_reduction <add>, %313, %cst_244 [0] : vector<4x128xf32> to vector<128xf32>
    %315 = vector.shape_cast %314 : vector<128xf32> to vector<1x128xf32>
    %cst_245 = arith.constant 6.250000e-02 : f32
    %316 = vector.broadcast %cst_245 : f32 to vector<1x128xf32>
    %317 = arith.mulf %315, %316 : vector<1x128xf32>
    %318 = vector.broadcast %317 : vector<1x128xf32> to vector<4x128xf32>
    %319 = arith.subf %310, %318 : vector<4x128xf32>
    %320 = arith.mulf %319, %319 : vector<4x128xf32>
    %cst_246 = arith.constant dense<0.000000e+00> : vector<4x128xf32>
    %321 = tpu.matmul %320, %312, %cst_246 {dimension_numbers = #tpu.dot_dimension_numbers<[1], [0], [0], [1], [0, 0, 1, 1], [], []>} : vector<4x128xf32>, vector<128x128xf32>, vector<4x128xf32> -> vector<4x128xf32>
    %cst_247 = arith.constant dense<0.000000e+00> : vector<128xf32>
    %322 = vector.multi_reduction <add>, %321, %cst_247 [0] : vector<4x128xf32> to vector<128xf32>
    %323 = vector.shape_cast %322 : vector<128xf32> to vector<1x128xf32>
    %cst_248 = arith.constant 6.250000e-02 : f32
    %324 = vector.broadcast %cst_248 : f32 to vector<1x128xf32>
    %325 = arith.mulf %323, %324 : vector<1x128xf32>
    %cst_249 = arith.constant 9.99999974E-6 : f32
    %326 = vector.broadcast %cst_249 : f32 to vector<1x128xf32>
    %327 = arith.addf %325, %326 : vector<1x128xf32>
    %328 = math.rsqrt %327 : vector<1x128xf32>
    %329 = vector.broadcast %328 : vector<1x128xf32> to vector<4x128xf32>
    %330 = arith.mulf %319, %329 : vector<4x128xf32>
    %331 = arith.addf %330, %262 : vector<4x128xf32>
    %c0_250 = arith.constant 0 : index
    %c0_251 = arith.constant 0 : index
    %c0_252 = arith.constant 0 : index
    %332 = vector.load %arg20[%c0_250, %c0_251, %c0_252] : memref<3x4x4xf32, #tpu.memory_space<vmem>>, vector<1x4x4xf32>
    %333 = vector.shape_cast %332 : vector<1x4x4xf32> to vector<4x4xf32>
    %cst_253 = arith.constant dense<0.000000e+00> : vector<4x128xf32>
    %334 = tpu.matmul %333, %331, %cst_253 {dimension_numbers = #tpu.dot_dimension_numbers<[1], [0], [0], [1], [0, 0, 1, 1], [], []>} : vector<4x4xf32>, vector<4x128xf32>, vector<4x128xf32> -> vector<4x128xf32>
    %c1_254 = arith.constant 1 : index
    %c0_255 = arith.constant 0 : index
    %c0_256 = arith.constant 0 : index
    %335 = vector.load %arg20[%c1_254, %c0_255, %c0_256] : memref<3x4x4xf32, #tpu.memory_space<vmem>>, vector<1x4x4xf32>
    %336 = vector.shape_cast %335 : vector<1x4x4xf32> to vector<4x4xf32>
    %cst_257 = arith.constant dense<0.000000e+00> : vector<4x128xf32>
    %337 = tpu.matmul %336, %331, %cst_257 {dimension_numbers = #tpu.dot_dimension_numbers<[1], [0], [0], [1], [0, 0, 1, 1], [], []>} : vector<4x4xf32>, vector<4x128xf32>, vector<4x128xf32> -> vector<4x128xf32>
    %c2_258 = arith.constant 2 : index
    %c0_259 = arith.constant 0 : index
    %c0_260 = arith.constant 0 : index
    %338 = vector.load %arg20[%c2_258, %c0_259, %c0_260] : memref<3x4x4xf32, #tpu.memory_space<vmem>>, vector<1x4x4xf32>
    %339 = vector.shape_cast %338 : vector<1x4x4xf32> to vector<4x4xf32>
    %cst_261 = arith.constant dense<0.000000e+00> : vector<4x128xf32>
    %340 = tpu.matmul %339, %331, %cst_261 {dimension_numbers = #tpu.dot_dimension_numbers<[1], [0], [0], [1], [0, 0, 1, 1], [], []>} : vector<4x4xf32>, vector<4x128xf32>, vector<4x128xf32> -> vector<4x128xf32>
    %341 = tpu.concatenate %334, %337, %340 in 1 : vector<4x128xf32>, vector<4x128xf32>, vector<4x128xf32> -> vector<4x384xf32>
    %342 = arith.truncf %341 : vector<4x384xf32> to vector<4x384xbf16>
    %c0_262 = arith.constant 0 : index
    %c0_263 = arith.constant 0 : index
    %343 = vector.load %arg21[%c0_262, %c0_263] : memref<384x128xbf16, #tpu.memory_space<vmem>>, vector<384x128xbf16>
    %cst_264 = arith.constant dense<0.000000e+00> : vector<4x128xf32>
    %344 = tpu.matmul %342, %343, %cst_264 {dimension_numbers = #tpu.dot_dimension_numbers<[1], [0], [0], [1], [0, 0, 1, 1], [], []>} : vector<4x384xbf16>, vector<384x128xbf16>, vector<4x128xf32> -> vector<4x128xf32>
    %c2_265 = arith.constant 2 : index
    %c0_266 = arith.constant 0 : index
    %c0_267 = arith.constant 0 : index
    %345 = vector.load %arg30[%c2_265, %c0_266, %c0_267] : memref<3x128x128xf32, #tpu.memory_space<vmem>>, vector<1x128x128xf32>
    %346 = vector.shape_cast %345 : vector<1x128x128xf32> to vector<128x128xf32>
    %cst_268 = arith.constant dense<0.000000e+00> : vector<4x128xf32>
    %347 = tpu.matmul %344, %346, %cst_268 {dimension_numbers = #tpu.dot_dimension_numbers<[1], [0], [0], [1], [0, 0, 1, 1], [], []>} : vector<4x128xf32>, vector<128x128xf32>, vector<4x128xf32> -> vector<4x128xf32>
    %cst_269 = arith.constant dense<0.000000e+00> : vector<128xf32>
    %348 = vector.multi_reduction <add>, %347, %cst_269 [0] : vector<4x128xf32> to vector<128xf32>
    %349 = vector.shape_cast %348 : vector<128xf32> to vector<1x128xf32>
    %cst_270 = arith.constant 6.250000e-02 : f32
    %350 = vector.broadcast %cst_270 : f32 to vector<1x128xf32>
    %351 = arith.mulf %349, %350 : vector<1x128xf32>
    %352 = vector.broadcast %351 : vector<1x128xf32> to vector<4x128xf32>
    %353 = arith.subf %344, %352 : vector<4x128xf32>
    %354 = arith.mulf %353, %353 : vector<4x128xf32>
    %cst_271 = arith.constant dense<0.000000e+00> : vector<4x128xf32>
    %355 = tpu.matmul %354, %346, %cst_271 {dimension_numbers = #tpu.dot_dimension_numbers<[1], [0], [0], [1], [0, 0, 1, 1], [], []>} : vector<4x128xf32>, vector<128x128xf32>, vector<4x128xf32> -> vector<4x128xf32>
    %cst_272 = arith.constant dense<0.000000e+00> : vector<128xf32>
    %356 = vector.multi_reduction <add>, %355, %cst_272 [0] : vector<4x128xf32> to vector<128xf32>
    %357 = vector.shape_cast %356 : vector<128xf32> to vector<1x128xf32>
    %cst_273 = arith.constant 6.250000e-02 : f32
    %358 = vector.broadcast %cst_273 : f32 to vector<1x128xf32>
    %359 = arith.mulf %357, %358 : vector<1x128xf32>
    %cst_274 = arith.constant 9.99999974E-6 : f32
    %360 = vector.broadcast %cst_274 : f32 to vector<1x128xf32>
    %361 = arith.addf %359, %360 : vector<1x128xf32>
    %362 = math.rsqrt %361 : vector<1x128xf32>
    %363 = vector.broadcast %362 : vector<1x128xf32> to vector<4x128xf32>
    %364 = arith.mulf %353, %363 : vector<4x128xf32>
    %cst_275 = arith.constant 0.000000e+00 : f32
    %365 = vector.broadcast %cst_275 : f32 to vector<4x128xf32>
    %366 = arith.maximumf %364, %365 : vector<4x128xf32>
    %c0_276 = arith.constant 0 : index
    %c0_277 = arith.constant 0 : index
    %c0_278 = arith.constant 0 : index
    %367 = vector.load %arg22[%c0_276, %c0_277, %c0_278] : memref<3x4x4xf32, #tpu.memory_space<vmem>>, vector<1x4x4xf32>
    %368 = vector.shape_cast %367 : vector<1x4x4xf32> to vector<4x4xf32>
    %cst_279 = arith.constant dense<0.000000e+00> : vector<4x128xf32>
    %369 = tpu.matmul %368, %366, %cst_279 {dimension_numbers = #tpu.dot_dimension_numbers<[1], [0], [0], [1], [0, 0, 1, 1], [], []>} : vector<4x4xf32>, vector<4x128xf32>, vector<4x128xf32> -> vector<4x128xf32>
    %c1_280 = arith.constant 1 : index
    %c0_281 = arith.constant 0 : index
    %c0_282 = arith.constant 0 : index
    %370 = vector.load %arg22[%c1_280, %c0_281, %c0_282] : memref<3x4x4xf32, #tpu.memory_space<vmem>>, vector<1x4x4xf32>
    %371 = vector.shape_cast %370 : vector<1x4x4xf32> to vector<4x4xf32>
    %cst_283 = arith.constant dense<0.000000e+00> : vector<4x128xf32>
    %372 = tpu.matmul %371, %366, %cst_283 {dimension_numbers = #tpu.dot_dimension_numbers<[1], [0], [0], [1], [0, 0, 1, 1], [], []>} : vector<4x4xf32>, vector<4x128xf32>, vector<4x128xf32> -> vector<4x128xf32>
    %c2_284 = arith.constant 2 : index
    %c0_285 = arith.constant 0 : index
    %c0_286 = arith.constant 0 : index
    %373 = vector.load %arg22[%c2_284, %c0_285, %c0_286] : memref<3x4x4xf32, #tpu.memory_space<vmem>>, vector<1x4x4xf32>
    %374 = vector.shape_cast %373 : vector<1x4x4xf32> to vector<4x4xf32>
    %cst_287 = arith.constant dense<0.000000e+00> : vector<4x128xf32>
    %375 = tpu.matmul %374, %366, %cst_287 {dimension_numbers = #tpu.dot_dimension_numbers<[1], [0], [0], [1], [0, 0, 1, 1], [], []>} : vector<4x4xf32>, vector<4x128xf32>, vector<4x128xf32> -> vector<4x128xf32>
    %376 = tpu.concatenate %369, %372, %375 in 1 : vector<4x128xf32>, vector<4x128xf32>, vector<4x128xf32> -> vector<4x384xf32>
    %377 = arith.truncf %376 : vector<4x384xf32> to vector<4x384xbf16>
    %c0_288 = arith.constant 0 : index
    %c0_289 = arith.constant 0 : index
    %378 = vector.load %arg23[%c0_288, %c0_289] : memref<384x128xbf16, #tpu.memory_space<vmem>>, vector<384x128xbf16>
    %cst_290 = arith.constant dense<0.000000e+00> : vector<4x128xf32>
    %379 = tpu.matmul %377, %378, %cst_290 {dimension_numbers = #tpu.dot_dimension_numbers<[1], [0], [0], [1], [0, 0, 1, 1], [], []>} : vector<4x384xbf16>, vector<384x128xbf16>, vector<4x128xf32> -> vector<4x128xf32>
    %c2_291 = arith.constant 2 : index
    %c0_292 = arith.constant 0 : index
    %c0_293 = arith.constant 0 : index
    %380 = vector.load %arg30[%c2_291, %c0_292, %c0_293] : memref<3x128x128xf32, #tpu.memory_space<vmem>>, vector<1x128x128xf32>
    %381 = vector.shape_cast %380 : vector<1x128x128xf32> to vector<128x128xf32>
    %cst_294 = arith.constant dense<0.000000e+00> : vector<4x128xf32>
    %382 = tpu.matmul %379, %381, %cst_294 {dimension_numbers = #tpu.dot_dimension_numbers<[1], [0], [0], [1], [0, 0, 1, 1], [], []>} : vector<4x128xf32>, vector<128x128xf32>, vector<4x128xf32> -> vector<4x128xf32>
    %cst_295 = arith.constant dense<0.000000e+00> : vector<128xf32>
    %383 = vector.multi_reduction <add>, %382, %cst_295 [0] : vector<4x128xf32> to vector<128xf32>
    %384 = vector.shape_cast %383 : vector<128xf32> to vector<1x128xf32>
    %cst_296 = arith.constant 6.250000e-02 : f32
    %385 = vector.broadcast %cst_296 : f32 to vector<1x128xf32>
    %386 = arith.mulf %384, %385 : vector<1x128xf32>
    %387 = vector.broadcast %386 : vector<1x128xf32> to vector<4x128xf32>
    %388 = arith.subf %379, %387 : vector<4x128xf32>
    %389 = arith.mulf %388, %388 : vector<4x128xf32>
    %cst_297 = arith.constant dense<0.000000e+00> : vector<4x128xf32>
    %390 = tpu.matmul %389, %381, %cst_297 {dimension_numbers = #tpu.dot_dimension_numbers<[1], [0], [0], [1], [0, 0, 1, 1], [], []>} : vector<4x128xf32>, vector<128x128xf32>, vector<4x128xf32> -> vector<4x128xf32>
    %cst_298 = arith.constant dense<0.000000e+00> : vector<128xf32>
    %391 = vector.multi_reduction <add>, %390, %cst_298 [0] : vector<4x128xf32> to vector<128xf32>
    %392 = vector.shape_cast %391 : vector<128xf32> to vector<1x128xf32>
    %cst_299 = arith.constant 6.250000e-02 : f32
    %393 = vector.broadcast %cst_299 : f32 to vector<1x128xf32>
    %394 = arith.mulf %392, %393 : vector<1x128xf32>
    %cst_300 = arith.constant 9.99999974E-6 : f32
    %395 = vector.broadcast %cst_300 : f32 to vector<1x128xf32>
    %396 = arith.addf %394, %395 : vector<1x128xf32>
    %397 = math.rsqrt %396 : vector<1x128xf32>
    %398 = vector.broadcast %397 : vector<1x128xf32> to vector<4x128xf32>
    %399 = arith.mulf %388, %398 : vector<4x128xf32>
    %400 = arith.addf %399, %331 : vector<4x128xf32>
    %c0_301 = arith.constant 0 : index
    %c0_302 = arith.constant 0 : index
    %c0_303 = arith.constant 0 : index
    %401 = vector.load %arg24[%c0_301, %c0_302, %c0_303] : memref<5x8x4xf32, #tpu.memory_space<vmem>>, vector<1x8x4xf32>
    %402 = vector.shape_cast %401 : vector<1x8x4xf32> to vector<8x4xf32>
    %cst_304 = arith.constant dense<0.000000e+00> : vector<8x128xf32>
    %403 = tpu.matmul %402, %400, %cst_304 {dimension_numbers = #tpu.dot_dimension_numbers<[1], [0], [0], [1], [0, 0, 1, 1], [], []>} : vector<8x4xf32>, vector<4x128xf32>, vector<8x128xf32> -> vector<8x128xf32>
    %c1_305 = arith.constant 1 : index
    %c0_306 = arith.constant 0 : index
    %c0_307 = arith.constant 0 : index
    %404 = vector.load %arg24[%c1_305, %c0_306, %c0_307] : memref<5x8x4xf32, #tpu.memory_space<vmem>>, vector<1x8x4xf32>
    %405 = vector.shape_cast %404 : vector<1x8x4xf32> to vector<8x4xf32>
    %cst_308 = arith.constant dense<0.000000e+00> : vector<8x128xf32>
    %406 = tpu.matmul %405, %400, %cst_308 {dimension_numbers = #tpu.dot_dimension_numbers<[1], [0], [0], [1], [0, 0, 1, 1], [], []>} : vector<8x4xf32>, vector<4x128xf32>, vector<8x128xf32> -> vector<8x128xf32>
    %c2_309 = arith.constant 2 : index
    %c0_310 = arith.constant 0 : index
    %c0_311 = arith.constant 0 : index
    %407 = vector.load %arg24[%c2_309, %c0_310, %c0_311] : memref<5x8x4xf32, #tpu.memory_space<vmem>>, vector<1x8x4xf32>
    %408 = vector.shape_cast %407 : vector<1x8x4xf32> to vector<8x4xf32>
    %cst_312 = arith.constant dense<0.000000e+00> : vector<8x128xf32>
    %409 = tpu.matmul %408, %400, %cst_312 {dimension_numbers = #tpu.dot_dimension_numbers<[1], [0], [0], [1], [0, 0, 1, 1], [], []>} : vector<8x4xf32>, vector<4x128xf32>, vector<8x128xf32> -> vector<8x128xf32>
    %c3_313 = arith.constant 3 : index
    %c0_314 = arith.constant 0 : index
    %c0_315 = arith.constant 0 : index
    %410 = vector.load %arg24[%c3_313, %c0_314, %c0_315] : memref<5x8x4xf32, #tpu.memory_space<vmem>>, vector<1x8x4xf32>
    %411 = vector.shape_cast %410 : vector<1x8x4xf32> to vector<8x4xf32>
    %cst_316 = arith.constant dense<0.000000e+00> : vector<8x128xf32>
    %412 = tpu.matmul %411, %400, %cst_316 {dimension_numbers = #tpu.dot_dimension_numbers<[1], [0], [0], [1], [0, 0, 1, 1], [], []>} : vector<8x4xf32>, vector<4x128xf32>, vector<8x128xf32> -> vector<8x128xf32>
    %c4_317 = arith.constant 4 : index
    %c0_318 = arith.constant 0 : index
    %c0_319 = arith.constant 0 : index
    %413 = vector.load %arg24[%c4_317, %c0_318, %c0_319] : memref<5x8x4xf32, #tpu.memory_space<vmem>>, vector<1x8x4xf32>
    %414 = vector.shape_cast %413 : vector<1x8x4xf32> to vector<8x4xf32>
    %cst_320 = arith.constant dense<0.000000e+00> : vector<8x128xf32>
    %415 = tpu.matmul %414, %400, %cst_320 {dimension_numbers = #tpu.dot_dimension_numbers<[1], [0], [0], [1], [0, 0, 1, 1], [], []>} : vector<8x4xf32>, vector<4x128xf32>, vector<8x128xf32> -> vector<8x128xf32>
    %416 = tpu.concatenate %403, %406, %409, %412, %415 in 1 : vector<8x128xf32>, vector<8x128xf32>, vector<8x128xf32>, vector<8x128xf32>, vector<8x128xf32> -> vector<8x640xf32>
    %417 = arith.truncf %416 : vector<8x640xf32> to vector<8x640xbf16>
    %c0_321 = arith.constant 0 : index
    %c0_322 = arith.constant 0 : index
    %418 = vector.load %arg25[%c0_321, %c0_322] : memref<640x128xbf16, #tpu.memory_space<vmem>>, vector<640x128xbf16>
    %cst_323 = arith.constant dense<0.000000e+00> : vector<8x128xf32>
    %419 = tpu.matmul %417, %418, %cst_323 {dimension_numbers = #tpu.dot_dimension_numbers<[1], [0], [0], [1], [0, 0, 1, 1], [], []>} : vector<8x640xbf16>, vector<640x128xbf16>, vector<8x128xf32> -> vector<8x128xf32>
    %c1_324 = arith.constant 1 : index
    %c0_325 = arith.constant 0 : index
    %c0_326 = arith.constant 0 : index
    %420 = vector.load %arg30[%c1_324, %c0_325, %c0_326] : memref<3x128x128xf32, #tpu.memory_space<vmem>>, vector<1x128x128xf32>
    %421 = vector.shape_cast %420 : vector<1x128x128xf32> to vector<128x128xf32>
    %cst_327 = arith.constant dense<0.000000e+00> : vector<8x128xf32>
    %422 = tpu.matmul %419, %421, %cst_327 {dimension_numbers = #tpu.dot_dimension_numbers<[1], [0], [0], [1], [0, 0, 1, 1], [], []>} : vector<8x128xf32>, vector<128x128xf32>, vector<8x128xf32> -> vector<8x128xf32>
    %cst_328 = arith.constant dense<0.000000e+00> : vector<128xf32>
    %423 = vector.multi_reduction <add>, %422, %cst_328 [0] : vector<8x128xf32> to vector<128xf32>
    %424 = vector.shape_cast %423 : vector<128xf32> to vector<1x128xf32>
    %cst_329 = arith.constant 1.562500e-02 : f32
    %425 = vector.broadcast %cst_329 : f32 to vector<1x128xf32>
    %426 = arith.mulf %424, %425 : vector<1x128xf32>
    %427 = vector.broadcast %426 : vector<1x128xf32> to vector<8x128xf32>
    %428 = arith.subf %419, %427 : vector<8x128xf32>
    %429 = arith.mulf %428, %428 : vector<8x128xf32>
    %cst_330 = arith.constant dense<0.000000e+00> : vector<8x128xf32>
    %430 = tpu.matmul %429, %421, %cst_330 {dimension_numbers = #tpu.dot_dimension_numbers<[1], [0], [0], [1], [0, 0, 1, 1], [], []>} : vector<8x128xf32>, vector<128x128xf32>, vector<8x128xf32> -> vector<8x128xf32>
    %cst_331 = arith.constant dense<0.000000e+00> : vector<128xf32>
    %431 = vector.multi_reduction <add>, %430, %cst_331 [0] : vector<8x128xf32> to vector<128xf32>
    %432 = vector.shape_cast %431 : vector<128xf32> to vector<1x128xf32>
    %cst_332 = arith.constant 1.562500e-02 : f32
    %433 = vector.broadcast %cst_332 : f32 to vector<1x128xf32>
    %434 = arith.mulf %432, %433 : vector<1x128xf32>
    %cst_333 = arith.constant 9.99999974E-6 : f32
    %435 = vector.broadcast %cst_333 : f32 to vector<1x128xf32>
    %436 = arith.addf %434, %435 : vector<1x128xf32>
    %437 = math.rsqrt %436 : vector<1x128xf32>
    %438 = vector.broadcast %437 : vector<1x128xf32> to vector<8x128xf32>
    %439 = arith.mulf %428, %438 : vector<8x128xf32>
    %cst_334 = arith.constant 0.000000e+00 : f32
    %440 = vector.broadcast %cst_334 : f32 to vector<8x128xf32>
    %441 = arith.maximumf %439, %440 : vector<8x128xf32>
    %c0_335 = arith.constant 0 : index
    %c0_336 = arith.constant 0 : index
    %c0_337 = arith.constant 0 : index
    %442 = vector.load %arg26[%c0_335, %c0_336, %c0_337] : memref<5x16x8xf32, #tpu.memory_space<vmem>>, vector<1x16x8xf32>
    %443 = vector.shape_cast %442 : vector<1x16x8xf32> to vector<16x8xf32>
    %cst_338 = arith.constant dense<0.000000e+00> : vector<16x128xf32>
    %444 = tpu.matmul %443, %441, %cst_338 {dimension_numbers = #tpu.dot_dimension_numbers<[1], [0], [0], [1], [0, 0, 1, 1], [], []>} : vector<16x8xf32>, vector<8x128xf32>, vector<16x128xf32> -> vector<16x128xf32>
    %c1_339 = arith.constant 1 : index
    %c0_340 = arith.constant 0 : index
    %c0_341 = arith.constant 0 : index
    %445 = vector.load %arg26[%c1_339, %c0_340, %c0_341] : memref<5x16x8xf32, #tpu.memory_space<vmem>>, vector<1x16x8xf32>
    %446 = vector.shape_cast %445 : vector<1x16x8xf32> to vector<16x8xf32>
    %cst_342 = arith.constant dense<0.000000e+00> : vector<16x128xf32>
    %447 = tpu.matmul %446, %441, %cst_342 {dimension_numbers = #tpu.dot_dimension_numbers<[1], [0], [0], [1], [0, 0, 1, 1], [], []>} : vector<16x8xf32>, vector<8x128xf32>, vector<16x128xf32> -> vector<16x128xf32>
    %c2_343 = arith.constant 2 : index
    %c0_344 = arith.constant 0 : index
    %c0_345 = arith.constant 0 : index
    %448 = vector.load %arg26[%c2_343, %c0_344, %c0_345] : memref<5x16x8xf32, #tpu.memory_space<vmem>>, vector<1x16x8xf32>
    %449 = vector.shape_cast %448 : vector<1x16x8xf32> to vector<16x8xf32>
    %cst_346 = arith.constant dense<0.000000e+00> : vector<16x128xf32>
    %450 = tpu.matmul %449, %441, %cst_346 {dimension_numbers = #tpu.dot_dimension_numbers<[1], [0], [0], [1], [0, 0, 1, 1], [], []>} : vector<16x8xf32>, vector<8x128xf32>, vector<16x128xf32> -> vector<16x128xf32>
    %c3_347 = arith.constant 3 : index
    %c0_348 = arith.constant 0 : index
    %c0_349 = arith.constant 0 : index
    %451 = vector.load %arg26[%c3_347, %c0_348, %c0_349] : memref<5x16x8xf32, #tpu.memory_space<vmem>>, vector<1x16x8xf32>
    %452 = vector.shape_cast %451 : vector<1x16x8xf32> to vector<16x8xf32>
    %cst_350 = arith.constant dense<0.000000e+00> : vector<16x128xf32>
    %453 = tpu.matmul %452, %441, %cst_350 {dimension_numbers = #tpu.dot_dimension_numbers<[1], [0], [0], [1], [0, 0, 1, 1], [], []>} : vector<16x8xf32>, vector<8x128xf32>, vector<16x128xf32> -> vector<16x128xf32>
    %c4_351 = arith.constant 4 : index
    %c0_352 = arith.constant 0 : index
    %c0_353 = arith.constant 0 : index
    %454 = vector.load %arg26[%c4_351, %c0_352, %c0_353] : memref<5x16x8xf32, #tpu.memory_space<vmem>>, vector<1x16x8xf32>
    %455 = vector.shape_cast %454 : vector<1x16x8xf32> to vector<16x8xf32>
    %cst_354 = arith.constant dense<0.000000e+00> : vector<16x128xf32>
    %456 = tpu.matmul %455, %441, %cst_354 {dimension_numbers = #tpu.dot_dimension_numbers<[1], [0], [0], [1], [0, 0, 1, 1], [], []>} : vector<16x8xf32>, vector<8x128xf32>, vector<16x128xf32> -> vector<16x128xf32>
    %457 = tpu.concatenate %444, %447, %450, %453, %456 in 1 : vector<16x128xf32>, vector<16x128xf32>, vector<16x128xf32>, vector<16x128xf32>, vector<16x128xf32> -> vector<16x640xf32>
    %458 = arith.truncf %457 : vector<16x640xf32> to vector<16x640xbf16>
    %c0_355 = arith.constant 0 : index
    %c0_356 = arith.constant 0 : index
    %459 = vector.load %arg27[%c0_355, %c0_356] : memref<640x128xbf16, #tpu.memory_space<vmem>>, vector<640x128xbf16>
    %cst_357 = arith.constant dense<0.000000e+00> : vector<16x128xf32>
    %460 = tpu.matmul %458, %459, %cst_357 {dimension_numbers = #tpu.dot_dimension_numbers<[1], [0], [0], [1], [0, 0, 1, 1], [], []>} : vector<16x640xbf16>, vector<640x128xbf16>, vector<16x128xf32> -> vector<16x128xf32>
    %c0_358 = arith.constant 0 : index
    %c0_359 = arith.constant 0 : index
    %c0_360 = arith.constant 0 : index
    %461 = vector.load %arg30[%c0_358, %c0_359, %c0_360] : memref<3x128x128xf32, #tpu.memory_space<vmem>>, vector<1x128x128xf32>
    %462 = vector.shape_cast %461 : vector<1x128x128xf32> to vector<128x128xf32>
    %cst_361 = arith.constant dense<0.000000e+00> : vector<16x128xf32>
    %463 = tpu.matmul %460, %462, %cst_361 {dimension_numbers = #tpu.dot_dimension_numbers<[1], [0], [0], [1], [0, 0, 1, 1], [], []>} : vector<16x128xf32>, vector<128x128xf32>, vector<16x128xf32> -> vector<16x128xf32>
    %cst_362 = arith.constant dense<0.000000e+00> : vector<128xf32>
    %464 = vector.multi_reduction <add>, %463, %cst_362 [0] : vector<16x128xf32> to vector<128xf32>
    %465 = vector.shape_cast %464 : vector<128xf32> to vector<1x128xf32>
    %cst_363 = arith.constant 3.906250e-03 : f32
    %466 = vector.broadcast %cst_363 : f32 to vector<1x128xf32>
    %467 = arith.mulf %465, %466 : vector<1x128xf32>
    %468 = vector.broadcast %467 : vector<1x128xf32> to vector<16x128xf32>
    %469 = arith.subf %460, %468 : vector<16x128xf32>
    %470 = arith.mulf %469, %469 : vector<16x128xf32>
    %cst_364 = arith.constant dense<0.000000e+00> : vector<16x128xf32>
    %471 = tpu.matmul %470, %462, %cst_364 {dimension_numbers = #tpu.dot_dimension_numbers<[1], [0], [0], [1], [0, 0, 1, 1], [], []>} : vector<16x128xf32>, vector<128x128xf32>, vector<16x128xf32> -> vector<16x128xf32>
    %cst_365 = arith.constant dense<0.000000e+00> : vector<128xf32>
    %472 = vector.multi_reduction <add>, %471, %cst_365 [0] : vector<16x128xf32> to vector<128xf32>
    %473 = vector.shape_cast %472 : vector<128xf32> to vector<1x128xf32>
    %cst_366 = arith.constant 3.906250e-03 : f32
    %474 = vector.broadcast %cst_366 : f32 to vector<1x128xf32>
    %475 = arith.mulf %473, %474 : vector<1x128xf32>
    %cst_367 = arith.constant 9.99999974E-6 : f32
    %476 = vector.broadcast %cst_367 : f32 to vector<1x128xf32>
    %477 = arith.addf %475, %476 : vector<1x128xf32>
    %478 = math.rsqrt %477 : vector<1x128xf32>
    %479 = vector.broadcast %478 : vector<1x128xf32> to vector<16x128xf32>
    %480 = arith.mulf %469, %479 : vector<16x128xf32>
    %cst_368 = arith.constant 0.000000e+00 : f32
    %481 = vector.broadcast %cst_368 : f32 to vector<16x128xf32>
    %482 = arith.maximumf %480, %481 : vector<16x128xf32>
    %c0_369 = arith.constant 0 : index
    %c0_370 = arith.constant 0 : index
    %c0_371 = arith.constant 0 : index
    %483 = vector.load %arg28[%c0_369, %c0_370, %c0_371] : memref<7x16x16xf32, #tpu.memory_space<vmem>>, vector<1x16x16xf32>
    %484 = vector.shape_cast %483 : vector<1x16x16xf32> to vector<16x16xf32>
    %cst_372 = arith.constant dense<0.000000e+00> : vector<16x128xf32>
    %485 = tpu.matmul %484, %482, %cst_372 {dimension_numbers = #tpu.dot_dimension_numbers<[1], [0], [0], [1], [0, 0, 1, 1], [], []>} : vector<16x16xf32>, vector<16x128xf32>, vector<16x128xf32> -> vector<16x128xf32>
    %c1_373 = arith.constant 1 : index
    %c0_374 = arith.constant 0 : index
    %c0_375 = arith.constant 0 : index
    %486 = vector.load %arg28[%c1_373, %c0_374, %c0_375] : memref<7x16x16xf32, #tpu.memory_space<vmem>>, vector<1x16x16xf32>
    %487 = vector.shape_cast %486 : vector<1x16x16xf32> to vector<16x16xf32>
    %cst_376 = arith.constant dense<0.000000e+00> : vector<16x128xf32>
    %488 = tpu.matmul %487, %482, %cst_376 {dimension_numbers = #tpu.dot_dimension_numbers<[1], [0], [0], [1], [0, 0, 1, 1], [], []>} : vector<16x16xf32>, vector<16x128xf32>, vector<16x128xf32> -> vector<16x128xf32>
    %c2_377 = arith.constant 2 : index
    %c0_378 = arith.constant 0 : index
    %c0_379 = arith.constant 0 : index
    %489 = vector.load %arg28[%c2_377, %c0_378, %c0_379] : memref<7x16x16xf32, #tpu.memory_space<vmem>>, vector<1x16x16xf32>
    %490 = vector.shape_cast %489 : vector<1x16x16xf32> to vector<16x16xf32>
    %cst_380 = arith.constant dense<0.000000e+00> : vector<16x128xf32>
    %491 = tpu.matmul %490, %482, %cst_380 {dimension_numbers = #tpu.dot_dimension_numbers<[1], [0], [0], [1], [0, 0, 1, 1], [], []>} : vector<16x16xf32>, vector<16x128xf32>, vector<16x128xf32> -> vector<16x128xf32>
    %c3_381 = arith.constant 3 : index
    %c0_382 = arith.constant 0 : index
    %c0_383 = arith.constant 0 : index
    %492 = vector.load %arg28[%c3_381, %c0_382, %c0_383] : memref<7x16x16xf32, #tpu.memory_space<vmem>>, vector<1x16x16xf32>
    %493 = vector.shape_cast %492 : vector<1x16x16xf32> to vector<16x16xf32>
    %cst_384 = arith.constant dense<0.000000e+00> : vector<16x128xf32>
    %494 = tpu.matmul %493, %482, %cst_384 {dimension_numbers = #tpu.dot_dimension_numbers<[1], [0], [0], [1], [0, 0, 1, 1], [], []>} : vector<16x16xf32>, vector<16x128xf32>, vector<16x128xf32> -> vector<16x128xf32>
    %c4_385 = arith.constant 4 : index
    %c0_386 = arith.constant 0 : index
    %c0_387 = arith.constant 0 : index
    %495 = vector.load %arg28[%c4_385, %c0_386, %c0_387] : memref<7x16x16xf32, #tpu.memory_space<vmem>>, vector<1x16x16xf32>
    %496 = vector.shape_cast %495 : vector<1x16x16xf32> to vector<16x16xf32>
    %cst_388 = arith.constant dense<0.000000e+00> : vector<16x128xf32>
    %497 = tpu.matmul %496, %482, %cst_388 {dimension_numbers = #tpu.dot_dimension_numbers<[1], [0], [0], [1], [0, 0, 1, 1], [], []>} : vector<16x16xf32>, vector<16x128xf32>, vector<16x128xf32> -> vector<16x128xf32>
    %c5_389 = arith.constant 5 : index
    %c0_390 = arith.constant 0 : index
    %c0_391 = arith.constant 0 : index
    %498 = vector.load %arg28[%c5_389, %c0_390, %c0_391] : memref<7x16x16xf32, #tpu.memory_space<vmem>>, vector<1x16x16xf32>
    %499 = vector.shape_cast %498 : vector<1x16x16xf32> to vector<16x16xf32>
    %cst_392 = arith.constant dense<0.000000e+00> : vector<16x128xf32>
    %500 = tpu.matmul %499, %482, %cst_392 {dimension_numbers = #tpu.dot_dimension_numbers<[1], [0], [0], [1], [0, 0, 1, 1], [], []>} : vector<16x16xf32>, vector<16x128xf32>, vector<16x128xf32> -> vector<16x128xf32>
    %c6_393 = arith.constant 6 : index
    %c0_394 = arith.constant 0 : index
    %c0_395 = arith.constant 0 : index
    %501 = vector.load %arg28[%c6_393, %c0_394, %c0_395] : memref<7x16x16xf32, #tpu.memory_space<vmem>>, vector<1x16x16xf32>
    %502 = vector.shape_cast %501 : vector<1x16x16xf32> to vector<16x16xf32>
    %cst_396 = arith.constant dense<0.000000e+00> : vector<16x128xf32>
    %503 = tpu.matmul %502, %482, %cst_396 {dimension_numbers = #tpu.dot_dimension_numbers<[1], [0], [0], [1], [0, 0, 1, 1], [], []>} : vector<16x16xf32>, vector<16x128xf32>, vector<16x128xf32> -> vector<16x128xf32>
    %504 = tpu.concatenate %485, %488, %491, %494, %497, %500, %503 in 1 : vector<16x128xf32>, vector<16x128xf32>, vector<16x128xf32>, vector<16x128xf32>, vector<16x128xf32>, vector<16x128xf32>, vector<16x128xf32> -> vector<16x896xf32>
    %505 = arith.truncf %504 : vector<16x896xf32> to vector<16x896xbf16>
    %c0_397 = arith.constant 0 : index
    %c0_398 = arith.constant 0 : index
    %506 = vector.load %arg29[%c0_397, %c0_398] : memref<896x48xbf16, #tpu.memory_space<vmem>>, vector<896x48xbf16>
    %cst_399 = arith.constant dense<0.000000e+00> : vector<16x48xf32>
    %507 = tpu.matmul %505, %506, %cst_399 {dimension_numbers = #tpu.dot_dimension_numbers<[1], [0], [0], [1], [0, 0, 1, 1], [], []>} : vector<16x896xbf16>, vector<896x48xbf16>, vector<16x48xf32> -> vector<16x48xf32>
    %c0_400 = arith.constant 0 : index
    %c0_401 = arith.constant 0 : index
    %508 = vector.load %arg31[%c0_400, %c0_401] : memref<1x48xf32, #tpu.memory_space<vmem>>, vector<1x48xf32>
    %509 = vector.broadcast %508 : vector<1x48xf32> to vector<16x48xf32>
    %510 = arith.addf %507, %509 : vector<16x48xf32>
    %511 = math.tanh %510 : vector<16x48xf32>
    %c0_402 = arith.constant 0 : index
    %c0_403 = arith.constant 0 : index
    %c0_404 = arith.constant 0 : index
    %512 = vector.load %arg32[%c0_402, %c0_403, %c0_404] : memref<1x16x48xf32, #tpu.memory_space<vmem>>, vector<1x16x48xf32>
    %513 = vector.shape_cast %512 : vector<1x16x48xf32> to vector<16x48xf32>
    %514 = vector.shape_cast %511 : vector<16x48xf32> to vector<1x16x48xf32>
    tpu.vector_store %arg32[%c0_402, %c0_403, %c0_404], %514 {strides = array<i32>} : memref<1x16x48xf32, #tpu.memory_space<vmem>>, vector<1x16x48xf32>,
    return
  }
  func.func @transform_0(%arg0: i32) -> (i32, i32, i32) {
    %c0_i32 = arith.constant 0 : i32
    %c0_i32_0 = arith.constant 0 : i32
    %c0_i32_1 = arith.constant 0 : i32
    return %arg0, %c0_i32, %c0_i32_0 : i32, i32, i32
  }
  func.func @transform_1(%arg0: i32) -> (i32, i32, i32) {
    %c0_i32 = arith.constant 0 : i32
    %c0_i32_0 = arith.constant 0 : i32
    %c0_i32_1 = arith.constant 0 : i32
    %c0_i32_2 = arith.constant 0 : i32
    return %c0_i32, %c0_i32_0, %c0_i32_1 : i32, i32, i32
  }
  func.func @transform_2(%arg0: i32) -> (i32, i32) {
    %c0_i32 = arith.constant 0 : i32
    %c0_i32_0 = arith.constant 0 : i32
    %c0_i32_1 = arith.constant 0 : i32
    return %c0_i32, %c0_i32_0 : i32, i32
  }
  func.func @transform_3(%arg0: i32) -> (i32, i32, i32) {
    %c0_i32 = arith.constant 0 : i32
    %c0_i32_0 = arith.constant 0 : i32
    %c0_i32_1 = arith.constant 0 : i32
    %c0_i32_2 = arith.constant 0 : i32
    return %c0_i32, %c0_i32_0, %c0_i32_1 : i32, i32, i32
  }
  func.func @transform_4(%arg0: i32) -> (i32, i32) {
    %c0_i32 = arith.constant 0 : i32
    %c0_i32_0 = arith.constant 0 : i32
    %c0_i32_1 = arith.constant 0 : i32
    return %c0_i32, %c0_i32_0 : i32, i32
  }
  func.func @transform_5(%arg0: i32) -> (i32, i32, i32) {
    %c0_i32 = arith.constant 0 : i32
    %c0_i32_0 = arith.constant 0 : i32
    %c0_i32_1 = arith.constant 0 : i32
    %c0_i32_2 = arith.constant 0 : i32
    return %c0_i32, %c0_i32_0, %c0_i32_1 : i32, i32, i32
  }
  func.func @transform_6(%arg0: i32) -> (i32, i32) {
    %c0_i32 = arith.constant 0 : i32
    %c0_i32_0 = arith.constant 0 : i32
    %c0_i32_1 = arith.constant 0 : i32
    return %c0_i32, %c0_i32_0 : i32, i32
  }
  func.func @transform_7(%arg0: i32) -> (i32, i32, i32) {
    %c0_i32 = arith.constant 0 : i32
    %c0_i32_0 = arith.constant 0 : i32
    %c0_i32_1 = arith.constant 0 : i32
    %c0_i32_2 = arith.constant 0 : i32
    return %c0_i32, %c0_i32_0, %c0_i32_1 : i32, i32, i32
  }
  func.func @transform_8(%arg0: i32) -> (i32, i32) {
    %c0_i32 = arith.constant 0 : i32
    %c0_i32_0 = arith.constant 0 : i32
    %c0_i32_1 = arith.constant 0 : i32
    return %c0_i32, %c0_i32_0 : i32, i32
  }
  func.func @transform_9(%arg0: i32) -> (i32, i32, i32) {
    %c0_i32 = arith.constant 0 : i32
    %c0_i32_0 = arith.constant 0 : i32
    %c0_i32_1 = arith.constant 0 : i32
    %c0_i32_2 = arith.constant 0 : i32
    return %c0_i32, %c0_i32_0, %c0_i32_1 : i32, i32, i32
  }
  func.func @transform_10(%arg0: i32) -> (i32, i32) {
    %c0_i32 = arith.constant 0 : i32
    %c0_i32_0 = arith.constant 0 : i32
    %c0_i32_1 = arith.constant 0 : i32
    return %c0_i32, %c0_i32_0 : i32, i32
  }
  func.func @transform_11(%arg0: i32) -> (i32, i32, i32) {
    %c0_i32 = arith.constant 0 : i32
    %c0_i32_0 = arith.constant 0 : i32
    %c0_i32_1 = arith.constant 0 : i32
    %c0_i32_2 = arith.constant 0 : i32
    return %c0_i32, %c0_i32_0, %c0_i32_1 : i32, i32, i32
  }
  func.func @transform_12(%arg0: i32) -> (i32, i32) {
    %c0_i32 = arith.constant 0 : i32
    %c0_i32_0 = arith.constant 0 : i32
    %c0_i32_1 = arith.constant 0 : i32
    return %c0_i32, %c0_i32_0 : i32, i32
  }
  func.func @transform_13(%arg0: i32) -> (i32, i32, i32) {
    %c0_i32 = arith.constant 0 : i32
    %c0_i32_0 = arith.constant 0 : i32
    %c0_i32_1 = arith.constant 0 : i32
    %c0_i32_2 = arith.constant 0 : i32
    return %c0_i32, %c0_i32_0, %c0_i32_1 : i32, i32, i32
  }
  func.func @transform_14(%arg0: i32) -> (i32, i32) {
    %c0_i32 = arith.constant 0 : i32
    %c0_i32_0 = arith.constant 0 : i32
    %c0_i32_1 = arith.constant 0 : i32
    return %c0_i32, %c0_i32_0 : i32, i32
  }
  func.func @transform_15(%arg0: i32) -> (i32, i32, i32) {
    %c0_i32 = arith.constant 0 : i32
    %c0_i32_0 = arith.constant 0 : i32
    %c0_i32_1 = arith.constant 0 : i32
    %c0_i32_2 = arith.constant 0 : i32
    return %c0_i32, %c0_i32_0, %c0_i32_1 : i32, i32, i32
  }
  func.func @transform_16(%arg0: i32) -> (i32, i32) {
    %c0_i32 = arith.constant 0 : i32
    %c0_i32_0 = arith.constant 0 : i32
    %c0_i32_1 = arith.constant 0 : i32
    return %c0_i32, %c0_i32_0 : i32, i32
  }
  func.func @transform_17(%arg0: i32) -> (i32, i32, i32) {
    %c0_i32 = arith.constant 0 : i32
    %c0_i32_0 = arith.constant 0 : i32
    %c0_i32_1 = arith.constant 0 : i32
    %c0_i32_2 = arith.constant 0 : i32
    return %c0_i32, %c0_i32_0, %c0_i32_1 : i32, i32, i32
  }
  func.func @transform_18(%arg0: i32) -> (i32, i32) {
    %c0_i32 = arith.constant 0 : i32
    %c0_i32_0 = arith.constant 0 : i32
    %c0_i32_1 = arith.constant 0 : i32
    return %c0_i32, %c0_i32_0 : i32, i32
  }
  func.func @transform_19(%arg0: i32) -> (i32, i32, i32) {
    %c0_i32 = arith.constant 0 : i32
    %c0_i32_0 = arith.constant 0 : i32
    %c0_i32_1 = arith.constant 0 : i32
    %c0_i32_2 = arith.constant 0 : i32
    return %c0_i32, %c0_i32_0, %c0_i32_1 : i32, i32, i32
  }
  func.func @transform_20(%arg0: i32) -> (i32, i32) {
    %c0_i32 = arith.constant 0 : i32
    %c0_i32_0 = arith.constant 0 : i32
    %c0_i32_1 = arith.constant 0 : i32
    return %c0_i32, %c0_i32_0 : i32, i32
  }
  func.func @transform_21(%arg0: i32) -> (i32, i32, i32) {
    %c0_i32 = arith.constant 0 : i32
    %c0_i32_0 = arith.constant 0 : i32
    %c0_i32_1 = arith.constant 0 : i32
    %c0_i32_2 = arith.constant 0 : i32
    return %c0_i32, %c0_i32_0, %c0_i32_1 : i32, i32, i32
  }
  func.func @transform_22(%arg0: i32) -> (i32, i32) {
    %c0_i32 = arith.constant 0 : i32
    %c0_i32_0 = arith.constant 0 : i32
    %c0_i32_1 = arith.constant 0 : i32
    return %c0_i32, %c0_i32_0 : i32, i32
  }
  func.func @transform_23(%arg0: i32) -> (i32, i32, i32) {
    %c0_i32 = arith.constant 0 : i32
    %c0_i32_0 = arith.constant 0 : i32
    %c0_i32_1 = arith.constant 0 : i32
    %c0_i32_2 = arith.constant 0 : i32
    return %c0_i32, %c0_i32_0, %c0_i32_1 : i32, i32, i32
  }
  func.func @transform_24(%arg0: i32) -> (i32, i32) {
    %c0_i32 = arith.constant 0 : i32
    %c0_i32_0 = arith.constant 0 : i32
    %c0_i32_1 = arith.constant 0 : i32
    return %c0_i32, %c0_i32_0 : i32, i32
  }
  func.func @transform_25(%arg0: i32) -> (i32, i32, i32) {
    %c0_i32 = arith.constant 0 : i32
    %c0_i32_0 = arith.constant 0 : i32
    %c0_i32_1 = arith.constant 0 : i32
    %c0_i32_2 = arith.constant 0 : i32
    return %c0_i32, %c0_i32_0, %c0_i32_1 : i32, i32, i32
  }
  func.func @transform_26(%arg0: i32) -> (i32, i32) {
    %c0_i32 = arith.constant 0 : i32
    %c0_i32_0 = arith.constant 0 : i32
    %c0_i32_1 = arith.constant 0 : i32
    return %c0_i32, %c0_i32_0 : i32, i32
  }
  func.func @transform_27(%arg0: i32) -> (i32, i32, i32) {
    %c0_i32 = arith.constant 0 : i32
    %c0_i32_0 = arith.constant 0 : i32
    %c0_i32_1 = arith.constant 0 : i32
    %c0_i32_2 = arith.constant 0 : i32
    return %c0_i32, %c0_i32_0, %c0_i32_1 : i32, i32, i32
  }
  func.func @transform_28(%arg0: i32) -> (i32, i32) {
    %c0_i32 = arith.constant 0 : i32
    %c0_i32_0 = arith.constant 0 : i32
    %c0_i32_1 = arith.constant 0 : i32
    return %c0_i32, %c0_i32_0 : i32, i32
  }
  func.func @transform_29(%arg0: i32) -> (i32, i32, i32) {
    %c0_i32 = arith.constant 0 : i32
    %c0_i32_0 = arith.constant 0 : i32
    %c0_i32_1 = arith.constant 0 : i32
    %c0_i32_2 = arith.constant 0 : i32
    return %c0_i32, %c0_i32_0, %c0_i32_1 : i32, i32, i32
  }
  func.func @transform_30(%arg0: i32) -> (i32, i32) {
    %c0_i32 = arith.constant 0 : i32
    %c0_i32_0 = arith.constant 0 : i32
    %c0_i32_1 = arith.constant 0 : i32
    return %c0_i32, %c0_i32_0 : i32, i32
  }
  func.func @transform_31(%arg0: i32) -> (i32, i32, i32) {
    %c0_i32 = arith.constant 0 : i32
    %c0_i32_0 = arith.constant 0 : i32
    %c0_i32_1 = arith.constant 0 : i32
    return %arg0, %c0_i32, %c0_i32_0 : i32, i32, i32
  }
}

</mosaic_0001>

<bundles_post_ra>
// kernel: _lambda_.1
= control target key start
LH: loop header
LB: loop body
LE: loop exit
PB: predicated region body
PF: predicated region fallthrough
CT: control target
= control target key end

     0   :  { %s18075_s6 = smov 1   ;;  %s18076_s10 = smov 2   ;;  %s19661_s0 = inlined_call_operand.smem [shape: u32[32], index: -1, kind: input, shape index: {}] }
   0x1   :  { %s18147_s5 = sld [smem:[%s19661_s0]]   ;;  %s18077_s14 = smov 3  }
   0x2   :  { %s18152_s9 = sld [smem:[%s19661_s0 + %s18075_s6]]   ;;  %s18078_s18 = smov 4  }
   0x3   :  { %s18157_s13 = sld [smem:[%s19661_s0 + %s18076_s10]]   ;;  %s18079_s22 = smov 5  }
   0x4   :  { %s18162_s17 = sld [smem:[%s19661_s0 + %s18077_s14]]   ;;  %s18080_s26 = smov 6  }
   0x5   :  { %s18167_s21 = sld [smem:[%s19661_s0 + %s18078_s18]]   ;;  %s18081_s30 = smov 7  }
   0x6   :  { %s18172_s25 = sld [smem:[%s19661_s0 + %s18079_s22]]   ;;  %s18082_s4 = smov 8  }
   0x7   :  { %19691 = sst [smem:[#allocation44_spill]] %s18147_s5  ;;  %s18083_s10 = smov 9  }
   0x8   :  { %19692 = sst [smem:[#allocation45_spill]] %s18152_s9  ;;  %s18084_s15 = smov 10  }
   0x9   :  { %19693 = sst [smem:[#allocation46_spill]] %s18157_s13  ;;  %s18085_s20 = smov 11  }
   0xa   :  { %s18177_s29 = sld [smem:[%s19661_s0 + %s18080_s26]]   ;;  %s18086_s26 = smov 12  }
   0xb   :  { %s18182_s3 = sld [smem:[%s19661_s0 + %s18081_s30]]   ;;  %s18087_s1 = smov 13  }
   0xc   :  { %s18187_s8 = sld [smem:[%s19661_s0 + %s18082_s4]]   ;;  %s18088_s7 = smov 14  }
   0xd   :  { %s18192_s14 = sld [smem:[%s19661_s0 + %s18083_s10]]   ;;  %s18090_s22 = smov 16  }
   0xe   :  { %s18197_s19 = sld [smem:[%s19661_s0 + %s18084_s15]]   ;;  %s18089_s15 = smov 15  }
   0xf   :  { %s18202_s24 = sld [smem:[%s19661_s0 + %s18085_s20]]   ;;  %s18091_s28 = smov 17  }
  0x10   :  { %s18207_s30 = sld [smem:[%s19661_s0 + %s18086_s26]]  }
  0x11   :  { %19694 = sst [smem:[#allocation47_spill]] %s18182_s3 }
  0x12   :  { %19695 = sst [smem:[#allocation48_spill]] %s18187_s8 }
  0x13   :  { %19696 = sst [smem:[#allocation49_spill]] %s18192_s14 }
  0x14   :  { %s18212_s6 = sld [smem:[%s19661_s0 + %s18087_s1]]  }
  0x15   :  { %19697 = sst [smem:[#allocation50_spill]] %s18202_s24 }
  0x16   :  { %s18217_s12 = sld [smem:[%s19661_s0 + %s18088_s7]]   ;;  %s18092_s7 = smov 18  }
  0x17   :  { %s18222_s20 = sld [smem:[%s19661_s0 + %s18089_s15]]   ;;  %s18093_s15 = smov 19  }
  0x18   :  { %s18227_s27 = sld [smem:[%s19661_s0 + %s18090_s22]]   ;;  %s18094_s22 = smov 20  }
  0x19   :  { %s18232_s4 = sld [smem:[%s19661_s0 + %s18091_s28]]   ;;  %s18095_s28 = smov 21  }
  0x1a   :  { %19698 = sst [smem:[#allocation51_spill]] %s18212_s6 }
  0x1b   :  { %s18237_s6 = sld [smem:[%s19661_s0 + %s18092_s7]]   ;;  %s18096_s7 = smov 22  }
  0x1c   :  { %s18247_s24 = sld [smem:[%s19661_s0 + %s18094_s22]]   ;;  %s18098_s22 = smov 24  }
  0x1d   :  { %19699 = sst [smem:[#allocation52_spill]] %s18222_s20 }
  0x1e   :  { %19700 = sst [smem:[#allocation53_spill]] %s18227_s27 }
  0x1f   :  { %19701 = sst [smem:[#allocation54_spill]] %s18232_s4 }
  0x20   :  { %s18242_s20 = sld [smem:[%s19661_s0 + %s18093_s15]]   ;;  %s18097_s15 = smov 23  }
  0x21   :  { %19702 = sst [smem:[#allocation55_spill]] %s18237_s6 }
  0x22   :  { %19704 = sst [smem:[#allocation57_spill]] %s18247_s24 }
  0x23   :  { %s18252_s4 = sld [smem:[%s19661_s0 + %s18095_s28]]   ;;  %s18099_s28 = smov 25  }
  0x24   :  { %s18257_s14 = sld [smem:[%s19661_s0 + %s18096_s7]]   ;;  %s18100_s7 = smov 26  }
  0x25   :  { %s18267_s3 = sld [smem:[%s19661_s0 + %s18098_s22]]   ;;  %s18102_s22 = smov 28  }
  0x26   :  { %19703 = sst [smem:[#allocation56_spill]] %s18242_s20 }
  0x27   :  { %s18262_s20 = sld [smem:[%s19661_s0 + %s18097_s15]]   ;;  %s18101_s15 = smov 27  }
  0x28   :  { %s18277_s5 = sld [smem:[%s19661_s0 + %s18100_s7]]   ;;  %s18104_s7 = smov 30  }
  0x29   :  { %19705 = sst [smem:[#allocation58_spill]] %s18252_s4 }
  0x2a   :  { %s18272_s4 = sld [smem:[%s19661_s0 + %s18099_s28]]   ;;  %s18103_s28 = smov 29  }
  0x2b   :  { %19707 = sst [smem:[#allocation60_spill]] %s18267_s3 }
  0x2c   :  { %s18287_s24 = sld [smem:[%s19661_s0 + %s18102_s22]]  }
  0x2d   :  { %19706 = sst [smem:[#allocation59_spill]] %s18262_s20 }
  0x2e   :  { %19709 = sst [smem:[#allocation62_spill]] %s18277_s5 }
  0x2f   :  { %s18282_s20 = sld [smem:[%s19661_s0 + %s18101_s15]]   ;;  %s18105_s15 = smov 31  }
  0x30   :  { %19708 = sst [smem:[#allocation61_spill]] %s18272_s4 }
  0x31   :  { %s18292_s4 = sld [smem:[%s19661_s0 + %s18103_s28]]  }
  0x32   :  { %s18297_s27 = sld [smem:[%s19661_s0 + %s18104_s7]]  }
  0x35   :  { %19710 = sst [smem:[#allocation63_spill]] %s18282_s20 }
  0x36   :  { %s18302_s20 = sld [smem:[%s19661_s0 + %s18105_s15]]  }
  0x37   :  { %68 = vsyncpa [#allocation3], 0 }
  0x38   :  { %69 = vsyncpa [#allocation5], 0 }
  0x39   :  { %70 = vsyncpa [#allocation8], 0 }
  0x3a   :  { %71 = vsyncpa [#allocation11], 0 }
  0x3b   :  { %72 = vsyncpa [#allocation14], 0 }
  0x3c   :  { %73 = vsyncpa [#allocation17], 0 }
  0x3d   :  { %74 = vsyncpa [#allocation20], 0 }
  0x3e   :  { %75 = vsyncpa [#allocation23], 0 }
  0x3f   :  { %76 = vsyncpa [#allocation26], 0 }
  0x40   :  { %77 = vsyncpa [#allocation29], 0 }
  0x41   :  { %78 = vsyncpa [#allocation32], 0  ;;  %s18304_s22 = smov 0  }
  0x42 LB: > { %s19711_s9 = sld [smem:[#allocation45_spill]]  ;;  %s19712_s8 = sld [smem:[#allocation48_spill]]  ;;  %s18073_s22 = sphi %s18304_s22, %s84_s22  }
  0x43   : > { %s19713_s6 = sld [smem:[#allocation55_spill]]  ;;  %s19714_s5 = sld [smem:[#allocation62_spill]] }
  0x44   : > { %s19715_s3 = sld [smem:[#allocation60_spill]]  ;;  %s19716_s13 = sld [smem:[#allocation46_spill]] }
  0x45   : > { %s18106_s0 = smov [#allocation4]   ;;  %s18310_s26 = sadd.s32 4294967295, %s18073_s22  }
  0x46   : > { %s796_s23 = sshll.u32 %s18106_s0, 4  ;;  %p12827_p0 = scmp.ge.s32.totalorder %s18073_s22, 1  ;;  %s18315_s23 = int_to_ptr.vmem [resolvable:$true] %s796_s23 }
  0x47   : > { %p771_p1 = scmp.lt.s32.totalorder %s18073_s22, 3  ;;  %p19675_p2 = scmp.eq.s32.totalorder %s18310_s26, 0 }
  0x48   : > { %s18107_s1 = smov [#allocation7]   ;;  %s18108_s10 = smov [#allocation10]  }
  0x49   : > { %p18317_p3 = pnand %p12827_p0, %p771_p1  ;;  %s822_s2 = sshll.u32 %s18107_s1, 4  ;;  %s18323_s2 = int_to_ptr.vmem [resolvable:$true] %s822_s2 }
  0x4a   : > { %s848_s11 = sshll.u32 %s18108_s10, 4  ;;  %s18109_s15 = smov [#allocation13]   ;;  %s18331_s11 = int_to_ptr.vmem [resolvable:$true] %s848_s11 }
  0x4b   : > { %s19717_s28 = scalar_select %p18317_p3, 1, 0 }
  0x4c   : > { %p16817_p4 = pneg %p18317_p3  ;;  %s18333_s16 = sshll.u32 %s18109_s15, 4  ;;  %s881_s16 = int_to_ptr.vmem [resolvable:$true] %s18333_s16 }
  0x4d   : > { %s17463_s18 = scalar_lea.hbm %s19716_s13, 2688 }
  0x4e   : > { %p18327_p5 = pnand %p19675_p2, %p16817_p4  ;;  %p17464_p6 = scmp.ne.s32.totalorder %s19716_s13, %s17463_s18 }
  0x4f   : > { %p17470_p10 = scmp.lt.u32.totalorder %s17463_s18, %s19716_s13 }
  0x50   : > { %p18339_p7 = pneg %p18327_p5 }
  0x52   : > { %p17466_p8 = pnand %p18339_p7, %p17464_p6 }
  0x54   : > { %p17467_p9 = pneg %p17466_p8 }
  0x56   : > { %p17472_p11 = pnand %p17470_p10, %p17467_p9 }
  0x58   : > { %17475 = shalt.err (!%p17472_p11)
}
  0x59   : > { %s17476_s1 = scalar_lea.vmem %s18315_s23, 2688  ;;  %p17484_p1 = scmp.lt.s32.totalorder %s18315_s23, %s18315_s23 }
  0x5a   : > { %p17477_p12 = scmp.ne.s32.totalorder %s18315_s23, %s17476_s1  ;;  %p17485_p4 = scmp.lt.s32.totalorder %s17476_s1, %s17476_s1 }
  0x5c   : > { %p17479_p13 = pnand %p17477_p12, %p18339_p7  ;;  %p17486_p2 = por %p17485_p4, %p17484_p1 }
  0x5e   : > { %p17480_p0 = pneg %p17479_p13 }
  0x60   : > { %p17487_p3 = pnand %p17486_p2, %p17480_p0 }
  0x62   : > { %17490 = shalt.err (!%p17487_p3)
}
  0x63   : > { %s19678_s10 = smov 64   ;;  %s19680_s15 = smov 4  }
  0x64   : > { %16823 = dma.hbm_to_vmem [thread:$0]  (!%p18327_p5), %s19716_s13, 2688, %s18315_s23, [#allocation5], %s19678_s10, %s19678_s10, %s19680_s15  }
  0x65   : > { %s17491_s18 = scalar_lea.hbm %s18167_s21, 4096 }
  0x66   : > { %p17492_p6 = scmp.ne.s32.totalorder %s18167_s21, %s17491_s18  ;;  %p17498_p3 = scmp.lt.u32.totalorder %s17491_s18, %s18167_s21 }
  0x68   : > { %p17494_p8 = pnand %p17492_p6, %p18339_p7 }
  0x6a   : > { %p17495_p2 = pneg %p17494_p8 }
  0x6c   : > { %p17500_p9 = pnand %p17498_p3, %p17495_p2 }
  0x6e   : > { %17503 = shalt.err (!%p17500_p9)
}
  0x6f   : > { %s17504_s1 = scalar_lea.vmem %s18323_s2, 4096  ;;  %p17512_p13 = scmp.lt.s32.totalorder %s18323_s2, %s18323_s2 }
  0x70   : > { %p17505_p10 = scmp.ne.s32.totalorder %s18323_s2, %s17504_s1  ;;  %p17513_p0 = scmp.lt.s32.totalorder %s17504_s1, %s17504_s1 }
  0x72   : > { %p17507_p11 = pnand %p17505_p10, %p18339_p7  ;;  %p17514_p1 = por %p17513_p0, %p17512_p13 }
  0x74   : > { %p17508_p12 = pneg %p17507_p11 }
  0x76   : > { %p17515_p4 = pnand %p17514_p1, %p17508_p12 }
  0x78   : > { %17518 = shalt.err (!%p17515_p4)
}
  0x79   : > { %16829 = dma.hbm_to_vmem [thread:$0]  (!%p18327_p5), %s18167_s21, 4096, %s18323_s2, [#allocation8], %s19678_s10, %s19678_s10, %s19680_s15  }
  0x7a   : > { %s17519_s23 = scalar_lea.hbm %s18177_s29, 4096 }
  0x7b   : > { %p17520_p6 = scmp.ne.s32.totalorder %s18177_s29, %s17519_s23  ;;  %p17526_p3 = scmp.lt.u32.totalorder %s17519_s23, %s18177_s29 }
  0x7d   : > { %p17522_p8 = pnand %p17520_p6, %p18339_p7 }
  0x7f   : > { %p17523_p2 = pneg %p17522_p8 }
  0x81   : > { %p17528_p9 = pnand %p17526_p3, %p17523_p2 }
  0x83   : > { %17531 = shalt.err (!%p17528_p9)
}
  0x84   : > { %s17532_s18 = scalar_lea.vmem %s18331_s11, 4096  ;;  %p17540_p13 = scmp.lt.s32.totalorder %s18331_s11, %s18331_s11 }
  0x85   : > { %p17533_p10 = scmp.ne.s32.totalorder %s18331_s11, %s17532_s18  ;;  %p17541_p0 = scmp.lt.s32.totalorder %s17532_s18, %s17532_s18 }
  0x87   : > { %p17535_p11 = pnand %p17533_p10, %p18339_p7  ;;  %p17542_p1 = por %p17541_p0, %p17540_p13 }
  0x89   : > { %p17536_p12 = pneg %p17535_p11 }
  0x8b   : > { %p17543_p4 = pnand %p17542_p1, %p17536_p12 }
  0x8d   : > { %17546 = shalt.err (!%p17543_p4)
}
  0x8e   : > { %16835 = dma.hbm_to_vmem [thread:$0]  (!%p18327_p5), %s18177_s29, 4096, %s18331_s11, [#allocation11], %s19678_s10, %s19678_s10, %s19680_s15  }
  0x8f   : > { %s17547_s2 = scalar_lea.hbm %s18197_s19, 3072 }
  0x90   : > { %p17548_p6 = scmp.ne.s32.totalorder %s18197_s19, %s17547_s2  ;;  %p17554_p3 = scmp.lt.u32.totalorder %s17547_s2, %s18197_s19 }
  0x92   : > { %p17550_p8 = pnand %p17548_p6, %p18339_p7 }
  0x94   : > { %p17551_p2 = pneg %p17550_p8 }
  0x96   : > { %p17556_p9 = pnand %p17554_p3, %p17551_p2 }
  0x98   : > { %17559 = shalt.err (!%p17556_p9)
}
  0x99   : > { %s17560_s1 = scalar_lea.vmem %s881_s16, 3072  ;;  %p17568_p13 = scmp.lt.s32.totalorder %s881_s16, %s881_s16 }
  0x9a   : > { %p17561_p10 = scmp.ne.s32.totalorder %s881_s16, %s17560_s1  ;;  %p17569_p0 = scmp.lt.s32.totalorder %s17560_s1, %s17560_s1 }
  0x9c   : > { %p17563_p11 = pnand %p17561_p10, %p18339_p7  ;;  %p17570_p1 = por %p17569_p0, %p17568_p13 }
  0x9e   : > { %p17564_p12 = pneg %p17563_p11 }
  0xa0   : > { %p17571_p4 = pnand %p17570_p1, %p17564_p12 }
  0xa2   : > { %17574 = shalt.err (!%p17571_p4)
}
  0xa3   : > { %16841 = dma.hbm_to_vmem [thread:$0]  (!%p18327_p5), %s18197_s19, 3072, %s881_s16, [#allocation14], %s19678_s10, %s19678_s10, %s19680_s15  }
  0xa4   : > { %s18112_s11 = smov [#allocation16]   ;;  %s18113_s18 = smov [#allocation19]  }
  0xa5   : > { %s912_s23 = sshll.u32 %s18112_s11, 4  ;;  %s944_s2 = sshll.u32 %s18113_s18, 4  ;;  %s913_s23 = int_to_ptr.vmem [resolvable:$true] %s912_s23  ;;  %s945_s2 = int_to_ptr.vmem [resolvable:$true] %s944_s2 }
  0xa6   : > { %s17575_s1 = scalar_lea.hbm %s18217_s12, 3072 }
  0xa7   : > { %p17576_p6 = scmp.ne.s32.totalorder %s18217_s12, %s17575_s1  ;;  %p17582_p3 = scmp.lt.u32.totalorder %s17575_s1, %s18217_s12 }
  0xa9   : > { %p17578_p8 = pnand %p17576_p6, %p18339_p7 }
  0xab   : > { %p17579_p2 = pneg %p17578_p8 }
  0xad   : > { %p17584_p9 = pnand %p17582_p3, %p17579_p2 }
  0xaf   : > { %17587 = shalt.err (!%p17584_p9)
}
  0xb0   : > { %s17588_s13 = scalar_lea.vmem %s913_s23, 3072  ;;  %p17596_p13 = scmp.lt.s32.totalorder %s913_s23, %s913_s23 }
  0xb1   : > { %p17589_p10 = scmp.ne.s32.totalorder %s913_s23, %s17588_s13  ;;  %p17597_p0 = scmp.lt.s32.totalorder %s17588_s13, %s17588_s13 }
  0xb3   : > { %p17591_p11 = pnand %p17589_p10, %p18339_p7  ;;  %p17598_p1 = por %p17597_p0, %p17596_p13 }
  0xb5   : > { %p17592_p12 = pneg %p17591_p11 }
  0xb7   : > { %p17599_p4 = pnand %p17598_p1, %p17592_p12 }
  0xb9   : > { %17602 = shalt.err (!%p17599_p4)
}
  0xba   : > { %16847 = dma.hbm_to_vmem [thread:$0]  (!%p18327_p5), %s18217_s12, 3072, %s913_s23, [#allocation17], %s19678_s10, %s19678_s10, %s19680_s15  }
  0xbb   : > { %s17603_s16 = scalar_lea.hbm %s19713_s6, 3072 }
  0xbc   : > { %p17604_p6 = scmp.ne.s32.totalorder %s19713_s6, %s17603_s16  ;;  %p17610_p3 = scmp.lt.u32.totalorder %s17603_s16, %s19713_s6 }
  0xbe   : > { %p17606_p8 = pnand %p17604_p6, %p18339_p7 }
  0xc0   : > { %p17607_p2 = pneg %p17606_p8 }
  0xc2   : > { %p17612_p9 = pnand %p17610_p3, %p17607_p2 }
  0xc4   : > { %17615 = shalt.err (!%p17612_p9)
}
  0xc5   : > { %s17616_s13 = scalar_lea.vmem %s945_s2, 3072  ;;  %p17624_p13 = scmp.lt.s32.totalorder %s945_s2, %s945_s2 }
  0xc6   : > { %p17617_p10 = scmp.ne.s32.totalorder %s945_s2, %s17616_s13  ;;  %p17625_p0 = scmp.lt.s32.totalorder %s17616_s13, %s17616_s13 }
  0xc8   : > { %p17619_p11 = pnand %p17617_p10, %p18339_p7  ;;  %p17626_p1 = por %p17625_p0, %p17624_p13 }
  0xca   : > { %p17620_p12 = pneg %p17619_p11 }
  0xcc   : > { %p17627_p4 = pnand %p17626_p1, %p17620_p12 }
  0xce   : > { %17630 = shalt.err (!%p17627_p4)
}
  0xcf   : > { %16853 = dma.hbm_to_vmem [thread:$0]  (!%p18327_p5), %s19713_s6, 3072, %s945_s2, [#allocation20], %s19678_s10, %s19678_s10, %s19680_s15  }
  0xd0   : > { %s18114_s11 = smov [#allocation22]   ;;  %s18115_s18 = smov [#allocation25]  }
  0xd1   : > { %s976_s23 = sshll.u32 %s18114_s11, 4  ;;  %s1002_s1 = sshll.u32 %s18115_s18, 4  ;;  %s977_s23 = int_to_ptr.vmem [resolvable:$true] %s976_s23  ;;  %s1003_s1 = int_to_ptr.vmem [resolvable:$true] %s1002_s1 }
  0xd2   : > { %s17631_s16 = scalar_lea.hbm %s18257_s14, 3072 }
  0xd3   : > { %p17632_p6 = scmp.ne.s32.totalorder %s18257_s14, %s17631_s16  ;;  %p17638_p3 = scmp.lt.u32.totalorder %s17631_s16, %s18257_s14 }
  0xd5   : > { %p17634_p8 = pnand %p17632_p6, %p18339_p7 }
  0xd7   : > { %p17635_p2 = pneg %p17634_p8 }
  0xd9   : > { %p17640_p9 = pnand %p17638_p3, %p17635_p2 }
  0xdb   : > { %17643 = shalt.err (!%p17640_p9)
}
  0xdc   : > { %s17644_s13 = scalar_lea.vmem %s977_s23, 3072  ;;  %p17652_p13 = scmp.lt.s32.totalorder %s977_s23, %s977_s23 }
  0xdd   : > { %p17645_p10 = scmp.ne.s32.totalorder %s977_s23, %s17644_s13  ;;  %p17653_p0 = scmp.lt.s32.totalorder %s17644_s13, %s17644_s13 }
  0xdf   : > { %p17647_p11 = pnand %p17645_p10, %p18339_p7  ;;  %p17654_p1 = por %p17653_p0, %p17652_p13 }
  0xe1   : > { %p17648_p12 = pneg %p17647_p11 }
  0xe3   : > { %p17655_p4 = pnand %p17654_p1, %p17648_p12 }
  0xe5   : > { %17658 = shalt.err (!%p17655_p4)
}
  0xe6   : > { %16859 = dma.hbm_to_vmem [thread:$0]  (!%p18327_p5), %s18257_s14, 3072, %s977_s23, [#allocation23], %s19678_s10, %s19678_s10, %s19680_s15  }
  0xe7   : > { %s17659_s2 = scalar_lea.hbm %s19715_s3, 5120 }
  0xe8   : > { %p17660_p6 = scmp.ne.s32.totalorder %s19715_s3, %s17659_s2  ;;  %p17666_p3 = scmp.lt.u32.totalorder %s17659_s2, %s19715_s3 }
  0xea   : > { %p17662_p8 = pnand %p17660_p6, %p18339_p7 }
  0xec   : > { %p17663_p2 = pneg %p17662_p8 }
  0xee   : > { %p17668_p9 = pnand %p17666_p3, %p17663_p2 }
  0xf0   : > { %17671 = shalt.err (!%p17668_p9)
}
  0xf1   : > { %s17672_s11 = scalar_lea.vmem %s1003_s1, 5120  ;;  %p17680_p13 = scmp.lt.s32.totalorder %s1003_s1, %s1003_s1 }
  0xf2   : > { %p17673_p10 = scmp.ne.s32.totalorder %s1003_s1, %s17672_s11  ;;  %p17681_p0 = scmp.lt.s32.totalorder %s17672_s11, %s17672_s11 }
  0xf4   : > { %p17675_p11 = pnand %p17673_p10, %p18339_p7  ;;  %p17682_p1 = por %p17681_p0, %p17680_p13 }
  0xf6   : > { %p17676_p12 = pneg %p17675_p11 }
  0xf8   : > { %p17683_p4 = pnand %p17682_p1, %p17676_p12 }
  0xfa   : > { %17686 = shalt.err (!%p17683_p4)
}
  0xfb   : > { %16865 = dma.hbm_to_vmem [thread:$0]  (!%p18327_p5), %s19715_s3, 5120, %s1003_s1, [#allocation26], %s19678_s10, %s19678_s10, %s19680_s15  }
  0xfc   : > { %s18116_s23 = smov [#allocation28]   ;;  %s18117_s16 = smov [#allocation2]  }
  0xfd   : > { %s1028_s18 = sshll.u32 %s18116_s23, 4  ;;  %s783_s13 = sshll.u32 %s18117_s16, 4  ;;  %s1029_s18 = int_to_ptr.vmem [resolvable:$true] %s1028_s18  ;;  %s784_s13 = int_to_ptr.vmem [resolvable:$true] %s783_s13 }
  0xfe   : > { %s17687_s2 = scalar_lea.hbm %s19714_s5, 5120 }
  0xff   : > { %p17688_p6 = scmp.ne.s32.totalorder %s19714_s5, %s17687_s2  ;;  %p17694_p3 = scmp.lt.u32.totalorder %s17687_s2, %s19714_s5 }
 0x101   : > { %p17690_p8 = pnand %p17688_p6, %p18339_p7 }
 0x103   : > { %p17691_p2 = pneg %p17690_p8 }
 0x105   : > { %p17696_p9 = pnand %p17694_p3, %p17691_p2 }
 0x107   : > { %17699 = shalt.err (!%p17696_p9)
}
 0x108   : > { %s17700_s11 = scalar_lea.vmem %s1029_s18, 5120  ;;  %p17708_p13 = scmp.lt.s32.totalorder %s1029_s18, %s1029_s18 }
 0x109   : > { %p17701_p10 = scmp.ne.s32.totalorder %s1029_s18, %s17700_s11  ;;  %p17709_p0 = scmp.lt.s32.totalorder %s17700_s11, %s17700_s11 }
 0x10b   : > { %p17703_p11 = pnand %p17701_p10, %p18339_p7  ;;  %p17710_p1 = por %p17709_p0, %p17708_p13 }
 0x10d   : > { %p17704_p12 = pneg %p17703_p11 }
 0x10f   : > { %p17711_p4 = pnand %p17710_p1, %p17704_p12 }
 0x111   : > { %17714 = shalt.err (!%p17711_p4)
}
 0x112   : > { %16871 = dma.hbm_to_vmem [thread:$0]  (!%p18327_p5), %s19714_s5, 5120, %s1029_s18, [#allocation29], %s19678_s10, %s19678_s10, %s19680_s15  }
 0x113   : > { %s17715_s1 = scalar_lea.hbm %s19711_s9, 1792 }
 0x114   : > { %p17716_p6 = scmp.ne.s32.totalorder %s19711_s9, %s17715_s1  ;;  %p17722_p3 = scmp.lt.u32.totalorder %s17715_s1, %s19711_s9 }
 0x116   : > { %p17718_p8 = pnand %p17716_p6, %p18339_p7 }
 0x118   : > { %p17719_p2 = pneg %p17718_p8 }
 0x11a   : > { %p17724_p9 = pnand %p17722_p3, %p17719_p2 }
 0x11c   : > { %17727 = shalt.err (!%p17724_p9)
}
 0x11d   : > { %s17728_s23 = scalar_lea.vmem %s784_s13, 1792  ;;  %p17736_p13 = scmp.lt.s32.totalorder %s784_s13, %s784_s13 }
 0x11e   : > { %p17729_p10 = scmp.ne.s32.totalorder %s784_s13, %s17728_s23  ;;  %p17737_p0 = scmp.lt.s32.totalorder %s17728_s23, %s17728_s23 }
 0x120   : > { %p17731_p11 = pnand %p17729_p10, %p18339_p7  ;;  %p17738_p1 = por %p17737_p0, %p17736_p13 }
 0x122   : > { %p17732_p12 = pneg %p17731_p11 }
 0x124   : > { %p17739_p4 = pnand %p17738_p1, %p17732_p12 }
 0x126   : > { %17742 = shalt.err (!%p17739_p4)
}
 0x127   : > { %s19682_s18 = smov 128   ;;  %s19684_s16 = smov 8  }
 0x128   : > { %16820 = dma.hbm_to_vmem [thread:$0]  (!%p18327_p5), %s19711_s9, 1792, %s784_s13, [#allocation3], %s19682_s18, %s19682_s18, %s19684_s16  }
 0x129   : > { %s18120_s2 = smov [#allocation6]   ;;  %s18121_s1 = smov [#allocation9]  }
 0x12a   : > { %s809_s11 = sshll.u32 %s18120_s2, 4  ;;  %s835_s23 = sshll.u32 %s18121_s1, 4  ;;  %s810_s11 = int_to_ptr.vmem [resolvable:$true] %s809_s11  ;;  %s836_s23 = int_to_ptr.vmem [resolvable:$true] %s835_s23 }
 0x12b   : > { %s17743_s10 = scalar_lea.hbm %s18162_s17, 512 }
 0x12c   : > { %p17744_p6 = scmp.ne.s32.totalorder %s18162_s17, %s17743_s10  ;;  %p17750_p3 = scmp.lt.u32.totalorder %s17743_s10, %s18162_s17 }
 0x12e   : > { %p17746_p8 = pnand %p17744_p6, %p18339_p7 }
 0x130   : > { %p17747_p2 = pneg %p17746_p8 }
 0x132   : > { %p17752_p9 = pnand %p17750_p3, %p17747_p2 }
 0x134   : > { %17755 = shalt.err (!%p17752_p9)
}
 0x135   : > { %s17756_s15 = scalar_lea.vmem %s810_s11, 512  ;;  %p17764_p13 = scmp.lt.s32.totalorder %s810_s11, %s810_s11 }
 0x136   : > { %p17757_p10 = scmp.ne.s32.totalorder %s810_s11, %s17756_s15  ;;  %p17765_p0 = scmp.lt.s32.totalorder %s17756_s15, %s17756_s15 }
 0x138   : > { %p17759_p11 = pnand %p17757_p10, %p18339_p7  ;;  %p17766_p1 = por %p17765_p0, %p17764_p13 }
 0x13a   : > { %p17760_p12 = pneg %p17759_p11 }
 0x13c   : > { %p17767_p4 = pnand %p17766_p1, %p17760_p12 }
 0x13e   : > { %17770 = shalt.err (!%p17767_p4)
}
 0x13f   : > { %16826 = dma.hbm_to_vmem [thread:$0]  (!%p18327_p5), %s18162_s17, 512, %s810_s11, [#allocation5], %s19682_s18, %s19682_s18, %s19684_s16  }
 0x140   : > { %s17771_s10 = scalar_lea.hbm %s18172_s25, 256 }
 0x141   : > { %p17772_p6 = scmp.ne.s32.totalorder %s18172_s25, %s17771_s10  ;;  %p17778_p3 = scmp.lt.u32.totalorder %s17771_s10, %s18172_s25 }
 0x143   : > { %p17774_p8 = pnand %p17772_p6, %p18339_p7 }
 0x145   : > { %p17775_p2 = pneg %p17774_p8 }
 0x147   : > { %p17780_p9 = pnand %p17778_p3, %p17775_p2 }
 0x149   : > { %17783 = shalt.err (!%p17780_p9)
}
 0x14a   : > { %s17784_s15 = scalar_lea.vmem %s836_s23, 256  ;;  %p17792_p13 = scmp.lt.s32.totalorder %s836_s23, %s836_s23 }
 0x14b   : > { %p17785_p10 = scmp.ne.s32.totalorder %s836_s23, %s17784_s15  ;;  %p17793_p0 = scmp.lt.s32.totalorder %s17784_s15, %s17784_s15 }
 0x14d   : > { %p17787_p11 = pnand %p17785_p10, %p18339_p7  ;;  %p17794_p1 = por %p17793_p0, %p17792_p13 }
 0x14f   : > { %p17788_p12 = pneg %p17787_p11 }
 0x151   : > { %p17795_p4 = pnand %p17794_p1, %p17788_p12 }
 0x153   : > { %17798 = shalt.err (!%p17795_p4)
}
 0x154   : > { %s19720_s13 = smov 4   ;;  %s19721_s2 = smov 64  }
 0x155   : > { %16832 = dma.hbm_to_vmem [thread:$0]  (!%p18327_p5), %s18172_s25, 256, %s836_s23, [#allocation8], %s19721_s2, %s19721_s2, %s19720_s13  }
 0x156   : > { %s18122_s11 = smov [#allocation12]   ;;  %s18123_s10 = smov [#allocation15]  }
 0x157   : > { %s864_s1 = sshll.u32 %s18122_s11, 4  ;;  %s896_s18 = sshll.u32 %s18123_s10, 4  ;;  %s865_s1 = int_to_ptr.vmem [resolvable:$true] %s864_s1  ;;  %s897_s18 = int_to_ptr.vmem [resolvable:$true] %s896_s18 }
 0x158   : > { %s17799_s15 = scalar_lea.hbm %s19712_s8, 3072 }
 0x159   : > { %p17800_p6 = scmp.ne.s32.totalorder %s19712_s8, %s17799_s15  ;;  %p17806_p3 = scmp.lt.u32.totalorder %s17799_s15, %s19712_s8 }
 0x15b   : > { %p17802_p8 = pnand %p17800_p6, %p18339_p7 }
 0x15d   : > { %p17803_p2 = pneg %p17802_p8 }
 0x15f   : > { %p17808_p9 = pnand %p17806_p3, %p17803_p2 }
 0x161   : > { %17811 = shalt.err (!%p17808_p9)
}
 0x162   : > { %s17812_s16 = scalar_lea.vmem %s865_s1, 3072  ;;  %p17820_p13 = scmp.lt.s32.totalorder %s865_s1, %s865_s1 }
 0x163   : > { %p17813_p10 = scmp.ne.s32.totalorder %s865_s1, %s17812_s16  ;;  %p17821_p0 = scmp.lt.s32.totalorder %s17812_s16, %s17812_s16 }
 0x165   : > { %p17815_p11 = pnand %p17813_p10, %p18339_p7  ;;  %p17822_p1 = por %p17821_p0, %p17820_p13 }
 0x167   : > { %p17816_p12 = pneg %p17815_p11 }
 0x169   : > { %p17823_p4 = pnand %p17822_p1, %p17816_p12 }
 0x16b   : > { %17826 = shalt.err (!%p17823_p4)
}
 0x16c   : > { %16838 = dma.hbm_to_vmem [thread:$0]  (!%p18327_p5), %s19712_s8, 3072, %s865_s1, [#allocation11], %s19721_s2, %s19721_s2, %s19720_s13  }
 0x16d   : > { %s17827_s23 = scalar_lea.hbm %s18207_s30, 3072 }
 0x16e   : > { %p17828_p6 = scmp.ne.s32.totalorder %s18207_s30, %s17827_s23  ;;  %p17834_p3 = scmp.lt.u32.totalorder %s17827_s23, %s18207_s30 }
 0x170   : > { %p17830_p8 = pnand %p17828_p6, %p18339_p7 }
 0x172   : > { %p17831_p2 = pneg %p17830_p8 }
 0x174   : > { %p17836_p9 = pnand %p17834_p3, %p17831_p2 }
 0x176   : > { %17839 = shalt.err (!%p17836_p9)
}
 0x177   : > { %s17840_s16 = scalar_lea.vmem %s897_s18, 3072  ;;  %p17848_p13 = scmp.lt.s32.totalorder %s897_s18, %s897_s18 }
 0x178   : > { %p17841_p10 = scmp.ne.s32.totalorder %s897_s18, %s17840_s16  ;;  %p17849_p0 = scmp.lt.s32.totalorder %s17840_s16, %s17840_s16 }
 0x17a   : > { %p17843_p11 = pnand %p17841_p10, %p18339_p7  ;;  %p17850_p1 = por %p17849_p0, %p17848_p13 }
 0x17c   : > { %p17844_p12 = pneg %p17843_p11 }
 0x17e   : > { %p17851_p4 = pnand %p17850_p1, %p17844_p12 }
 0x180   : > { %17854 = shalt.err (!%p17851_p4)
}
 0x181   : > { %s19722_s11 = sld [smem:[#allocation53_spill]]  ;;  %s18124_s1 = smov [#allocation18]  }
 0x182   : > { %16844 = dma.hbm_to_vmem [thread:$0]  (!%p18327_p5), %s18207_s30, 3072, %s897_s18, [#allocation14], %s19721_s2, %s19721_s2, %s19720_s13  }
 0x183   : > { %s928_s10 = sshll.u32 %s18124_s1, 4  ;;  %s18125_s15 = smov [#allocation21]   ;;  %s929_s10 = int_to_ptr.vmem [resolvable:$true] %s928_s10 }
 0x184   : > { %s960_s23 = sshll.u32 %s18125_s15, 4  ;;  %s961_s23 = int_to_ptr.vmem [resolvable:$true] %s960_s23 }
 0x187   : > { %s17855_s16 = scalar_lea.hbm %s19722_s11, 3072 }
 0x188   : > { %p17856_p6 = scmp.ne.s32.totalorder %s19722_s11, %s17855_s16  ;;  %p17862_p3 = scmp.lt.u32.totalorder %s17855_s16, %s19722_s11 }
 0x18a   : > { %p17858_p8 = pnand %p17856_p6, %p18339_p7 }
 0x18c   : > { %p17859_p2 = pneg %p17858_p8 }
 0x18e   : > { %p17864_p9 = pnand %p17862_p3, %p17859_p2 }
 0x190   : > { %17867 = shalt.err (!%p17864_p9)
}
 0x191   : > { %s17868_s3 = scalar_lea.vmem %s929_s10, 3072  ;;  %p17876_p13 = scmp.lt.s32.totalorder %s929_s10, %s929_s10 }
 0x192   : > { %p17869_p10 = scmp.ne.s32.totalorder %s929_s10, %s17868_s3  ;;  %p17877_p0 = scmp.lt.s32.totalorder %s17868_s3, %s17868_s3 }
 0x194   : > { %p17871_p11 = pnand %p17869_p10, %p18339_p7  ;;  %p17878_p1 = por %p17877_p0, %p17876_p13 }
 0x196   : > { %p17872_p12 = pneg %p17871_p11 }
 0x198   : > { %p17879_p4 = pnand %p17878_p1, %p17872_p12 }
 0x19a   : > { %17882 = shalt.err (!%p17879_p4)
}
 0x19b   : > { %s19723_s18 = sld [smem:[#allocation57_spill]] }
 0x19c   : > { %16850 = dma.hbm_to_vmem [thread:$0]  (!%p18327_p5), %s19722_s11, 3072, %s929_s10, [#allocation17], %s19721_s2, %s19721_s2, %s19720_s13  }
 0x1a1   : > { %s17883_s1 = scalar_lea.hbm %s19723_s18, 3072 }
 0x1a2   : > { %p17884_p6 = scmp.ne.s32.totalorder %s19723_s18, %s17883_s1  ;;  %p17890_p3 = scmp.lt.u32.totalorder %s17883_s1, %s19723_s18 }
 0x1a4   : > { %p17886_p8 = pnand %p17884_p6, %p18339_p7 }
 0x1a6   : > { %p17887_p2 = pneg %p17886_p8 }
 0x1a8   : > { %p17892_p9 = pnand %p17890_p3, %p17887_p2 }
 0x1aa   : > { %17895 = shalt.err (!%p17892_p9)
}
 0x1ab   : > { %s17896_s3 = scalar_lea.vmem %s961_s23, 3072  ;;  %p17904_p13 = scmp.lt.s32.totalorder %s961_s23, %s961_s23 }
 0x1ac   : > { %p17897_p10 = scmp.ne.s32.totalorder %s961_s23, %s17896_s3  ;;  %p17905_p0 = scmp.lt.s32.totalorder %s17896_s3, %s17896_s3 }
 0x1ae   : > { %p17899_p11 = pnand %p17897_p10, %p18339_p7  ;;  %p17906_p1 = por %p17905_p0, %p17904_p13 }
 0x1b0   : > { %p17900_p12 = pneg %p17899_p11 }
 0x1b2   : > { %p17907_p4 = pnand %p17906_p1, %p17900_p12 }
 0x1b4   : > { %17910 = shalt.err (!%p17907_p4)
}
 0x1b5   : > { %s19724_s10 = sld [smem:[#allocation59_spill]]  ;;  %s18126_s15 = smov [#allocation24]  }
 0x1b6   : > { %16856 = dma.hbm_to_vmem [thread:$0]  (!%p18327_p5), %s19723_s18, 3072, %s961_s23, [#allocation20], %s19721_s2, %s19721_s2, %s19720_s13  }
 0x1b7   : > { %s989_s16 = sshll.u32 %s18126_s15, 4  ;;  %s18127_s1 = smov [#allocation27]   ;;  %s990_s16 = int_to_ptr.vmem [resolvable:$true] %s989_s16 }
 0x1b8   : > { %s1015_s5 = sshll.u32 %s18127_s1, 4  ;;  %s1016_s5 = int_to_ptr.vmem [resolvable:$true] %s1015_s5 }
 0x1bb   : > { %s17911_s3 = scalar_lea.hbm %s19724_s10, 640 }
 0x1bc   : > { %p17912_p6 = scmp.ne.s32.totalorder %s19724_s10, %s17911_s3  ;;  %p17918_p3 = scmp.lt.u32.totalorder %s17911_s3, %s19724_s10 }
 0x1be   : > { %p17914_p8 = pnand %p17912_p6, %p18339_p7 }
 0x1c0   : > { %p17915_p2 = pneg %p17914_p8 }
 0x1c2   : > { %p17920_p9 = pnand %p17918_p3, %p17915_p2 }
 0x1c4   : > { %17923 = shalt.err (!%p17920_p9)
}
 0x1c5   : > { %s17924_s6 = scalar_lea.vmem %s990_s16, 640  ;;  %p17932_p13 = scmp.lt.s32.totalorder %s990_s16, %s990_s16 }
 0x1c6   : > { %p17925_p10 = scmp.ne.s32.totalorder %s990_s16, %s17924_s6  ;;  %p17933_p0 = scmp.lt.s32.totalorder %s17924_s6, %s17924_s6 }
 0x1c8   : > { %p17927_p11 = pnand %p17925_p10, %p18339_p7  ;;  %p17934_p1 = por %p17933_p0, %p17932_p13 }
 0x1ca   : > { %p17928_p12 = pneg %p17927_p11 }
 0x1cc   : > { %p17935_p4 = pnand %p17934_p1, %p17928_p12 }
 0x1ce   : > { %17938 = shalt.err (!%p17935_p4)
}
 0x1cf   : > { %s19725_s13 = smov 8   ;;  %s19726_s2 = smov 128  }
 0x1d0   : > { %s19727_s23 = sld [smem:[#allocation61_spill]] }
 0x1d1   : > { %16862 = dma.hbm_to_vmem [thread:$0]  (!%p18327_p5), %s19724_s10, 640, %s990_s16, [#allocation23], %s19726_s2, %s19726_s2, %s19725_s13  }
 0x1d6   : > { %s17939_s15 = scalar_lea.hbm %s19727_s23, 1280 }
 0x1d7   : > { %p17940_p6 = scmp.ne.s32.totalorder %s19727_s23, %s17939_s15  ;;  %p17946_p3 = scmp.lt.u32.totalorder %s17939_s15, %s19727_s23 }
 0x1d9   : > { %p17942_p8 = pnand %p17940_p6, %p18339_p7 }
 0x1db   : > { %p17943_p2 = pneg %p17942_p8 }
 0x1dd   : > { %p17948_p9 = pnand %p17946_p3, %p17943_p2 }
 0x1df   : > { %17951 = shalt.err (!%p17948_p9)
}
 0x1e0   : > { %s17952_s6 = scalar_lea.vmem %s1016_s5, 1280  ;;  %p17960_p13 = scmp.lt.s32.totalorder %s1016_s5, %s1016_s5 }
 0x1e1   : > { %p17953_p10 = scmp.ne.s32.totalorder %s1016_s5, %s17952_s6  ;;  %p17961_p0 = scmp.lt.s32.totalorder %s17952_s6, %s17952_s6 }
 0x1e3   : > { %p17955_p11 = pnand %p17953_p10, %p18339_p7  ;;  %p17962_p1 = por %p17961_p0, %p17960_p13 }
 0x1e5   : > { %p17956_p12 = pneg %p17955_p11 }
 0x1e7   : > { %p17963_p4 = pnand %p17962_p1, %p17956_p12 }
 0x1e9   : > { %17966 = shalt.err (!%p17963_p4)
}
 0x1ea   : > { %s19728_s16 = sld [smem:[#allocation63_spill]]  ;;  %s18128_s1 = smov [#allocation30]  }
 0x1eb   : > { %16868 = dma.hbm_to_vmem [thread:$0]  (!%p18327_p5), %s19727_s23, 1280, %s1016_s5, [#allocation26], %s19726_s2, %s19726_s2, %s19725_s13  }
 0x1ec   : > { %s1041_s3 = sshll.u32 %s18128_s1, 4  ;;  %s18129_s15 = smov [#allocation31]   ;;  %s1042_s3 = int_to_ptr.vmem [resolvable:$true] %s1041_s3 }
 0x1ed   : > { %s1057_s8 = sshll.u32 %s18129_s15, 4  ;;  %s1058_s8 = int_to_ptr.vmem [resolvable:$true] %s1057_s8 }
 0x1f0   : > { %s17967_s6 = scalar_lea.hbm %s19728_s16, 1792 }
 0x1f1   : > { %p17968_p6 = scmp.ne.s32.totalorder %s19728_s16, %s17967_s6  ;;  %p17974_p3 = scmp.lt.u32.totalorder %s17967_s6, %s19728_s16 }
 0x1f3   : > { %p17970_p8 = pnand %p17968_p6, %p18339_p7 }
 0x1f5   : > { %p17971_p2 = pneg %p17970_p8 }
 0x1f7   : > { %p17976_p9 = pnand %p17974_p3, %p17971_p2 }
 0x1f9   : > { %17979 = shalt.err (!%p17976_p9)
}
 0x1fa   : > { %s17980_s9 = scalar_lea.vmem %s1042_s3, 1792  ;;  %p17988_p13 = scmp.lt.s32.totalorder %s1042_s3, %s1042_s3 }
 0x1fb   : > { %p17981_p10 = scmp.ne.s32.totalorder %s1042_s3, %s17980_s9  ;;  %p17989_p0 = scmp.lt.s32.totalorder %s17980_s9, %s17980_s9 }
 0x1fd   : > { %p17983_p11 = pnand %p17981_p10, %p18339_p7  ;;  %p17990_p1 = por %p17989_p0, %p17988_p13 }
 0x1ff   : > { %p17984_p12 = pneg %p17983_p11 }
 0x201   : > { %p17991_p4 = pnand %p17990_p1, %p17984_p12 }
 0x203   : > { %17994 = shalt.err (!%p17991_p4)
}
 0x204   : > { %16874 = dma.hbm_to_vmem [thread:$0]  (!%p18327_p5), %s19728_s16, 1792, %s1042_s3, [#allocation29], %s19726_s2, %s19726_s2, %s19725_s13  }
 0x205   : > { %s17995_s5 = scalar_lea.hbm %s18292_s4, 6144 }
 0x206   : > { %p17996_p6 = scmp.ne.s32.totalorder %s18292_s4, %s17995_s5  ;;  %p18002_p3 = scmp.lt.u32.totalorder %s17995_s5, %s18292_s4 }
 0x208   : > { %p17998_p8 = pnand %p17996_p6, %p18339_p7 }
 0x20a   : > { %p17999_p2 = pneg %p17998_p8 }
 0x20c   : > { %p18004_p9 = pnand %p18002_p3, %p17999_p2 }
 0x20e   : > { %18007 = shalt.err (!%p18004_p9)
}
 0x20f   : > { %s18008_s9 = scalar_lea.vmem %s1058_s8, 6144  ;;  %p18016_p13 = scmp.lt.s32.totalorder %s1058_s8, %s1058_s8 }
 0x210   : > { %p18009_p10 = scmp.ne.s32.totalorder %s1058_s8, %s18008_s9  ;;  %p18017_p0 = scmp.lt.s32.totalorder %s18008_s9, %s18008_s9 }
 0x212   : > { %p18011_p11 = pnand %p18009_p10, %p18339_p7  ;;  %p18018_p1 = por %p18017_p0, %p18016_p13 }
 0x214   : > { %p18012_p12 = pneg %p18011_p11 }
 0x216   : > { %p18019_p4 = pnand %p18018_p1, %p18012_p12 }
 0x218   : > { %18022 = shalt.err (!%p18019_p4)
}
 0x219   : > { %16877 = dma.hbm_to_vmem [thread:$0]  (!%p18327_p5), %s18292_s4, 6144, %s1058_s8, [#allocation32], %s19726_s2, %s19726_s2, %s19725_s13  }
 0x21a   : > { %p19729_p6 = scmp.ne.s32.totalorder %s19717_s28, 0 }
 0x21b   : > { %p19730_p8 = scmp.eq.s32.totalorder (!%p19729_p6), %s18310_s26, 0 }
 0x21c   : > { %1084 = sbr.rel (%p19729_p6) target bundleno = 13112 (0x3338), region = 144 }
 0x223   : > { %18028 = dma.done.wait (%p19730_p8), [#allocation3], 1792   ;;  %p19731_p7 = pmov %p19730_p8 }
 0x225   : > { %18030 = vsyncadd (%p19731_p7), [#allocation3], 4294965504  ;;  %p19732_p2 = pmov %p19731_p7 }
 0x227   : > { %18032 = dma.done.wait (%p19732_p2), [#allocation5], 3200   ;;  %p19733_p3 = pmov %p19732_p2 }
 0x228   : > { %p19734_p9 = pmov %p19732_p2 }
 0x229   : > { %18034 = vsyncadd (%p19733_p3), [#allocation5], 4294964096 }
 0x22a   : > { %18036 = dma.done.wait (%p19734_p9), [#allocation8], 4352   ;;  %p19735_p5 = pmov %p19732_p2 }
 0x22b   : > { %p19736_p10 = pmov %p19732_p2 }
 0x22c   : > { %18038 = vsyncadd (%p19735_p5), [#allocation8], 4294962944 }
 0x22d   : > { %18040 = dma.done.wait (%p19736_p10), [#allocation11], 7168   ;;  %p19737_p11 = pmov %p19732_p2 }
 0x22e   : > { %p19738_p12 = pmov %p19732_p2 }
 0x22f   : > { %18042 = vsyncadd (%p19737_p11), [#allocation11], 4294960128 }
 0x230   : > { %18044 = dma.done.wait (%p19738_p12), [#allocation14], 6144   ;;  %p19739_p13 = pmov %p19732_p2 }
 0x231   : > { %p19740_p0 = pmov %p19732_p2 }
 0x232   : > { %18046 = vsyncadd (%p19739_p13), [#allocation14], 4294961152 }
 0x233   : > { %18048 = dma.done.wait (%p19740_p0), [#allocation17], 6144   ;;  %p19741_p1 = pmov %p19740_p0 }
 0x234   : > { %p19742_p4 = pmov %p19740_p0 }
 0x235   : > { %18050 = vsyncadd (%p19741_p1), [#allocation17], 4294961152 }
 0x236   : > { %18052 = dma.done.wait (%p19742_p4), [#allocation20], 6144   ;;  %p19743_p6 = pmov %p19740_p0 }
 0x237   : > { %p19744_p8 = pmov %p19740_p0 }
 0x238   : > { %18054 = vsyncadd (%p19743_p6), [#allocation20], 4294961152 }
 0x239   : > { %18056 = dma.done.wait (%p19744_p8), [#allocation23], 3712   ;;  %p19745_p7 = pmov %p19740_p0 }
 0x23a   : > { %p19746_p2 = pmov %p19740_p0 }
 0x23b   : > { %18058 = vsyncadd (%p19745_p7), [#allocation23], 4294963584 }
 0x23c   : > { %18060 = dma.done.wait (%p19746_p2), [#allocation26], 6400   ;;  %p19747_p3 = pmov %p19740_p0 }
 0x23d   : > { %p19748_p9 = pmov %p19740_p0 }
 0x23e   : > { %18062 = vsyncadd (%p19747_p3), [#allocation26], 4294960896 }
 0x23f   : > { %18064 = dma.done.wait (%p19748_p9), [#allocation29], 6912   ;;  %p19749_p5 = pmov %p19740_p0 }
 0x240   : > { %p19750_p10 = pmov %p19740_p0 }
 0x241   : > { %18066 = vsyncadd (%p19749_p5), [#allocation29], 4294960384 }
 0x242   : > { %18068 = dma.done.wait (%p19750_p10), [#allocation32], 6144   ;;  %p19751_p11 = pmov %p19740_p0 }
 0x243   : > { %s19752_s8 = sld [smem:[#allocation44_spill]]  ;;  %p1240_p12 = scmp.lt.s32.totalorder %s18310_s26, 1  ;;  %vm1255_vm0 = vcmask 130048   ;;  %v1253_v2 = vld [vmem:[#allocation2] sm:$0xff]  ;;  %v1338_v4 = vld [vmem:[#allocation2 + $0x10] sm:$0xff]  ;;  %v1254_v5 = vld [vmem:[#allocation2 + $0x8] sm:$0xff] }
 0x244   : > { %18070 = vsyncadd (%p19751_p11), [#allocation32], 4294961152  ;;  %14557 = vmatprep.mubr.msk.f32.mxu0 %vm1255_vm0, %v1253_v2  ;;  %14564 = vmatprep.mubr.msk.f32.mxu1 %vm1255_vm0, %v1338_v4  ;;  %v1339_v6 = vld [vmem:[#allocation2 + $0x18] sm:$0xff]  ;;  %v1422_v7 = vld [vmem:[#allocation2 + $0x20] sm:$0xff]  ;;  %v18130_v20 = vmov 0.0   ;;  %s18131_s0 = smov 96  }
 0x245   : > { %s19762_s26 = smov (!%p1240_p12, %s18310_s26), 1  ;;  %v1506_v8 = vld [vmem:[#allocation2 + $0x30] sm:$0xff]  ;;  %v1423_v9 = vld [vmem:[#allocation2 + $0x28] sm:$0xff]  ;;  %v1507_v10 = vld [vmem:[#allocation2 + $0x38] sm:$0xff]  ;;  %vm18132_vm1 = vmmov 0   ;;  %s18133_s13 = smov 16  }
 0x246   : > { %s13411_s28 = sshll.u32 %s19762_s26, 4  ;;  %v1590_v11 = vld [vmem:[#allocation2 + $0x40] sm:$0xff]  ;;  %v1674_v12 = vld [vmem:[#allocation2 + $0x50] sm:$0xff]  ;;  %v1591_v13 = vld [vmem:[#allocation2 + $0x48] sm:$0xff]  ;;  %s18134_s2 = smov 64   ;;  %vm1897_vm2 = vcmask 523264  }
 0x247   : > { %v1675_v14 = vld [vmem:[#allocation2 + $0x58] sm:$0xff]  ;;  %v1758_v15 = vld [vmem:[#allocation2 + $0x60] sm:$0xff]  ;;  %v1759_v16 = vld [vmem:[#allocation2 + $0x68] sm:$0xff]  ;;  %s18135_s1 = smov 112   ;;  %s18136_s3 = smov 48   ;;  %vm1889_vm3 = vcmask 392192  }
 0x248   : > { %v17020_v17 = vld [vmem:[#allocation4 + $0x40] sm:$0xff]   ;;  %v17022_v19 = vld [vmem:[#allocation4 + $0x48] sm:$0xff]   ;;  %v17024_v22 = vld [vmem:[#allocation4 + $0x50] sm:$0xff]   ;;  %s18137_s15 = smov 32   ;;  %vm1900_vm4 = vcmask 916480   ;;  %vm1892_vm5 = vcmask 785408  }
 0x249   : > { %s1244_s7 = scalar_lea.vmem %s19752_s8, %s13411_s28  ;;  %v17021_v18 = vld [vmem:[#allocation4] sm:$0xff]   ;;  %v17023_v21 = vld [vmem:[#allocation4 + $0x8] sm:$0xff]   ;;  %v17025_v24 = vld [vmem:[#allocation4 + $0x10] sm:$0xff]   ;;  %vm1903_vm6 = vcmask 261120   ;;  %vm2077_vm7 = vcmask 654336   ;;  %vm3172_vm8 = vcmask 64512  }
 0x24a   : > { %v1251_v0 = vld [vmem:[%s1244_s7] sm:$0xff]  ;;  %v1252_v1 = vld [vmem:[%s1244_s7 + $0x8] sm:$0xff]  ;;  %v17029_v23 = vld [vmem:[#allocation4 + $0x80] sm:$0xff]   ;;  %vm3898_vm9 = vcmask 1043456   ;;  %s19753_s6 = sld [smem:[#allocation47_spill]]  ;;  %vm3992_vm10 = vcmask 31744  }
 0x24b   : > { %v16013_v3 = vpack.c.bf16 %v1252_v1, %v1251_v0  ;;  %v17026_v25 = vld [vmem:[#allocation4 + $0x58] sm:$0xff]   ;;  %v17028_v27 = vld [vmem:[#allocation4 + $0x60] sm:$0xff]   ;;  %v17031_v29 = vld [vmem:[#allocation4 + $0x68] sm:$0xff]   ;;  %s19754_s5 = sld [smem:[#allocation49_spill]]  ;;  %s19755_s9 = sld [smem:[#allocation50_spill]] }
 0x24c   : > { %v17027_v26 = vld [vmem:[#allocation4 + $0x18] sm:$0xff]   ;;  %v17030_v28 = vld [vmem:[#allocation4 + $0x20] sm:$0xff]   ;;  %v17032_v30 = vld [vmem:[#allocation4 + $0x88] sm:$0xff]   ;;  %s19756_s8 = sld [smem:[#allocation51_spill]]  ;;  %s19757_s7 = sld [smem:[#allocation52_spill]] }
 0x24d   : > { %16014 = vmatprep.subr.bf16.mxu0 %v16013_v3  ;;  %16018 = vmatprep.subr.bf16.mxu1 %v16013_v3  ;;  %v17033_v31 = vld [vmem:[#allocation4 + $0x28] sm:$0xff]   ;;  %v17034_v32 = vld [vmem:[#allocation4 + $0x70] sm:$0xff]   ;;  %v17037_v40 = vld [vmem:[#allocation4 + $0x78] sm:$0xff]  }
 0x24e   : > { %16016 = vmatpush3.bf16.msra.mxu0 %v16013_v3  ;;  %16020 = vmatpush3.bf16.msra.mxu1 %v16013_v3  ;;  %v17035_v33 = vld [vmem:[#allocation4 + $0x90] sm:$0xff]   ;;  %v17038_v41 = vld [vmem:[#allocation4 + $0x98] sm:$0xff]   ;;  %v17040_v49 = vld [vmem:[#allocation4 + $0xa0] sm:$0xff]  }
 0x24f   : > { %16022 = vmatprep.subr.bf16.mxu0 %v16013_v3  ;;  %16026 = vmatprep.subr.bf16.mxu1 %v16013_v3  ;;  %v17036_v36 = vld [vmem:[#allocation4 + $0x30] sm:$0xff]   ;;  %v17039_v43 = vld [vmem:[#allocation4 + $0x38] sm:$0xff]   ;;  %v2163_v57 = vld [vmem:[#allocation31] sm:$0xff] }
 0x250   : > { %v2164_v58 = vld [vmem:[#allocation31 + $0x8] sm:$0xff] }
 0x251   : > { %14558 = vmatmul.mubr.msk.f32.vlgmr.msra.gmra.mrb[0].mxu0 %vm1255_vm0, %v1254_v5  ;;  %14565 = vmatmul.mubr.msk.f32.vlgmr.msra.gmra.mrb[0].mxu1 %vm1255_vm0, %v1339_v6  ;;  %v18696_v60 = vpack.c.bf16 %v2164_v58, %v2163_v57 }
 0x252   : > { %16024 = vmatpush3.bf16.msra.mxu0 %v16013_v3  ;;  %14571 = vmatprep.mubr.msk.f32.mxu0 %vm1255_vm0, %v1422_v7 }
 0x253   : > { %16028 = vmatpush3.bf16.msra.mxu1 %v16013_v3  ;;  %16030 = vmatprep.subr.bf16.mxu0 %v16013_v3 }
 0x254   : > { %14578 = vmatprep.mubr.msk.f32.mxu1 %vm1255_vm0, %v1506_v8  ;;  %16034 = vmatprep.subr.bf16.mxu1 %v16013_v3 }
 0x255   : > { %14572 = vmatmul.mubr.msk.f32.vlgmr.msra.gmra.mrb[2].mxu0 %vm1255_vm0, %v1423_v9 }
 0x256   : > { %16032 = vmatpush3.bf16.msra.mxu0 %v16013_v3  ;;  %14579 = vmatmul.mubr.msk.f32.vlgmr.msra.gmra.mrb[2].mxu1 %vm1255_vm0, %v1507_v10 }
 0x257   : > { %14585 = vmatprep.mubr.msk.f32.mxu0 %vm1255_vm0, %v1590_v11  ;;  %16036 = vmatpush3.bf16.msra.mxu1 %v16013_v3 }
 0x258   : > { %14592 = vmatprep.mubr.msk.f32.mxu1 %vm1255_vm0, %v1674_v12  ;;  %16038 = vmatprep.subr.bf16.mxu0 %v16013_v3 }
 0x259   : > { %14586 = vmatmul.mubr.msk.f32.vlgmr.msra.gmra.mrb[4].mxu0 %vm1255_vm0, %v1591_v13  ;;  %13441 = vmatprep.subr.bf16.mxu1 %v17020_v17 }
 0x25a   : > { %14593 = vmatmul.mubr.msk.f32.vlgmr.msra.gmra.mrb[4].mxu1 %vm1255_vm0, %v1675_v14  ;;  %16040 = vmatpush3.bf16.msra.mxu0 %v16013_v3 }
 0x25b   : > { %14599 = vmatprep.mubr.msk.f32.mxu0 %vm1255_vm0, %v1758_v15  ;;  %14602 = vmatprep.subr.bf16.mxu0 %v18130_v20 }
 0x25c   : > { %13442 = vmatpush3.bf16.msra.mxu1 %v17021_v18 }
 0x25d   : > { %14600 = vmatmul.mubr.msk.f32.vlgmr.msra.gmra.mrb[6].mxu0 %vm1255_vm0, %v1759_v16  ;;  %13443 = vmatprep.subr.bf16.mxu1 %v17022_v19 }
 0x25e   : > { %14603 = vmatpush3.bf16.msra.mxu0 %v17029_v23  ;;  %14612 = vmatprep.mubr.msk.bf16.mxu0 %vm18132_vm1, %v18130_v20 }
 0x25f   : > { %14604 = vmatprep.subr.bf16.mxu0 %v18130_v20 }
 0x260   : > { %13444 = vmatpush3.bf16.msra.mxu1 %v17023_v21 }
 0x261   : > { %13445 = vmatprep.subr.bf16.mxu1 %v17024_v22 }
 0x262   : > { %14605 = vmatpush3.bf16.msra.mxu0 %v17032_v30 }
 0x263   : > { %14606 = vmatprep.subr.bf16.mxu0 %v18130_v20 }
 0x264   : > { %13446 = vmatpush3.bf16.msra.mxu1 %v17025_v24 }
 0x265   : > { %13447 = vmatprep.subr.bf16.mxu1 %v17026_v25 }
 0x266   : > { %14607 = vmatpush3.bf16.msra.mxu0 %v17035_v33 }
 0x267   : > { %14608 = vmatprep.subr.bf16.mxu0 %v18130_v20 }
 0x268   : > { %13448 = vmatpush3.bf16.msra.mxu1 %v17027_v26  ;;  %v2165_v26 = vld [vmem:[#allocation31 + $0x10] sm:$0xff] }
 0x269   : > { %13449 = vmatprep.subr.bf16.mxu1 %v17028_v27  ;;  %v2166_v27 = vld [vmem:[#allocation31 + $0x18] sm:$0xff] }
 0x26a   : > { %14609 = vmatpush3.bf16.msra.mxu0 %v17038_v41  ;;  %v18706_v33 = vpack.c.bf16 %v2166_v27, %v2165_v26  ;;  %v2171_v41 = vld [vmem:[#allocation31 + $0x40] sm:$0xff] }
 0x26b   : > { %14610 = vmatprep.subr.bf16.mxu0 %v18130_v20 }
 0x26c   : > { %13450 = vmatpush3.bf16.msra.mxu1 %v17030_v28 }
 0x26d   : > { %13451 = vmatprep.subr.bf16.mxu1 %v17031_v29 }
 0x26e   : > { %14611 = vmatpush3.bf16.msra.mxu0 %v17040_v49 }
 0x26f   : > { %16042 = vmatprep.subr.bf16.mxu0 %v18696_v60 }
 0x270   : > { %13452 = vmatpush3.bf16.msra.mxu1 %v17033_v31 }
 0x271   : > { %13453 = vmatprep.subr.bf16.mxu1 %v17034_v32 }
 0x274   : > { %13454 = vmatpush3.bf16.msra.mxu1 %v17036_v36  ;;  %v2168_v36 = vld [vmem:[#allocation31 + $0x28] sm:$0xff] }
 0x275   : > { %13455 = vmatprep.subr.bf16.mxu1 %v17037_v40 }
 0x278   : > { %13456 = vmatpush3.bf16.msra.mxu1 %v17039_v43 }
 0x279   : > { %16074 = vmatprep.subr.bf16.mxu1 %v18696_v60 }
 0x324   : > { %v18688_v34 = vpop.f32.mrb[0].mxu0  ;;  %v14566_v35 = vpop.f32.mrb[0].mxu1 }
 0x325   : > { %v18690_v37 = vpop.f32.mrb[1].mxu0  ;;  %v1412_v38 = vpop.f32.mrb[1].mxu1 }
 0x326   : > { %v17005_v39 = vpack.i.bf16 %v14566_v35, %v1412_v38  ;;  %v2167_v35 = vld [vmem:[#allocation31 + $0x20] sm:$0xff]  ;;  %v2169_v38 = vld [vmem:[#allocation31 + $0x30] sm:$0xff] }
 0x328   : > { %v14573_v42 = vpop.f32.mrb[2].mxu0 }
 0x329   : > { %v1496_v44 = vpop.f32.mrb[3].mxu0  ;;  %v14580_v45 = vpop.f32.mrb[2].mxu1 }
 0x32a   : > { %v16990_v46 = vpack.i.bf16 %v14573_v42, %v1496_v44  ;;  %v1580_v47 = vpop.f32.mrb[3].mxu1  ;;  %v2172_v42 = vld [vmem:[#allocation31 + $0x48] sm:$0xff]  ;;  %v2173_v44 = vld [vmem:[#allocation31 + $0x50] sm:$0xff] }
 0x32b   : > { %v16995_v48 = vpack.i.bf16 %v14580_v45, %v1580_v47  ;;  %v18723_v43 = vpack.c.bf16 %v2172_v42, %v2171_v41  ;;  %v2174_v45 = vld [vmem:[#allocation31 + $0x58] sm:$0xff]  ;;  %v2175_v47 = vld [vmem:[#allocation31 + $0x60] sm:$0xff]  ;;  %v17045_v41 = vld [vmem:[#allocation7 + $0x80] sm:$0xff]  }
 0x32c   : > { %16991 = vrot.lane.b32.xlu0 %v16990_v46, %s18131_s0  ;;  %v14587_v50 = vpop.f32.mrb[4].mxu0  ;;  %v18729_v46 = vpack.c.bf16 %v2174_v45, %v2173_v44  ;;  %v17047_v42 = vld [vmem:[#allocation7 + $0xc8] sm:$0xff]   ;;  %v17041_v45 = vld [vmem:[#allocation7 + $0x40] sm:$0xff]   ;;  %s19758_s0 = sld [smem:[#allocation54_spill]] }
 0x32d   : > { %v1664_v51 = vpop.f32.mrb[5].mxu0  ;;  %v14594_v52 = vpop.f32.mrb[4].mxu1  ;;  %v2430_v44 = vld [vmem:[#allocation6 + $0x8] sm:$0xff] }
 0x32e   : > { %v17000_v53 = vpack.i.bf16 %v14587_v50, %v1664_v51  ;;  %v1748_v54 = vpop.f32.mrb[5].mxu1  ;;  %v2177_v50 = vld [vmem:[#allocation31 + $0x70] sm:$0xff]  ;;  %v2178_v51 = vld [vmem:[#allocation31 + $0x78] sm:$0xff] }
 0x32f   : > { %v17010_v55 = vpack.i.bf16 %v14594_v52, %v1748_v54  ;;  %v18744_v52 = vpack.c.bf16 %v2178_v51, %v2177_v50  ;;  %v2505_v50 = vld [vmem:[#allocation6 + $0x10] sm:$0xff]  ;;  %v17042_v51 = vld [vmem:[#allocation7] sm:$0xff]  }
 0x330   : > { %16996 = vrot.lane.b32.xlu0 %v16995_v48, %s18133_s13  ;;  %17001 = vrot.lane.b32.xlu1 %v17000_v53, %s18134_s2  ;;  %v14601_v56 = vpop.f32.mrb[6].mxu0  ;;  %v2176_v48 = vld [vmem:[#allocation31 + $0x68] sm:$0xff]  ;;  %s19759_s13 = sld [smem:[#allocation56_spill]]  ;;  %s19760_s2 = sld [smem:[#allocation58_spill]] }
 0x331   : > { %v1832_v59 = vpop.f32.mrb[7].mxu0  ;;  %v18738_v49 = vpack.c.bf16 %v2176_v48, %v2175_v47  ;;  %v17049_v47 = vld [vmem:[#allocation7 + $0x88] sm:$0xff]   ;;  %v17051_v48 = vld [vmem:[#allocation7 + $0xd0] sm:$0xff]  }
 0x332   : > { %v17015_v61 = vpack.i.bf16 %v14601_v56, %v1832_v59 }
 0x334   : > { %17011 = vrot.lane.b32.xlu0 %v17010_v55, %s18135_s1  ;;  %17006 = vrot.lane.b32.xlu1 %v17005_v39, %s18136_s3  ;;  %v2170_v39 = vld [vmem:[#allocation31 + $0x38] sm:$0xff]  ;;  %s1249_s1 = scalar_lea.vmem %s18302_s20, %s13411_s28 }
 0x335   : > { %v18717_v40 = vpack.c.bf16 %v2170_v39, %v2169_v38  ;;  %v2355_v38 = vld [vmem:[#allocation6] sm:$0xff]  ;;  %v2580_v39 = vld [vmem:[#allocation6 + $0x18] sm:$0xff] }
 0x338   : > { %17016 = vrot.lane.b32.xlu1 %v17015_v61, %s18137_s15 }
 0x39e   : > { %v16992_v62 = vpop.permute.xlu0 %16991 }
 0x39f   : > { %v16994_v1 = vunpack.i.h.bf16 %v16992_v62  ;;  %v16993_v2 = vunpack.i.l.bf16 %v16992_v62 }
 0x3a2   : > { %v16997_v63 = vpop.permute.xlu0 %16996  ;;  %v17002_v0 = vpop.permute.xlu1 %17001 }
 0x3a3   : > { %v16999_v3 = vunpack.i.h.bf16 %v16997_v63  ;;  %v16998_v4 = vunpack.i.l.bf16 %v16997_v63  ;;  %v17004_v5 = vunpack.i.h.bf16 %v17002_v0  ;;  %v17003_v6 = vunpack.i.l.bf16 %v17002_v0 }
 0x3a5   : > { %v1895_v7 = vsel %vm1255_vm0, %v16993_v2, %v16998_v4  ;;  %v1896_v8 = vsel %vm1255_vm0, %v16994_v1, %v16999_v3 }
 0x3a6   : > { %v17012_v9 = vpop.permute.xlu0 %17011  ;;  %v17007_v10 = vpop.permute.xlu1 %17006  ;;  %v1899_v15 = vsel %vm1897_vm2, %v1896_v8, %v17004_v5  ;;  %v1898_v16 = vsel %vm1897_vm2, %v1895_v7, %v17003_v6 }
 0x3a7   : > { %v17014_v11 = vunpack.i.h.bf16 %v17012_v9  ;;  %v17013_v12 = vunpack.i.l.bf16 %v17012_v9  ;;  %v17009_v13 = vunpack.i.h.bf16 %v17007_v10  ;;  %v17008_v14 = vunpack.i.l.bf16 %v17007_v10 }
 0x3a9   : > { %v1891_v17 = vsel %vm1889_vm3, %v18688_v34, %v17009_v13  ;;  %v1890_v18 = vsel %vm1889_vm3, %v18690_v37, %v17008_v14  ;;  %v1901_v19 = vsel %vm1900_vm4, %v1898_v16, %v17013_v12  ;;  %v1902_v21 = vsel %vm1900_vm4, %v1899_v15, %v17014_v11 }
 0x3aa   : > { %v17017_v22 = vpop.permute.xlu1 %17016  ;;  %v1907_v23 = vpack.c.bf16 %v1902_v21, %v1901_v19  ;;  %v1893_v24 = vsel %vm1892_vm5, %v1890_v18, %v16993_v2  ;;  %v1894_v25 = vsel %vm1892_vm5, %v1891_v17, %v16994_v1  ;;  %v18711_v37 = vpack.c.bf16 %v2168_v36, %v2167_v35  ;;  %v17043_v35 = vld [vmem:[#allocation7 + $0xc0] sm:$0xff]  }
 0x3ab   : > { %v17019_v28 = vunpack.i.h.bf16 %v17017_v22  ;;  %v17018_v29 = vunpack.i.l.bf16 %v17017_v22  ;;  %v1906_v30 = vpack.c.bf16 %v1894_v25, %v1893_v24  ;;  %v18138_v16 = vmov 0.0|0.0  }
 0x3ac   : > { %2113 = vmatprep.mubr.bf16.mxu1 %v1907_v23 }
 0x3ad   : > { %v1905_v31 = vsel %vm1903_vm6, %v17014_v11, %v17019_v28  ;;  %v1904_v32 = vsel %vm1903_vm6, %v17013_v12, %v17018_v29  ;;  %2114 = vmatmul.mubr.bf16.vlgmr.msra.gmra.mrb[8].mxu1 %v1906_v30 }
 0x3ae   : > { %v1908_v34 = vpack.c.bf16 %v1905_v31, %v1904_v32  ;;  %16076 = vmatpush3.bf16.msra.mxu1 %v18696_v60 }
 0x3af   : > { %16078 = vmatprep.subr.bf16.mxu1 %v18706_v33 }
 0x3b0   : > { %14613 = vmatmul.mubr.msk.bf16.vlgmr.msra.gmra.mrb[8].mxu0 %vm2077_vm7, %v1908_v34 }
 0x3b1   : > { %16044 = vmatpush3.bf16.msra.mxu0 %v18696_v60 }
 0x3b2   : > { %16046 = vmatprep.subr.bf16.mxu0 %v18706_v33  ;;  %16080 = vmatpush3.bf16.msra.mxu1 %v18706_v33 }
 0x3b3   : > { %16082 = vmatprep.subr.bf16.mxu1 %v18711_v37 }
 0x3b5   : > { %16048 = vmatpush3.bf16.msra.mxu0 %v18706_v33 }
 0x3b6   : > { %16050 = vmatprep.subr.bf16.mxu0 %v18711_v37  ;;  %16084 = vmatpush3.bf16.msra.mxu1 %v18711_v37 }
 0x3b7   : > { %16086 = vmatprep.subr.bf16.mxu1 %v18717_v40 }
 0x3b9   : > { %16052 = vmatpush3.bf16.msra.mxu0 %v18711_v37 }
 0x3ba   : > { %16054 = vmatprep.subr.bf16.mxu0 %v18717_v40  ;;  %16088 = vmatpush3.bf16.msra.mxu1 %v18717_v40 }
 0x3bb   : > { %16090 = vmatprep.subr.bf16.mxu1 %v18723_v43 }
 0x3bd   : > { %16056 = vmatpush3.bf16.msra.mxu0 %v18717_v40 }
 0x3be   : > { %16058 = vmatprep.subr.bf16.mxu0 %v18723_v43  ;;  %16092 = vmatpush3.bf16.msra.mxu1 %v18723_v43 }
 0x3bf   : > { %16094 = vmatprep.subr.bf16.mxu1 %v18729_v46 }
 0x3c1   : > { %16060 = vmatpush3.bf16.msra.mxu0 %v18723_v43 }
 0x3c2   : > { %16062 = vmatprep.subr.bf16.mxu0 %v18729_v46  ;;  %16096 = vmatpush3.bf16.msra.mxu1 %v18729_v46 }
 0x3c3   : > { %16098 = vmatprep.subr.bf16.mxu1 %v18738_v49 }
 0x3c5   : > { %16064 = vmatpush3.bf16.msra.mxu0 %v18729_v46 }
 0x3c6   : > { %16066 = vmatprep.subr.bf16.mxu0 %v18738_v49  ;;  %16100 = vmatpush3.bf16.msra.mxu1 %v18738_v49 }
 0x3c7   : > { %16102 = vmatprep.subr.bf16.mxu1 %v18744_v52 }
 0x3c9   : > { %16068 = vmatpush3.bf16.msra.mxu0 %v18738_v49 }
 0x3ca   : > { %16070 = vmatprep.subr.bf16.mxu0 %v18744_v52  ;;  %16104 = vmatpush3.bf16.msra.mxu1 %v18744_v52 }
 0x3cb   : > { %16114 = vmatprep.subr.bf16.mxu1 %v18138_v16 }
 0x3cd   : > { %16072 = vmatpush3.bf16.msra.mxu0 %v18744_v52 }
 0x3ce   : > { %16105 = vmatprep.subr.bf16.mxu0 %v18138_v16 }
 0x480   : > { %v13457_v53 = vpop.f32.mrb[8].mxu1 }
 0x481   : > { %v13458_v54 = vpop.f32.mrb[9].mxu1 }
 0x482   : > { %v13459_v55 = vadd.f32 %v13458_v54, %v13457_v53  ;;  %v13460_v56 = vpop.f32.mrb[10].mxu1  ;;  %v17044_v53 = vld [vmem:[#allocation7 + $0x48] sm:$0xff]   ;;  %v17053_v54 = vld [vmem:[#allocation7 + $0x90] sm:$0xff]  }
 0x483   : > { %v13461_v57 = vpop.f32.mrb[11].mxu1  ;;  %v2156_v58 = vpop.f32.mrb[8].mxu0 }
 0x484   : > { %v13462_v59 = vadd.f32 %v13461_v57, %v13460_v56  ;;  %v2157_v61 = vadd.f32 %v13459_v55, %v2156_v58  ;;  %v14614_v62 = vpop.f32.mrb[9].mxu0  ;;  %v17055_v55 = vld [vmem:[#allocation7 + $0xd8] sm:$0xff]   ;;  %v17046_v56 = vld [vmem:[#allocation7 + $0x8] sm:$0xff]   ;;  %v17048_v57 = vld [vmem:[#allocation7 + $0x50] sm:$0xff]  }
 0x485   : > { %v2159_v63 = vpop.f32.mrb[10].mxu0  ;;  %v17057_v58 = vld [vmem:[#allocation7 + $0x98] sm:$0xff]  }
 0x486   : > { %v2160_v0 = vadd.f32 %v13462_v59, %v2159_v63  ;;  %v14615_v1 = vpop.f32.mrb[11].mxu0  ;;  %14648 = vmatprep.mubr.f32.mxu0 %v2157_v61  ;;  %v17059_v59 = vld [vmem:[#allocation7 + $0xe0] sm:$0xff]   ;;  %v17052_v62 = vld [vmem:[#allocation7 + $0x58] sm:$0xff]  }
 0x487   : > { %v17061_v63 = vld [vmem:[#allocation7 + $0xa0] sm:$0xff]   ;;  %v17054_v1 = vld [vmem:[#allocation7 + $0x18] sm:$0xff]  }
 0x488   : > { %14649 = vmatmul.mubr.f32.vlgmr.msra.gmra.mrb[12].mxu0 %v2160_v0 }
 0x489   : > { %14690 = vmatprep.mubr.msk.f32.mxu0 %vm18132_vm1, %v18130_v20 }
 0x55b   : > { %v14650_v2 = vpop.f32.mrb[12].mxu0 }
 0x55c   : > { %v2245_v3 = vpop.f32.mrb[13].mxu0 }
 0x55d   : > { %v2254_v4 = vadd.f32 %v14650_v2, %v2245_v3  ;;  %v17056_v2 = vld [vmem:[#allocation7 + $0x60] sm:$0xff]  }
 0x55e   : > { %v17058_v3 = vld [vmem:[#allocation7 + $0x20] sm:$0xff]  }
 0x55f   : > { %v2255_v5 = vrot.slane %v2254_v4, 4 }
 0x561   : > { %v2256_v6 = vadd.f32 %v2255_v5, %v2254_v4  ;;  %v17060_v4 = vld [vmem:[#allocation7 + $0x68] sm:$0xff]  }
 0x562   : > { %v17062_v5 = vld [vmem:[#allocation7 + $0x28] sm:$0xff]  }
 0x563   : > { %v2257_v7 = vrot.slane %v2256_v6, 2 }
 0x565   : > { %v2258_v8 = vadd.f32 %v2257_v7, %v2256_v6  ;;  %v17064_v6 = vld [vmem:[#allocation7 + $0x70] sm:$0xff]   ;;  %v17065_v7 = vld [vmem:[#allocation7 + $0xa8] sm:$0xff]  }
 0x567   : > { %v2259_v9 = vrot.slane %v2258_v8, 1 }
 0x569   : > { %v2260_v10 = vadd.f32 %v2259_v9, %v2258_v8  ;;  %v17066_v8 = vld [vmem:[#allocation7 + $0x30] sm:$0xff]  }
 0x56a   : > { %v17067_v9 = vld [vmem:[#allocation7 + $0xf0] sm:$0xff]  }
 0x56b   : > { %v2261_v11 = vmul.f32 0.00390625, %v2260_v10  ;;  %v17068_v10 = vld [vmem:[#allocation7 + $0x78] sm:$0xff]  }
 0x56d   : > { %v2263_v12 = vsub.f32 %v2160_v0, %v2261_v11  ;;  %v2262_v13 = vsub.f32 %v2157_v61, %v2261_v11  ;;  %v17050_v61 = vld [vmem:[#allocation7 + $0x10] sm:$0xff]   ;;  %v17063_v0 = vld [vmem:[#allocation7 + $0xe8] sm:$0xff]  }
 0x56e   : > { %v17069_v11 = vld [vmem:[#allocation7 + $0xb0] sm:$0xff]  }
 0x56f   : > { %v2264_v14 = vmul.f32 %v2262_v13, %v2262_v13  ;;  %v2265_v15 = vmul.f32 %v2263_v12, %v2263_v12 }
 0x571   : > { %14683 = vmatprep.mubr.f32.mxu1 %v2264_v14  ;;  %v17072_v14 = vld [vmem:[#allocation7 + $0xb8] sm:$0xff]  }
 0x572   : > { %14684 = vmatmul.mubr.f32.vlgmr.msra.gmra.mrb[6].mxu1 %v2265_v15 }
 0x573   : > { %14711 = vmatprep.mubr.msk.f32.mxu1 %vm18132_vm1, %v18130_v20 }
 0x645   : > { %v14685_v17 = vpop.f32.mrb[6].mxu1 }
 0x646   : > { %v2332_v18 = vpop.f32.mrb[7].mxu1 }
 0x647   : > { %v2341_v19 = vadd.f32 %v14685_v17, %v2332_v18 }
 0x649   : > { %v2342_v21 = vrot.slane %v2341_v19, 4 }
 0x64b   : > { %v2343_v22 = vadd.f32 %v2342_v21, %v2341_v19 }
 0x64d   : > { %v2344_v23 = vrot.slane %v2343_v22, 2 }
 0x64f   : > { %v2345_v24 = vadd.f32 %v2344_v23, %v2343_v22  ;;  %v2995_v22 = vld [vmem:[#allocation31 + $0x80] sm:$0xff]  ;;  %v2996_v23 = vld [vmem:[#allocation31 + $0x88] sm:$0xff] }
 0x651   : > { %v2346_v25 = vrot.slane %v2345_v24, 1 }
 0x653   : > { %v2347_v26 = vadd.f32 %v2346_v25, %v2345_v24 }
 0x655   : > { %v2348_v27 = vmul.f32 0.00390625, %v2347_v26 }
 0x657   : > { %v2349_v28 = vadd.f32 1e-05, %v2348_v27  ;;  %v18768_v27 = vpack.c.bf16 %v2996_v23, %v2995_v22 }
 0x659   : > { %17433 = vrsqrt.f32 %v2349_v28 }
 0x663   : > { %v17434_v29 = vpop.eup %17433 }
 0x664   : > { %v2351_v30 = vmul.f32 %v17434_v29, %v2262_v13  ;;  %v2352_v31 = vmul.f32 %v17434_v29, %v2263_v12  ;;  %v17070_v12 = vld [vmem:[#allocation7 + $0x38] sm:$0xff]   ;;  %v2997_v29 = vld [vmem:[#allocation31 + $0x90] sm:$0xff] }
 0x665   : > { %v17071_v13 = vld [vmem:[#allocation7 + $0xf8] sm:$0xff]  }
 0x666   : > { %v2353_v32 = vmax.f32 %v2351_v30, 0.0  ;;  %v2354_v34 = vmax.f32 %v2352_v31, 0.0  ;;  %v2998_v30 = vld [vmem:[#allocation31 + $0x98] sm:$0xff] }
 0x668   : > { %v16106_v36 = vpack.c.bf16 %v2354_v34, %v2353_v32 }
 0x66a   : > { %16107 = vmatpush3.bf16.msra.mxu0 %v16106_v36  ;;  %16116 = vmatpush3.bf16.msra.mxu1 %v16106_v36 }
 0x66b   : > { %16108 = vmatprep.subr.bf16.mxu0 %v18138_v16  ;;  %13539 = vmatprep.subr.bf16.mxu1 %v17043_v35  ;;  %v18771_v35 = vpack.c.bf16 %v2998_v30, %v2997_v29 }
 0x66d   : > { %14691 = vmatmul.mubr.msk.f32.vlgmr.msra.gmra.mrb[14].mxu0 %vm1255_vm0, %v2355_v38  ;;  %14712 = vmatmul.mubr.msk.f32.vlgmr.msra.gmra.mrb[12].mxu1 %vm1255_vm0, %v2580_v39  ;;  %v3000_v38 = vld [vmem:[#allocation31 + $0xa8] sm:$0xff] }
 0x66e   : > { %16110 = vmatpush3.bf16.msra.mxu0 %v16106_v36  ;;  %14697 = vmatprep.mubr.msk.f32.mxu0 %vm18132_vm1, %v18130_v20 }
 0x66f   : > { %16111 = vmatprep.subr.bf16.mxu0 %v18138_v16  ;;  %13540 = vmatpush3.bf16.msra.mxu1 %v17045_v41  ;;  %v3001_v41 = vld [vmem:[#allocation31 + $0xb0] sm:$0xff] }
 0x670   : > { %13541 = vmatprep.subr.bf16.mxu1 %v17047_v42  ;;  %v3002_v42 = vld [vmem:[#allocation31 + $0xb8] sm:$0xff] }
 0x671   : > { %14698 = vmatmul.mubr.msk.f32.vlgmr.msra.gmra.mrb[16].mxu0 %vm1255_vm0, %v2430_v44  ;;  %v18786_v44 = vpack.c.bf16 %v3002_v42, %v3001_v41  ;;  %v3247_v41 = vld [vmem:[#allocation9 + $0x4] sm:$0xf]  ;;  %v3322_v42 = vld [vmem:[#allocation9 + $0x8] sm:$0xf] }
 0x672   : > { %16113 = vmatpush3.bf16.msra.mxu0 %v16106_v36  ;;  %14704 = vmatprep.mubr.msk.f32.mxu0 %vm18132_vm1, %v18130_v20  ;;  %v2999_v36 = vld [vmem:[#allocation31 + $0xa0] sm:$0xff] }
 0x673   : > { %13517 = vmatprep.subr.bf16.mxu0 %v17041_v45  ;;  %13542 = vmatpush3.bf16.msra.mxu1 %v17049_v47  ;;  %v18780_v39 = vpack.c.bf16 %v3000_v38, %v2999_v36  ;;  %v3003_v45 = vld [vmem:[#allocation31 + $0xc0] sm:$0xff]  ;;  %v3004_v47 = vld [vmem:[#allocation31 + $0xc8] sm:$0xff] }
 0x674   : > { %13543 = vmatprep.subr.bf16.mxu1 %v17051_v48  ;;  %v18792_v48 = vpack.c.bf16 %v3004_v47, %v3003_v45  ;;  %v3171_v38 = vld [vmem:[#allocation9] sm:$0xf]  ;;  %v3397_v45 = vld [vmem:[#allocation9 + $0xc] sm:$0xf]  ;;  %v17073_v47 = vld [vmem:[#allocation10 + $0x40] sm:$0xff]  }
 0x675   : > { %14705 = vmatmul.mubr.msk.f32.vlgmr.msra.gmra.mrb[18].mxu0 %vm1255_vm0, %v2505_v50  ;;  %v3005_v50 = vld [vmem:[#allocation31 + $0xd0] sm:$0xff] }
 0x676   : > { %13518 = vmatpush3.bf16.msra.mxu0 %v17042_v51  ;;  %v3006_v51 = vld [vmem:[#allocation31 + $0xd8] sm:$0xff] }
 0x677   : > { %13519 = vmatprep.subr.bf16.mxu0 %v17044_v53  ;;  %13544 = vmatpush3.bf16.msra.mxu1 %v17053_v54  ;;  %v18798_v53 = vpack.c.bf16 %v3006_v51, %v3005_v50  ;;  %v3007_v54 = vld [vmem:[#allocation31 + $0xe0] sm:$0xff]  ;;  %v17076_v50 = vld [vmem:[#allocation10 + $0xc0] sm:$0xff]  }
 0x678   : > { %13545 = vmatprep.subr.bf16.mxu1 %v17055_v55  ;;  %v3008_v55 = vld [vmem:[#allocation31 + $0xe8] sm:$0xff]  ;;  %v17074_v51 = vld [vmem:[#allocation10] sm:$0xff]  }
 0x67a   : > { %13520 = vmatpush3.bf16.msra.mxu0 %v17046_v56  ;;  %v18808_v56 = vpack.c.bf16 %v3008_v55, %v3007_v54  ;;  %v17078_v54 = vld [vmem:[#allocation10 + $0x80] sm:$0xff]   ;;  %v17075_v55 = vld [vmem:[#allocation10 + $0x48] sm:$0xff]  }
 0x67b   : > { %13521 = vmatprep.subr.bf16.mxu0 %v17048_v57  ;;  %13546 = vmatpush3.bf16.msra.mxu1 %v17057_v58  ;;  %v3009_v57 = vld [vmem:[#allocation31 + $0xf0] sm:$0xff]  ;;  %v3010_v58 = vld [vmem:[#allocation31 + $0xf8] sm:$0xff] }
 0x67c   : > { %13547 = vmatprep.subr.bf16.mxu1 %v17059_v59  ;;  %v18814_v59 = vpack.c.bf16 %v3010_v58, %v3009_v57  ;;  %v17080_v57 = vld [vmem:[#allocation10 + $0xc8] sm:$0xff]  }
 0x67d   : > { %v17077_v58 = vld [vmem:[#allocation10 + $0x8] sm:$0xff]  }
 0x67e   : > { %13522 = vmatpush3.bf16.msra.mxu0 %v17050_v61 }
 0x67f   : > { %13523 = vmatprep.subr.bf16.mxu0 %v17052_v62  ;;  %13548 = vmatpush3.bf16.msra.mxu1 %v17061_v63 }
 0x680   : > { %13549 = vmatprep.subr.bf16.mxu1 %v17063_v0 }
 0x682   : > { %13524 = vmatpush3.bf16.msra.mxu0 %v17054_v1 }
 0x683   : > { %13525 = vmatprep.subr.bf16.mxu0 %v17056_v2  ;;  %13550 = vmatpush3.bf16.msra.mxu1 %v17065_v7 }
 0x684   : > { %13551 = vmatprep.subr.bf16.mxu1 %v17067_v9 }
 0x686   : > { %13526 = vmatpush3.bf16.msra.mxu0 %v17058_v3 }
 0x687   : > { %13527 = vmatprep.subr.bf16.mxu0 %v17060_v4  ;;  %13552 = vmatpush3.bf16.msra.mxu1 %v17069_v11 }
 0x688   : > { %13553 = vmatprep.subr.bf16.mxu1 %v17071_v13 }
 0x68a   : > { %13528 = vmatpush3.bf16.msra.mxu0 %v17062_v5 }
 0x68b   : > { %13529 = vmatprep.subr.bf16.mxu0 %v17064_v6  ;;  %13554 = vmatpush3.bf16.msra.mxu1 %v17072_v14 }
 0x68c   : > { %16141 = vmatprep.subr.bf16.mxu1 %v18138_v16 }
 0x68e   : > { %13530 = vmatpush3.bf16.msra.mxu0 %v17066_v8 }
 0x68f   : > { %13531 = vmatprep.subr.bf16.mxu0 %v17068_v10 }
 0x692   : > { %13532 = vmatpush3.bf16.msra.mxu0 %v17070_v12 }
 0x693   : > { %16117 = vmatprep.subr.bf16.mxu0 %v18138_v16 }
 0x740   : > { %v2425_v15 = vpop.f32.mrb[14].mxu0  ;;  %v2650_v17 = vpop.f32.mrb[12].mxu1 }
 0x741   : > { %v14692_v18 = vpop.f32.mrb[15].mxu0  ;;  %v2657_v19 = vpack.c.bf16 %v2650_v17, %v2650_v17  ;;  %v14713_v21 = vpop.f32.mrb[13].mxu1  ;;  %v2654_v28 = vpack.c.bf16 %v2425_v15, %v2425_v15 }
 0x743   : > { %2986 = vmatprep.mubr.bf16.mxu1 %v2657_v19 }
 0x744   : > { %v2500_v24 = vpop.f32.mrb[16].mxu0 }
 0x745   : > { %v2655_v25 = vpack.c.bf16 %v2500_v24, %v2500_v24  ;;  %v14699_v26 = vpop.f32.mrb[17].mxu0 }
 0x747   : > { %2946 = vmatprep.mubr.bf16.mxu0 %v2655_v25 }
 0x748   : > { %v2575_v31 = vpop.f32.mrb[18].mxu0  ;;  %2947 = vmatmul.mubr.bf16.vlgmr.msra.gmra.mrb[20].mxu0 %v2654_v28 }
 0x749   : > { %v2656_v32 = vpack.c.bf16 %v2575_v31, %v2575_v31  ;;  %v14706_v34 = vpop.f32.mrb[19].mxu0  ;;  %16119 = vmatpush3.bf16.msra.mxu0 %v18768_v27  ;;  %14746 = vmatprep.mubr.msk.f32.mxu0 %vm18132_vm1, %v18130_v20 }
 0x74a   : > { %16120 = vmatprep.subr.bf16.mxu0 %v18138_v16 }
 0x74b   : > { %2987 = vmatmul.mubr.bf16.vlgmr.msra.gmra.mrb[16].mxu1 %v2656_v32 }
 0x74c   : > { %16143 = vmatpush3.bf16.msra.mxu1 %v18768_v27  ;;  %14781 = vmatprep.mubr.msk.f32.mxu1 %vm18132_vm1, %v18130_v20 }
 0x74d   : > { %16122 = vmatpush3.bf16.msra.mxu0 %v18771_v35  ;;  %16144 = vmatprep.subr.bf16.mxu1 %v18138_v16 }
 0x74e   : > { %16123 = vmatprep.subr.bf16.mxu0 %v18138_v16 }
 0x750   : > { %16146 = vmatpush3.bf16.msra.mxu1 %v18771_v35 }
 0x751   : > { %16125 = vmatpush3.bf16.msra.mxu0 %v18780_v39  ;;  %16147 = vmatprep.subr.bf16.mxu1 %v18138_v16 }
 0x752   : > { %16126 = vmatprep.subr.bf16.mxu0 %v18138_v16 }
 0x754   : > { %16149 = vmatpush3.bf16.msra.mxu1 %v18780_v39 }
 0x755   : > { %16128 = vmatpush3.bf16.msra.mxu0 %v18786_v44  ;;  %16150 = vmatprep.subr.bf16.mxu1 %v18138_v16 }
 0x756   : > { %16129 = vmatprep.subr.bf16.mxu0 %v18138_v16 }
 0x758   : > { %16152 = vmatpush3.bf16.msra.mxu1 %v18786_v44 }
 0x759   : > { %16131 = vmatpush3.bf16.msra.mxu0 %v18792_v48  ;;  %16153 = vmatprep.subr.bf16.mxu1 %v18138_v16 }
 0x75a   : > { %16132 = vmatprep.subr.bf16.mxu0 %v18138_v16 }
 0x75c   : > { %16155 = vmatpush3.bf16.msra.mxu1 %v18792_v48 }
 0x75d   : > { %16134 = vmatpush3.bf16.msra.mxu0 %v18798_v53  ;;  %16156 = vmatprep.subr.bf16.mxu1 %v18138_v16 }
 0x75e   : > { %16135 = vmatprep.subr.bf16.mxu0 %v18138_v16 }
 0x760   : > { %16158 = vmatpush3.bf16.msra.mxu1 %v18798_v53 }
 0x761   : > { %16159 = vmatprep.subr.bf16.mxu1 %v18138_v16  ;;  %16137 = vmatpush3.bf16.msra.mxu0 %v18808_v56 }
 0x762   : > { %16138 = vmatprep.subr.bf16.mxu0 %v18138_v16 }
 0x764   : > { %16161 = vmatpush3.bf16.msra.mxu1 %v18808_v56 }
 0x765   : > { %16162 = vmatprep.subr.bf16.mxu1 %v18138_v16  ;;  %16140 = vmatpush3.bf16.msra.mxu0 %v18814_v59 }
 0x766   : > { %14784 = vmatprep.subr.mxu0 %v18130_v20 }
 0x768   : > { %16164 = vmatpush3.bf16.msra.mxu1 %v18814_v59 }
 0x769   : > { %14789 = vmatprep.subr.mxu1 %v18130_v20 }
 0x81b   : > { %v13533_v61 = vpop.f32.mrb[20].mxu0 }
 0x81c   : > { %v13534_v62 = vpop.f32.mrb[21].mxu0 }
 0x81d   : > { %v13535_v63 = vadd.f32 %v13534_v62, %v13533_v61  ;;  %v13536_v0 = vpop.f32.mrb[22].mxu0  ;;  %v17082_v61 = vld [vmem:[#allocation10 + $0x88] sm:$0xff]   ;;  %v17079_v62 = vld [vmem:[#allocation10 + $0x50] sm:$0xff]  }
 0x81e   : > { %v13537_v1 = vpop.f32.mrb[23].mxu0  ;;  %v13555_v2 = vpop.f32.mrb[16].mxu1  ;;  %v17081_v0 = vld [vmem:[#allocation10 + $0x10] sm:$0xff]  }
 0x81f   : > { %v13556_v3 = vpop.f32.mrb[17].mxu1  ;;  %v17086_v1 = vld [vmem:[#allocation10 + $0x90] sm:$0xff]  }
 0x820   : > { %v13557_v4 = vadd.f32 %v13556_v3, %v13555_v2  ;;  %v13558_v5 = vpop.f32.mrb[18].mxu1  ;;  %v17083_v2 = vld [vmem:[#allocation10 + $0x58] sm:$0xff]  }
 0x821   : > { %v13559_v6 = vpop.f32.mrb[19].mxu1  ;;  %v17088_v3 = vld [vmem:[#allocation10 + $0xd8] sm:$0xff]  }
 0x822   : > { %v2989_v7 = vadd.f32 %v13557_v4, %v13535_v63  ;;  %v17084_v63 = vld [vmem:[#allocation10 + $0xd0] sm:$0xff]   ;;  %v17085_v4 = vld [vmem:[#allocation10 + $0x18] sm:$0xff]   ;;  %v17087_v6 = vld [vmem:[#allocation10 + $0x60] sm:$0xff]  }
 0x823   : > { %v17090_v5 = vld [vmem:[#allocation10 + $0x98] sm:$0xff]  }
 0x824   : > { %14747 = vmatmul.mubr.f32.vlgmr.msra.gmra.mrb[24].mxu0 %v2989_v7 }
 0x825   : > { %14786 = vmatprep.mubr.msk.f32.mxu0 %vm18132_vm1, %v18130_v20 }
 0x8f7   : > { %v3077_v8 = vpop.f32.mrb[24].mxu0 }
 0x8f8   : > { %v3081_v9 = vrot.slane %v3077_v8, 4  ;;  %v14748_v10 = vpop.f32.mrb[25].mxu0 }
 0x8f9   : > { %v17091_v10 = vld [vmem:[#allocation10 + $0x68] sm:$0xff]  }
 0x8fa   : > { %v3082_v11 = vadd.f32 %v3081_v9, %v3077_v8  ;;  %v17089_v8 = vld [vmem:[#allocation10 + $0x20] sm:$0xff]  }
 0x8fb   : > { %v17094_v9 = vld [vmem:[#allocation10 + $0xa0] sm:$0xff]  }
 0x8fc   : > { %v3083_v12 = vrot.slane %v3082_v11, 2 }
 0x8fe   : > { %v3084_v13 = vadd.f32 %v3083_v12, %v3082_v11  ;;  %v17096_v11 = vld [vmem:[#allocation10 + $0xe8] sm:$0xff]  }
 0x8ff   : > { %v17093_v12 = vld [vmem:[#allocation10 + $0x28] sm:$0xff]  }
 0x900   : > { %v3085_v14 = vrot.slane %v3084_v13, 1 }
 0x902   : > { %v3086_v15 = vadd.f32 %v3085_v14, %v3084_v13  ;;  %v17098_v13 = vld [vmem:[#allocation10 + $0xa8] sm:$0xff]   ;;  %v17095_v14 = vld [vmem:[#allocation10 + $0x70] sm:$0xff]  }
 0x904   : > { %v3087_v17 = vmul.f32 0.015625, %v3086_v15  ;;  %v17097_v15 = vld [vmem:[#allocation10 + $0x30] sm:$0xff]  }
 0x906   : > { %v3088_v18 = vsub.f32 %v2989_v7, %v3087_v17  ;;  %v17092_v7 = vld [vmem:[#allocation10 + $0xe0] sm:$0xff]   ;;  %v17099_v17 = vld [vmem:[#allocation10 + $0x78] sm:$0xff]  }
 0x908   : > { %v3089_v19 = vmul.f32 %v3088_v18, %v3088_v18 }
 0x90a   : > { %14782 = vmatmul.mubr.f32.vlgmr.msra.gmra.mrb[14].mxu1 %v3089_v19  ;;  %v17101_v19 = vld [vmem:[#allocation10 + $0x38] sm:$0xff]  }
 0x90b   : > { %14791 = vmatprep.mubr.msk.f32.mxu1 %vm18132_vm1, %v18130_v20 }
 0x9dd   : > { %v3156_v21 = vpop.f32.mrb[14].mxu1 }
 0x9de   : > { %v3160_v22 = vrot.slane %v3156_v21, 4  ;;  %v14783_v23 = vpop.f32.mrb[15].mxu1 }
 0x9df   : > { %v17104_v23 = vld [vmem:[#allocation10 + $0xb8] sm:$0xff]  }
 0x9e0   : > { %v3161_v24 = vadd.f32 %v3160_v22, %v3156_v21  ;;  %v17102_v21 = vld [vmem:[#allocation10 + $0xb0] sm:$0xff]   ;;  %v17103_v22 = vld [vmem:[#allocation10 + $0xf8] sm:$0xff]  }
 0x9e2   : > { %v3162_v25 = vrot.slane %v3161_v24, 2 }
 0x9e4   : > { %v3163_v26 = vadd.f32 %v3162_v25, %v3161_v24  ;;  %v3812_v24 = vld [vmem:[#allocation31 + $0x100] sm:$0xff]  ;;  %v3813_v25 = vld [vmem:[#allocation31 + $0x108] sm:$0xff] }
 0x9e6   : > { %v3164_v28 = vrot.slane %v3163_v26, 1 }
 0x9e8   : > { %v3165_v29 = vadd.f32 %v3164_v28, %v3163_v26 }
 0x9ea   : > { %v3166_v30 = vmul.f32 0.015625, %v3165_v29 }
 0x9ec   : > { %v3167_v31 = vadd.f32 1e-05, %v3166_v30 }
 0x9ee   : > { %17435 = vrsqrt.f32 %v3167_v31 }
 0x9f8   : > { %v17436_v32 = vpop.eup %17435 }
 0x9f9   : > { %v3169_v34 = vmul.f32 %v17436_v32, %v3088_v18  ;;  %v17100_v18 = vld [vmem:[#allocation10 + $0xf0] sm:$0xff]  }
 0x9fb   : > { %v3170_v36 = vmax.f32 %v3169_v34, 0.0  ;;  %v18836_v34 = vpack.c.bf16 %v3813_v25, %v3812_v24 }
 0x9fd   : > { %14785 = vmatpush3.msra.mxu0 %v3170_v36  ;;  %14790 = vmatpush3.msra.mxu1 %v3170_v36 }
 0x9fe   : > { %14787 = vmatmul.mubr.msk.f32.vlgmr.msra.gmra.mrb[26].mxu0 %vm3172_vm8, %v3171_v38  ;;  %14792 = vmatmul.mubr.msk.f32.vlgmr.msra.gmra.mrb[20].mxu1 %vm3172_vm8, %v3247_v41  ;;  %v3815_v38 = vld [vmem:[#allocation31 + $0x118] sm:$0xff] }
 0x9ff   : > { %14794 = vmatprep.subr.mxu0 %v18130_v20  ;;  %14799 = vmatprep.subr.mxu1 %v18130_v20 }
 0xa00   : > { %14795 = vmatpush3.msra.mxu0 %v3170_v36  ;;  %14800 = vmatpush3.msra.mxu1 %v3170_v36  ;;  %v3814_v36 = vld [vmem:[#allocation31 + $0x110] sm:$0xff] }
 0xa01   : > { %14796 = vmatprep.mubr.msk.f32.mxu0 %vm18132_vm1, %v18130_v20  ;;  %14801 = vmatprep.mubr.msk.f32.mxu1 %vm18132_vm1, %v18130_v20 }
 0xa02   : > { %14797 = vmatmul.mubr.msk.f32.vlgmr.msra.gmra.mrb[28].mxu0 %vm3172_vm8, %v3322_v42  ;;  %14802 = vmatmul.mubr.msk.f32.vlgmr.msra.gmra.mrb[22].mxu1 %vm3172_vm8, %v3397_v45 }
 0xa03   : > { %13603 = vmatprep.subr.bf16.mxu0 %v17073_v47  ;;  %13625 = vmatprep.subr.bf16.mxu1 %v17076_v50 }
 0xa04   : > { %13604 = vmatpush3.bf16.msra.mxu0 %v17074_v51  ;;  %13626 = vmatpush3.bf16.msra.mxu1 %v17078_v54  ;;  %v18839_v54 = vpack.c.bf16 %v3815_v38, %v3814_v36 }
 0xa05   : > { %13605 = vmatprep.subr.bf16.mxu0 %v17075_v55  ;;  %13627 = vmatprep.subr.bf16.mxu1 %v17080_v57  ;;  %v3816_v55 = vld [vmem:[#allocation31 + $0x120] sm:$0xff]  ;;  %v3817_v57 = vld [vmem:[#allocation31 + $0x128] sm:$0xff] }
 0xa08   : > { %13606 = vmatpush3.bf16.msra.mxu0 %v17077_v58  ;;  %13628 = vmatpush3.bf16.msra.mxu1 %v17082_v61  ;;  %v18845_v58 = vpack.c.bf16 %v3817_v57, %v3816_v55  ;;  %v3818_v61 = vld [vmem:[#allocation31 + $0x130] sm:$0xff] }
 0xa09   : > { %13607 = vmatprep.subr.bf16.mxu0 %v17079_v62  ;;  %13629 = vmatprep.subr.bf16.mxu1 %v17084_v63  ;;  %v3819_v62 = vld [vmem:[#allocation31 + $0x138] sm:$0xff] }
 0xa0a   : > { %v18853_v63 = vpack.c.bf16 %v3819_v62, %v3818_v61 }
 0xa0c   : > { %13608 = vmatpush3.bf16.msra.mxu0 %v17081_v0  ;;  %13630 = vmatpush3.bf16.msra.mxu1 %v17086_v1  ;;  %v3820_v0 = vld [vmem:[#allocation31 + $0x140] sm:$0xff]  ;;  %v3821_v1 = vld [vmem:[#allocation31 + $0x148] sm:$0xff] }
 0xa0d   : > { %13609 = vmatprep.subr.bf16.mxu0 %v17083_v2  ;;  %13631 = vmatprep.subr.bf16.mxu1 %v17088_v3  ;;  %v18859_v2 = vpack.c.bf16 %v3821_v1, %v3820_v0  ;;  %v3822_v3 = vld [vmem:[#allocation31 + $0x150] sm:$0xff] }
 0xa10   : > { %13610 = vmatpush3.bf16.msra.mxu0 %v17085_v4  ;;  %13632 = vmatpush3.bf16.msra.mxu1 %v17090_v5  ;;  %v3823_v4 = vld [vmem:[#allocation31 + $0x158] sm:$0xff] }
 0xa11   : > { %13611 = vmatprep.subr.bf16.mxu0 %v17087_v6  ;;  %13633 = vmatprep.subr.bf16.mxu1 %v17092_v7  ;;  %v18865_v5 = vpack.c.bf16 %v3823_v4, %v3822_v3  ;;  %v3824_v6 = vld [vmem:[#allocation31 + $0x160] sm:$0xff]  ;;  %v3825_v7 = vld [vmem:[#allocation31 + $0x168] sm:$0xff] }
 0xa14   : > { %13612 = vmatpush3.bf16.msra.mxu0 %v17089_v8  ;;  %13634 = vmatpush3.bf16.msra.mxu1 %v17094_v9  ;;  %v18876_v8 = vpack.c.bf16 %v3825_v7, %v3824_v6  ;;  %v3826_v9 = vld [vmem:[#allocation31 + $0x170] sm:$0xff] }
 0xa15   : > { %13613 = vmatprep.subr.bf16.mxu0 %v17091_v10  ;;  %13635 = vmatprep.subr.bf16.mxu1 %v17096_v11  ;;  %v3827_v10 = vld [vmem:[#allocation31 + $0x178] sm:$0xff] }
 0xa16   : > { %v18882_v11 = vpack.c.bf16 %v3827_v10, %v3826_v9  ;;  %v3991_v10 = vld [vmem:[%s19753_s6] sm:$0xf] }
 0xa18   : > { %13614 = vmatpush3.bf16.msra.mxu0 %v17093_v12  ;;  %13636 = vmatpush3.bf16.msra.mxu1 %v17098_v13 }
 0xa19   : > { %13615 = vmatprep.subr.bf16.mxu0 %v17095_v14  ;;  %13637 = vmatprep.subr.bf16.mxu1 %v17100_v18 }
 0xa1c   : > { %13616 = vmatpush3.bf16.msra.mxu0 %v17097_v15  ;;  %13638 = vmatpush3.bf16.msra.mxu1 %v17102_v21 }
 0xa1d   : > { %13617 = vmatprep.subr.bf16.mxu0 %v17099_v17  ;;  %13639 = vmatprep.subr.bf16.mxu1 %v17103_v22 }
 0xa20   : > { %13618 = vmatpush3.bf16.msra.mxu0 %v17101_v19  ;;  %13640 = vmatpush3.bf16.msra.mxu1 %v17104_v23 }
 0xa21   : > { %16165 = vmatprep.subr.bf16.mxu0 %v18138_v16  ;;  %16189 = vmatprep.subr.bf16.mxu1 %v18138_v16 }
 0xad1   : > { %v3242_v26 = vpop.f32.mrb[26].mxu0  ;;  %v3317_v28 = vpop.f32.mrb[20].mxu1 }
 0xad2   : > { %v3471_v29 = vpack.c.bf16 %v3242_v26, %v3242_v26  ;;  %v3472_v30 = vpack.c.bf16 %v3317_v28, %v3317_v28  ;;  %v14788_v31 = vpop.f32.mrb[27].mxu0  ;;  %v14793_v32 = vpop.f32.mrb[21].mxu1 }
 0xad4   : > { %3763 = vmatprep.mubr.bf16.mxu0 %v3472_v30 }
 0xad5   : > { %v3392_v41 = vpop.f32.mrb[28].mxu0  ;;  %v3467_v42 = vpop.f32.mrb[22].mxu1  ;;  %3764 = vmatmul.mubr.bf16.vlgmr.msra.gmra.mrb[32].mxu0 %v3471_v29 }
 0xad6   : > { %v3473_v45 = vpack.c.bf16 %v3392_v41, %v3392_v41  ;;  %v3474_v47 = vpack.c.bf16 %v3467_v42, %v3467_v42  ;;  %v14798_v50 = vpop.f32.mrb[29].mxu0  ;;  %v14803_v51 = vpop.f32.mrb[23].mxu1  ;;  %16167 = vmatpush3.bf16.msra.mxu0 %v18836_v34  ;;  %14836 = vmatprep.mubr.msk.f32.mxu0 %vm18132_vm1, %v18130_v20 }
 0xad7   : > { %16168 = vmatprep.subr.bf16.mxu0 %v18138_v16 }
 0xad8   : > { %3803 = vmatprep.mubr.bf16.mxu1 %v3474_v47 }
 0xad9   : > { %3804 = vmatmul.mubr.bf16.vlgmr.msra.gmra.mrb[24].mxu1 %v3473_v45 }
 0xada   : > { %16170 = vmatpush3.bf16.msra.mxu0 %v18839_v54  ;;  %16191 = vmatpush3.bf16.msra.mxu1 %v18836_v34 }
 0xadb   : > { %16171 = vmatprep.subr.bf16.mxu0 %v18138_v16  ;;  %16192 = vmatprep.subr.bf16.mxu1 %v18138_v16 }
 0xadc   : > { %14871 = vmatprep.mubr.msk.f32.mxu1 %vm18132_vm1, %v18130_v20 }
 0xade   : > { %16173 = vmatpush3.bf16.msra.mxu0 %v18845_v58  ;;  %16194 = vmatpush3.bf16.msra.mxu1 %v18839_v54 }
 0xadf   : > { %16174 = vmatprep.subr.bf16.mxu0 %v18138_v16  ;;  %16195 = vmatprep.subr.bf16.mxu1 %v18138_v16 }
 0xae2   : > { %16176 = vmatpush3.bf16.msra.mxu0 %v18853_v63  ;;  %16197 = vmatpush3.bf16.msra.mxu1 %v18845_v58 }
 0xae3   : > { %16177 = vmatprep.subr.bf16.mxu0 %v18138_v16  ;;  %16198 = vmatprep.subr.bf16.mxu1 %v18138_v16 }
 0xae6   : > { %16179 = vmatpush3.bf16.msra.mxu0 %v18859_v2  ;;  %16200 = vmatpush3.bf16.msra.mxu1 %v18853_v63 }
 0xae7   : > { %16180 = vmatprep.subr.bf16.mxu0 %v18138_v16  ;;  %16201 = vmatprep.subr.bf16.mxu1 %v18138_v16 }
 0xaea   : > { %16182 = vmatpush3.bf16.msra.mxu0 %v18865_v5  ;;  %16203 = vmatpush3.bf16.msra.mxu1 %v18859_v2 }
 0xaeb   : > { %16183 = vmatprep.subr.bf16.mxu0 %v18138_v16  ;;  %16204 = vmatprep.subr.bf16.mxu1 %v18138_v16 }
 0xaee   : > { %16206 = vmatpush3.bf16.msra.mxu1 %v18865_v5  ;;  %16185 = vmatpush3.bf16.msra.mxu0 %v18876_v8 }
 0xaef   : > { %16207 = vmatprep.subr.bf16.mxu1 %v18138_v16  ;;  %16186 = vmatprep.subr.bf16.mxu0 %v18138_v16 }
 0xaf2   : > { %16209 = vmatpush3.bf16.msra.mxu1 %v18876_v8  ;;  %16188 = vmatpush3.bf16.msra.mxu0 %v18882_v11 }
 0xaf3   : > { %16210 = vmatprep.subr.bf16.mxu1 %v18138_v16  ;;  %14874 = vmatprep.subr.mxu0 %v18130_v20 }
 0xaf6   : > { %16212 = vmatpush3.bf16.msra.mxu1 %v18882_v11 }
 0xaf7   : > { %14879 = vmatprep.subr.mxu1 %v18130_v20 }
 0xba8   : > { %v13619_v12 = vpop.f32.mrb[32].mxu0 }
 0xba9   : > { %v13620_v13 = vpop.f32.mrb[33].mxu0 }
 0xbaa   : > { %v13621_v14 = vadd.f32 %v13620_v13, %v13619_v12  ;;  %v13622_v15 = vpop.f32.mrb[34].mxu0  ;;  %v12984_v12 = vld [vmem:[%s19753_s6 + $0x4] sm:$0xf]  ;;  %v17105_v13 = vld [vmem:[#allocation12 + $0x40] sm:$0xff]  }
 0xbab   : > { %v13623_v17 = vpop.f32.mrb[35].mxu0  ;;  %v17107_v15 = vld [vmem:[#allocation12 + $0x48] sm:$0xff]  }
 0xbac   : > { %v13641_v18 = vpop.f32.mrb[24].mxu1  ;;  %v12987_v17 = vld [vmem:[%s19753_s6 + $0x8] sm:$0xf] }
 0xbad   : > { %v13642_v19 = vpop.f32.mrb[25].mxu1 }
 0xbae   : > { %v13643_v21 = vadd.f32 %v13642_v19, %v13641_v18  ;;  %v13644_v22 = vpop.f32.mrb[26].mxu1  ;;  %v17108_v18 = vld [vmem:[#allocation12 + $0x80] sm:$0xff]   ;;  %v17109_v19 = vld [vmem:[#allocation12 + $0x8] sm:$0xff]  }
 0xbaf   : > { %v13645_v23 = vpop.f32.mrb[27].mxu1  ;;  %v17111_v22 = vld [vmem:[#allocation12 + $0x88] sm:$0xff]  }
 0xbb0   : > { %v3806_v24 = vadd.f32 %v13643_v21, %v13621_v14  ;;  %v17106_v14 = vld [vmem:[#allocation12] sm:$0xff]   ;;  %v17110_v21 = vld [vmem:[#allocation12 + $0x50] sm:$0xff]  }
 0xbb1   : > { %v17112_v23 = vld [vmem:[#allocation12 + $0x10] sm:$0xff]  }
 0xbb2   : > { %14837 = vmatmul.mubr.f32.vlgmr.msra.gmra.mrb[30].mxu0 %v3806_v24 }
 0xbb3   : > { %14876 = vmatprep.mubr.msk.f32.mxu0 %vm18132_vm1, %v18130_v20 }
 0xc85   : > { %v3894_v25 = vpop.f32.mrb[30].mxu0 }
 0xc86   : > { %v3899_v26 = vsel %vm3898_vm9, %v3894_v25, 0.0  ;;  %v14838_v28 = vpop.f32.mrb[31].mxu0  ;;  %v17114_v25 = vld [vmem:[#allocation12 + $0x90] sm:$0xff]  }
 0xc87   : > { %v3900_v29 = vrot.slane %v3899_v26, 4  ;;  %v17116_v28 = vld [vmem:[#allocation12 + $0x60] sm:$0xff]  }
 0xc89   : > { %v3901_v30 = vadd.f32 %v3900_v29, %v3899_v26  ;;  %v17115_v26 = vld [vmem:[#allocation12 + $0x18] sm:$0xff]  }
 0xc8a   : > { %v17117_v29 = vld [vmem:[#allocation12 + $0x98] sm:$0xff]  }
 0xc8b   : > { %v3902_v31 = vrot.slane %v3901_v30, 2 }
 0xc8d   : > { %v3903_v32 = vadd.f32 %v3902_v31, %v3901_v30  ;;  %v17118_v30 = vld [vmem:[#allocation12 + $0x20] sm:$0xff]   ;;  %v17119_v31 = vld [vmem:[#allocation12 + $0x68] sm:$0xff]  }
 0xc8f   : > { %v3904_v36 = vrot.slane %v3903_v32, 1 }
 0xc91   : > { %v3905_v38 = vadd.f32 %v3904_v36, %v3903_v32  ;;  %v17120_v32 = vld [vmem:[#allocation12 + $0xa0] sm:$0xff]   ;;  %v17121_v36 = vld [vmem:[#allocation12 + $0x28] sm:$0xff]  }
 0xc93   : > { %v3906_v41 = vmul.f32 0.0625, %v3905_v38  ;;  %v17122_v38 = vld [vmem:[#allocation12 + $0x70] sm:$0xff]  }
 0xc95   : > { %v3907_v42 = vsub.f32 %v3806_v24, %v3906_v41  ;;  %v17113_v24 = vld [vmem:[#allocation12 + $0x58] sm:$0xff]   ;;  %v17123_v41 = vld [vmem:[#allocation12 + $0xa8] sm:$0xff]  }
 0xc97   : > { %v3908_v45 = vmul.f32 %v3907_v42, %v3907_v42 }
 0xc99   : > { %14872 = vmatmul.mubr.f32.vlgmr.msra.gmra.mrb[28].mxu1 %v3908_v45  ;;  %v17125_v45 = vld [vmem:[#allocation12 + $0x78] sm:$0xff]  }
 0xc9a   : > { %14881 = vmatprep.mubr.msk.f32.mxu1 %vm18132_vm1, %v18130_v20 }
 0xd6c   : > { %v3975_v47 = vpop.f32.mrb[28].mxu1 }
 0xd6d   : > { %v3979_v50 = vsel %vm3898_vm9, %v3975_v47, 0.0  ;;  %v14873_v51 = vpop.f32.mrb[29].mxu1  ;;  %v17126_v47 = vld [vmem:[#allocation12 + $0xb0] sm:$0xff]  }
 0xd6e   : > { %v3980_v55 = vrot.slane %v3979_v50, 4  ;;  %v17128_v51 = vld [vmem:[#allocation12 + $0xb8] sm:$0xff]  }
 0xd70   : > { %v3981_v57 = vadd.f32 %v3980_v55, %v3979_v50  ;;  %v17127_v50 = vld [vmem:[#allocation12 + $0x38] sm:$0xff]  }
 0xd72   : > { %v3982_v61 = vrot.slane %v3981_v57, 2 }
 0xd74   : > { %v3983_v62 = vadd.f32 %v3982_v61, %v3981_v57 }
 0xd76   : > { %v3984_v0 = vrot.slane %v3983_v62, 1 }
 0xd78   : > { %v3985_v1 = vadd.f32 %v3984_v0, %v3983_v62 }
 0xd7a   : > { %v3986_v3 = vmul.f32 0.0625, %v3985_v1 }
 0xd7c   : > { %v3987_v4 = vadd.f32 1e-05, %v3986_v3 }
 0xd7e   : > { %17437 = vrsqrt.f32 %v3987_v4 }
 0xd88   : > { %v17438_v6 = vpop.eup %17437 }
 0xd89   : > { %v3989_v7 = vmul.f32 %v17438_v6, %v3907_v42  ;;  %v17124_v42 = vld [vmem:[#allocation12 + $0x30] sm:$0xff]  }
 0xd8b   : > { %v18894_v9 = vmax.f32 %v3989_v7, 0.0 }
 0xd8d   : > { %14875 = vmatpush3.msk.msra.mxu0 %vm3898_vm9, %v18894_v9  ;;  %14880 = vmatpush3.msk.msra.mxu1 %vm3898_vm9, %v18894_v9 }
 0xd8e   : > { %14877 = vmatmul.mubr.msk.f32.vlgmr.msra.gmra.mrb[36].mxu0 %vm3992_vm10, %v3991_v10  ;;  %14882 = vmatmul.mubr.msk.f32.vlgmr.msra.gmra.mrb[30].mxu1 %vm3992_vm10, %v12984_v12 }
 0xd8f   : > { %14884 = vmatprep.subr.mxu0 %v18130_v20  ;;  %14886 = vmatprep.mubr.msk.f32.mxu0 %vm18132_vm1, %v18130_v20 }
 0xd90   : > { %14885 = vmatpush3.msk.msra.mxu0 %vm3898_vm9, %v18894_v9  ;;  %13687 = vmatprep.subr.bf16.mxu1 %v17105_v13 }
 0xd91   : > { %13688 = vmatpush3.bf16.msra.mxu1 %v17106_v14  ;;  %14889 = vmatprep.subr.bf16.mxu0 %v18130_v20 }
 0xd92   : > { %14887 = vmatmul.mubr.msk.f32.vlgmr.msra.gmra.mrb[38].mxu0 %vm3992_vm10, %v12987_v17  ;;  %13689 = vmatprep.subr.bf16.mxu1 %v17107_v15 }
 0xd93   : > { %14890 = vmatpush3.bf16.msra.mxu0 %v17108_v18  ;;  %14905 = vmatprep.mubr.msk.bf16.mxu0 %vm18132_vm1, %v18130_v20 }
 0xd94   : > { %14891 = vmatprep.subr.bf16.mxu0 %v18130_v20 }
 0xd95   : > { %13690 = vmatpush3.bf16.msra.mxu1 %v17109_v19 }
 0xd96   : > { %13691 = vmatprep.subr.bf16.mxu1 %v17110_v21 }
 0xd97   : > { %14892 = vmatpush3.bf16.msra.mxu0 %v17111_v22 }
 0xd98   : > { %14893 = vmatprep.subr.bf16.mxu0 %v18130_v20 }
 0xd99   : > { %13692 = vmatpush3.bf16.msra.mxu1 %v17112_v23 }
 0xd9a   : > { %13693 = vmatprep.subr.bf16.mxu1 %v17113_v24 }
 0xd9b   : > { %14894 = vmatpush3.bf16.msra.mxu0 %v17114_v25 }
 0xd9c   : > { %14895 = vmatprep.subr.bf16.mxu0 %v18130_v20 }
 0xd9d   : > { %13694 = vmatpush3.bf16.msra.mxu1 %v17115_v26 }
 0xd9e   : > { %13695 = vmatprep.subr.bf16.mxu1 %v17116_v28 }
 0xd9f   : > { %14896 = vmatpush3.bf16.msra.mxu0 %v17117_v29 }
 0xda0   : > { %14897 = vmatprep.subr.bf16.mxu0 %v18130_v20 }
 0xda1   : > { %13696 = vmatpush3.bf16.msra.mxu1 %v17118_v30 }
 0xda2   : > { %13697 = vmatprep.subr.bf16.mxu1 %v17119_v31 }
 0xda3   : > { %14898 = vmatpush3.bf16.msra.mxu0 %v17120_v32 }
 0xda4   : > { %14899 = vmatprep.subr.bf16.mxu0 %v18130_v20 }
 0xda5   : > { %13698 = vmatpush3.bf16.msra.mxu1 %v17121_v36 }
 0xda6   : > { %13699 = vmatprep.subr.bf16.mxu1 %v17122_v38 }
 0xda7   : > { %14900 = vmatpush3.bf16.msra.mxu0 %v17123_v41 }
 0xda8   : > { %14901 = vmatprep.subr.bf16.mxu0 %v18130_v20 }
 0xda9   : > { %13700 = vmatpush3.bf16.msra.mxu1 %v17124_v42 }
 0xdaa   : > { %13701 = vmatprep.subr.bf16.mxu1 %v17125_v45 }
 0xdab   : > { %14902 = vmatpush3.bf16.msra.mxu0 %v17126_v47 }
 0xdac   : > { %14903 = vmatprep.subr.bf16.mxu0 %v18130_v20 }
 0xdad   : > { %13702 = vmatpush3.bf16.msra.mxu1 %v17127_v50 }
 0xdae   : > { %16213 = vmatprep.subr.bf16.mxu1 %v18138_v16 }
 0xdaf   : > { %14904 = vmatpush3.bf16.msra.mxu0 %v17128_v51 }
 0xdb0   : > { %16237 = vmatprep.subr.bf16.mxu0 %v18138_v16 }
 0xe61   : > { %v4065_v55 = vpop.f32.mrb[36].mxu0  ;;  %v4140_v57 = vpop.f32.mrb[30].mxu1 }
 0xe62   : > { %v4219_v61 = vpack.c.bf16 %v4065_v55, %v4065_v55  ;;  %v4220_v62 = vpack.c.bf16 %v4140_v57, %v4140_v57  ;;  %v14878_v0 = vpop.f32.mrb[37].mxu0  ;;  %v14883_v1 = vpop.f32.mrb[31].mxu1 }
 0xe64   : > { %4446 = vmatprep.mubr.bf16.mxu1 %v4220_v62 }
 0xe65   : > { %v4215_v3 = vpop.f32.mrb[38].mxu0  ;;  %4447 = vmatmul.mubr.bf16.vlgmr.msra.gmra.mrb[32].mxu1 %v4219_v61 }
 0xe66   : > { %v4221_v4 = vpack.c.bf16 %v4215_v3, %v4215_v3  ;;  %v14888_v6 = vpop.f32.mrb[39].mxu0  ;;  %16215 = vmatpush3.bf16.msra.mxu1 %v18836_v34  ;;  %14941 = vmatprep.mubr.msk.f32.mxu1 %vm18132_vm1, %v18130_v20 }
 0xe67   : > { %16216 = vmatprep.subr.bf16.mxu1 %v18138_v16  ;;  %v4656_v6 = vld [vmem:[%s19754_s5] sm:$0xf] }
 0xe68   : > { %14906 = vmatmul.mubr.bf16.vlgmr.msra.gmra.mrb[40].mxu0 %v4221_v4 }
 0xe69   : > { %16239 = vmatpush3.bf16.msra.mxu0 %v18836_v34  ;;  %14976 = vmatprep.mubr.msk.f32.mxu0 %vm18132_vm1, %v18130_v20 }
 0xe6a   : > { %16218 = vmatpush3.bf16.msra.mxu1 %v18839_v54  ;;  %16240 = vmatprep.subr.bf16.mxu0 %v18138_v16 }
 0xe6b   : > { %16219 = vmatprep.subr.bf16.mxu1 %v18138_v16 }
 0xe6d   : > { %16242 = vmatpush3.bf16.msra.mxu0 %v18839_v54 }
 0xe6e   : > { %16221 = vmatpush3.bf16.msra.mxu1 %v18845_v58  ;;  %16243 = vmatprep.subr.bf16.mxu0 %v18138_v16 }
 0xe6f   : > { %16222 = vmatprep.subr.bf16.mxu1 %v18138_v16 }
 0xe71   : > { %16245 = vmatpush3.bf16.msra.mxu0 %v18845_v58 }
 0xe72   : > { %16224 = vmatpush3.bf16.msra.mxu1 %v18853_v63  ;;  %16246 = vmatprep.subr.bf16.mxu0 %v18138_v16 }
 0xe73   : > { %16225 = vmatprep.subr.bf16.mxu1 %v18138_v16 }
 0xe75   : > { %16248 = vmatpush3.bf16.msra.mxu0 %v18853_v63 }
 0xe76   : > { %16227 = vmatpush3.bf16.msra.mxu1 %v18859_v2  ;;  %16249 = vmatprep.subr.bf16.mxu0 %v18138_v16 }
 0xe77   : > { %16228 = vmatprep.subr.bf16.mxu1 %v18138_v16 }
 0xe79   : > { %16251 = vmatpush3.bf16.msra.mxu0 %v18859_v2 }
 0xe7a   : > { %16230 = vmatpush3.bf16.msra.mxu1 %v18865_v5  ;;  %16252 = vmatprep.subr.bf16.mxu0 %v18138_v16 }
 0xe7b   : > { %16231 = vmatprep.subr.bf16.mxu1 %v18138_v16 }
 0xe7d   : > { %16254 = vmatpush3.bf16.msra.mxu0 %v18865_v5 }
 0xe7e   : > { %16233 = vmatpush3.bf16.msra.mxu1 %v18876_v8  ;;  %16255 = vmatprep.subr.bf16.mxu0 %v18138_v16 }
 0xe7f   : > { %16234 = vmatprep.subr.bf16.mxu1 %v18138_v16 }
 0xe81   : > { %16257 = vmatpush3.bf16.msra.mxu0 %v18876_v8 }
 0xe82   : > { %16236 = vmatpush3.bf16.msra.mxu1 %v18882_v11  ;;  %16258 = vmatprep.subr.bf16.mxu0 %v18138_v16 }
 0xe83   : > { %14979 = vmatprep.subr.mxu1 %v18130_v20 }
 0xe85   : > { %16260 = vmatpush3.bf16.msra.mxu0 %v18882_v11 }
 0xe86   : > { %14984 = vmatprep.subr.mxu0 %v18130_v20 }
 0xf38   : > { %v13703_v7 = vpop.f32.mrb[32].mxu1 }
 0xf39   : > { %v13704_v10 = vpop.f32.mrb[33].mxu1 }
 0xf3a   : > { %v13705_v12 = vadd.f32 %v13704_v10, %v13703_v7  ;;  %v13706_v13 = vpop.f32.mrb[34].mxu1  ;;  %v13016_v7 = vld [vmem:[%s19754_s5 + $0x4] sm:$0xf]  ;;  %v17129_v10 = vld [vmem:[#allocation13 + $0x40] sm:$0xff]  }
 0xf3b   : > { %v13707_v14 = vpop.f32.mrb[35].mxu1  ;;  %v4488_v15 = vpop.f32.mrb[40].mxu0  ;;  %v17131_v13 = vld [vmem:[#allocation13 + $0x48] sm:$0xff]  }
 0xf3c   : > { %v4489_v17 = vadd.f32 %v13705_v12, %v4488_v15  ;;  %v14907_v18 = vpop.f32.mrb[41].mxu0  ;;  %v17130_v12 = vld [vmem:[#allocation13] sm:$0xff]  }
 0xf3d   : > { %v4491_v19 = vpop.f32.mrb[42].mxu0  ;;  %v13019_v14 = vld [vmem:[%s19754_s5 + $0x8] sm:$0xf]  ;;  %v17134_v18 = vld [vmem:[#allocation13 + $0x50] sm:$0xff]  }
 0xf3e   : > { %v14908_v21 = vpop.f32.mrb[43].mxu0  ;;  %14942 = vmatmul.mubr.f32.vlgmr.msra.gmra.mrb[36].mxu1 %v4489_v17  ;;  %v17132_v15 = vld [vmem:[#allocation13 + $0x80] sm:$0xff]   ;;  %v17135_v19 = vld [vmem:[#allocation13 + $0x88] sm:$0xff]  }
 0xf3f   : > { %14981 = vmatprep.mubr.msk.f32.mxu1 %vm18132_vm1, %v18130_v20  ;;  %v17136_v21 = vld [vmem:[#allocation13 + $0x10] sm:$0xff]  }
0x1011   : > { %v4560_v22 = vpop.f32.mrb[36].mxu1 }
0x1012   : > { %v4564_v23 = vsel %vm3898_vm9, %v4560_v22, 0.0  ;;  %v14943_v24 = vpop.f32.mrb[37].mxu1  ;;  %v17137_v22 = vld [vmem:[#allocation13 + $0x58] sm:$0xff]  }
0x1013   : > { %v4565_v25 = vrot.slane %v4564_v23, 4  ;;  %v17139_v24 = vld [vmem:[#allocation13 + $0x18] sm:$0xff]  }
0x1015   : > { %v4566_v26 = vadd.f32 %v4565_v25, %v4564_v23  ;;  %v17138_v23 = vld [vmem:[#allocation13 + $0x90] sm:$0xff]   ;;  %v17140_v25 = vld [vmem:[#allocation13 + $0x60] sm:$0xff]  }
0x1017   : > { %v4567_v28 = vrot.slane %v4566_v26, 2 }
0x1019   : > { %v4568_v29 = vadd.f32 %v4567_v28, %v4566_v26  ;;  %v17141_v26 = vld [vmem:[#allocation13 + $0x98] sm:$0xff]   ;;  %v17142_v28 = vld [vmem:[#allocation13 + $0x20] sm:$0xff]  }
0x101b   : > { %v4569_v30 = vrot.slane %v4568_v29, 1 }
0x101d   : > { %v4570_v31 = vadd.f32 %v4569_v30, %v4568_v29  ;;  %v17143_v29 = vld [vmem:[#allocation13 + $0x68] sm:$0xff]   ;;  %v17144_v30 = vld [vmem:[#allocation13 + $0xa0] sm:$0xff]  }
0x101f   : > { %v4571_v32 = vmul.f32 0.0625, %v4570_v31  ;;  %v17145_v31 = vld [vmem:[#allocation13 + $0x28] sm:$0xff]  }
0x1021   : > { %v4572_v36 = vsub.f32 %v4489_v17, %v4571_v32  ;;  %v17133_v17 = vld [vmem:[#allocation13 + $0x8] sm:$0xff]   ;;  %v17146_v32 = vld [vmem:[#allocation13 + $0x70] sm:$0xff]  }
0x1023   : > { %v4573_v38 = vmul.f32 %v4572_v36, %v4572_v36 }
0x1025   : > { %14977 = vmatmul.mubr.f32.vlgmr.msra.gmra.mrb[44].mxu0 %v4573_v38  ;;  %v17148_v38 = vld [vmem:[#allocation13 + $0x30] sm:$0xff]  }
0x1026   : > { %14986 = vmatprep.mubr.msk.f32.mxu0 %vm18132_vm1, %v18130_v20 }
0x10f8   : > { %v4640_v41 = vpop.f32.mrb[44].mxu0 }
0x10f9   : > { %v4644_v42 = vsel %vm3898_vm9, %v4640_v41, 0.0  ;;  %v14978_v45 = vpop.f32.mrb[45].mxu0  ;;  %v17149_v41 = vld [vmem:[#allocation13 + $0x78] sm:$0xff]  }
0x10fa   : > { %v4645_v47 = vrot.slane %v4644_v42, 4  ;;  %v17151_v45 = vld [vmem:[#allocation13 + $0x38] sm:$0xff]  }
0x10fc   : > { %v4646_v50 = vadd.f32 %v4645_v47, %v4644_v42  ;;  %v17150_v42 = vld [vmem:[#allocation13 + $0xb0] sm:$0xff]   ;;  %v17152_v47 = vld [vmem:[#allocation13 + $0xb8] sm:$0xff]  }
0x10fe   : > { %v4647_v51 = vrot.slane %v4646_v50, 2 }
0x1100   : > { %v4648_v55 = vadd.f32 %v4647_v51, %v4646_v50 }
0x1102   : > { %v4649_v57 = vrot.slane %v4648_v55, 1 }
0x1104   : > { %v4650_v61 = vadd.f32 %v4649_v57, %v4648_v55 }
0x1106   : > { %v4651_v62 = vmul.f32 0.0625, %v4650_v61 }
0x1108   : > { %v4652_v0 = vadd.f32 1e-05, %v4651_v62 }
0x110a   : > { %17439 = vrsqrt.f32 %v4652_v0 }
0x1114   : > { %v17440_v1 = vpop.eup %17439 }
0x1115   : > { %v4654_v3 = vmul.f32 %v17440_v1, %v4572_v36  ;;  %v17147_v36 = vld [vmem:[#allocation13 + $0xa8] sm:$0xff]  }
0x1117   : > { %v4655_v4 = vmax.f32 %v4654_v3, 0.0 }
0x1119   : > { %14980 = vmatpush3.msk.msra.mxu1 %vm3898_vm9, %v4655_v4  ;;  %14985 = vmatpush3.msk.msra.mxu0 %vm3898_vm9, %v4655_v4 }
0x111a   : > { %14982 = vmatmul.mubr.msk.f32.vlgmr.msra.gmra.mrb[38].mxu1 %vm3992_vm10, %v4656_v6  ;;  %14987 = vmatmul.mubr.msk.f32.vlgmr.msra.gmra.mrb[46].mxu0 %vm3992_vm10, %v13016_v7 }
0x111b   : > { %14989 = vmatprep.subr.mxu1 %v18130_v20  ;;  %14991 = vmatprep.mubr.msk.f32.mxu1 %vm18132_vm1, %v18130_v20 }
0x111c   : > { %14990 = vmatpush3.msk.msra.mxu1 %vm3898_vm9, %v4655_v4  ;;  %13758 = vmatprep.subr.bf16.mxu0 %v17129_v10 }
0x111d   : > { %13759 = vmatpush3.bf16.msra.mxu0 %v17130_v12  ;;  %14994 = vmatprep.subr.bf16.mxu1 %v18130_v20 }
0x111e   : > { %14992 = vmatmul.mubr.msk.f32.vlgmr.msra.gmra.mrb[40].mxu1 %vm3992_vm10, %v13019_v14  ;;  %13760 = vmatprep.subr.bf16.mxu0 %v17131_v13 }
0x111f   : > { %14995 = vmatpush3.bf16.msra.mxu1 %v17132_v15  ;;  %15010 = vmatprep.mubr.msk.bf16.mxu1 %vm18132_vm1, %v18130_v20 }
0x1120   : > { %14996 = vmatprep.subr.bf16.mxu1 %v18130_v20 }
0x1121   : > { %13761 = vmatpush3.bf16.msra.mxu0 %v17133_v17 }
0x1122   : > { %13762 = vmatprep.subr.bf16.mxu0 %v17134_v18 }
0x1123   : > { %14997 = vmatpush3.bf16.msra.mxu1 %v17135_v19 }
0x1124   : > { %14998 = vmatprep.subr.bf16.mxu1 %v18130_v20 }
0x1125   : > { %13763 = vmatpush3.bf16.msra.mxu0 %v17136_v21 }
0x1126   : > { %13764 = vmatprep.subr.bf16.mxu0 %v17137_v22 }
0x1127   : > { %14999 = vmatpush3.bf16.msra.mxu1 %v17138_v23 }
0x1128   : > { %15000 = vmatprep.subr.bf16.mxu1 %v18130_v20 }
0x1129   : > { %13765 = vmatpush3.bf16.msra.mxu0 %v17139_v24 }
0x112a   : > { %13766 = vmatprep.subr.bf16.mxu0 %v17140_v25 }
0x112b   : > { %15001 = vmatpush3.bf16.msra.mxu1 %v17141_v26 }
0x112c   : > { %15002 = vmatprep.subr.bf16.mxu1 %v18130_v20 }
0x112d   : > { %13767 = vmatpush3.bf16.msra.mxu0 %v17142_v28 }
0x112e   : > { %13768 = vmatprep.subr.bf16.mxu0 %v17143_v29 }
0x112f   : > { %15003 = vmatpush3.bf16.msra.mxu1 %v17144_v30 }
0x1130   : > { %15004 = vmatprep.subr.bf16.mxu1 %v18130_v20 }
0x1131   : > { %13769 = vmatpush3.bf16.msra.mxu0 %v17145_v31 }
0x1132   : > { %13770 = vmatprep.subr.bf16.mxu0 %v17146_v32 }
0x1133   : > { %15005 = vmatpush3.bf16.msra.mxu1 %v17147_v36 }
0x1134   : > { %15006 = vmatprep.subr.bf16.mxu1 %v18130_v20 }
0x1135   : > { %13771 = vmatpush3.bf16.msra.mxu0 %v17148_v38 }
0x1136   : > { %13772 = vmatprep.subr.bf16.mxu0 %v17149_v41 }
0x1137   : > { %15007 = vmatpush3.bf16.msra.mxu1 %v17150_v42 }
0x1138   : > { %15008 = vmatprep.subr.bf16.mxu1 %v18130_v20 }
0x1139   : > { %13773 = vmatpush3.bf16.msra.mxu0 %v17151_v45 }
0x113a   : > { %16261 = vmatprep.subr.bf16.mxu0 %v18138_v16 }
0x113b   : > { %15009 = vmatpush3.bf16.msra.mxu1 %v17152_v47 }
0x113c   : > { %16285 = vmatprep.subr.bf16.mxu1 %v18138_v16 }
0x11ed   : > { %v4729_v50 = vpop.f32.mrb[38].mxu1  ;;  %v4804_v51 = vpop.f32.mrb[46].mxu0 }
0x11ee   : > { %v4883_v55 = vpack.c.bf16 %v4729_v50, %v4729_v50  ;;  %v4884_v57 = vpack.c.bf16 %v4804_v51, %v4804_v51  ;;  %v14983_v61 = vpop.f32.mrb[39].mxu1  ;;  %v14988_v62 = vpop.f32.mrb[47].mxu0 }
0x11f0   : > { %5110 = vmatprep.mubr.bf16.mxu0 %v4884_v57 }
0x11f1   : > { %v4879_v0 = vpop.f32.mrb[40].mxu1  ;;  %5111 = vmatmul.mubr.bf16.vlgmr.msra.gmra.mrb[48].mxu0 %v4883_v55 }
0x11f2   : > { %v4885_v1 = vpack.c.bf16 %v4879_v0, %v4879_v0  ;;  %v14993_v3 = vpop.f32.mrb[41].mxu1  ;;  %16263 = vmatpush3.bf16.msra.mxu0 %v18836_v34  ;;  %15046 = vmatprep.mubr.msk.f32.mxu0 %vm18132_vm1, %v18130_v20 }
0x11f3   : > { %16264 = vmatprep.subr.bf16.mxu0 %v18138_v16  ;;  %v5320_v3 = vld [vmem:[%s19755_s9] sm:$0xf] }
0x11f4   : > { %15011 = vmatmul.mubr.bf16.vlgmr.msra.gmra.mrb[44].mxu1 %v4885_v1 }
0x11f5   : > { %16287 = vmatpush3.bf16.msra.mxu1 %v18836_v34  ;;  %15081 = vmatprep.mubr.msk.f32.mxu1 %vm18132_vm1, %v18130_v20 }
0x11f6   : > { %16266 = vmatpush3.bf16.msra.mxu0 %v18839_v54  ;;  %16288 = vmatprep.subr.bf16.mxu1 %v18138_v16 }
0x11f7   : > { %16267 = vmatprep.subr.bf16.mxu0 %v18138_v16 }
0x11f9   : > { %16290 = vmatpush3.bf16.msra.mxu1 %v18839_v54 }
0x11fa   : > { %16269 = vmatpush3.bf16.msra.mxu0 %v18845_v58  ;;  %16291 = vmatprep.subr.bf16.mxu1 %v18138_v16 }
0x11fb   : > { %16270 = vmatprep.subr.bf16.mxu0 %v18138_v16 }
0x11fd   : > { %16293 = vmatpush3.bf16.msra.mxu1 %v18845_v58 }
0x11fe   : > { %16272 = vmatpush3.bf16.msra.mxu0 %v18853_v63  ;;  %16294 = vmatprep.subr.bf16.mxu1 %v18138_v16 }
0x11ff   : > { %16273 = vmatprep.subr.bf16.mxu0 %v18138_v16 }
0x1201   : > { %16296 = vmatpush3.bf16.msra.mxu1 %v18853_v63 }
0x1202   : > { %16275 = vmatpush3.bf16.msra.mxu0 %v18859_v2  ;;  %16297 = vmatprep.subr.bf16.mxu1 %v18138_v16 }
0x1203   : > { %16276 = vmatprep.subr.bf16.mxu0 %v18138_v16 }
0x1205   : > { %16299 = vmatpush3.bf16.msra.mxu1 %v18859_v2 }
0x1206   : > { %16278 = vmatpush3.bf16.msra.mxu0 %v18865_v5  ;;  %16300 = vmatprep.subr.bf16.mxu1 %v18138_v16 }
0x1207   : > { %16279 = vmatprep.subr.bf16.mxu0 %v18138_v16 }
0x1209   : > { %16302 = vmatpush3.bf16.msra.mxu1 %v18865_v5 }
0x120a   : > { %16281 = vmatpush3.bf16.msra.mxu0 %v18876_v8  ;;  %16303 = vmatprep.subr.bf16.mxu1 %v18138_v16 }
0x120b   : > { %16282 = vmatprep.subr.bf16.mxu0 %v18138_v16 }
0x120d   : > { %16305 = vmatpush3.bf16.msra.mxu1 %v18876_v8 }
0x120e   : > { %16284 = vmatpush3.bf16.msra.mxu0 %v18882_v11  ;;  %16306 = vmatprep.subr.bf16.mxu1 %v18138_v16 }
0x120f   : > { %15084 = vmatprep.subr.mxu0 %v18130_v20 }
0x1211   : > { %16308 = vmatpush3.bf16.msra.mxu1 %v18882_v11 }
0x1212   : > { %15089 = vmatprep.subr.mxu1 %v18130_v20 }
0x12c4   : > { %v13774_v4 = vpop.f32.mrb[48].mxu0 }
0x12c5   : > { %v13775_v6 = vpop.f32.mrb[49].mxu0 }
0x12c6   : > { %v13776_v7 = vadd.f32 %v13775_v6, %v13774_v4  ;;  %v13777_v10 = vpop.f32.mrb[50].mxu0  ;;  %v13048_v4 = vld [vmem:[%s19755_s9 + $0x4] sm:$0xf]  ;;  %v17153_v6 = vld [vmem:[#allocation15 + $0x40] sm:$0xff]  }
0x12c7   : > { %v13778_v12 = vpop.f32.mrb[51].mxu0  ;;  %v5152_v13 = vpop.f32.mrb[44].mxu1  ;;  %v17155_v10 = vld [vmem:[#allocation15 + $0x48] sm:$0xff]  }
0x12c8   : > { %v5153_v14 = vadd.f32 %v13776_v7, %v5152_v13  ;;  %v15012_v15 = vpop.f32.mrb[45].mxu1  ;;  %v17154_v7 = vld [vmem:[#allocation15] sm:$0xff]   ;;  %v17157_v13 = vld [vmem:[#allocation15 + $0x8] sm:$0xff]  }
0x12c9   : > { %v5155_v17 = vpop.f32.mrb[46].mxu1  ;;  %v17156_v12 = vld [vmem:[#allocation15 + $0x80] sm:$0xff]   ;;  %v17159_v15 = vld [vmem:[#allocation15 + $0x88] sm:$0xff]  }
0x12ca   : > { %v15013_v18 = vpop.f32.mrb[47].mxu1  ;;  %15047 = vmatmul.mubr.f32.vlgmr.msra.gmra.mrb[52].mxu0 %v5153_v14  ;;  %v17160_v17 = vld [vmem:[#allocation15 + $0x10] sm:$0xff]  }
0x12cb   : > { %15086 = vmatprep.mubr.msk.f32.mxu0 %vm18132_vm1, %v18130_v20  ;;  %v17161_v18 = vld [vmem:[#allocation15 + $0x58] sm:$0xff]  }
0x139d   : > { %v5224_v19 = vpop.f32.mrb[52].mxu0 }
0x139e   : > { %v5228_v21 = vsel %vm3898_vm9, %v5224_v19, 0.0  ;;  %v15048_v22 = vpop.f32.mrb[53].mxu0  ;;  %v17162_v19 = vld [vmem:[#allocation15 + $0x90] sm:$0xff]  }
0x139f   : > { %v5229_v23 = vrot.slane %v5228_v21, 4  ;;  %v17164_v22 = vld [vmem:[#allocation15 + $0x60] sm:$0xff]  }
0x13a1   : > { %v5230_v24 = vadd.f32 %v5229_v23, %v5228_v21  ;;  %v17163_v21 = vld [vmem:[#allocation15 + $0x18] sm:$0xff]  }
0x13a2   : > { %v17165_v23 = vld [vmem:[#allocation15 + $0x98] sm:$0xff]  }
0x13a3   : > { %v5231_v25 = vrot.slane %v5230_v24, 2 }
0x13a5   : > { %v5232_v26 = vadd.f32 %v5231_v25, %v5230_v24  ;;  %v17166_v24 = vld [vmem:[#allocation15 + $0x20] sm:$0xff]   ;;  %v17167_v25 = vld [vmem:[#allocation15 + $0x68] sm:$0xff]  }
0x13a7   : > { %v5233_v28 = vrot.slane %v5232_v26, 1 }
0x13a9   : > { %v5234_v29 = vadd.f32 %v5233_v28, %v5232_v26  ;;  %v17168_v26 = vld [vmem:[#allocation15 + $0xa0] sm:$0xff]   ;;  %v17169_v28 = vld [vmem:[#allocation15 + $0x28] sm:$0xff]  }
0x13ab   : > { %v5235_v30 = vmul.f32 0.0625, %v5234_v29  ;;  %v17170_v29 = vld [vmem:[#allocation15 + $0x70] sm:$0xff]  }
0x13ad   : > { %v5236_v31 = vsub.f32 %v5153_v14, %v5235_v30  ;;  %v17158_v14 = vld [vmem:[#allocation15 + $0x50] sm:$0xff]   ;;  %v17171_v30 = vld [vmem:[#allocation15 + $0xa8] sm:$0xff]  }
0x13af   : > { %v5237_v32 = vmul.f32 %v5236_v31, %v5236_v31 }
0x13b1   : > { %15082 = vmatmul.mubr.f32.vlgmr.msra.gmra.mrb[42].mxu1 %v5237_v32  ;;  %v17173_v32 = vld [vmem:[#allocation15 + $0x78] sm:$0xff]  }
0x13b2   : > { %15091 = vmatprep.mubr.msk.f32.mxu1 %vm18132_vm1, %v18130_v20 }
0x1484   : > { %v5304_v36 = vpop.f32.mrb[42].mxu1 }
0x1485   : > { %v5308_v38 = vsel %vm3898_vm9, %v5304_v36, 0.0  ;;  %v15083_v41 = vpop.f32.mrb[43].mxu1  ;;  %v17174_v36 = vld [vmem:[#allocation15 + $0xb0] sm:$0xff]  }
0x1486   : > { %v5309_v42 = vrot.slane %v5308_v38, 4  ;;  %v17176_v41 = vld [vmem:[#allocation15 + $0xb8] sm:$0xff]  }
0x1488   : > { %v5310_v45 = vadd.f32 %v5309_v42, %v5308_v38  ;;  %v17175_v38 = vld [vmem:[#allocation15 + $0x38] sm:$0xff]  }
0x148a   : > { %v5311_v47 = vrot.slane %v5310_v45, 2 }
0x148c   : > { %v5312_v50 = vadd.f32 %v5311_v47, %v5310_v45 }
0x148e   : > { %v5313_v51 = vrot.slane %v5312_v50, 1 }
0x1490   : > { %v5314_v55 = vadd.f32 %v5313_v51, %v5312_v50 }
0x1492   : > { %v5315_v57 = vmul.f32 0.0625, %v5314_v55 }
0x1494   : > { %v5316_v61 = vadd.f32 1e-05, %v5315_v57 }
0x1496   : > { %17441 = vrsqrt.f32 %v5316_v61 }
0x14a0   : > { %v17442_v62 = vpop.eup %17441 }
0x14a1   : > { %v5318_v0 = vmul.f32 %v17442_v62, %v5236_v31  ;;  %v17172_v31 = vld [vmem:[#allocation15 + $0x30] sm:$0xff]  }
0x14a3   : > { %v19032_v1 = vadd.f32 %v5318_v0, %v18894_v9  ;;  %v13051_v9 = vld [vmem:[%s19755_s9 + $0x8] sm:$0xf] }
0x14a5   : > { %15085 = vmatpush3.msk.msra.mxu0 %vm3898_vm9, %v19032_v1  ;;  %15090 = vmatpush3.msk.msra.mxu1 %vm3898_vm9, %v19032_v1 }
0x14a6   : > { %15087 = vmatmul.mubr.msk.f32.vlgmr.msra.gmra.mrb[54].mxu0 %vm3992_vm10, %v5320_v3  ;;  %15092 = vmatmul.mubr.msk.f32.vlgmr.msra.gmra.mrb[48].mxu1 %vm3992_vm10, %v13048_v4 }
0x14a7   : > { %15094 = vmatprep.subr.mxu0 %v18130_v20  ;;  %15096 = vmatprep.mubr.msk.f32.mxu0 %vm18132_vm1, %v18130_v20 }
0x14a8   : > { %15095 = vmatpush3.msk.msra.mxu0 %vm3898_vm9, %v19032_v1  ;;  %13829 = vmatprep.subr.bf16.mxu1 %v17153_v6 }
0x14a9   : > { %13830 = vmatpush3.bf16.msra.mxu1 %v17154_v7  ;;  %15099 = vmatprep.subr.bf16.mxu0 %v18130_v20 }
0x14aa   : > { %15097 = vmatmul.mubr.msk.f32.vlgmr.msra.gmra.mrb[56].mxu0 %vm3992_vm10, %v13051_v9  ;;  %13831 = vmatprep.subr.bf16.mxu1 %v17155_v10 }
0x14ab   : > { %15100 = vmatpush3.bf16.msra.mxu0 %v17156_v12  ;;  %15115 = vmatprep.mubr.msk.bf16.mxu0 %vm18132_vm1, %v18130_v20 }
0x14ac   : > { %15101 = vmatprep.subr.bf16.mxu0 %v18130_v20 }
0x14ad   : > { %13832 = vmatpush3.bf16.msra.mxu1 %v17157_v13 }
0x14ae   : > { %13833 = vmatprep.subr.bf16.mxu1 %v17158_v14 }
0x14af   : > { %15102 = vmatpush3.bf16.msra.mxu0 %v17159_v15 }
0x14b0   : > { %15103 = vmatprep.subr.bf16.mxu0 %v18130_v20 }
0x14b1   : > { %13834 = vmatpush3.bf16.msra.mxu1 %v17160_v17 }
0x14b2   : > { %13835 = vmatprep.subr.bf16.mxu1 %v17161_v18 }
0x14b3   : > { %15104 = vmatpush3.bf16.msra.mxu0 %v17162_v19 }
0x14b4   : > { %15105 = vmatprep.subr.bf16.mxu0 %v18130_v20 }
0x14b5   : > { %13836 = vmatpush3.bf16.msra.mxu1 %v17163_v21 }
0x14b6   : > { %13837 = vmatprep.subr.bf16.mxu1 %v17164_v22 }
0x14b7   : > { %15106 = vmatpush3.bf16.msra.mxu0 %v17165_v23 }
0x14b8   : > { %15107 = vmatprep.subr.bf16.mxu0 %v18130_v20 }
0x14b9   : > { %13838 = vmatpush3.bf16.msra.mxu1 %v17166_v24 }
0x14ba   : > { %13839 = vmatprep.subr.bf16.mxu1 %v17167_v25 }
0x14bb   : > { %15108 = vmatpush3.bf16.msra.mxu0 %v17168_v26 }
0x14bc   : > { %15109 = vmatprep.subr.bf16.mxu0 %v18130_v20 }
0x14bd   : > { %13840 = vmatpush3.bf16.msra.mxu1 %v17169_v28 }
0x14be   : > { %13841 = vmatprep.subr.bf16.mxu1 %v17170_v29 }
0x14bf   : > { %15110 = vmatpush3.bf16.msra.mxu0 %v17171_v30 }
0x14c0   : > { %15111 = vmatprep.subr.bf16.mxu0 %v18130_v20 }
0x14c1   : > { %13842 = vmatpush3.bf16.msra.mxu1 %v17172_v31 }
0x14c2   : > { %13843 = vmatprep.subr.bf16.mxu1 %v17173_v32 }
0x14c3   : > { %15112 = vmatpush3.bf16.msra.mxu0 %v17174_v36 }
0x14c4   : > { %15113 = vmatprep.subr.bf16.mxu0 %v18130_v20 }
0x14c5   : > { %13844 = vmatpush3.bf16.msra.mxu1 %v17175_v38 }
0x14c6   : > { %16309 = vmatprep.subr.bf16.mxu1 %v18138_v16 }
0x14c7   : > { %15114 = vmatpush3.bf16.msra.mxu0 %v17176_v41 }
0x14c8   : > { %16333 = vmatprep.subr.bf16.mxu0 %v18138_v16 }
0x1579   : > { %v5393_v42 = vpop.f32.mrb[54].mxu0  ;;  %v5468_v45 = vpop.f32.mrb[48].mxu1 }
0x157a   : > { %v5547_v47 = vpack.c.bf16 %v5393_v42, %v5393_v42  ;;  %v5548_v50 = vpack.c.bf16 %v5468_v45, %v5468_v45  ;;  %v15088_v51 = vpop.f32.mrb[55].mxu0  ;;  %v15093_v55 = vpop.f32.mrb[49].mxu1 }
0x157c   : > { %5774 = vmatprep.mubr.bf16.mxu1 %v5548_v50 }
0x157d   : > { %v5543_v57 = vpop.f32.mrb[56].mxu0  ;;  %5775 = vmatmul.mubr.bf16.vlgmr.msra.gmra.mrb[52].mxu1 %v5547_v47 }
0x157e   : > { %v5549_v61 = vpack.c.bf16 %v5543_v57, %v5543_v57  ;;  %v15098_v62 = vpop.f32.mrb[57].mxu0  ;;  %16311 = vmatpush3.bf16.msra.mxu1 %v18836_v34  ;;  %15151 = vmatprep.mubr.msk.f32.mxu1 %vm18132_vm1, %v18130_v20 }
0x157f   : > { %16312 = vmatprep.subr.bf16.mxu1 %v18138_v16  ;;  %v5984_v62 = vld [vmem:[%s19756_s8] sm:$0xf] }
0x1580   : > { %15116 = vmatmul.mubr.bf16.vlgmr.msra.gmra.mrb[60].mxu0 %v5549_v61 }
0x1581   : > { %16335 = vmatpush3.bf16.msra.mxu0 %v18836_v34  ;;  %15186 = vmatprep.mubr.msk.f32.mxu0 %vm18132_vm1, %v18130_v20 }
0x1582   : > { %16314 = vmatpush3.bf16.msra.mxu1 %v18839_v54  ;;  %16336 = vmatprep.subr.bf16.mxu0 %v18138_v16 }
0x1583   : > { %16315 = vmatprep.subr.bf16.mxu1 %v18138_v16 }
0x1585   : > { %16338 = vmatpush3.bf16.msra.mxu0 %v18839_v54 }
0x1586   : > { %16317 = vmatpush3.bf16.msra.mxu1 %v18845_v58  ;;  %16339 = vmatprep.subr.bf16.mxu0 %v18138_v16 }
0x1587   : > { %16318 = vmatprep.subr.bf16.mxu1 %v18138_v16 }
0x1589   : > { %16341 = vmatpush3.bf16.msra.mxu0 %v18845_v58 }
0x158a   : > { %16320 = vmatpush3.bf16.msra.mxu1 %v18853_v63  ;;  %16342 = vmatprep.subr.bf16.mxu0 %v18138_v16 }
0x158b   : > { %16321 = vmatprep.subr.bf16.mxu1 %v18138_v16 }
0x158d   : > { %16344 = vmatpush3.bf16.msra.mxu0 %v18853_v63 }
0x158e   : > { %16323 = vmatpush3.bf16.msra.mxu1 %v18859_v2  ;;  %16345 = vmatprep.subr.bf16.mxu0 %v18138_v16 }
0x158f   : > { %16324 = vmatprep.subr.bf16.mxu1 %v18138_v16 }
0x1591   : > { %16347 = vmatpush3.bf16.msra.mxu0 %v18859_v2 }
0x1592   : > { %16326 = vmatpush3.bf16.msra.mxu1 %v18865_v5  ;;  %16348 = vmatprep.subr.bf16.mxu0 %v18138_v16 }
0x1593   : > { %16327 = vmatprep.subr.bf16.mxu1 %v18138_v16 }
0x1595   : > { %16350 = vmatpush3.bf16.msra.mxu0 %v18865_v5 }
0x1596   : > { %16329 = vmatpush3.bf16.msra.mxu1 %v18876_v8  ;;  %16351 = vmatprep.subr.bf16.mxu0 %v18138_v16 }
0x1597   : > { %16330 = vmatprep.subr.bf16.mxu1 %v18138_v16 }
0x1599   : > { %16353 = vmatpush3.bf16.msra.mxu0 %v18876_v8 }
0x159a   : > { %16332 = vmatpush3.bf16.msra.mxu1 %v18882_v11  ;;  %16354 = vmatprep.subr.bf16.mxu0 %v18138_v16 }
0x159b   : > { %15189 = vmatprep.subr.mxu1 %v18130_v20 }
0x159d   : > { %16356 = vmatpush3.bf16.msra.mxu0 %v18882_v11 }
0x159e   : > { %15194 = vmatprep.subr.mxu0 %v18130_v20 }
0x1650   : > { %v13845_v0 = vpop.f32.mrb[52].mxu1 }
0x1651   : > { %v13846_v3 = vpop.f32.mrb[53].mxu1 }
0x1652   : > { %v13847_v4 = vadd.f32 %v13846_v3, %v13845_v0  ;;  %v13848_v6 = vpop.f32.mrb[54].mxu1  ;;  %v13080_v0 = vld [vmem:[%s19756_s8 + $0x4] sm:$0xf]  ;;  %v17177_v3 = vld [vmem:[#allocation16 + $0x40] sm:$0xff]  }
0x1653   : > { %v13849_v7 = vpop.f32.mrb[55].mxu1  ;;  %v5816_v10 = vpop.f32.mrb[60].mxu0  ;;  %v17179_v6 = vld [vmem:[#allocation16 + $0x48] sm:$0xff]  }
0x1654   : > { %v5817_v9 = vadd.f32 %v13847_v4, %v5816_v10  ;;  %v15117_v12 = vpop.f32.mrb[61].mxu0  ;;  %v17178_v4 = vld [vmem:[#allocation16] sm:$0xff]  }
0x1655   : > { %v5819_v13 = vpop.f32.mrb[62].mxu0  ;;  %v13083_v7 = vld [vmem:[%s19756_s8 + $0x8] sm:$0xf]  ;;  %v17182_v12 = vld [vmem:[#allocation16 + $0x50] sm:$0xff]  }
0x1656   : > { %v15118_v14 = vpop.f32.mrb[63].mxu0  ;;  %15152 = vmatmul.mubr.f32.vlgmr.msra.gmra.mrb[50].mxu1 %v5817_v9  ;;  %v17180_v10 = vld [vmem:[#allocation16 + $0x80] sm:$0xff]   ;;  %v17183_v13 = vld [vmem:[#allocation16 + $0x88] sm:$0xff]  }
0x1657   : > { %15191 = vmatprep.mubr.msk.f32.mxu1 %vm18132_vm1, %v18130_v20  ;;  %v17184_v14 = vld [vmem:[#allocation16 + $0x10] sm:$0xff]  }
0x1729   : > { %v5888_v15 = vpop.f32.mrb[50].mxu1 }
0x172a   : > { %v5892_v17 = vsel %vm3898_vm9, %v5888_v15, 0.0  ;;  %v15153_v18 = vpop.f32.mrb[51].mxu1  ;;  %v17185_v15 = vld [vmem:[#allocation16 + $0x58] sm:$0xff]  }
0x172b   : > { %v5893_v19 = vrot.slane %v5892_v17, 4  ;;  %v17187_v18 = vld [vmem:[#allocation16 + $0x18] sm:$0xff]  }
0x172d   : > { %v5894_v21 = vadd.f32 %v5893_v19, %v5892_v17  ;;  %v17186_v17 = vld [vmem:[#allocation16 + $0x90] sm:$0xff]   ;;  %v17188_v19 = vld [vmem:[#allocation16 + $0x60] sm:$0xff]  }
0x172f   : > { %v5895_v22 = vrot.slane %v5894_v21, 2 }
0x1731   : > { %v5896_v23 = vadd.f32 %v5895_v22, %v5894_v21  ;;  %v17189_v21 = vld [vmem:[#allocation16 + $0x98] sm:$0xff]   ;;  %v17190_v22 = vld [vmem:[#allocation16 + $0x20] sm:$0xff]  }
0x1733   : > { %v5897_v24 = vrot.slane %v5896_v23, 1 }
0x1735   : > { %v5898_v25 = vadd.f32 %v5897_v24, %v5896_v23  ;;  %v17191_v23 = vld [vmem:[#allocation16 + $0x68] sm:$0xff]   ;;  %v17192_v24 = vld [vmem:[#allocation16 + $0xa0] sm:$0xff]  }
0x1737   : > { %v5899_v26 = vmul.f32 0.0625, %v5898_v25  ;;  %v17193_v25 = vld [vmem:[#allocation16 + $0x28] sm:$0xff]  }
0x1739   : > { %v5900_v28 = vsub.f32 %v5817_v9, %v5899_v26  ;;  %v17181_v9 = vld [vmem:[#allocation16 + $0x8] sm:$0xff]   ;;  %v17194_v26 = vld [vmem:[#allocation16 + $0x70] sm:$0xff]  }
0x173b   : > { %v5901_v29 = vmul.f32 %v5900_v28, %v5900_v28 }
0x173d   : > { %15187 = vmatmul.mubr.f32.vlgmr.msra.gmra.mrb[58].mxu0 %v5901_v29  ;;  %v17196_v29 = vld [vmem:[#allocation16 + $0x30] sm:$0xff]  }
0x173e   : > { %15196 = vmatprep.mubr.msk.f32.mxu0 %vm18132_vm1, %v18130_v20 }
0x1810   : > { %v5968_v30 = vpop.f32.mrb[58].mxu0 }
0x1811   : > { %v5972_v31 = vsel %vm3898_vm9, %v5968_v30, 0.0  ;;  %v15188_v32 = vpop.f32.mrb[59].mxu0  ;;  %v17197_v30 = vld [vmem:[#allocation16 + $0x78] sm:$0xff]  }
0x1812   : > { %v5973_v36 = vrot.slane %v5972_v31, 4  ;;  %v17199_v32 = vld [vmem:[#allocation16 + $0x38] sm:$0xff]  }
0x1814   : > { %v5974_v38 = vadd.f32 %v5973_v36, %v5972_v31  ;;  %v17198_v31 = vld [vmem:[#allocation16 + $0xb0] sm:$0xff]   ;;  %v17200_v36 = vld [vmem:[#allocation16 + $0xb8] sm:$0xff]  }
0x1816   : > { %v5975_v41 = vrot.slane %v5974_v38, 2 }
0x1818   : > { %v5976_v42 = vadd.f32 %v5975_v41, %v5974_v38 }
0x181a   : > { %v5977_v45 = vrot.slane %v5976_v42, 1 }
0x181c   : > { %v5978_v47 = vadd.f32 %v5977_v45, %v5976_v42 }
0x181e   : > { %v5979_v50 = vmul.f32 0.0625, %v5978_v47 }
0x1820   : > { %v5980_v51 = vadd.f32 1e-05, %v5979_v50 }
0x1822   : > { %17443 = vrsqrt.f32 %v5980_v51 }
0x182c   : > { %v17444_v55 = vpop.eup %17443 }
0x182d   : > { %v5982_v57 = vmul.f32 %v17444_v55, %v5900_v28  ;;  %v17195_v28 = vld [vmem:[#allocation16 + $0xa8] sm:$0xff]  }
0x182f   : > { %v5983_v61 = vmax.f32 %v5982_v57, 0.0 }
0x1831   : > { %15190 = vmatpush3.msk.msra.mxu1 %vm3898_vm9, %v5983_v61  ;;  %15195 = vmatpush3.msk.msra.mxu0 %vm3898_vm9, %v5983_v61 }
0x1832   : > { %15192 = vmatmul.mubr.msk.f32.vlgmr.msra.gmra.mrb[56].mxu1 %vm3992_vm10, %v5984_v62  ;;  %15197 = vmatmul.mubr.msk.f32.vlgmr.msra.gmra.mrb[64].mxu0 %vm3992_vm10, %v13080_v0 }
0x1833   : > { %15199 = vmatprep.subr.mxu1 %v18130_v20  ;;  %15201 = vmatprep.mubr.msk.f32.mxu1 %vm18132_vm1, %v18130_v20 }
0x1834   : > { %15200 = vmatpush3.msk.msra.mxu1 %vm3898_vm9, %v5983_v61  ;;  %13900 = vmatprep.subr.bf16.mxu0 %v17177_v3 }
0x1835   : > { %13901 = vmatpush3.bf16.msra.mxu0 %v17178_v4  ;;  %15204 = vmatprep.subr.bf16.mxu1 %v18130_v20 }
0x1836   : > { %15202 = vmatmul.mubr.msk.f32.vlgmr.msra.gmra.mrb[58].mxu1 %vm3992_vm10, %v13083_v7  ;;  %13902 = vmatprep.subr.bf16.mxu0 %v17179_v6 }
0x1837   : > { %15205 = vmatpush3.bf16.msra.mxu1 %v17180_v10  ;;  %15220 = vmatprep.mubr.msk.bf16.mxu1 %vm18132_vm1, %v18130_v20 }
0x1838   : > { %15206 = vmatprep.subr.bf16.mxu1 %v18130_v20 }
0x1839   : > { %13903 = vmatpush3.bf16.msra.mxu0 %v17181_v9 }
0x183a   : > { %13904 = vmatprep.subr.bf16.mxu0 %v17182_v12 }
0x183b   : > { %15207 = vmatpush3.bf16.msra.mxu1 %v17183_v13 }
0x183c   : > { %15208 = vmatprep.subr.bf16.mxu1 %v18130_v20 }
0x183d   : > { %13905 = vmatpush3.bf16.msra.mxu0 %v17184_v14 }
0x183e   : > { %13906 = vmatprep.subr.bf16.mxu0 %v17185_v15 }
0x183f   : > { %15209 = vmatpush3.bf16.msra.mxu1 %v17186_v17 }
0x1840   : > { %15210 = vmatprep.subr.bf16.mxu1 %v18130_v20 }
0x1841   : > { %13907 = vmatpush3.bf16.msra.mxu0 %v17187_v18 }
0x1842   : > { %13908 = vmatprep.subr.bf16.mxu0 %v17188_v19 }
0x1843   : > { %15211 = vmatpush3.bf16.msra.mxu1 %v17189_v21 }
0x1844   : > { %15212 = vmatprep.subr.bf16.mxu1 %v18130_v20 }
0x1845   : > { %13909 = vmatpush3.bf16.msra.mxu0 %v17190_v22 }
0x1846   : > { %13910 = vmatprep.subr.bf16.mxu0 %v17191_v23 }
0x1847   : > { %15213 = vmatpush3.bf16.msra.mxu1 %v17192_v24 }
0x1848   : > { %15214 = vmatprep.subr.bf16.mxu1 %v18130_v20 }
0x1849   : > { %13911 = vmatpush3.bf16.msra.mxu0 %v17193_v25 }
0x184a   : > { %13912 = vmatprep.subr.bf16.mxu0 %v17194_v26 }
0x184b   : > { %15215 = vmatpush3.bf16.msra.mxu1 %v17195_v28 }
0x184c   : > { %15216 = vmatprep.subr.bf16.mxu1 %v18130_v20 }
0x184d   : > { %13913 = vmatpush3.bf16.msra.mxu0 %v17196_v29 }
0x184e   : > { %13914 = vmatprep.subr.bf16.mxu0 %v17197_v30 }
0x184f   : > { %15217 = vmatpush3.bf16.msra.mxu1 %v17198_v31 }
0x1850   : > { %15218 = vmatprep.subr.bf16.mxu1 %v18130_v20 }
0x1851   : > { %13915 = vmatpush3.bf16.msra.mxu0 %v17199_v32 }
0x1852   : > { %16357 = vmatprep.subr.bf16.mxu0 %v18138_v16 }
0x1853   : > { %15219 = vmatpush3.bf16.msra.mxu1 %v17200_v36 }
0x1854   : > { %16381 = vmatprep.subr.bf16.mxu1 %v18138_v16 }
0x1905   : > { %v6057_v38 = vpop.f32.mrb[56].mxu1  ;;  %v6132_v41 = vpop.f32.mrb[64].mxu0 }
0x1906   : > { %v6211_v42 = vpack.c.bf16 %v6057_v38, %v6057_v38  ;;  %v6212_v45 = vpack.c.bf16 %v6132_v41, %v6132_v41  ;;  %v15193_v47 = vpop.f32.mrb[57].mxu1  ;;  %v15198_v50 = vpop.f32.mrb[65].mxu0 }
0x1908   : > { %6438 = vmatprep.mubr.bf16.mxu0 %v6212_v45 }
0x1909   : > { %v6207_v51 = vpop.f32.mrb[58].mxu1  ;;  %6439 = vmatmul.mubr.bf16.vlgmr.msra.gmra.mrb[68].mxu0 %v6211_v42 }
0x190a   : > { %v6213_v55 = vpack.c.bf16 %v6207_v51, %v6207_v51  ;;  %v15203_v57 = vpop.f32.mrb[59].mxu1  ;;  %16359 = vmatpush3.bf16.msra.mxu0 %v18836_v34  ;;  %15256 = vmatprep.mubr.msk.f32.mxu0 %vm18132_vm1, %v18130_v20 }
0x190b   : > { %16360 = vmatprep.subr.bf16.mxu0 %v18138_v16  ;;  %v6648_v57 = vld [vmem:[%s19757_s7] sm:$0xf] }
0x190c   : > { %15221 = vmatmul.mubr.bf16.vlgmr.msra.gmra.mrb[60].mxu1 %v6213_v55 }
0x190d   : > { %16383 = vmatpush3.bf16.msra.mxu1 %v18836_v34  ;;  %15291 = vmatprep.mubr.msk.f32.mxu1 %vm18132_vm1, %v18130_v20 }
0x190e   : > { %16362 = vmatpush3.bf16.msra.mxu0 %v18839_v54  ;;  %16384 = vmatprep.subr.bf16.mxu1 %v18138_v16 }
0x190f   : > { %16363 = vmatprep.subr.bf16.mxu0 %v18138_v16 }
0x1911   : > { %16386 = vmatpush3.bf16.msra.mxu1 %v18839_v54 }
0x1912   : > { %16365 = vmatpush3.bf16.msra.mxu0 %v18845_v58  ;;  %16387 = vmatprep.subr.bf16.mxu1 %v18138_v16 }
0x1913   : > { %16366 = vmatprep.subr.bf16.mxu0 %v18138_v16 }
0x1915   : > { %16389 = vmatpush3.bf16.msra.mxu1 %v18845_v58 }
0x1916   : > { %16368 = vmatpush3.bf16.msra.mxu0 %v18853_v63  ;;  %16390 = vmatprep.subr.bf16.mxu1 %v18138_v16 }
0x1917   : > { %16369 = vmatprep.subr.bf16.mxu0 %v18138_v16 }
0x1919   : > { %16392 = vmatpush3.bf16.msra.mxu1 %v18853_v63 }
0x191a   : > { %16371 = vmatpush3.bf16.msra.mxu0 %v18859_v2  ;;  %16393 = vmatprep.subr.bf16.mxu1 %v18138_v16 }
0x191b   : > { %16372 = vmatprep.subr.bf16.mxu0 %v18138_v16 }
0x191d   : > { %16395 = vmatpush3.bf16.msra.mxu1 %v18859_v2 }
0x191e   : > { %16374 = vmatpush3.bf16.msra.mxu0 %v18865_v5  ;;  %16396 = vmatprep.subr.bf16.mxu1 %v18138_v16 }
0x191f   : > { %16375 = vmatprep.subr.bf16.mxu0 %v18138_v16 }
0x1921   : > { %16398 = vmatpush3.bf16.msra.mxu1 %v18865_v5 }
0x1922   : > { %16377 = vmatpush3.bf16.msra.mxu0 %v18876_v8  ;;  %16399 = vmatprep.subr.bf16.mxu1 %v18138_v16 }
0x1923   : > { %16378 = vmatprep.subr.bf16.mxu0 %v18138_v16 }
0x1925   : > { %16401 = vmatpush3.bf16.msra.mxu1 %v18876_v8 }
0x1926   : > { %16380 = vmatpush3.bf16.msra.mxu0 %v18882_v11  ;;  %16402 = vmatprep.subr.bf16.mxu1 %v18138_v16 }
0x1927   : > { %15294 = vmatprep.subr.mxu0 %v18130_v20 }
0x1929   : > { %16404 = vmatpush3.bf16.msra.mxu1 %v18882_v11 }
0x192a   : > { %15299 = vmatprep.subr.mxu1 %v18130_v20 }
0x19dc   : > { %v13916_v61 = vpop.f32.mrb[68].mxu0 }
0x19dd   : > { %v13917_v62 = vpop.f32.mrb[69].mxu0 }
0x19de   : > { %v13918_v0 = vadd.f32 %v13917_v62, %v13916_v61  ;;  %v13919_v3 = vpop.f32.mrb[70].mxu0  ;;  %v13112_v61 = vld [vmem:[%s19757_s7 + $0x4] sm:$0xf]  ;;  %v17201_v62 = vld [vmem:[#allocation18 + $0x40] sm:$0xff]  }
0x19df   : > { %v13920_v4 = vpop.f32.mrb[71].mxu0  ;;  %v6480_v6 = vpop.f32.mrb[60].mxu1  ;;  %v17203_v3 = vld [vmem:[#allocation18 + $0x48] sm:$0xff]  }
0x19e0   : > { %v6481_v7 = vadd.f32 %v13918_v0, %v6480_v6  ;;  %v15222_v10 = vpop.f32.mrb[61].mxu1  ;;  %v17202_v0 = vld [vmem:[#allocation18] sm:$0xff]   ;;  %v17205_v6 = vld [vmem:[#allocation18 + $0x8] sm:$0xff]  }
0x19e1   : > { %v6483_v9 = vpop.f32.mrb[62].mxu1  ;;  %v17204_v4 = vld [vmem:[#allocation18 + $0x80] sm:$0xff]   ;;  %v17207_v10 = vld [vmem:[#allocation18 + $0x88] sm:$0xff]  }
0x19e2   : > { %v15223_v12 = vpop.f32.mrb[63].mxu1  ;;  %15257 = vmatmul.mubr.f32.vlgmr.msra.gmra.mrb[66].mxu0 %v6481_v7  ;;  %v17208_v9 = vld [vmem:[#allocation18 + $0x10] sm:$0xff]  }
0x19e3   : > { %15296 = vmatprep.mubr.msk.f32.mxu0 %vm18132_vm1, %v18130_v20  ;;  %v17209_v12 = vld [vmem:[#allocation18 + $0x58] sm:$0xff]  }
0x1ab5   : > { %v6552_v13 = vpop.f32.mrb[66].mxu0 }
0x1ab6   : > { %v6556_v14 = vsel %vm3898_vm9, %v6552_v13, 0.0  ;;  %v15258_v15 = vpop.f32.mrb[67].mxu0  ;;  %v17210_v13 = vld [vmem:[#allocation18 + $0x90] sm:$0xff]  }
0x1ab7   : > { %v6557_v17 = vrot.slane %v6556_v14, 4  ;;  %v17212_v15 = vld [vmem:[#allocation18 + $0x60] sm:$0xff]  }
0x1ab9   : > { %v6558_v18 = vadd.f32 %v6557_v17, %v6556_v14  ;;  %v17211_v14 = vld [vmem:[#allocation18 + $0x18] sm:$0xff]  }
0x1aba   : > { %v17213_v17 = vld [vmem:[#allocation18 + $0x98] sm:$0xff]  }
0x1abb   : > { %v6559_v19 = vrot.slane %v6558_v18, 2 }
0x1abd   : > { %v6560_v21 = vadd.f32 %v6559_v19, %v6558_v18  ;;  %v17214_v18 = vld [vmem:[#allocation18 + $0x20] sm:$0xff]   ;;  %v17215_v19 = vld [vmem:[#allocation18 + $0x68] sm:$0xff]  }
0x1abf   : > { %v6561_v22 = vrot.slane %v6560_v21, 1 }
0x1ac1   : > { %v6562_v23 = vadd.f32 %v6561_v22, %v6560_v21  ;;  %v17216_v21 = vld [vmem:[#allocation18 + $0xa0] sm:$0xff]   ;;  %v17217_v22 = vld [vmem:[#allocation18 + $0x28] sm:$0xff]  }
0x1ac3   : > { %v6563_v24 = vmul.f32 0.0625, %v6562_v23  ;;  %v17218_v23 = vld [vmem:[#allocation18 + $0x70] sm:$0xff]  }
0x1ac5   : > { %v6564_v25 = vsub.f32 %v6481_v7, %v6563_v24  ;;  %v17206_v7 = vld [vmem:[#allocation18 + $0x50] sm:$0xff]   ;;  %v17219_v24 = vld [vmem:[#allocation18 + $0xa8] sm:$0xff]  }
0x1ac7   : > { %v6565_v26 = vmul.f32 %v6564_v25, %v6564_v25 }
0x1ac9   : > { %15292 = vmatmul.mubr.f32.vlgmr.msra.gmra.mrb[64].mxu1 %v6565_v26  ;;  %v17221_v26 = vld [vmem:[#allocation18 + $0x78] sm:$0xff]  }
0x1aca   : > { %15301 = vmatprep.mubr.msk.f32.mxu1 %vm18132_vm1, %v18130_v20 }
0x1b9c   : > { %v6632_v28 = vpop.f32.mrb[64].mxu1 }
0x1b9d   : > { %v6636_v29 = vsel %vm3898_vm9, %v6632_v28, 0.0  ;;  %v15293_v30 = vpop.f32.mrb[65].mxu1  ;;  %v17222_v28 = vld [vmem:[#allocation18 + $0xb0] sm:$0xff]  }
0x1b9e   : > { %v6637_v31 = vrot.slane %v6636_v29, 4  ;;  %v17224_v30 = vld [vmem:[#allocation18 + $0xb8] sm:$0xff]  }
0x1ba0   : > { %v6638_v32 = vadd.f32 %v6637_v31, %v6636_v29  ;;  %v17223_v29 = vld [vmem:[#allocation18 + $0x38] sm:$0xff]  }
0x1ba2   : > { %v6639_v36 = vrot.slane %v6638_v32, 2 }
0x1ba4   : > { %v6640_v38 = vadd.f32 %v6639_v36, %v6638_v32 }
0x1ba6   : > { %v6641_v41 = vrot.slane %v6640_v38, 1 }
0x1ba8   : > { %v6642_v42 = vadd.f32 %v6641_v41, %v6640_v38 }
0x1baa   : > { %v6643_v45 = vmul.f32 0.0625, %v6642_v42 }
0x1bac   : > { %v6644_v47 = vadd.f32 1e-05, %v6643_v45 }
0x1bae   : > { %17445 = vrsqrt.f32 %v6644_v47 }
0x1bb8   : > { %v17446_v50 = vpop.eup %17445 }
0x1bb9   : > { %v6646_v51 = vmul.f32 %v17446_v50, %v6564_v25  ;;  %v17220_v25 = vld [vmem:[#allocation18 + $0x30] sm:$0xff]  }
0x1bbb   : > { %v19170_v55 = vadd.f32 %v6646_v51, %v19032_v1  ;;  %v13115_v1 = vld [vmem:[%s19757_s7 + $0x8] sm:$0xf] }
0x1bbd   : > { %15295 = vmatpush3.msk.msra.mxu0 %vm3898_vm9, %v19170_v55  ;;  %15300 = vmatpush3.msk.msra.mxu1 %vm3898_vm9, %v19170_v55 }
0x1bbe   : > { %15297 = vmatmul.mubr.msk.f32.vlgmr.msra.gmra.mrb[72].mxu0 %vm3992_vm10, %v6648_v57  ;;  %15302 = vmatmul.mubr.msk.f32.vlgmr.msra.gmra.mrb[66].mxu1 %vm3992_vm10, %v13112_v61 }
0x1bbf   : > { %15304 = vmatprep.subr.mxu0 %v18130_v20  ;;  %15306 = vmatprep.mubr.msk.f32.mxu0 %vm18132_vm1, %v18130_v20 }
0x1bc0   : > { %15305 = vmatpush3.msk.msra.mxu0 %vm3898_vm9, %v19170_v55  ;;  %13971 = vmatprep.subr.bf16.mxu1 %v17201_v62 }
0x1bc1   : > { %13972 = vmatpush3.bf16.msra.mxu1 %v17202_v0  ;;  %15309 = vmatprep.subr.bf16.mxu0 %v18130_v20 }
0x1bc2   : > { %15307 = vmatmul.mubr.msk.f32.vlgmr.msra.gmra.mrb[74].mxu0 %vm3992_vm10, %v13115_v1  ;;  %13973 = vmatprep.subr.bf16.mxu1 %v17203_v3 }
0x1bc3   : > { %15310 = vmatpush3.bf16.msra.mxu0 %v17204_v4  ;;  %15325 = vmatprep.mubr.msk.bf16.mxu0 %vm18132_vm1, %v18130_v20 }
0x1bc4   : > { %15311 = vmatprep.subr.bf16.mxu0 %v18130_v20 }
0x1bc5   : > { %13974 = vmatpush3.bf16.msra.mxu1 %v17205_v6 }
0x1bc6   : > { %13975 = vmatprep.subr.bf16.mxu1 %v17206_v7 }
0x1bc7   : > { %15312 = vmatpush3.bf16.msra.mxu0 %v17207_v10 }
0x1bc8   : > { %15313 = vmatprep.subr.bf16.mxu0 %v18130_v20 }
0x1bc9   : > { %13976 = vmatpush3.bf16.msra.mxu1 %v17208_v9 }
0x1bca   : > { %13977 = vmatprep.subr.bf16.mxu1 %v17209_v12 }
0x1bcb   : > { %15314 = vmatpush3.bf16.msra.mxu0 %v17210_v13 }
0x1bcc   : > { %15315 = vmatprep.subr.bf16.mxu0 %v18130_v20 }
0x1bcd   : > { %13978 = vmatpush3.bf16.msra.mxu1 %v17211_v14 }
0x1bce   : > { %13979 = vmatprep.subr.bf16.mxu1 %v17212_v15 }
0x1bcf   : > { %15316 = vmatpush3.bf16.msra.mxu0 %v17213_v17 }
0x1bd0   : > { %15317 = vmatprep.subr.bf16.mxu0 %v18130_v20 }
0x1bd1   : > { %13980 = vmatpush3.bf16.msra.mxu1 %v17214_v18 }
0x1bd2   : > { %13981 = vmatprep.subr.bf16.mxu1 %v17215_v19 }
0x1bd3   : > { %15318 = vmatpush3.bf16.msra.mxu0 %v17216_v21 }
0x1bd4   : > { %15319 = vmatprep.subr.bf16.mxu0 %v18130_v20 }
0x1bd5   : > { %13982 = vmatpush3.bf16.msra.mxu1 %v17217_v22 }
0x1bd6   : > { %13983 = vmatprep.subr.bf16.mxu1 %v17218_v23 }
0x1bd7   : > { %15320 = vmatpush3.bf16.msra.mxu0 %v17219_v24 }
0x1bd8   : > { %15321 = vmatprep.subr.bf16.mxu0 %v18130_v20 }
0x1bd9   : > { %13984 = vmatpush3.bf16.msra.mxu1 %v17220_v25 }
0x1bda   : > { %13985 = vmatprep.subr.bf16.mxu1 %v17221_v26 }
0x1bdb   : > { %15322 = vmatpush3.bf16.msra.mxu0 %v17222_v28 }
0x1bdc   : > { %15323 = vmatprep.subr.bf16.mxu0 %v18130_v20 }
0x1bdd   : > { %13986 = vmatpush3.bf16.msra.mxu1 %v17223_v29 }
0x1bde   : > { %16405 = vmatprep.subr.bf16.mxu1 %v18138_v16 }
0x1bdf   : > { %15324 = vmatpush3.bf16.msra.mxu0 %v17224_v30 }
0x1be0   : > { %16429 = vmatprep.subr.bf16.mxu0 %v18138_v16 }
0x1c91   : > { %v6721_v31 = vpop.f32.mrb[72].mxu0  ;;  %v6796_v32 = vpop.f32.mrb[66].mxu1 }
0x1c92   : > { %v6875_v36 = vpack.c.bf16 %v6721_v31, %v6721_v31  ;;  %v6876_v38 = vpack.c.bf16 %v6796_v32, %v6796_v32  ;;  %v15298_v41 = vpop.f32.mrb[73].mxu0  ;;  %v15303_v42 = vpop.f32.mrb[67].mxu1 }
0x1c94   : > { %7102 = vmatprep.mubr.bf16.mxu1 %v6876_v38 }
0x1c95   : > { %v6871_v45 = vpop.f32.mrb[74].mxu0  ;;  %7103 = vmatmul.mubr.bf16.vlgmr.msra.gmra.mrb[68].mxu1 %v6875_v36 }
0x1c96   : > { %v6877_v47 = vpack.c.bf16 %v6871_v45, %v6871_v45  ;;  %v15308_v50 = vpop.f32.mrb[75].mxu0  ;;  %16407 = vmatpush3.bf16.msra.mxu1 %v18836_v34  ;;  %15361 = vmatprep.mubr.msk.f32.mxu1 %vm18132_vm1, %v18130_v20 }
0x1c97   : > { %16408 = vmatprep.subr.bf16.mxu1 %v18138_v16  ;;  %v7312_v50 = vld [vmem:[%s19758_s0] sm:$0xf] }
0x1c98   : > { %15326 = vmatmul.mubr.bf16.vlgmr.msra.gmra.mrb[76].mxu0 %v6877_v47 }
0x1c99   : > { %16431 = vmatpush3.bf16.msra.mxu0 %v18836_v34  ;;  %15396 = vmatprep.mubr.msk.f32.mxu0 %vm18132_vm1, %v18130_v20 }
0x1c9a   : > { %16410 = vmatpush3.bf16.msra.mxu1 %v18839_v54  ;;  %16432 = vmatprep.subr.bf16.mxu0 %v18138_v16 }
0x1c9b   : > { %16411 = vmatprep.subr.bf16.mxu1 %v18138_v16 }
0x1c9d   : > { %16434 = vmatpush3.bf16.msra.mxu0 %v18839_v54 }
0x1c9e   : > { %16413 = vmatpush3.bf16.msra.mxu1 %v18845_v58  ;;  %16435 = vmatprep.subr.bf16.mxu0 %v18138_v16 }
0x1c9f   : > { %16414 = vmatprep.subr.bf16.mxu1 %v18138_v16 }
0x1ca1   : > { %16437 = vmatpush3.bf16.msra.mxu0 %v18845_v58 }
0x1ca2   : > { %16416 = vmatpush3.bf16.msra.mxu1 %v18853_v63  ;;  %16438 = vmatprep.subr.bf16.mxu0 %v18138_v16 }
0x1ca3   : > { %16417 = vmatprep.subr.bf16.mxu1 %v18138_v16 }
0x1ca5   : > { %16440 = vmatpush3.bf16.msra.mxu0 %v18853_v63 }
0x1ca6   : > { %16419 = vmatpush3.bf16.msra.mxu1 %v18859_v2  ;;  %16441 = vmatprep.subr.bf16.mxu0 %v18138_v16 }
0x1ca7   : > { %16420 = vmatprep.subr.bf16.mxu1 %v18138_v16 }
0x1ca9   : > { %16443 = vmatpush3.bf16.msra.mxu0 %v18859_v2 }
0x1caa   : > { %16422 = vmatpush3.bf16.msra.mxu1 %v18865_v5  ;;  %16444 = vmatprep.subr.bf16.mxu0 %v18138_v16 }
0x1cab   : > { %16423 = vmatprep.subr.bf16.mxu1 %v18138_v16 }
0x1cad   : > { %16446 = vmatpush3.bf16.msra.mxu0 %v18865_v5 }
0x1cae   : > { %16425 = vmatpush3.bf16.msra.mxu1 %v18876_v8  ;;  %16447 = vmatprep.subr.bf16.mxu0 %v18138_v16 }
0x1caf   : > { %16426 = vmatprep.subr.bf16.mxu1 %v18138_v16 }
0x1cb1   : > { %16449 = vmatpush3.bf16.msra.mxu0 %v18876_v8 }
0x1cb2   : > { %16428 = vmatpush3.bf16.msra.mxu1 %v18882_v11  ;;  %16450 = vmatprep.subr.bf16.mxu0 %v18138_v16 }
0x1cb3   : > { %15399 = vmatprep.subr.mxu1 %v18130_v20 }
0x1cb5   : > { %16452 = vmatpush3.bf16.msra.mxu0 %v18882_v11 }
0x1cb6   : > { %15404 = vmatprep.subr.mxu0 %v18130_v20 }
0x1d68   : > { %v13987_v51 = vpop.f32.mrb[68].mxu1 }
0x1d69   : > { %v13988_v57 = vpop.f32.mrb[69].mxu1 }
0x1d6a   : > { %v13989_v61 = vadd.f32 %v13988_v57, %v13987_v51  ;;  %v13990_v62 = vpop.f32.mrb[70].mxu1  ;;  %v13144_v51 = vld [vmem:[%s19758_s0 + $0x4] sm:$0xf]  ;;  %v17225_v57 = vld [vmem:[#allocation19 + $0x40] sm:$0xff]  }
0x1d6b   : > { %v13991_v0 = vpop.f32.mrb[71].mxu1  ;;  %v7144_v3 = vpop.f32.mrb[76].mxu0  ;;  %v17227_v62 = vld [vmem:[#allocation19 + $0x48] sm:$0xff]  }
0x1d6c   : > { %v7145_v1 = vadd.f32 %v13989_v61, %v7144_v3  ;;  %v15327_v4 = vpop.f32.mrb[77].mxu0  ;;  %v17226_v61 = vld [vmem:[#allocation19] sm:$0xff]  }
0x1d6d   : > { %v7147_v6 = vpop.f32.mrb[78].mxu0  ;;  %v13147_v0 = vld [vmem:[%s19758_s0 + $0x8] sm:$0xf]  ;;  %v17230_v4 = vld [vmem:[#allocation19 + $0x50] sm:$0xff]  }
0x1d6e   : > { %v15328_v7 = vpop.f32.mrb[79].mxu0  ;;  %15362 = vmatmul.mubr.f32.vlgmr.msra.gmra.mrb[72].mxu1 %v7145_v1  ;;  %v17228_v3 = vld [vmem:[#allocation19 + $0x80] sm:$0xff]   ;;  %v17231_v6 = vld [vmem:[#allocation19 + $0x88] sm:$0xff]  }
0x1d6f   : > { %15401 = vmatprep.mubr.msk.f32.mxu1 %vm18132_vm1, %v18130_v20  ;;  %v17232_v7 = vld [vmem:[#allocation19 + $0x10] sm:$0xff]  }
0x1e41   : > { %v7216_v10 = vpop.f32.mrb[72].mxu1 }
0x1e42   : > { %v7220_v9 = vsel %vm3898_vm9, %v7216_v10, 0.0  ;;  %v15363_v12 = vpop.f32.mrb[73].mxu1  ;;  %v17233_v10 = vld [vmem:[#allocation19 + $0x58] sm:$0xff]  }
0x1e43   : > { %v7221_v13 = vrot.slane %v7220_v9, 4  ;;  %v17235_v12 = vld [vmem:[#allocation19 + $0x18] sm:$0xff]  }
0x1e45   : > { %v7222_v14 = vadd.f32 %v7221_v13, %v7220_v9  ;;  %v17234_v9 = vld [vmem:[#allocation19 + $0x90] sm:$0xff]   ;;  %v17236_v13 = vld [vmem:[#allocation19 + $0x60] sm:$0xff]  }
0x1e47   : > { %v7223_v15 = vrot.slane %v7222_v14, 2 }
0x1e49   : > { %v7224_v17 = vadd.f32 %v7223_v15, %v7222_v14  ;;  %v17237_v14 = vld [vmem:[#allocation19 + $0x98] sm:$0xff]   ;;  %v17238_v15 = vld [vmem:[#allocation19 + $0x20] sm:$0xff]  }
0x1e4b   : > { %v7225_v18 = vrot.slane %v7224_v17, 1 }
0x1e4d   : > { %v7226_v19 = vadd.f32 %v7225_v18, %v7224_v17  ;;  %v17239_v17 = vld [vmem:[#allocation19 + $0x68] sm:$0xff]   ;;  %v17240_v18 = vld [vmem:[#allocation19 + $0xa0] sm:$0xff]  }
0x1e4f   : > { %v7227_v21 = vmul.f32 0.0625, %v7226_v19  ;;  %v17241_v19 = vld [vmem:[#allocation19 + $0x28] sm:$0xff]  }
0x1e51   : > { %v7228_v22 = vsub.f32 %v7145_v1, %v7227_v21  ;;  %v17229_v1 = vld [vmem:[#allocation19 + $0x8] sm:$0xff]   ;;  %v17242_v21 = vld [vmem:[#allocation19 + $0x70] sm:$0xff]  }
0x1e53   : > { %v7229_v23 = vmul.f32 %v7228_v22, %v7228_v22 }
0x1e55   : > { %15397 = vmatmul.mubr.f32.vlgmr.msra.gmra.mrb[80].mxu0 %v7229_v23  ;;  %v17244_v23 = vld [vmem:[#allocation19 + $0x30] sm:$0xff]  }
0x1e56   : > { %15406 = vmatprep.mubr.msk.f32.mxu0 %vm18132_vm1, %v18130_v20 }
0x1f28   : > { %v7296_v24 = vpop.f32.mrb[80].mxu0 }
0x1f29   : > { %v7300_v25 = vsel %vm3898_vm9, %v7296_v24, 0.0  ;;  %v15398_v26 = vpop.f32.mrb[81].mxu0  ;;  %v17245_v24 = vld [vmem:[#allocation19 + $0x78] sm:$0xff]  }
0x1f2a   : > { %v7301_v28 = vrot.slane %v7300_v25, 4  ;;  %v17247_v26 = vld [vmem:[#allocation19 + $0x38] sm:$0xff]  }
0x1f2c   : > { %v7302_v29 = vadd.f32 %v7301_v28, %v7300_v25  ;;  %v17246_v25 = vld [vmem:[#allocation19 + $0xb0] sm:$0xff]   ;;  %v17248_v28 = vld [vmem:[#allocation19 + $0xb8] sm:$0xff]  }
0x1f2e   : > { %v7303_v30 = vrot.slane %v7302_v29, 2 }
0x1f30   : > { %v7304_v31 = vadd.f32 %v7303_v30, %v7302_v29 }
0x1f32   : > { %v7305_v32 = vrot.slane %v7304_v31, 1 }
0x1f34   : > { %v7306_v36 = vadd.f32 %v7305_v32, %v7304_v31 }
0x1f36   : > { %v7307_v38 = vmul.f32 0.0625, %v7306_v36 }
0x1f38   : > { %v7308_v41 = vadd.f32 1e-05, %v7307_v38 }
0x1f3a   : > { %17447 = vrsqrt.f32 %v7308_v41 }
0x1f44   : > { %v17448_v42 = vpop.eup %17447 }
0x1f45   : > { %v7310_v45 = vmul.f32 %v17448_v42, %v7228_v22  ;;  %v17243_v22 = vld [vmem:[#allocation19 + $0xa8] sm:$0xff]  }
0x1f47   : > { %v7311_v47 = vmax.f32 %v7310_v45, 0.0 }
0x1f49   : > { %15400 = vmatpush3.msk.msra.mxu1 %vm3898_vm9, %v7311_v47  ;;  %15405 = vmatpush3.msk.msra.mxu0 %vm3898_vm9, %v7311_v47 }
0x1f4a   : > { %15402 = vmatmul.mubr.msk.f32.vlgmr.msra.gmra.mrb[74].mxu1 %vm3992_vm10, %v7312_v50  ;;  %15407 = vmatmul.mubr.msk.f32.vlgmr.msra.gmra.mrb[82].mxu0 %vm3992_vm10, %v13144_v51 }
0x1f4b   : > { %15409 = vmatprep.subr.mxu1 %v18130_v20  ;;  %15411 = vmatprep.mubr.msk.f32.mxu1 %vm18132_vm1, %v18130_v20 }
0x1f4c   : > { %15410 = vmatpush3.msk.msra.mxu1 %vm3898_vm9, %v7311_v47  ;;  %14042 = vmatprep.subr.bf16.mxu0 %v17225_v57 }
0x1f4d   : > { %14043 = vmatpush3.bf16.msra.mxu0 %v17226_v61  ;;  %15414 = vmatprep.subr.bf16.mxu1 %v18130_v20 }
0x1f4e   : > { %15412 = vmatmul.mubr.msk.f32.vlgmr.msra.gmra.mrb[76].mxu1 %vm3992_vm10, %v13147_v0  ;;  %14044 = vmatprep.subr.bf16.mxu0 %v17227_v62 }
0x1f4f   : > { %15415 = vmatpush3.bf16.msra.mxu1 %v17228_v3  ;;  %15430 = vmatprep.mubr.msk.bf16.mxu1 %vm18132_vm1, %v18130_v20 }
0x1f50   : > { %15416 = vmatprep.subr.bf16.mxu1 %v18130_v20 }
0x1f51   : > { %14045 = vmatpush3.bf16.msra.mxu0 %v17229_v1 }
0x1f52   : > { %14046 = vmatprep.subr.bf16.mxu0 %v17230_v4 }
0x1f53   : > { %15417 = vmatpush3.bf16.msra.mxu1 %v17231_v6 }
0x1f54   : > { %15418 = vmatprep.subr.bf16.mxu1 %v18130_v20 }
0x1f55   : > { %14047 = vmatpush3.bf16.msra.mxu0 %v17232_v7 }
0x1f56   : > { %14048 = vmatprep.subr.bf16.mxu0 %v17233_v10 }
0x1f57   : > { %15419 = vmatpush3.bf16.msra.mxu1 %v17234_v9 }
0x1f58   : > { %15420 = vmatprep.subr.bf16.mxu1 %v18130_v20 }
0x1f59   : > { %14049 = vmatpush3.bf16.msra.mxu0 %v17235_v12 }
0x1f5a   : > { %14050 = vmatprep.subr.bf16.mxu0 %v17236_v13 }
0x1f5b   : > { %15421 = vmatpush3.bf16.msra.mxu1 %v17237_v14 }
0x1f5c   : > { %15422 = vmatprep.subr.bf16.mxu1 %v18130_v20 }
0x1f5d   : > { %14051 = vmatpush3.bf16.msra.mxu0 %v17238_v15 }
0x1f5e   : > { %14052 = vmatprep.subr.bf16.mxu0 %v17239_v17 }
0x1f5f   : > { %15423 = vmatpush3.bf16.msra.mxu1 %v17240_v18 }
0x1f60   : > { %15424 = vmatprep.subr.bf16.mxu1 %v18130_v20 }
0x1f61   : > { %14053 = vmatpush3.bf16.msra.mxu0 %v17241_v19 }
0x1f62   : > { %14054 = vmatprep.subr.bf16.mxu0 %v17242_v21 }
0x1f63   : > { %15425 = vmatpush3.bf16.msra.mxu1 %v17243_v22 }
0x1f64   : > { %15426 = vmatprep.subr.bf16.mxu1 %v18130_v20 }
0x1f65   : > { %14055 = vmatpush3.bf16.msra.mxu0 %v17244_v23 }
0x1f66   : > { %14056 = vmatprep.subr.bf16.mxu0 %v17245_v24 }
0x1f67   : > { %15427 = vmatpush3.bf16.msra.mxu1 %v17246_v25 }
0x1f68   : > { %15428 = vmatprep.subr.bf16.mxu1 %v18130_v20 }
0x1f69   : > { %14057 = vmatpush3.bf16.msra.mxu0 %v17247_v26 }
0x1f6a   : > { %16453 = vmatprep.subr.bf16.mxu0 %v18138_v16 }
0x1f6b   : > { %15429 = vmatpush3.bf16.msra.mxu1 %v17248_v28 }
0x1f6c   : > { %16477 = vmatprep.subr.bf16.mxu1 %v18138_v16 }
0x201d   : > { %v7385_v29 = vpop.f32.mrb[74].mxu1  ;;  %v7460_v30 = vpop.f32.mrb[82].mxu0 }
0x201e   : > { %v7539_v31 = vpack.c.bf16 %v7385_v29, %v7385_v29  ;;  %v7540_v32 = vpack.c.bf16 %v7460_v30, %v7460_v30  ;;  %v15403_v36 = vpop.f32.mrb[75].mxu1  ;;  %v15408_v38 = vpop.f32.mrb[83].mxu0 }
0x2020   : > { %7766 = vmatprep.mubr.bf16.mxu0 %v7540_v32 }
0x2021   : > { %v7535_v41 = vpop.f32.mrb[76].mxu1  ;;  %7767 = vmatmul.mubr.bf16.vlgmr.msra.gmra.mrb[84].mxu0 %v7539_v31 }
0x2022   : > { %v7541_v42 = vpack.c.bf16 %v7535_v41, %v7535_v41  ;;  %v15413_v45 = vpop.f32.mrb[77].mxu1  ;;  %16455 = vmatpush3.bf16.msra.mxu0 %v18836_v34  ;;  %15466 = vmatprep.mubr.msk.f32.mxu0 %vm18132_vm1, %v18130_v20 }
0x2023   : > { %16456 = vmatprep.subr.bf16.mxu0 %v18138_v16  ;;  %v7976_v45 = vld [vmem:[%s19759_s13] sm:$0xf] }
0x2024   : > { %15431 = vmatmul.mubr.bf16.vlgmr.msra.gmra.mrb[80].mxu1 %v7541_v42 }
0x2025   : > { %16479 = vmatpush3.bf16.msra.mxu1 %v18836_v34  ;;  %15501 = vmatprep.mubr.msk.f32.mxu1 %vm18132_vm1, %v18130_v20 }
0x2026   : > { %16458 = vmatpush3.bf16.msra.mxu0 %v18839_v54  ;;  %16480 = vmatprep.subr.bf16.mxu1 %v18138_v16 }
0x2027   : > { %16459 = vmatprep.subr.bf16.mxu0 %v18138_v16 }
0x2029   : > { %16482 = vmatpush3.bf16.msra.mxu1 %v18839_v54 }
0x202a   : > { %16461 = vmatpush3.bf16.msra.mxu0 %v18845_v58  ;;  %16483 = vmatprep.subr.bf16.mxu1 %v18138_v16 }
0x202b   : > { %16462 = vmatprep.subr.bf16.mxu0 %v18138_v16 }
0x202d   : > { %16485 = vmatpush3.bf16.msra.mxu1 %v18845_v58 }
0x202e   : > { %16464 = vmatpush3.bf16.msra.mxu0 %v18853_v63  ;;  %16486 = vmatprep.subr.bf16.mxu1 %v18138_v16 }
0x202f   : > { %16465 = vmatprep.subr.bf16.mxu0 %v18138_v16 }
0x2031   : > { %16488 = vmatpush3.bf16.msra.mxu1 %v18853_v63 }
0x2032   : > { %16467 = vmatpush3.bf16.msra.mxu0 %v18859_v2  ;;  %16489 = vmatprep.subr.bf16.mxu1 %v18138_v16 }
0x2033   : > { %16468 = vmatprep.subr.bf16.mxu0 %v18138_v16 }
0x2035   : > { %16491 = vmatpush3.bf16.msra.mxu1 %v18859_v2 }
0x2036   : > { %16470 = vmatpush3.bf16.msra.mxu0 %v18865_v5  ;;  %16492 = vmatprep.subr.bf16.mxu1 %v18138_v16 }
0x2037   : > { %16471 = vmatprep.subr.bf16.mxu0 %v18138_v16 }
0x2039   : > { %16494 = vmatpush3.bf16.msra.mxu1 %v18865_v5 }
0x203a   : > { %16473 = vmatpush3.bf16.msra.mxu0 %v18876_v8  ;;  %16495 = vmatprep.subr.bf16.mxu1 %v18138_v16 }
0x203b   : > { %16474 = vmatprep.subr.bf16.mxu0 %v18138_v16 }
0x203d   : > { %16497 = vmatpush3.bf16.msra.mxu1 %v18876_v8 }
0x203e   : > { %16476 = vmatpush3.bf16.msra.mxu0 %v18882_v11  ;;  %16498 = vmatprep.subr.bf16.mxu1 %v18138_v16 }
0x203f   : > { %15504 = vmatprep.subr.mxu0 %v18130_v20 }
0x2041   : > { %16500 = vmatpush3.bf16.msra.mxu1 %v18882_v11 }
0x2042   : > { %15509 = vmatprep.subr.mxu1 %v18130_v20 }
0x20f4   : > { %v14058_v47 = vpop.f32.mrb[84].mxu0 }
0x20f5   : > { %v14059_v50 = vpop.f32.mrb[85].mxu0 }
0x20f6   : > { %v14060_v51 = vadd.f32 %v14059_v50, %v14058_v47  ;;  %v14061_v57 = vpop.f32.mrb[86].mxu0  ;;  %v13176_v47 = vld [vmem:[%s19759_s13 + $0x4] sm:$0xf]  ;;  %v17249_v50 = vld [vmem:[#allocation21 + $0x40] sm:$0xff]  }
0x20f7   : > { %v14062_v61 = vpop.f32.mrb[87].mxu0  ;;  %v7808_v62 = vpop.f32.mrb[80].mxu1  ;;  %v17251_v57 = vld [vmem:[#allocation21 + $0x48] sm:$0xff]  }
0x20f8   : > { %v7809_v0 = vadd.f32 %v14060_v51, %v7808_v62  ;;  %v15432_v3 = vpop.f32.mrb[81].mxu1  ;;  %v17250_v51 = vld [vmem:[#allocation21] sm:$0xff]   ;;  %v17253_v62 = vld [vmem:[#allocation21 + $0x8] sm:$0xff]  }
0x20f9   : > { %v7811_v1 = vpop.f32.mrb[82].mxu1  ;;  %v17252_v61 = vld [vmem:[#allocation21 + $0x80] sm:$0xff]   ;;  %v17255_v3 = vld [vmem:[#allocation21 + $0x88] sm:$0xff]  }
0x20fa   : > { %v15433_v4 = vpop.f32.mrb[83].mxu1  ;;  %15467 = vmatmul.mubr.f32.vlgmr.msra.gmra.mrb[88].mxu0 %v7809_v0  ;;  %v17256_v1 = vld [vmem:[#allocation21 + $0x10] sm:$0xff]  }
0x20fb   : > { %15506 = vmatprep.mubr.msk.f32.mxu0 %vm18132_vm1, %v18130_v20  ;;  %v17257_v4 = vld [vmem:[#allocation21 + $0x58] sm:$0xff]  }
0x21cd   : > { %v7880_v6 = vpop.f32.mrb[88].mxu0 }
0x21ce   : > { %v7884_v7 = vsel %vm3898_vm9, %v7880_v6, 0.0  ;;  %v15468_v10 = vpop.f32.mrb[89].mxu0  ;;  %v17258_v6 = vld [vmem:[#allocation21 + $0x90] sm:$0xff]  }
0x21cf   : > { %v7885_v9 = vrot.slane %v7884_v7, 4  ;;  %v17260_v10 = vld [vmem:[#allocation21 + $0x60] sm:$0xff]  }
0x21d1   : > { %v7886_v12 = vadd.f32 %v7885_v9, %v7884_v7  ;;  %v17259_v7 = vld [vmem:[#allocation21 + $0x18] sm:$0xff]  }
0x21d2   : > { %v17261_v9 = vld [vmem:[#allocation21 + $0x98] sm:$0xff]  }
0x21d3   : > { %v7887_v13 = vrot.slane %v7886_v12, 2 }
0x21d5   : > { %v7888_v14 = vadd.f32 %v7887_v13, %v7886_v12  ;;  %v17262_v12 = vld [vmem:[#allocation21 + $0x20] sm:$0xff]   ;;  %v17263_v13 = vld [vmem:[#allocation21 + $0x68] sm:$0xff]  }
0x21d7   : > { %v7889_v15 = vrot.slane %v7888_v14, 1 }
0x21d9   : > { %v7890_v17 = vadd.f32 %v7889_v15, %v7888_v14  ;;  %v17264_v14 = vld [vmem:[#allocation21 + $0xa0] sm:$0xff]   ;;  %v17265_v15 = vld [vmem:[#allocation21 + $0x28] sm:$0xff]  }
0x21db   : > { %v7891_v18 = vmul.f32 0.0625, %v7890_v17  ;;  %v17266_v17 = vld [vmem:[#allocation21 + $0x70] sm:$0xff]  }
0x21dd   : > { %v7892_v19 = vsub.f32 %v7809_v0, %v7891_v18  ;;  %v17254_v0 = vld [vmem:[#allocation21 + $0x50] sm:$0xff]   ;;  %v17267_v18 = vld [vmem:[#allocation21 + $0xa8] sm:$0xff]  }
0x21df   : > { %v7893_v21 = vmul.f32 %v7892_v19, %v7892_v19 }
0x21e1   : > { %15502 = vmatmul.mubr.f32.vlgmr.msra.gmra.mrb[78].mxu1 %v7893_v21  ;;  %v17269_v21 = vld [vmem:[#allocation21 + $0x78] sm:$0xff]  }
0x21e2   : > { %15511 = vmatprep.mubr.msk.f32.mxu1 %vm18132_vm1, %v18130_v20 }
0x22b4   : > { %v7960_v22 = vpop.f32.mrb[78].mxu1 }
0x22b5   : > { %v7964_v23 = vsel %vm3898_vm9, %v7960_v22, 0.0  ;;  %v15503_v24 = vpop.f32.mrb[79].mxu1  ;;  %v17270_v22 = vld [vmem:[#allocation21 + $0xb0] sm:$0xff]  }
0x22b6   : > { %v7965_v25 = vrot.slane %v7964_v23, 4  ;;  %v17272_v24 = vld [vmem:[#allocation21 + $0xb8] sm:$0xff]  }
0x22b8   : > { %v7966_v26 = vadd.f32 %v7965_v25, %v7964_v23  ;;  %v17271_v23 = vld [vmem:[#allocation21 + $0x38] sm:$0xff]  }
0x22ba   : > { %v7967_v28 = vrot.slane %v7966_v26, 2 }
0x22bc   : > { %v7968_v29 = vadd.f32 %v7967_v28, %v7966_v26 }
0x22be   : > { %v7969_v30 = vrot.slane %v7968_v29, 1 }
0x22c0   : > { %v7970_v31 = vadd.f32 %v7969_v30, %v7968_v29 }
0x22c2   : > { %v7971_v32 = vmul.f32 0.0625, %v7970_v31 }
0x22c4   : > { %v7972_v36 = vadd.f32 1e-05, %v7971_v32 }
0x22c6   : > { %17449 = vrsqrt.f32 %v7972_v36 }
0x22d0   : > { %v17450_v38 = vpop.eup %17449 }
0x22d1   : > { %v7974_v41 = vmul.f32 %v17450_v38, %v7892_v19  ;;  %v17268_v19 = vld [vmem:[#allocation21 + $0x30] sm:$0xff]  }
0x22d3   : > { %v19308_v42 = vadd.f32 %v7974_v41, %v19170_v55  ;;  %v13179_v55 = vld [vmem:[%s19759_s13 + $0x8] sm:$0xf] }
0x22d5   : > { %15505 = vmatpush3.msk.msra.mxu0 %vm3898_vm9, %v19308_v42  ;;  %15510 = vmatpush3.msk.msra.mxu1 %vm3898_vm9, %v19308_v42 }
0x22d6   : > { %15507 = vmatmul.mubr.msk.f32.vlgmr.msra.gmra.mrb[90].mxu0 %vm3992_vm10, %v7976_v45  ;;  %15512 = vmatmul.mubr.msk.f32.vlgmr.msra.gmra.mrb[84].mxu1 %vm3992_vm10, %v13176_v47 }
0x22d7   : > { %15514 = vmatprep.subr.mxu0 %v18130_v20  ;;  %15516 = vmatprep.mubr.msk.f32.mxu0 %vm18132_vm1, %v18130_v20 }
0x22d8   : > { %15515 = vmatpush3.msk.msra.mxu0 %vm3898_vm9, %v19308_v42  ;;  %14113 = vmatprep.subr.bf16.mxu1 %v17249_v50 }
0x22d9   : > { %14114 = vmatpush3.bf16.msra.mxu1 %v17250_v51  ;;  %15519 = vmatprep.subr.bf16.mxu0 %v18130_v20 }
0x22da   : > { %15517 = vmatmul.mubr.msk.f32.vlgmr.msra.gmra.mrb[92].mxu0 %vm3992_vm10, %v13179_v55  ;;  %14115 = vmatprep.subr.bf16.mxu1 %v17251_v57 }
0x22db   : > { %15520 = vmatpush3.bf16.msra.mxu0 %v17252_v61  ;;  %15535 = vmatprep.mubr.msk.bf16.mxu0 %vm18132_vm1, %v18130_v20 }
0x22dc   : > { %15521 = vmatprep.subr.bf16.mxu0 %v18130_v20 }
0x22dd   : > { %14116 = vmatpush3.bf16.msra.mxu1 %v17253_v62 }
0x22de   : > { %14117 = vmatprep.subr.bf16.mxu1 %v17254_v0 }
0x22df   : > { %15522 = vmatpush3.bf16.msra.mxu0 %v17255_v3 }
0x22e0   : > { %15523 = vmatprep.subr.bf16.mxu0 %v18130_v20 }
0x22e1   : > { %14118 = vmatpush3.bf16.msra.mxu1 %v17256_v1 }
0x22e2   : > { %14119 = vmatprep.subr.bf16.mxu1 %v17257_v4 }
0x22e3   : > { %15524 = vmatpush3.bf16.msra.mxu0 %v17258_v6 }
0x22e4   : > { %15525 = vmatprep.subr.bf16.mxu0 %v18130_v20 }
0x22e5   : > { %14120 = vmatpush3.bf16.msra.mxu1 %v17259_v7 }
0x22e6   : > { %14121 = vmatprep.subr.bf16.mxu1 %v17260_v10 }
0x22e7   : > { %15526 = vmatpush3.bf16.msra.mxu0 %v17261_v9 }
0x22e8   : > { %15527 = vmatprep.subr.bf16.mxu0 %v18130_v20 }
0x22e9   : > { %14122 = vmatpush3.bf16.msra.mxu1 %v17262_v12 }
0x22ea   : > { %14123 = vmatprep.subr.bf16.mxu1 %v17263_v13 }
0x22eb   : > { %15528 = vmatpush3.bf16.msra.mxu0 %v17264_v14 }
0x22ec   : > { %15529 = vmatprep.subr.bf16.mxu0 %v18130_v20 }
0x22ed   : > { %14124 = vmatpush3.bf16.msra.mxu1 %v17265_v15 }
0x22ee   : > { %14125 = vmatprep.subr.bf16.mxu1 %v17266_v17 }
0x22ef   : > { %15530 = vmatpush3.bf16.msra.mxu0 %v17267_v18 }
0x22f0   : > { %15531 = vmatprep.subr.bf16.mxu0 %v18130_v20 }
0x22f1   : > { %14126 = vmatpush3.bf16.msra.mxu1 %v17268_v19 }
0x22f2   : > { %14127 = vmatprep.subr.bf16.mxu1 %v17269_v21 }
0x22f3   : > { %15532 = vmatpush3.bf16.msra.mxu0 %v17270_v22 }
0x22f4   : > { %15533 = vmatprep.subr.bf16.mxu0 %v18130_v20 }
0x22f5   : > { %14128 = vmatpush3.bf16.msra.mxu1 %v17271_v23 }
0x22f6   : > { %16501 = vmatprep.subr.bf16.mxu1 %v18138_v16 }
0x22f7   : > { %15534 = vmatpush3.bf16.msra.mxu0 %v17272_v24 }
0x22f8   : > { %16525 = vmatprep.subr.bf16.mxu0 %v18138_v16 }
0x23a9   : > { %v8049_v25 = vpop.f32.mrb[90].mxu0  ;;  %v8124_v26 = vpop.f32.mrb[84].mxu1 }
0x23aa   : > { %v8203_v28 = vpack.c.bf16 %v8049_v25, %v8049_v25  ;;  %v8204_v29 = vpack.c.bf16 %v8124_v26, %v8124_v26  ;;  %v15508_v30 = vpop.f32.mrb[91].mxu0  ;;  %v15513_v31 = vpop.f32.mrb[85].mxu1 }
0x23ac   : > { %8430 = vmatprep.mubr.bf16.mxu1 %v8204_v29 }
0x23ad   : > { %v8199_v32 = vpop.f32.mrb[92].mxu0  ;;  %8431 = vmatmul.mubr.bf16.vlgmr.msra.gmra.mrb[88].mxu1 %v8203_v28 }
0x23ae   : > { %v8205_v36 = vpack.c.bf16 %v8199_v32, %v8199_v32  ;;  %v15518_v38 = vpop.f32.mrb[93].mxu0  ;;  %16503 = vmatpush3.bf16.msra.mxu1 %v18836_v34  ;;  %15571 = vmatprep.mubr.msk.f32.mxu1 %vm18132_vm1, %v18130_v20 }
0x23af   : > { %16504 = vmatprep.subr.bf16.mxu1 %v18138_v16  ;;  %v8640_v38 = vld [vmem:[%s19760_s2] sm:$0xf] }
0x23b0   : > { %15536 = vmatmul.mubr.bf16.vlgmr.msra.gmra.mrb[96].mxu0 %v8205_v36 }
0x23b1   : > { %16527 = vmatpush3.bf16.msra.mxu0 %v18836_v34  ;;  %15606 = vmatprep.mubr.msk.f32.mxu0 %vm18132_vm1, %v18130_v20 }
0x23b2   : > { %16506 = vmatpush3.bf16.msra.mxu1 %v18839_v54  ;;  %16528 = vmatprep.subr.bf16.mxu0 %v18138_v16 }
0x23b3   : > { %16507 = vmatprep.subr.bf16.mxu1 %v18138_v16 }
0x23b5   : > { %16530 = vmatpush3.bf16.msra.mxu0 %v18839_v54 }
0x23b6   : > { %16509 = vmatpush3.bf16.msra.mxu1 %v18845_v58  ;;  %16531 = vmatprep.subr.bf16.mxu0 %v18138_v16 }
0x23b7   : > { %16510 = vmatprep.subr.bf16.mxu1 %v18138_v16 }
0x23b9   : > { %16533 = vmatpush3.bf16.msra.mxu0 %v18845_v58 }
0x23ba   : > { %16512 = vmatpush3.bf16.msra.mxu1 %v18853_v63  ;;  %16534 = vmatprep.subr.bf16.mxu0 %v18138_v16 }
0x23bb   : > { %16513 = vmatprep.subr.bf16.mxu1 %v18138_v16 }
0x23bd   : > { %16536 = vmatpush3.bf16.msra.mxu0 %v18853_v63 }
0x23be   : > { %16515 = vmatpush3.bf16.msra.mxu1 %v18859_v2  ;;  %16537 = vmatprep.subr.bf16.mxu0 %v18138_v16 }
0x23bf   : > { %16516 = vmatprep.subr.bf16.mxu1 %v18138_v16 }
0x23c1   : > { %16539 = vmatpush3.bf16.msra.mxu0 %v18859_v2 }
0x23c2   : > { %16518 = vmatpush3.bf16.msra.mxu1 %v18865_v5  ;;  %16540 = vmatprep.subr.bf16.mxu0 %v18138_v16 }
0x23c3   : > { %16519 = vmatprep.subr.bf16.mxu1 %v18138_v16 }
0x23c5   : > { %16542 = vmatpush3.bf16.msra.mxu0 %v18865_v5 }
0x23c6   : > { %16521 = vmatpush3.bf16.msra.mxu1 %v18876_v8  ;;  %16543 = vmatprep.subr.bf16.mxu0 %v18138_v16 }
0x23c7   : > { %16522 = vmatprep.subr.bf16.mxu1 %v18138_v16 }
0x23c9   : > { %16545 = vmatpush3.bf16.msra.mxu0 %v18876_v8 }
0x23ca   : > { %16524 = vmatpush3.bf16.msra.mxu1 %v18882_v11  ;;  %16546 = vmatprep.subr.bf16.mxu0 %v18138_v16 }
0x23cb   : > { %15609 = vmatprep.subr.mxu1 %v18130_v20 }
0x23cd   : > { %16548 = vmatpush3.bf16.msra.mxu0 %v18882_v11 }
0x23ce   : > { %15614 = vmatprep.subr.mxu0 %v18130_v20 }
0x2480   : > { %v14129_v41 = vpop.f32.mrb[88].mxu1 }
0x2481   : > { %v14130_v45 = vpop.f32.mrb[89].mxu1 }
0x2482   : > { %v14131_v47 = vadd.f32 %v14130_v45, %v14129_v41  ;;  %v14132_v50 = vpop.f32.mrb[90].mxu1  ;;  %v13208_v41 = vld [vmem:[%s19760_s2 + $0x4] sm:$0xf]  ;;  %v17273_v45 = vld [vmem:[#allocation22 + $0x40] sm:$0xff]  }
0x2483   : > { %v14133_v51 = vpop.f32.mrb[91].mxu1  ;;  %v8472_v57 = vpop.f32.mrb[96].mxu0  ;;  %v17275_v50 = vld [vmem:[#allocation22 + $0x48] sm:$0xff]  }
0x2484   : > { %v8473_v55 = vadd.f32 %v14131_v47, %v8472_v57  ;;  %v15537_v61 = vpop.f32.mrb[97].mxu0  ;;  %v17274_v47 = vld [vmem:[#allocation22] sm:$0xff]  }
0x2485   : > { %v8475_v62 = vpop.f32.mrb[98].mxu0  ;;  %v13211_v51 = vld [vmem:[%s19760_s2 + $0x8] sm:$0xf]  ;;  %v17278_v61 = vld [vmem:[#allocation22 + $0x50] sm:$0xff]  }
0x2486   : > { %v15538_v0 = vpop.f32.mrb[99].mxu0  ;;  %15572 = vmatmul.mubr.f32.vlgmr.msra.gmra.mrb[86].mxu1 %v8473_v55  ;;  %v17276_v57 = vld [vmem:[#allocation22 + $0x80] sm:$0xff]   ;;  %v17279_v62 = vld [vmem:[#allocation22 + $0x88] sm:$0xff]  }
0x2487   : > { %15611 = vmatprep.mubr.msk.f32.mxu1 %vm18132_vm1, %v18130_v20  ;;  %v17280_v0 = vld [vmem:[#allocation22 + $0x10] sm:$0xff]  }
0x2559   : > { %v8544_v3 = vpop.f32.mrb[86].mxu1 }
0x255a   : > { %v8548_v1 = vsel %vm3898_vm9, %v8544_v3, 0.0  ;;  %v15573_v4 = vpop.f32.mrb[87].mxu1  ;;  %v17281_v3 = vld [vmem:[#allocation22 + $0x58] sm:$0xff]  }
0x255b   : > { %v8549_v6 = vrot.slane %v8548_v1, 4  ;;  %v17283_v4 = vld [vmem:[#allocation22 + $0x18] sm:$0xff]  }
0x255d   : > { %v8550_v7 = vadd.f32 %v8549_v6, %v8548_v1  ;;  %v17282_v1 = vld [vmem:[#allocation22 + $0x90] sm:$0xff]   ;;  %v17284_v6 = vld [vmem:[#allocation22 + $0x60] sm:$0xff]  }
0x255f   : > { %v8551_v10 = vrot.slane %v8550_v7, 2 }
0x2561   : > { %v8552_v9 = vadd.f32 %v8551_v10, %v8550_v7  ;;  %v17285_v7 = vld [vmem:[#allocation22 + $0x98] sm:$0xff]   ;;  %v17286_v10 = vld [vmem:[#allocation22 + $0x20] sm:$0xff]  }
0x2563   : > { %v8553_v12 = vrot.slane %v8552_v9, 1 }
0x2565   : > { %v8554_v13 = vadd.f32 %v8553_v12, %v8552_v9  ;;  %v17287_v9 = vld [vmem:[#allocation22 + $0x68] sm:$0xff]   ;;  %v17288_v12 = vld [vmem:[#allocation22 + $0xa0] sm:$0xff]  }
0x2567   : > { %v8555_v14 = vmul.f32 0.0625, %v8554_v13  ;;  %v17289_v13 = vld [vmem:[#allocation22 + $0x28] sm:$0xff]  }
0x2569   : > { %v8556_v15 = vsub.f32 %v8473_v55, %v8555_v14  ;;  %v17277_v55 = vld [vmem:[#allocation22 + $0x8] sm:$0xff]   ;;  %v17290_v14 = vld [vmem:[#allocation22 + $0x70] sm:$0xff]  }
0x256b   : > { %v8557_v17 = vmul.f32 %v8556_v15, %v8556_v15 }
0x256d   : > { %15607 = vmatmul.mubr.f32.vlgmr.msra.gmra.mrb[94].mxu0 %v8557_v17  ;;  %v17292_v17 = vld [vmem:[#allocation22 + $0x30] sm:$0xff]  }
0x256e   : > { %15616 = vmatprep.mubr.msk.f32.mxu0 %vm18132_vm1, %v18130_v20 }
0x2640   : > { %v8624_v18 = vpop.f32.mrb[94].mxu0 }
0x2641   : > { %v8628_v19 = vsel %vm3898_vm9, %v8624_v18, 0.0  ;;  %v15608_v21 = vpop.f32.mrb[95].mxu0  ;;  %v17293_v18 = vld [vmem:[#allocation22 + $0x78] sm:$0xff]  }
0x2642   : > { %v8629_v22 = vrot.slane %v8628_v19, 4  ;;  %v17295_v21 = vld [vmem:[#allocation22 + $0x38] sm:$0xff]  }
0x2644   : > { %v8630_v23 = vadd.f32 %v8629_v22, %v8628_v19  ;;  %v17294_v19 = vld [vmem:[#allocation22 + $0xb0] sm:$0xff]   ;;  %v17296_v22 = vld [vmem:[#allocation22 + $0xb8] sm:$0xff]  }
0x2646   : > { %v8631_v24 = vrot.slane %v8630_v23, 2 }
0x2648   : > { %v8632_v25 = vadd.f32 %v8631_v24, %v8630_v23 }
0x264a   : > { %v8633_v26 = vrot.slane %v8632_v25, 1 }
0x264c   : > { %v8634_v28 = vadd.f32 %v8633_v26, %v8632_v25 }
0x264e   : > { %v8635_v29 = vmul.f32 0.0625, %v8634_v28 }
0x2650   : > { %v8636_v30 = vadd.f32 1e-05, %v8635_v29 }
0x2652   : > { %17451 = vrsqrt.f32 %v8636_v30 }
0x265c   : > { %v17452_v31 = vpop.eup %17451 }
0x265d   : > { %v8638_v32 = vmul.f32 %v17452_v31, %v8556_v15  ;;  %v17291_v15 = vld [vmem:[#allocation22 + $0xa8] sm:$0xff]  }
0x265f   : > { %v8639_v36 = vmax.f32 %v8638_v32, 0.0 }
0x2661   : > { %15610 = vmatpush3.msk.msra.mxu1 %vm3898_vm9, %v8639_v36  ;;  %15615 = vmatpush3.msk.msra.mxu0 %vm3898_vm9, %v8639_v36 }
0x2662   : > { %15612 = vmatmul.mubr.msk.f32.vlgmr.msra.gmra.mrb[92].mxu1 %vm3992_vm10, %v8640_v38  ;;  %15617 = vmatmul.mubr.msk.f32.vlgmr.msra.gmra.mrb[100].mxu0 %vm3992_vm10, %v13208_v41 }
0x2663   : > { %15619 = vmatprep.subr.mxu1 %v18130_v20  ;;  %15621 = vmatprep.mubr.msk.f32.mxu1 %vm18132_vm1, %v18130_v20 }
0x2664   : > { %15620 = vmatpush3.msk.msra.mxu1 %vm3898_vm9, %v8639_v36  ;;  %14184 = vmatprep.subr.bf16.mxu0 %v17273_v45 }
0x2665   : > { %14185 = vmatpush3.bf16.msra.mxu0 %v17274_v47  ;;  %15624 = vmatprep.subr.bf16.mxu1 %v18130_v20 }
0x2666   : > { %15622 = vmatmul.mubr.msk.f32.vlgmr.msra.gmra.mrb[94].mxu1 %vm3992_vm10, %v13211_v51  ;;  %14186 = vmatprep.subr.bf16.mxu0 %v17275_v50 }
0x2667   : > { %15625 = vmatpush3.bf16.msra.mxu1 %v17276_v57  ;;  %15640 = vmatprep.mubr.msk.bf16.mxu1 %vm18132_vm1, %v18130_v20 }
0x2668   : > { %15626 = vmatprep.subr.bf16.mxu1 %v18130_v20 }
0x2669   : > { %14187 = vmatpush3.bf16.msra.mxu0 %v17277_v55 }
0x266a   : > { %14188 = vmatprep.subr.bf16.mxu0 %v17278_v61 }
0x266b   : > { %15627 = vmatpush3.bf16.msra.mxu1 %v17279_v62 }
0x266c   : > { %15628 = vmatprep.subr.bf16.mxu1 %v18130_v20 }
0x266d   : > { %14189 = vmatpush3.bf16.msra.mxu0 %v17280_v0 }
0x266e   : > { %14190 = vmatprep.subr.bf16.mxu0 %v17281_v3 }
0x266f   : > { %15629 = vmatpush3.bf16.msra.mxu1 %v17282_v1 }
0x2670   : > { %15630 = vmatprep.subr.bf16.mxu1 %v18130_v20 }
0x2671   : > { %14191 = vmatpush3.bf16.msra.mxu0 %v17283_v4 }
0x2672   : > { %14192 = vmatprep.subr.bf16.mxu0 %v17284_v6 }
0x2673   : > { %15631 = vmatpush3.bf16.msra.mxu1 %v17285_v7 }
0x2674   : > { %15632 = vmatprep.subr.bf16.mxu1 %v18130_v20 }
0x2675   : > { %14193 = vmatpush3.bf16.msra.mxu0 %v17286_v10 }
0x2676   : > { %14194 = vmatprep.subr.bf16.mxu0 %v17287_v9 }
0x2677   : > { %15633 = vmatpush3.bf16.msra.mxu1 %v17288_v12 }
0x2678   : > { %15634 = vmatprep.subr.bf16.mxu1 %v18130_v20 }
0x2679   : > { %14195 = vmatpush3.bf16.msra.mxu0 %v17289_v13 }
0x267a   : > { %14196 = vmatprep.subr.bf16.mxu0 %v17290_v14 }
0x267b   : > { %15635 = vmatpush3.bf16.msra.mxu1 %v17291_v15 }
0x267c   : > { %15636 = vmatprep.subr.bf16.mxu1 %v18130_v20 }
0x267d   : > { %14197 = vmatpush3.bf16.msra.mxu0 %v17292_v17 }
0x267e   : > { %14198 = vmatprep.subr.bf16.mxu0 %v17293_v18 }
0x267f   : > { %15637 = vmatpush3.bf16.msra.mxu1 %v17294_v19 }
0x2680   : > { %15638 = vmatprep.subr.bf16.mxu1 %v18130_v20 }
0x2681   : > { %14199 = vmatpush3.bf16.msra.mxu0 %v17295_v21 }
0x2682   : > { %16549 = vmatprep.subr.bf16.mxu0 %v18138_v16 }
0x2683   : > { %15639 = vmatpush3.bf16.msra.mxu1 %v17296_v22 }
0x2684   : > { %16573 = vmatprep.subr.bf16.mxu1 %v18138_v16 }
0x2735   : > { %v8713_v23 = vpop.f32.mrb[92].mxu1  ;;  %v8788_v24 = vpop.f32.mrb[100].mxu0 }
0x2736   : > { %v8867_v25 = vpack.c.bf16 %v8713_v23, %v8713_v23  ;;  %v8868_v26 = vpack.c.bf16 %v8788_v24, %v8788_v24  ;;  %v15613_v28 = vpop.f32.mrb[93].mxu1  ;;  %v15618_v29 = vpop.f32.mrb[101].mxu0  ;;  %v9304_v23 = vld [vmem:[#allocation24] sm:$0xff]  ;;  %v9382_v24 = vld [vmem:[#allocation24 + $0x8] sm:$0xff] }
0x2737   : > { %v17298_v28 = vld [vmem:[#allocation25] sm:$0xff]  }
0x2738   : > { %9094 = vmatprep.mubr.bf16.mxu0 %v8868_v26  ;;  %v17297_v26 = vld [vmem:[#allocation25 + $0x40] sm:$0xff]  }
0x2739   : > { %v8863_v30 = vpop.f32.mrb[94].mxu1  ;;  %9095 = vmatmul.mubr.bf16.vlgmr.msra.gmra.mrb[104].mxu0 %v8867_v25  ;;  %v9457_v25 = vld [vmem:[#allocation24 + $0x10] sm:$0xff]  ;;  %v17301_v29 = vld [vmem:[#allocation25 + $0xc0] sm:$0xff]  }
0x273a   : > { %v8869_v31 = vpack.c.bf16 %v8863_v30, %v8863_v30  ;;  %v15623_v32 = vpop.f32.mrb[95].mxu1  ;;  %16551 = vmatpush3.bf16.msra.mxu0 %v18836_v34  ;;  %15676 = vmatprep.mubr.msk.f32.mxu0 %vm18132_vm1, %v18130_v20  ;;  %v17299_v30 = vld [vmem:[#allocation25 + $0x48] sm:$0xff]  }
0x273b   : > { %16552 = vmatprep.subr.bf16.mxu0 %v18138_v16  ;;  %v17302_v32 = vld [vmem:[#allocation25 + $0x80] sm:$0xff]  }
0x273c   : > { %15641 = vmatmul.mubr.bf16.vlgmr.msra.gmra.mrb[96].mxu1 %v8869_v31  ;;  %v9607_v31 = vld [vmem:[#allocation24 + $0x20] sm:$0xff] }
0x273d   : > { %16575 = vmatpush3.bf16.msra.mxu1 %v18836_v34  ;;  %15711 = vmatprep.mubr.msk.f32.mxu1 %vm18132_vm1, %v18130_v20 }
0x273e   : > { %16554 = vmatpush3.bf16.msra.mxu0 %v18839_v54  ;;  %16576 = vmatprep.subr.bf16.mxu1 %v18138_v16 }
0x273f   : > { %16555 = vmatprep.subr.bf16.mxu0 %v18138_v16 }
0x2741   : > { %16578 = vmatpush3.bf16.msra.mxu1 %v18839_v54 }
0x2742   : > { %16557 = vmatpush3.bf16.msra.mxu0 %v18845_v58  ;;  %16579 = vmatprep.subr.bf16.mxu1 %v18138_v16 }
0x2743   : > { %16558 = vmatprep.subr.bf16.mxu0 %v18138_v16 }
0x2745   : > { %16581 = vmatpush3.bf16.msra.mxu1 %v18845_v58 }
0x2746   : > { %16560 = vmatpush3.bf16.msra.mxu0 %v18853_v63  ;;  %16582 = vmatprep.subr.bf16.mxu1 %v18138_v16 }
0x2747   : > { %16561 = vmatprep.subr.bf16.mxu0 %v18138_v16 }
0x2749   : > { %16584 = vmatpush3.bf16.msra.mxu1 %v18853_v63 }
0x274a   : > { %16563 = vmatpush3.bf16.msra.mxu0 %v18859_v2  ;;  %16585 = vmatprep.subr.bf16.mxu1 %v18138_v16 }
0x274b   : > { %16564 = vmatprep.subr.bf16.mxu0 %v18138_v16 }
0x274d   : > { %16587 = vmatpush3.bf16.msra.mxu1 %v18859_v2 }
0x274e   : > { %16566 = vmatpush3.bf16.msra.mxu0 %v18865_v5  ;;  %16588 = vmatprep.subr.bf16.mxu1 %v18138_v16 }
0x274f   : > { %16567 = vmatprep.subr.bf16.mxu0 %v18138_v16 }
0x2751   : > { %16590 = vmatpush3.bf16.msra.mxu1 %v18865_v5 }
0x2752   : > { %16569 = vmatpush3.bf16.msra.mxu0 %v18876_v8  ;;  %16591 = vmatprep.subr.bf16.mxu1 %v18138_v16 }
0x2753   : > { %16570 = vmatprep.subr.bf16.mxu0 %v18138_v16 }
0x2755   : > { %16593 = vmatpush3.bf16.msra.mxu1 %v18876_v8 }
0x2756   : > { %16572 = vmatpush3.bf16.msra.mxu0 %v18882_v11  ;;  %16594 = vmatprep.subr.bf16.mxu1 %v18138_v16 }
0x2757   : > { %15714 = vmatprep.subr.mxu0 %v18130_v20 }
0x2759   : > { %16596 = vmatpush3.bf16.msra.mxu1 %v18882_v11 }
0x275a   : > { %15719 = vmatprep.subr.mxu1 %v18130_v20 }
0x280c   : > { %v14200_v34 = vpop.f32.mrb[104].mxu0 }
0x280d   : > { %v14201_v54 = vpop.f32.mrb[105].mxu0 }
0x280e   : > { %v14202_v58 = vadd.f32 %v14201_v54, %v14200_v34  ;;  %v14203_v63 = vpop.f32.mrb[106].mxu0  ;;  %v17305_v34 = vld [vmem:[#allocation25 + $0xc8] sm:$0xff]  }
0x280f   : > { %v14204_v2 = vpop.f32.mrb[107].mxu0  ;;  %v9136_v5 = vpop.f32.mrb[96].mxu1  ;;  %v17300_v54 = vld [vmem:[#allocation25 + $0x8] sm:$0xff]  }
0x2810   : > { %v9137_v36 = vadd.f32 %v14202_v58, %v9136_v5  ;;  %v15642_v38 = vpop.f32.mrb[97].mxu1  ;;  %v17303_v58 = vld [vmem:[#allocation25 + $0x50] sm:$0xff]   ;;  %v17306_v63 = vld [vmem:[#allocation25 + $0x88] sm:$0xff]  }
0x2811   : > { %v9139_v41 = vpop.f32.mrb[98].mxu1  ;;  %v17309_v2 = vld [vmem:[#allocation25 + $0xd0] sm:$0xff]  }
0x2812   : > { %v15643_v8 = vpop.f32.mrb[99].mxu1  ;;  %15677 = vmatmul.mubr.f32.vlgmr.msra.gmra.mrb[102].mxu0 %v9137_v36  ;;  %v17304_v5 = vld [vmem:[#allocation25 + $0x10] sm:$0xff]   ;;  %v17313_v41 = vld [vmem:[#allocation25 + $0xd8] sm:$0xff]  }
0x2813   : > { %15716 = vmatprep.mubr.msk.f32.mxu0 %vm18132_vm1, %v18130_v20  ;;  %v17310_v38 = vld [vmem:[#allocation25 + $0x90] sm:$0xff]   ;;  %v17308_v8 = vld [vmem:[#allocation25 + $0x18] sm:$0xff]  }
0x28e5   : > { %v9208_v45 = vpop.f32.mrb[102].mxu0 }
0x28e6   : > { %v9212_v47 = vsel %vm3898_vm9, %v9208_v45, 0.0  ;;  %v15678_v11 = vpop.f32.mrb[103].mxu0  ;;  %v17311_v45 = vld [vmem:[#allocation25 + $0x60] sm:$0xff]  }
0x28e7   : > { %v9213_v50 = vrot.slane %v9212_v47, 4  ;;  %v17317_v11 = vld [vmem:[#allocation25 + $0xe0] sm:$0xff]  }
0x28e9   : > { %v9214_v51 = vadd.f32 %v9213_v50, %v9212_v47  ;;  %v17314_v47 = vld [vmem:[#allocation25 + $0x98] sm:$0xff]   ;;  %v17312_v50 = vld [vmem:[#allocation25 + $0x20] sm:$0xff]  }
0x28eb   : > { %v9215_v57 = vrot.slane %v9214_v51, 2 }
0x28ed   : > { %v9216_v55 = vadd.f32 %v9215_v57, %v9214_v51  ;;  %v17315_v51 = vld [vmem:[#allocation25 + $0x68] sm:$0xff]   ;;  %v17318_v57 = vld [vmem:[#allocation25 + $0xa0] sm:$0xff]  }
0x28ef   : > { %v9217_v61 = vrot.slane %v9216_v55, 1 }
0x28f1   : > { %v9218_v62 = vadd.f32 %v9217_v61, %v9216_v55  ;;  %v17321_v55 = vld [vmem:[#allocation25 + $0xe8] sm:$0xff]  }
0x28f2   : > { %v17316_v61 = vld [vmem:[#allocation25 + $0x28] sm:$0xff]  }
0x28f3   : > { %v9219_v0 = vmul.f32 0.0625, %v9218_v62  ;;  %v17319_v62 = vld [vmem:[#allocation25 + $0x70] sm:$0xff]  }
0x28f5   : > { %v9220_v3 = vsub.f32 %v9137_v36, %v9219_v0  ;;  %v17307_v36 = vld [vmem:[#allocation25 + $0x58] sm:$0xff]   ;;  %v17322_v0 = vld [vmem:[#allocation25 + $0xa8] sm:$0xff]  }
0x28f7   : > { %v9221_v1 = vmul.f32 %v9220_v3, %v9220_v3 }
0x28f9   : > { %15712 = vmatmul.mubr.f32.vlgmr.msra.gmra.mrb[100].mxu1 %v9221_v1  ;;  %v17323_v1 = vld [vmem:[#allocation25 + $0x78] sm:$0xff]  }
0x28fa   : > { %15721 = vmatprep.mubr.msk.f32.mxu1 %vm18132_vm1, %v18130_v20 }
0x29cc   : > { %v9288_v4 = vpop.f32.mrb[100].mxu1 }
0x29cd   : > { %v9292_v6 = vsel %vm3898_vm9, %v9288_v4, 0.0  ;;  %v15713_v7 = vpop.f32.mrb[101].mxu1  ;;  %v17324_v4 = vld [vmem:[#allocation25 + $0x38] sm:$0xff]  }
0x29ce   : > { %v9293_v10 = vrot.slane %v9292_v6, 4  ;;  %v17326_v7 = vld [vmem:[#allocation25 + $0xb0] sm:$0xff]  }
0x29d0   : > { %v9294_v9 = vadd.f32 %v9293_v10, %v9292_v6  ;;  %v17325_v6 = vld [vmem:[#allocation25 + $0xf0] sm:$0xff]   ;;  %v17327_v10 = vld [vmem:[#allocation25 + $0xf8] sm:$0xff]  }
0x29d2   : > { %v9295_v12 = vrot.slane %v9294_v9, 2 }
0x29d4   : > { %v9296_v13 = vadd.f32 %v9295_v12, %v9294_v9  ;;  %v17329_v9 = vld [vmem:[#allocation25 + $0xb8] sm:$0xff]  }
0x29d6   : > { %v9297_v14 = vrot.slane %v9296_v13, 1 }
0x29d8   : > { %v9298_v15 = vadd.f32 %v9297_v14, %v9296_v13 }
0x29da   : > { %v9299_v17 = vmul.f32 0.0625, %v9298_v15 }
0x29dc   : > { %v9300_v18 = vadd.f32 1e-05, %v9299_v17 }
0x29de   : > { %17453 = vrsqrt.f32 %v9300_v18 }
0x29e8   : > { %v17454_v19 = vpop.eup %17453 }
0x29e9   : > { %v9302_v21 = vmul.f32 %v17454_v19, %v9220_v3  ;;  %v17320_v3 = vld [vmem:[#allocation25 + $0x30] sm:$0xff]   ;;  %v17328_v19 = vld [vmem:[#allocation25 + $0x100] sm:$0xff]  }
0x29eb   : > { %v9303_v22 = vadd.f32 %v9302_v21, %v19308_v42  ;;  %v9532_v42 = vld [vmem:[#allocation24 + $0x18] sm:$0xff] }
0x29ed   : > { %15715 = vmatpush3.msk.msra.mxu0 %vm3898_vm9, %v9303_v22  ;;  %15720 = vmatpush3.msk.msra.mxu1 %vm3898_vm9, %v9303_v22 }
0x29ee   : > { %15717 = vmatmul.mubr.msk.f32.vlgmr.msra.gmra.mrb[108].mxu0 %vm3992_vm10, %v9304_v23  ;;  %15722 = vmatmul.mubr.msk.f32.vlgmr.msra.gmra.mrb[102].mxu1 %vm3992_vm10, %v9382_v24  ;;  %v17330_v24 = vld [vmem:[#allocation25 + $0x108] sm:$0xff]  }
0x29ef   : > { %15724 = vmatprep.subr.mxu0 %v18130_v20  ;;  %15729 = vmatprep.subr.mxu1 %v18130_v20 }
0x29f0   : > { %15725 = vmatpush3.msk.msra.mxu0 %vm3898_vm9, %v9303_v22  ;;  %15730 = vmatpush3.msk.msra.mxu1 %vm3898_vm9, %v9303_v22 }
0x29f1   : > { %15726 = vmatprep.mubr.msk.f32.mxu0 %vm18132_vm1, %v18130_v20  ;;  %15731 = vmatprep.mubr.msk.f32.mxu1 %vm18132_vm1, %v18130_v20 }
0x29f2   : > { %15734 = vmatprep.subr.mxu0 %v18130_v20  ;;  %15727 = vmatmul.mubr.msk.f32.vlgmr.msra.gmra.mrb[110].mxu0 %vm3992_vm10, %v9457_v25 }
0x29f3   : > { %15732 = vmatmul.mubr.msk.f32.vlgmr.msra.gmra.mrb[104].mxu1 %vm3992_vm10, %v9532_v42  ;;  %15735 = vmatpush3.msk.msra.mxu0 %vm3898_vm9, %v9303_v22 }
0x29f4   : > { %15736 = vmatprep.mubr.msk.f32.mxu0 %vm18132_vm1, %v18130_v20  ;;  %14259 = vmatprep.subr.bf16.mxu1 %v17297_v26 }
0x29f5   : > { %14260 = vmatpush3.bf16.msra.mxu1 %v17298_v28  ;;  %14281 = vmatprep.subr.bf16.mxu0 %v17301_v29  ;;  %v17331_v29 = vld [vmem:[#allocation25 + $0x110] sm:$0xff]  }
0x29f6   : > { %15737 = vmatmul.mubr.msk.f32.vlgmr.msra.gmra.mrb[112].mxu0 %vm3992_vm10, %v9607_v31  ;;  %14261 = vmatprep.subr.bf16.mxu1 %v17299_v30  ;;  %v17332_v31 = vld [vmem:[#allocation25 + $0x118] sm:$0xff]  }
0x29f7   : > { %14282 = vmatpush3.bf16.msra.mxu0 %v17302_v32  ;;  %v17333_v32 = vld [vmem:[#allocation25 + $0x120] sm:$0xff]  }
0x29f8   : > { %14283 = vmatprep.subr.bf16.mxu0 %v17305_v34  ;;  %v17334_v34 = vld [vmem:[#allocation25 + $0x128] sm:$0xff]  }
0x29f9   : > { %14262 = vmatpush3.bf16.msra.mxu1 %v17300_v54  ;;  %v17335_v54 = vld [vmem:[#allocation25 + $0x130] sm:$0xff]  }
0x29fa   : > { %14263 = vmatprep.subr.bf16.mxu1 %v17303_v58  ;;  %v17336_v58 = vld [vmem:[#allocation25 + $0x138] sm:$0xff]  }
0x29fb   : > { %14284 = vmatpush3.bf16.msra.mxu0 %v17306_v63 }
0x29fc   : > { %14285 = vmatprep.subr.bf16.mxu0 %v17309_v2 }
0x29fd   : > { %14264 = vmatpush3.bf16.msra.mxu1 %v17304_v5 }
0x29fe   : > { %14265 = vmatprep.subr.bf16.mxu1 %v17307_v36 }
0x29ff   : > { %14286 = vmatpush3.bf16.msra.mxu0 %v17310_v38 }
0x2a00   : > { %14287 = vmatprep.subr.bf16.mxu0 %v17313_v41 }
0x2a01   : > { %14266 = vmatpush3.bf16.msra.mxu1 %v17308_v8 }
0x2a02   : > { %14267 = vmatprep.subr.bf16.mxu1 %v17311_v45 }
0x2a03   : > { %14288 = vmatpush3.bf16.msra.mxu0 %v17314_v47 }
0x2a04   : > { %14289 = vmatprep.subr.bf16.mxu0 %v17317_v11 }
0x2a05   : > { %14268 = vmatpush3.bf16.msra.mxu1 %v17312_v50 }
0x2a06   : > { %14269 = vmatprep.subr.bf16.mxu1 %v17315_v51 }
0x2a07   : > { %14290 = vmatpush3.bf16.msra.mxu0 %v17318_v57 }
0x2a08   : > { %14291 = vmatprep.subr.bf16.mxu0 %v17321_v55 }
0x2a09   : > { %14270 = vmatpush3.bf16.msra.mxu1 %v17316_v61 }
0x2a0a   : > { %14271 = vmatprep.subr.bf16.mxu1 %v17319_v62 }
0x2a0b   : > { %14292 = vmatpush3.bf16.msra.mxu0 %v17322_v0 }
0x2a0c   : > { %14293 = vmatprep.subr.bf16.mxu0 %v17325_v6  ;;  %v17343_v6 = vld [vmem:[#allocation28 + $0xc0] sm:$0xff]  }
0x2a0d   : > { %14272 = vmatpush3.bf16.msra.mxu1 %v17320_v3 }
0x2a0e   : > { %14273 = vmatprep.subr.bf16.mxu1 %v17323_v1 }
0x2a0f   : > { %14294 = vmatpush3.bf16.msra.mxu0 %v17326_v7  ;;  %v17344_v7 = vld [vmem:[#allocation28 + $0x80] sm:$0xff]  }
0x2a10   : > { %14295 = vmatprep.subr.bf16.mxu0 %v17327_v10  ;;  %v17347_v10 = vld [vmem:[#allocation28 + $0xc8] sm:$0xff]  }
0x2a11   : > { %14274 = vmatpush3.bf16.msra.mxu1 %v17324_v4  ;;  %v10286_v4 = vld [vmem:[#allocation27] sm:$0xff] }
0x2a12   : > { %15739 = vmatprep.subr.bf16.mxu1 %v18130_v20 }
0x2a13   : > { %14296 = vmatpush3.bf16.msra.mxu0 %v17329_v9  ;;  %v17348_v9 = vld [vmem:[#allocation28 + $0x88] sm:$0xff]  }
0x2a14   : > { %16597 = vmatprep.subr.bf16.mxu0 %v18138_v16 }
0x2ac1   : > { %v9377_v12 = vpop.f32.mrb[108].mxu0  ;;  %v9452_v13 = vpop.f32.mrb[102].mxu1 }
0x2ac2   : > { %v9681_v14 = vpack.c.bf16 %v9377_v12, %v9377_v12  ;;  %v9682_v15 = vpack.c.bf16 %v9452_v13, %v9452_v13  ;;  %v15718_v17 = vpop.f32.mrb[109].mxu0  ;;  %v15723_v18 = vpop.f32.mrb[103].mxu1  ;;  %v17351_v12 = vld [vmem:[#allocation28 + $0xd0] sm:$0xff]  }
0x2ac3   : > { %v17352_v13 = vld [vmem:[#allocation28 + $0x90] sm:$0xff]  }
0x2ac4   : > { %10038 = vmatprep.mubr.bf16.mxu1 %v9682_v15  ;;  %v17356_v15 = vld [vmem:[#allocation28 + $0x98] sm:$0xff]  }
0x2ac5   : > { %10039 = vmatmul.mubr.bf16.vlgmr.msra.gmra.mrb[108].mxu1 %v9681_v14  ;;  %v9527_v21 = vpop.f32.mrb[110].mxu0  ;;  %v17355_v14 = vld [vmem:[#allocation28 + $0xd8] sm:$0xff]  }
0x2ac6   : > { %v9602_v22 = vpop.f32.mrb[104].mxu1  ;;  %15740 = vmatpush3.bf16.msra.mxu1 %v17328_v19  ;;  %v9683_v23 = vpack.c.bf16 %v9527_v21, %v9527_v21  ;;  %v15728_v25 = vpop.f32.mrb[111].mxu0  ;;  %15755 = vmatprep.mubr.msk.bf16.mxu1 %vm18132_vm1, %v18130_v20 }
0x2ac7   : > { %v9684_v42 = vpack.c.bf16 %v9602_v22, %v9602_v22  ;;  %15741 = vmatprep.subr.bf16.mxu1 %v18130_v20  ;;  %v15733_v26 = vpop.f32.mrb[105].mxu1 }
0x2ac9   : > { %10078 = vmatprep.mubr.bf16.mxu0 %v9684_v42  ;;  %v9677_v28 = vpop.f32.mrb[112].mxu0 }
0x2aca   : > { %10079 = vmatmul.mubr.bf16.vlgmr.msra.gmra.mrb[116].mxu0 %v9683_v23  ;;  %15742 = vmatpush3.bf16.msra.mxu1 %v17330_v24  ;;  %v15738_v30 = vpop.f32.mrb[113].mxu0  ;;  %v9685_v63 = vpack.c.bf16 %v9677_v28, %v9677_v28 }
0x2acb   : > { %15743 = vmatprep.subr.bf16.mxu1 %v18130_v20  ;;  %16599 = vmatpush3.bf16.msra.mxu0 %v18768_v27 }
0x2acc   : > { %16600 = vmatprep.subr.bf16.mxu0 %v18138_v16  ;;  %15791 = vmatprep.mubr.msk.f32.mxu0 %vm18132_vm1, %v18130_v20 }
0x2ace   : > { %15744 = vmatpush3.bf16.msra.mxu1 %v17331_v29 }
0x2acf   : > { %15745 = vmatprep.subr.bf16.mxu1 %v18130_v20  ;;  %16602 = vmatpush3.bf16.msra.mxu0 %v18771_v35 }
0x2ad0   : > { %16603 = vmatprep.subr.bf16.mxu0 %v18138_v16 }
0x2ad2   : > { %15746 = vmatpush3.bf16.msra.mxu1 %v17332_v31  ;;  %v10287_v31 = vld [vmem:[#allocation27 + $0x8] sm:$0xff] }
0x2ad3   : > { %15747 = vmatprep.subr.bf16.mxu1 %v18130_v20  ;;  %16605 = vmatpush3.bf16.msra.mxu0 %v18780_v39 }
0x2ad4   : > { %16606 = vmatprep.subr.bf16.mxu0 %v18138_v16 }
0x2ad6   : > { %15748 = vmatpush3.bf16.msra.mxu1 %v17333_v32  ;;  %v10370_v32 = vld [vmem:[#allocation27 + $0x10] sm:$0xff] }
0x2ad7   : > { %15749 = vmatprep.subr.bf16.mxu1 %v18130_v20  ;;  %16608 = vmatpush3.bf16.msra.mxu0 %v18786_v44 }
0x2ad8   : > { %16609 = vmatprep.subr.bf16.mxu0 %v18138_v16 }
0x2ada   : > { %15750 = vmatpush3.bf16.msra.mxu1 %v17334_v34  ;;  %v10371_v34 = vld [vmem:[#allocation27 + $0x18] sm:$0xff] }
0x2adb   : > { %15751 = vmatprep.subr.bf16.mxu1 %v18130_v20  ;;  %16611 = vmatpush3.bf16.msra.mxu0 %v18792_v48 }
0x2adc   : > { %16612 = vmatprep.subr.bf16.mxu0 %v18138_v16 }
0x2ade   : > { %15752 = vmatpush3.bf16.msra.mxu1 %v17335_v54  ;;  %v10454_v54 = vld [vmem:[#allocation27 + $0x20] sm:$0xff] }
0x2adf   : > { %15753 = vmatprep.subr.bf16.mxu1 %v18130_v20  ;;  %16614 = vmatpush3.bf16.msra.mxu0 %v18798_v53 }
0x2ae0   : > { %16615 = vmatprep.subr.bf16.mxu0 %v18138_v16 }
0x2ae2   : > { %15754 = vmatpush3.bf16.msra.mxu1 %v17336_v58  ;;  %v10455_v58 = vld [vmem:[#allocation27 + $0x28] sm:$0xff] }
0x2ae3   : > { %16617 = vmatpush3.bf16.msra.mxu0 %v18808_v56  ;;  %16621 = vmatprep.subr.bf16.mxu1 %v18138_v16 }
0x2ae4   : > { %16618 = vmatprep.subr.bf16.mxu0 %v18138_v16 }
0x2ae5   : > { %15756 = vmatmul.mubr.bf16.vlgmr.msra.gmra.mrb[112].mxu1 %v9685_v63  ;;  %v10538_v63 = vld [vmem:[#allocation27 + $0x30] sm:$0xff] }
0x2ae6   : > { %16623 = vmatpush3.bf16.msra.mxu1 %v18768_v27  ;;  %15826 = vmatprep.mubr.msk.f32.mxu1 %vm18132_vm1, %v18130_v20 }
0x2ae7   : > { %16620 = vmatpush3.bf16.msra.mxu0 %v18814_v59  ;;  %16624 = vmatprep.subr.bf16.mxu1 %v18138_v16 }
0x2aea   : > { %16626 = vmatpush3.bf16.msra.mxu1 %v18771_v35 }
0x2aeb   : > { %16627 = vmatprep.subr.bf16.mxu1 %v18138_v16 }
0x2aee   : > { %16629 = vmatpush3.bf16.msra.mxu1 %v18780_v39 }
0x2aef   : > { %16630 = vmatprep.subr.bf16.mxu1 %v18138_v16 }
0x2af2   : > { %16632 = vmatpush3.bf16.msra.mxu1 %v18786_v44 }
0x2af3   : > { %16633 = vmatprep.subr.bf16.mxu1 %v18138_v16 }
0x2af6   : > { %16635 = vmatpush3.bf16.msra.mxu1 %v18792_v48 }
0x2af7   : > { %16636 = vmatprep.subr.bf16.mxu1 %v18138_v16 }
0x2afa   : > { %16638 = vmatpush3.bf16.msra.mxu1 %v18798_v53 }
0x2afb   : > { %16639 = vmatprep.subr.bf16.mxu1 %v18138_v16 }
0x2afe   : > { %16641 = vmatpush3.bf16.msra.mxu1 %v18808_v56 }
0x2aff   : > { %16642 = vmatprep.subr.bf16.mxu1 %v18138_v16 }
0x2b02   : > { %16644 = vmatpush3.bf16.msra.mxu1 %v18814_v59 }
0x2b03   : > { %14383 = vmatprep.subr.bf16.mxu1 %v17343_v6 }
0x2b98   : > { %v14275_v27 = vpop.f32.mrb[108].mxu1 }
0x2b99   : > { %v14276_v35 = vpop.f32.mrb[109].mxu1 }
0x2b9a   : > { %v14277_v39 = vadd.f32 %v14276_v35, %v14275_v27  ;;  %v14278_v44 = vpop.f32.mrb[110].mxu1  ;;  %v10539_v27 = vld [vmem:[#allocation27 + $0x38] sm:$0xff]  ;;  %v10622_v35 = vld [vmem:[#allocation27 + $0x40] sm:$0xff] }
0x2b9b   : > { %v14279_v2 = vpop.f32.mrb[111].mxu1  ;;  %v10623_v44 = vld [vmem:[#allocation27 + $0x48] sm:$0xff] }
0x2b9c   : > { %v17338_v2 = vld [vmem:[#allocation28] sm:$0xff]  }
0x2b9d   : > { %v14297_v5 = vpop.f32.mrb[116].mxu0 }
0x2b9e   : > { %v14298_v36 = vpop.f32.mrb[117].mxu0 }
0x2b9f   : > { %v14299_v48 = vadd.f32 %v14298_v36, %v14297_v5  ;;  %v14300_v38 = vpop.f32.mrb[118].mxu0  ;;  %v17339_v5 = vld [vmem:[#allocation28 + $0x48] sm:$0xff]  }
0x2ba0   : > { %v14301_v41 = vpop.f32.mrb[119].mxu0  ;;  %v17340_v36 = vld [vmem:[#allocation28 + $0x8] sm:$0xff]   ;;  %v17342_v38 = vld [vmem:[#allocation28 + $0x10] sm:$0xff]  }
0x2ba1   : > { %v10081_v8 = vadd.f32 %v14299_v48, %v14277_v39  ;;  %v17337_v39 = vld [vmem:[#allocation28 + $0x40] sm:$0xff]   ;;  %v17341_v48 = vld [vmem:[#allocation28 + $0x50] sm:$0xff]   ;;  %v17345_v41 = vld [vmem:[#allocation28 + $0x58] sm:$0xff]  }
0x2bb8   : > { %v10120_v53 = vpop.f32.mrb[112].mxu1 }
0x2bb9   : > { %v10121_v45 = vadd.f32 %v10120_v53, %v10081_v8  ;;  %v15757_v47 = vpop.f32.mrb[113].mxu1  ;;  %v17346_v8 = vld [vmem:[#allocation28 + $0x18] sm:$0xff]   ;;  %v17349_v53 = vld [vmem:[#allocation28 + $0x60] sm:$0xff]  }
0x2bba   : > { %v10123_v11 = vpop.f32.mrb[114].mxu1  ;;  %v17353_v47 = vld [vmem:[#allocation28 + $0x68] sm:$0xff]  }
0x2bbb   : > { %v15758_v56 = vpop.f32.mrb[115].mxu1  ;;  %15792 = vmatmul.mubr.f32.vlgmr.msra.gmra.mrb[114].mxu0 %v10121_v45  ;;  %v17354_v11 = vld [vmem:[#allocation28 + $0x28] sm:$0xff]  }
0x2bbc   : > { %15831 = vmatprep.mubr.msk.f32.mxu0 %vm3172_vm8, %v10286_v4  ;;  %v17357_v56 = vld [vmem:[#allocation28 + $0x70] sm:$0xff]  }
0x2c8e   : > { %v10192_v16 = vpop.f32.mrb[114].mxu0 }
0x2c8f   : > { %v10196_v50 = vrot.slane %v10192_v16, 4  ;;  %v15793_v59 = vpop.f32.mrb[115].mxu0 }
0x2c90   : > { %v17360_v59 = vld [vmem:[#allocation28 + $0xa0] sm:$0xff]  }
0x2c91   : > { %v10197_v51 = vadd.f32 %v10196_v50, %v10192_v16  ;;  %v17358_v16 = vld [vmem:[#allocation28 + $0x30] sm:$0xff]   ;;  %v17359_v50 = vld [vmem:[#allocation28 + $0xe0] sm:$0xff]  }
0x2c93   : > { %v10198_v57 = vrot.slane %v10197_v51, 2 }
0x2c95   : > { %v10199_v55 = vadd.f32 %v10198_v57, %v10197_v51  ;;  %v17361_v51 = vld [vmem:[#allocation28 + $0x78] sm:$0xff]  }
0x2c96   : > { %v17362_v57 = vld [vmem:[#allocation28 + $0x38] sm:$0xff]  }
0x2c97   : > { %v10200_v61 = vrot.slane %v10199_v55, 1 }
0x2c99   : > { %v10201_v62 = vadd.f32 %v10200_v61, %v10199_v55  ;;  %v17363_v55 = vld [vmem:[#allocation28 + $0xe8] sm:$0xff]  }
0x2c9a   : > { %v17364_v61 = vld [vmem:[#allocation28 + $0xa8] sm:$0xff]  }
0x2c9b   : > { %v10202_v0 = vmul.f32 0.015625, %v10201_v62  ;;  %v17365_v62 = vld [vmem:[#allocation28 + $0xf0] sm:$0xff]  }
0x2c9d   : > { %v10203_v3 = vsub.f32 %v10121_v45, %v10202_v0  ;;  %v17350_v45 = vld [vmem:[#allocation28 + $0x20] sm:$0xff]   ;;  %v17367_v0 = vld [vmem:[#allocation28 + $0xb0] sm:$0xff]  }
0x2c9f   : > { %v10204_v1 = vmul.f32 %v10203_v3, %v10203_v3 }
0x2ca1   : > { %15827 = vmatmul.mubr.f32.vlgmr.msra.gmra.mrb[106].mxu1 %v10204_v1  ;;  %v17370_v1 = vld [vmem:[#allocation28 + $0xb8] sm:$0xff]  }
0x2ca2   : > { %14384 = vmatpush3.bf16.msra.mxu1 %v17344_v7 }
0x2ca3   : > { %14385 = vmatprep.subr.bf16.mxu1 %v17347_v10 }
0x2ca6   : > { %14386 = vmatpush3.bf16.msra.mxu1 %v17348_v9 }
0x2ca7   : > { %14387 = vmatprep.subr.bf16.mxu1 %v17351_v12 }
0x2caa   : > { %14388 = vmatpush3.bf16.msra.mxu1 %v17352_v13  ;;  %v17366_v13 = vld [vmem:[#allocation28 + $0x100] sm:$0xff]  }
0x2cab   : > { %14389 = vmatprep.subr.bf16.mxu1 %v17355_v14 }
0x2cae   : > { %14390 = vmatpush3.bf16.msra.mxu1 %v17356_v15 }
0x2caf   : > { %14391 = vmatprep.subr.bf16.mxu1 %v17359_v50 }
0x2cb2   : > { %14392 = vmatpush3.bf16.msra.mxu1 %v17360_v59 }
0x2cb3   : > { %14393 = vmatprep.subr.bf16.mxu1 %v17363_v55  ;;  %v11329_v55 = vld [vmem:[#allocation30] sm:$0xff] }
0x2cb6   : > { %14394 = vmatpush3.bf16.msra.mxu1 %v17364_v61  ;;  %v11833_v61 = vld [vmem:[#allocation30 + $0x60] sm:$0xff] }
0x2cb7   : > { %14395 = vmatprep.subr.bf16.mxu1 %v17365_v62 }
0x2cba   : > { %14396 = vmatpush3.bf16.msra.mxu1 %v17367_v0 }
0x2d74   : > { %v10271_v17 = vpop.f32.mrb[106].mxu1 }
0x2d75   : > { %v10275_v18 = vrot.slane %v10271_v17, 4  ;;  %v15828_v19 = vpop.f32.mrb[107].mxu1 }
0x2d77   : > { %v10276_v21 = vadd.f32 %v10275_v18, %v10271_v17  ;;  %v17369_v18 = vld [vmem:[#allocation28 + $0x108] sm:$0xff]  }
0x2d79   : > { %v10277_v22 = vrot.slane %v10276_v21, 2 }
0x2d7b   : > { %v10278_v23 = vadd.f32 %v10277_v22, %v10276_v21 }
0x2d7d   : > { %v10279_v24 = vrot.slane %v10278_v23, 1 }
0x2d7f   : > { %v10280_v25 = vadd.f32 %v10279_v24, %v10278_v23  ;;  %v17371_v23 = vld [vmem:[#allocation28 + $0x110] sm:$0xff]  }
0x2d81   : > { %v10281_v42 = vmul.f32 0.015625, %v10280_v25 }
0x2d83   : > { %v10282_v26 = vadd.f32 1e-05, %v10281_v42  ;;  %v17372_v42 = vld [vmem:[#allocation28 + $0x118] sm:$0xff]  }
0x2d85   : > { %17455 = vrsqrt.f32 %v10282_v26 }
0x2d8f   : > { %v17456_v28 = vpop.eup %17455 }
0x2d90   : > { %v10284_v29 = vmul.f32 %v17456_v28, %v10203_v3  ;;  %v17368_v3 = vld [vmem:[#allocation28 + $0xf8] sm:$0xff]   ;;  %v17373_v28 = vld [vmem:[#allocation28 + $0x120] sm:$0xff]  }
0x2d91   : > { %14397 = vmatprep.subr.bf16.mxu1 %v17368_v3 }
0x2d92   : > { %v10285_v30 = vmax.f32 %v10284_v29, 0.0  ;;  %14398 = vmatpush3.bf16.msra.mxu1 %v17370_v1  ;;  %v17374_v29 = vld [vmem:[#allocation28 + $0x128] sm:$0xff]  }
0x2d93   : > { %16646 = vmatprep.subr.bf16.mxu1 %v18696_v60 }
0x2d94   : > { %15829 = vmatprep.subr.mxu0 %v10285_v30 }
0x2d95   : > { %15830 = vmatpush3.msra.mxu0 %v10285_v30 }
0x2d96   : > { %15832 = vmatmul.mubr.msk.f32.vlgmr.msra.gmra.mrb[120].mxu0 %vm3172_vm8, %v10287_v31  ;;  %15834 = vmatprep.subr.mxu0 %v10285_v30  ;;  %v17376_v31 = vld [vmem:[#allocation28 + $0x138] sm:$0xff]  }
0x2d97   : > { %15835 = vmatpush3.msra.mxu0 %v10285_v30  ;;  %15836 = vmatprep.mubr.msk.f32.mxu0 %vm3172_vm8, %v10370_v32 }
0x2d98   : > { %15839 = vmatprep.subr.mxu0 %v10285_v30 }
0x2d9a   : > { %15837 = vmatmul.mubr.msk.f32.vlgmr.msra.gmra.mrb[122].mxu0 %vm3172_vm8, %v10371_v34 }
0x2d9b   : > { %15840 = vmatpush3.msra.mxu0 %v10285_v30  ;;  %15841 = vmatprep.mubr.msk.f32.mxu0 %vm3172_vm8, %v10454_v54 }
0x2d9c   : > { %15844 = vmatprep.subr.mxu0 %v10285_v30 }
0x2d9e   : > { %15842 = vmatmul.mubr.msk.f32.vlgmr.msra.gmra.mrb[124].mxu0 %vm3172_vm8, %v10455_v58 }
0x2d9f   : > { %15845 = vmatpush3.msra.mxu0 %v10285_v30  ;;  %15846 = vmatprep.mubr.msk.f32.mxu0 %vm3172_vm8, %v10538_v63 }
0x2da0   : > { %15849 = vmatprep.subr.mxu0 %v10285_v30 }
0x2da2   : > { %15847 = vmatmul.mubr.msk.f32.vlgmr.msra.gmra.mrb[126].mxu0 %vm3172_vm8, %v10539_v27 }
0x2da3   : > { %15850 = vmatpush3.msra.mxu0 %v10285_v30  ;;  %15851 = vmatprep.mubr.msk.f32.mxu0 %vm3172_vm8, %v10622_v35  ;;  %v17375_v30 = vld [vmem:[#allocation28 + $0x130] sm:$0xff]  }
0x2da4   : > { %14361 = vmatprep.subr.bf16.mxu0 %v17337_v39 }
0x2da6   : > { %15852 = vmatmul.mubr.msk.f32.vlgmr.msra.gmra.mrb[128].mxu0 %vm3172_vm8, %v10623_v44 }
0x2da7   : > { %14362 = vmatpush3.bf16.msra.mxu0 %v17338_v2 }
0x2da8   : > { %14363 = vmatprep.subr.bf16.mxu0 %v17339_v5 }
0x2dab   : > { %14364 = vmatpush3.bf16.msra.mxu0 %v17340_v36 }
0x2dac   : > { %14365 = vmatprep.subr.bf16.mxu0 %v17341_v48 }
0x2daf   : > { %14366 = vmatpush3.bf16.msra.mxu0 %v17342_v38 }
0x2db0   : > { %14367 = vmatprep.subr.bf16.mxu0 %v17345_v41 }
0x2db3   : > { %14368 = vmatpush3.bf16.msra.mxu0 %v17346_v8 }
0x2db4   : > { %14369 = vmatprep.subr.bf16.mxu0 %v17349_v53 }
0x2db7   : > { %14370 = vmatpush3.bf16.msra.mxu0 %v17350_v45 }
0x2db8   : > { %14371 = vmatprep.subr.bf16.mxu0 %v17353_v47 }
0x2dbb   : > { %14372 = vmatpush3.bf16.msra.mxu0 %v17354_v11 }
0x2dbc   : > { %14373 = vmatprep.subr.bf16.mxu0 %v17357_v56 }
0x2dbf   : > { %14374 = vmatpush3.bf16.msra.mxu0 %v17358_v16 }
0x2dc0   : > { %14375 = vmatprep.subr.bf16.mxu0 %v17361_v51 }
0x2dc3   : > { %14376 = vmatpush3.bf16.msra.mxu0 %v17362_v57 }
0x2dc4   : > { %15854 = vmatprep.subr.bf16.mxu0 %v18130_v20 }
0x2e69   : > { %v15833_v4 = vpop.f32.mrb[120].mxu0 }
0x2e6a   : > { %v10360_v6 = vpop.f32.mrb[121].mxu0 }
0x2e6b   : > { %v10705_v7 = vpack.c.bf16 %v15833_v4, %v10360_v6 }
0x2e6d   : > { %v15838_v10 = vpop.f32.mrb[122].mxu0 }
0x2e6e   : > { %v10444_v9 = vpop.f32.mrb[123].mxu0 }
0x2e6f   : > { %v10706_v12 = vpack.c.bf16 %v15838_v10, %v10444_v9 }
0x2e71   : > { %11062 = vmatprep.mubr.bf16.mxu0 %v10706_v12  ;;  %v15843_v14 = vpop.f32.mrb[124].mxu0 }
0x2e72   : > { %11063 = vmatmul.mubr.bf16.vlgmr.msra.gmra.mrb[132].mxu0 %v10705_v7  ;;  %v10528_v15 = vpop.f32.mrb[125].mxu0 }
0x2e73   : > { %15855 = vmatpush3.bf16.msra.mxu0 %v17366_v13  ;;  %v10707_v17 = vpack.c.bf16 %v15843_v14, %v10528_v15  ;;  %15870 = vmatprep.mubr.msk.bf16.mxu0 %vm18132_vm1, %v18130_v20 }
0x2e74   : > { %15856 = vmatprep.subr.bf16.mxu0 %v18130_v20 }
0x2e75   : > { %v15848_v19 = vpop.f32.mrb[126].mxu0 }
0x2e76   : > { %v10612_v21 = vpop.f32.mrb[127].mxu0 }
0x2e77   : > { %v10708_v22 = vpack.c.bf16 %v15848_v19, %v10612_v21  ;;  %15857 = vmatpush3.bf16.msra.mxu0 %v17369_v18 }
0x2e78   : > { %15858 = vmatprep.subr.bf16.mxu0 %v18130_v20 }
0x2e79   : > { %11103 = vmatprep.mubr.bf16.mxu1 %v10708_v22  ;;  %v15853_v24 = vpop.f32.mrb[128].mxu0  ;;  %v17382_v22 = vld [vmem:[%s18287_s24 + $0xc0] sm:$0xff]  }
0x2e7a   : > { %11104 = vmatmul.mubr.bf16.vlgmr.msra.gmra.mrb[116].mxu1 %v10707_v17  ;;  %v10696_v25 = vpop.f32.mrb[129].mxu0 }
0x2e7b   : > { %15859 = vmatpush3.bf16.msra.mxu0 %v17371_v23  ;;  %v10709_v26 = vpack.c.bf16 %v15853_v24, %v10696_v25  ;;  %16648 = vmatpush3.bf16.msra.mxu1 %v18696_v60  ;;  %v11330_v23 = vld [vmem:[#allocation30 + $0x8] sm:$0xff]  ;;  %v11413_v25 = vld [vmem:[#allocation30 + $0x10] sm:$0xff] }
0x2e7c   : > { %15860 = vmatprep.subr.bf16.mxu0 %v18130_v20  ;;  %16650 = vmatprep.subr.bf16.mxu1 %v18706_v33  ;;  %v11834_v24 = vld [vmem:[#allocation30 + $0x68] sm:$0xff] }
0x2e7f   : > { %15861 = vmatpush3.bf16.msra.mxu0 %v17372_v42  ;;  %16652 = vmatpush3.bf16.msra.mxu1 %v18706_v33  ;;  %v17384_v42 = vld [vmem:[%s18287_s24 + $0x80] sm:$0xff]  }
0x2e80   : > { %15862 = vmatprep.subr.bf16.mxu0 %v18130_v20  ;;  %16654 = vmatprep.subr.bf16.mxu1 %v18711_v37 }
0x2e83   : > { %15863 = vmatpush3.bf16.msra.mxu0 %v17373_v28  ;;  %16656 = vmatpush3.bf16.msra.mxu1 %v18711_v37  ;;  %v11414_v28 = vld [vmem:[#allocation30 + $0x18] sm:$0xff] }
0x2e84   : > { %15864 = vmatprep.subr.bf16.mxu0 %v18130_v20  ;;  %16658 = vmatprep.subr.bf16.mxu1 %v18717_v40 }
0x2e87   : > { %15865 = vmatpush3.bf16.msra.mxu0 %v17374_v29  ;;  %16660 = vmatpush3.bf16.msra.mxu1 %v18717_v40  ;;  %v11497_v29 = vld [vmem:[#allocation30 + $0x20] sm:$0xff] }
0x2e88   : > { %15866 = vmatprep.subr.bf16.mxu0 %v18130_v20  ;;  %16662 = vmatprep.subr.bf16.mxu1 %v18723_v43 }
0x2e8b   : > { %15867 = vmatpush3.bf16.msra.mxu0 %v17375_v30  ;;  %16664 = vmatpush3.bf16.msra.mxu1 %v18723_v43  ;;  %v17388_v30 = vld [vmem:[%s18287_s24 + $0x88] sm:$0xff]  }
0x2e8c   : > { %15868 = vmatprep.subr.bf16.mxu0 %v18130_v20  ;;  %16666 = vmatprep.subr.bf16.mxu1 %v18729_v46 }
0x2e8f   : > { %15869 = vmatpush3.bf16.msra.mxu0 %v17376_v31  ;;  %16668 = vmatpush3.bf16.msra.mxu1 %v18729_v46  ;;  %v17390_v31 = vld [vmem:[%s18287_s24 + $0xd0] sm:$0xff]  }
0x2e90   : > { %16670 = vmatprep.subr.bf16.mxu1 %v18738_v49  ;;  %16678 = vmatprep.subr.bf16.mxu0 %v18696_v60 }
0x2e92   : > { %15871 = vmatmul.mubr.bf16.vlgmr.msra.gmra.mrb[136].mxu0 %v10709_v26  ;;  %v17386_v26 = vld [vmem:[%s18287_s24 + $0xc8] sm:$0xff]  }
0x2e93   : > { %16672 = vmatpush3.bf16.msra.mxu1 %v18738_v49  ;;  %16680 = vmatpush3.bf16.msra.mxu0 %v18696_v60 }
0x2e94   : > { %16674 = vmatprep.subr.bf16.mxu1 %v18744_v52  ;;  %16682 = vmatprep.subr.bf16.mxu0 %v18706_v33 }
0x2e97   : > { %16676 = vmatpush3.bf16.msra.mxu1 %v18744_v52  ;;  %16684 = vmatpush3.bf16.msra.mxu0 %v18706_v33 }
0x2e98   : > { %16686 = vmatprep.subr.bf16.mxu0 %v18711_v37 }
0x2e9b   : > { %16688 = vmatpush3.bf16.msra.mxu0 %v18711_v37 }
0x2e9c   : > { %16690 = vmatprep.subr.bf16.mxu0 %v18717_v40 }
0x2e9f   : > { %16692 = vmatpush3.bf16.msra.mxu0 %v18717_v40 }
0x2ea0   : > { %16694 = vmatprep.subr.bf16.mxu0 %v18723_v43 }
0x2ea3   : > { %16696 = vmatpush3.bf16.msra.mxu0 %v18723_v43 }
0x2ea4   : > { %16698 = vmatprep.subr.bf16.mxu0 %v18729_v46 }
0x2ea7   : > { %16700 = vmatpush3.bf16.msra.mxu0 %v18729_v46 }
0x2ea8   : > { %16702 = vmatprep.subr.bf16.mxu0 %v18738_v49 }
0x2eab   : > { %16704 = vmatpush3.bf16.msra.mxu0 %v18738_v49 }
0x2eac   : > { %16706 = vmatprep.subr.bf16.mxu0 %v18744_v52 }
0x2eaf   : > { %16708 = vmatpush3.bf16.msra.mxu0 %v18744_v52 }
0x2f45   : > { %v14377_v60 = vpop.f32.mrb[132].mxu0 }
0x2f46   : > { %v14378_v33 = vpop.f32.mrb[133].mxu0 }
0x2f47   : > { %v14379_v37 = vadd.f32 %v14378_v33, %v14377_v60  ;;  %v14380_v40 = vpop.f32.mrb[134].mxu0  ;;  %v11498_v60 = vld [vmem:[#allocation30 + $0x28] sm:$0xff]  ;;  %v11581_v33 = vld [vmem:[#allocation30 + $0x30] sm:$0xff] }
0x2f48   : > { %v14381_v32 = vpop.f32.mrb[135].mxu0 }
0x2f49   : > { %v14382_v34 = vadd.f32 %v14381_v32, %v14380_v40  ;;  %v17394_v40 = vld [vmem:[%s18287_s24 + $0xd8] sm:$0xff]  }
0x2f4a   : > { %v11582_v32 = vld [vmem:[#allocation30 + $0x38] sm:$0xff] }
0x2f4d   : > { %v14399_v54 = vpop.f32.mrb[116].mxu1 }
0x2f4e   : > { %v14400_v43 = vpop.f32.mrb[117].mxu1 }
0x2f4f   : > { %v14401_v58 = vadd.f32 %v14400_v43, %v14399_v54  ;;  %v14402_v63 = vpop.f32.mrb[118].mxu1  ;;  %v17396_v54 = vld [vmem:[%s18287_s24 + $0x98] sm:$0xff]   ;;  %v17398_v43 = vld [vmem:[%s18287_s24 + $0xe0] sm:$0xff]  }
0x2f50   : > { %v14403_v27 = vpop.f32.mrb[119].mxu1 }
0x2f51   : > { %v14404_v46 = vadd.f32 %v14403_v27, %v14402_v63  ;;  %v11106_v35 = vadd.f32 %v14401_v58, %v14379_v37  ;;  %v17392_v37 = vld [vmem:[%s18287_s24 + $0x90] sm:$0xff]   ;;  %v11666_v58 = vld [vmem:[#allocation30 + $0x48] sm:$0xff]  ;;  %v17377_v27 = vld [vmem:[%s18287_s24 + $0x40] sm:$0xff]  }
0x2f52   : > { %v11749_v63 = vld [vmem:[#allocation30 + $0x50] sm:$0xff] }
0x2f53   : > { %v11109_v39 = vadd.f32 %v14404_v46, %v14382_v34  ;;  %v11665_v34 = vld [vmem:[#allocation30 + $0x40] sm:$0xff] }
0x2f54   : > { %v17400_v46 = vld [vmem:[%s18287_s24 + $0xa0] sm:$0xff]  }
0x2f65   : > { %v11146_v44 = vpop.f32.mrb[136].mxu0 }
0x2f66   : > { %v11147_v49 = vadd.f32 %v11146_v44, %v11106_v35  ;;  %v15872_v2 = vpop.f32.mrb[137].mxu0  ;;  %v11750_v35 = vld [vmem:[#allocation30 + $0x58] sm:$0xff]  ;;  %v17379_v44 = vld [vmem:[%s18287_s24 + $0x48] sm:$0xff]  }
0x2f67   : > { %v11149_v5 = vpop.f32.mrb[138].mxu0  ;;  %v17381_v2 = vld [vmem:[%s18287_s24 + $0x50] sm:$0xff]  }
0x2f68   : > { %v11150_v36 = vadd.f32 %v11149_v5, %v11109_v39  ;;  %v15873_v52 = vpop.f32.mrb[139].mxu0  ;;  %15906 = vmatprep.mubr.f32.mxu1 %v11147_v49  ;;  %v17378_v39 = vld [vmem:[%s18287_s24] sm:$0xff]   ;;  %v17383_v5 = vld [vmem:[%s18287_s24 + $0x10] sm:$0xff]  }
0x2f69   : > { %v17387_v52 = vld [vmem:[%s18287_s24 + $0x18] sm:$0xff]  }
0x2f6a   : > { %15907 = vmatmul.mubr.f32.vlgmr.msra.gmra.mrb[120].mxu1 %v11150_v36 }
0x2f6b   : > { %15948 = vmatprep.mubr.msk.f32.mxu1 %vm1255_vm0, %v11329_v55  ;;  %v17411_v55 = vld [vmem:[%s18287_s24 + $0xb8] sm:$0xff]  }
0x303d   : > { %v15908_v48 = vpop.f32.mrb[120].mxu1 }
0x303e   : > { %v11219_v38 = vpop.f32.mrb[121].mxu1 }
0x303f   : > { %v11228_v41 = vadd.f32 %v15908_v48, %v11219_v38  ;;  %v17389_v48 = vld [vmem:[%s18287_s24 + $0x60] sm:$0xff]  }
0x3040   : > { %v17391_v38 = vld [vmem:[%s18287_s24 + $0x20] sm:$0xff]  }
0x3041   : > { %v11229_v8 = vrot.slane %v11228_v41, 4 }
0x3043   : > { %v11230_v53 = vadd.f32 %v11229_v8, %v11228_v41  ;;  %v17393_v41 = vld [vmem:[%s18287_s24 + $0x68] sm:$0xff]  }
0x3044   : > { %v17395_v8 = vld [vmem:[%s18287_s24 + $0x28] sm:$0xff]  }
0x3045   : > { %v11231_v45 = vrot.slane %v11230_v53, 2 }
0x3047   : > { %v11232_v47 = vadd.f32 %v11231_v45, %v11230_v53  ;;  %v17397_v53 = vld [vmem:[%s18287_s24 + $0x70] sm:$0xff]  }
0x3048   : > { %v17399_v45 = vld [vmem:[%s18287_s24 + $0x30] sm:$0xff]  }
0x3049   : > { %v11233_v11 = vrot.slane %v11232_v47, 1 }
0x304b   : > { %v11234_v56 = vadd.f32 %v11233_v11, %v11232_v47  ;;  %v17401_v47 = vld [vmem:[%s18287_s24 + $0x78] sm:$0xff]   ;;  %v17402_v11 = vld [vmem:[%s18287_s24 + $0xe8] sm:$0xff]  }
0x304d   : > { %v11235_v16 = vmul.f32 0.00390625, %v11234_v56  ;;  %v17403_v56 = vld [vmem:[%s18287_s24 + $0x38] sm:$0xff]  }
0x304f   : > { %v11237_v50 = vsub.f32 %v11150_v36, %v11235_v16  ;;  %v11236_v59 = vsub.f32 %v11147_v49, %v11235_v16  ;;  %v17380_v49 = vld [vmem:[%s18287_s24 + $0x8] sm:$0xff]   ;;  %v17385_v36 = vld [vmem:[%s18287_s24 + $0x58] sm:$0xff]  }
0x3050   : > { %v17404_v16 = vld [vmem:[%s18287_s24 + $0xa8] sm:$0xff]  }
0x3051   : > { %v11238_v51 = vmul.f32 %v11236_v59, %v11236_v59  ;;  %v11239_v57 = vmul.f32 %v11237_v50, %v11237_v50 }
0x3053   : > { %15941 = vmatprep.mubr.f32.mxu0 %v11238_v51  ;;  %v17407_v51 = vld [vmem:[%s18287_s24 + $0xb0] sm:$0xff]  }
0x3054   : > { %15942 = vmatmul.mubr.f32.vlgmr.msra.gmra.mrb[130].mxu0 %v11239_v57  ;;  %v17409_v57 = vld [vmem:[%s18287_s24 + $0xf8] sm:$0xff]  }
0x3055   : > { %15990 = vmatprep.mubr.msk.f32.mxu0 %vm1255_vm0, %v11833_v61 }
0x3127   : > { %v15943_v62 = vpop.f32.mrb[130].mxu0 }
0x3128   : > { %v11306_v0 = vpop.f32.mrb[131].mxu0 }
0x3129   : > { %v11315_v3 = vadd.f32 %v15943_v62, %v11306_v0 }
0x312b   : > { %v11316_v1 = vrot.slane %v11315_v3, 4 }
0x312d   : > { %v11317_v4 = vadd.f32 %v11316_v1, %v11315_v3 }
0x312f   : > { %v11318_v6 = vrot.slane %v11317_v4, 2 }
0x3131   : > { %v11319_v7 = vadd.f32 %v11318_v6, %v11317_v4 }
0x3133   : > { %v11320_v10 = vrot.slane %v11319_v7, 1 }
0x3135   : > { %v11321_v9 = vadd.f32 %v11320_v10, %v11319_v7 }
0x3137   : > { %v11322_v12 = vmul.f32 0.00390625, %v11321_v9  ;;  %v17408_v9 = vld [vmem:[%s18287_s24 + $0x100] sm:$0xff]  }
0x3139   : > { %v11323_v13 = vadd.f32 1e-05, %v11322_v12  ;;  %v17410_v12 = vld [vmem:[%s18287_s24 + $0x148] sm:$0xff]  }
0x313b   : > { %17457 = vrsqrt.f32 %v11323_v13 }
0x3145   : > { %v17458_v14 = vpop.eup %17457 }
0x3146   : > { %v11325_v15 = vmul.f32 %v17458_v14, %v11236_v59  ;;  %v11326_v17 = vmul.f32 %v17458_v14, %v11237_v50  ;;  %v17405_v50 = vld [vmem:[%s18287_s24 + $0xf0] sm:$0xff]   ;;  %v17406_v59 = vld [vmem:[%s18287_s24 + $0x140] sm:$0xff]  }
0x3148   : > { %v11327_v18 = vmax.f32 %v11325_v15, 0.0  ;;  %v11328_v19 = vmax.f32 %v11326_v17, 0.0  ;;  %v17412_v17 = vld [vmem:[%s18287_s24 + $0x108] sm:$0xff]  }
0x314a   : > { %v16709_v21 = vpack.c.bf16 %v11328_v19, %v11327_v18  ;;  %v17413_v18 = vld [vmem:[%s18287_s24 + $0x150] sm:$0xff]  }
0x314c   : > { %16710 = vmatprep.subr.bf16.mxu1 %v16709_v21  ;;  %16734 = vmatprep.subr.bf16.mxu0 %v16709_v21 }
0x314d   : > { %16712 = vmatpush3.bf16.msra.mxu1 %v16709_v21  ;;  %16736 = vmatpush3.bf16.msra.mxu0 %v16709_v21 }
0x314e   : > { %16714 = vmatprep.subr.bf16.mxu1 %v16709_v21  ;;  %14500 = vmatprep.subr.bf16.mxu0 %v17382_v22 }
0x3150   : > { %15949 = vmatmul.mubr.msk.f32.vlgmr.msra.gmra.mrb[122].mxu1 %vm1255_vm0, %v11330_v23  ;;  %15991 = vmatmul.mubr.msk.f32.vlgmr.msra.gmra.mrb[140].mxu0 %vm1255_vm0, %v11834_v24  ;;  %v17414_v23 = vld [vmem:[%s18287_s24 + $0x110] sm:$0xff]   ;;  %v17415_v24 = vld [vmem:[%s18287_s24 + $0x180] sm:$0xff]  }
0x3151   : > { %16716 = vmatpush3.bf16.msra.mxu1 %v16709_v21  ;;  %15955 = vmatprep.mubr.msk.f32.mxu1 %vm1255_vm0, %v11413_v25  ;;  %v17416_v25 = vld [vmem:[%s18287_s24 + $0x158] sm:$0xff]  }
0x3152   : > { %16718 = vmatprep.subr.bf16.mxu1 %v16709_v21  ;;  %14501 = vmatpush3.bf16.msra.mxu0 %v17384_v42 }
0x3153   : > { %14502 = vmatprep.subr.bf16.mxu0 %v17386_v26 }
0x3154   : > { %15956 = vmatmul.mubr.msk.f32.vlgmr.msra.gmra.mrb[124].mxu1 %vm1255_vm0, %v11414_v28  ;;  %v17417_v28 = vld [vmem:[%s18287_s24 + $0x118] sm:$0xff]  }
0x3155   : > { %16720 = vmatpush3.bf16.msra.mxu1 %v16709_v21  ;;  %15962 = vmatprep.mubr.msk.f32.mxu1 %vm1255_vm0, %v11497_v29  ;;  %v17418_v29 = vld [vmem:[%s18287_s24 + $0x188] sm:$0xff]  }
0x3156   : > { %16722 = vmatprep.subr.bf16.mxu1 %v16709_v21  ;;  %14503 = vmatpush3.bf16.msra.mxu0 %v17388_v30 }
0x3157   : > { %14504 = vmatprep.subr.bf16.mxu0 %v17390_v31  ;;  %v17419_v31 = vld [vmem:[%s18287_s24 + $0x160] sm:$0xff]  }
0x3158   : > { %15963 = vmatmul.mubr.msk.f32.vlgmr.msra.gmra.mrb[126].mxu1 %vm1255_vm0, %v11498_v60 }
0x3159   : > { %16724 = vmatpush3.bf16.msra.mxu1 %v16709_v21  ;;  %15969 = vmatprep.mubr.msk.f32.mxu1 %vm1255_vm0, %v11581_v33 }
0x315a   : > { %16726 = vmatprep.subr.bf16.mxu1 %v16709_v21  ;;  %14505 = vmatpush3.bf16.msra.mxu0 %v17392_v37  ;;  %v17420_v37 = vld [vmem:[%s18287_s24 + $0x120] sm:$0xff]  }
0x315b   : > { %14506 = vmatprep.subr.bf16.mxu0 %v17394_v40  ;;  %v17421_v40 = vld [vmem:[%s18287_s24 + $0x190] sm:$0xff]  }
0x315c   : > { %15970 = vmatmul.mubr.msk.f32.vlgmr.msra.gmra.mrb[128].mxu1 %vm1255_vm0, %v11582_v32 }
0x315d   : > { %16728 = vmatpush3.bf16.msra.mxu1 %v16709_v21  ;;  %15976 = vmatprep.mubr.msk.f32.mxu1 %vm1255_vm0, %v11665_v34  ;;  %v17422_v34 = vld [vmem:[%s18287_s24 + $0x168] sm:$0xff]  }
0x315e   : > { %16730 = vmatprep.subr.bf16.mxu1 %v16709_v21  ;;  %14507 = vmatpush3.bf16.msra.mxu0 %v17396_v54  ;;  %v17423_v54 = vld [vmem:[%s18287_s24 + $0x128] sm:$0xff]  }
0x315f   : > { %14508 = vmatprep.subr.bf16.mxu0 %v17398_v43  ;;  %v17424_v43 = vld [vmem:[%s18287_s24 + $0x198] sm:$0xff]  }
0x3160   : > { %15977 = vmatmul.mubr.msk.f32.vlgmr.msra.gmra.mrb[130].mxu1 %vm1255_vm0, %v11666_v58  ;;  %v17425_v58 = vld [vmem:[%s18287_s24 + $0x170] sm:$0xff]  }
0x3161   : > { %16732 = vmatpush3.bf16.msra.mxu1 %v16709_v21  ;;  %15983 = vmatprep.mubr.msk.f32.mxu1 %vm1255_vm0, %v11749_v63  ;;  %v17426_v63 = vld [vmem:[%s18287_s24 + $0x130] sm:$0xff]  }
0x3162   : > { %14478 = vmatprep.subr.bf16.mxu1 %v17377_v27  ;;  %14509 = vmatpush3.bf16.msra.mxu0 %v17400_v46  ;;  %v17427_v27 = vld [vmem:[%s18287_s24 + $0x1a0] sm:$0xff]   ;;  %v17428_v46 = vld [vmem:[%s18287_s24 + $0x178] sm:$0xff]  }
0x3163   : > { %14510 = vmatprep.subr.bf16.mxu0 %v17402_v11 }
0x3164   : > { %15984 = vmatmul.mubr.msk.f32.vlgmr.msra.gmra.mrb[132].mxu1 %vm1255_vm0, %v11750_v35  ;;  %v17429_v35 = vld [vmem:[%s18287_s24 + $0x138] sm:$0xff]  }
0x3165   : > { %14479 = vmatpush3.bf16.msra.mxu1 %v17378_v39  ;;  %v17430_v39 = vld [vmem:[%s18287_s24 + $0x1a8] sm:$0xff]  }
0x3166   : > { %14480 = vmatprep.subr.bf16.mxu1 %v17379_v44  ;;  %14511 = vmatpush3.bf16.msra.mxu0 %v17404_v16  ;;  %v17431_v44 = vld [vmem:[%s18287_s24 + $0x1b0] sm:$0xff]  }
0x3167   : > { %14512 = vmatprep.subr.bf16.mxu0 %v17405_v50 }
0x3169   : > { %14481 = vmatpush3.bf16.msra.mxu1 %v17380_v49  ;;  %v17432_v49 = vld [vmem:[%s18287_s24 + $0x1b8] sm:$0xff]  }
0x316a   : > { %14482 = vmatprep.subr.bf16.mxu1 %v17381_v2  ;;  %14513 = vmatpush3.bf16.msra.mxu0 %v17407_v51 }
0x316b   : > { %14514 = vmatprep.subr.bf16.mxu0 %v17409_v57 }
0x316d   : > { %14483 = vmatpush3.bf16.msra.mxu1 %v17383_v5 }
0x316e   : > { %14484 = vmatprep.subr.bf16.mxu1 %v17385_v36  ;;  %14515 = vmatpush3.bf16.msra.mxu0 %v17411_v55 }
0x316f   : > { %15993 = vmatprep.subr.bf16.mxu0 %v18130_v20 }
0x3171   : > { %14485 = vmatpush3.bf16.msra.mxu1 %v17387_v52 }
0x3172   : > { %14486 = vmatprep.subr.bf16.mxu1 %v17389_v48 }
0x3175   : > { %14487 = vmatpush3.bf16.msra.mxu1 %v17391_v38 }
0x3176   : > { %14488 = vmatprep.subr.bf16.mxu1 %v17393_v41  ;;  %v13352_v41 = vld [vmem:[%s18297_s27] ss:$0 sm:$0xff] }
0x3179   : > { %14489 = vmatpush3.bf16.msra.mxu1 %v17395_v8 }
0x317a   : > { %14490 = vmatprep.subr.bf16.mxu1 %v17397_v53 }
0x317d   : > { %14491 = vmatpush3.bf16.msra.mxu1 %v17399_v45 }
0x317e   : > { %14492 = vmatprep.subr.bf16.mxu1 %v17401_v47 }
0x3181   : > { %14493 = vmatpush3.bf16.msra.mxu1 %v17403_v56 }
0x3182   : > { %14522 = vmatprep.subr.bf16.mxu1 %v17406_v59 }
0x3223   : > { %v15950_v61 = vpop.f32.mrb[122].mxu1  ;;  %v19611_v62 = vpop.f32.mrb[140].mxu0 }
0x3224   : > { %v11403_v0 = vpop.f32.mrb[123].mxu1  ;;  %v19613_v3 = vpop.f32.mrb[141].mxu0 }
0x3225   : > { %v11916_v1 = vpack.c.bf16 %v15950_v61, %v11403_v0  ;;  %v11922_v4 = vpack.c.bf16 %v19611_v62, %v19613_v3 }
0x3227   : > { %v15957_v6 = vpop.f32.mrb[124].mxu1 }
0x3228   : > { %v11487_v7 = vpop.f32.mrb[125].mxu1 }
0x3229   : > { %v11917_v10 = vpack.c.bf16 %v15957_v6, %v11487_v7 }
0x322b   : > { %12410 = vmatprep.mubr.bf16.mxu1 %v11917_v10  ;;  %v15964_v13 = vpop.f32.mrb[126].mxu1 }
0x322c   : > { %12411 = vmatmul.mubr.bf16.vlgmr.msra.gmra.mrb[136].mxu1 %v11916_v1  ;;  %v11571_v14 = vpop.f32.mrb[127].mxu1 }
0x322d   : > { %14523 = vmatpush3.bf16.msra.mxu1 %v17408_v9  ;;  %v11918_v15 = vpack.c.bf16 %v15964_v13, %v11571_v14 }
0x322e   : > { %14524 = vmatprep.subr.bf16.mxu1 %v17410_v12 }
0x322f   : > { %v15971_v19 = vpop.f32.mrb[128].mxu1 }
0x3230   : > { %v11655_v21 = vpop.f32.mrb[129].mxu1 }
0x3231   : > { %v11919_v22 = vpack.c.bf16 %v15971_v19, %v11655_v21  ;;  %14525 = vmatpush3.bf16.msra.mxu1 %v17412_v17 }
0x3232   : > { %14526 = vmatprep.subr.bf16.mxu1 %v17413_v18 }
0x3233   : > { %12451 = vmatprep.mubr.bf16.mxu0 %v11919_v22  ;;  %v15978_v42 = vpop.f32.mrb[130].mxu1 }
0x3234   : > { %12452 = vmatmul.mubr.bf16.vlgmr.msra.gmra.mrb[144].mxu0 %v11918_v15  ;;  %v11739_v26 = vpop.f32.mrb[131].mxu1 }
0x3235   : > { %14527 = vmatpush3.bf16.msra.mxu1 %v17414_v23  ;;  %15994 = vmatpush3.bf16.msra.mxu0 %v17415_v24  ;;  %v11920_v30 = vpack.c.bf16 %v15978_v42, %v11739_v26 }
0x3236   : > { %14528 = vmatprep.subr.bf16.mxu1 %v17416_v25  ;;  %15995 = vmatprep.subr.bf16.mxu0 %v18130_v20 }
0x3237   : > { %v15985_v60 = vpop.f32.mrb[132].mxu1  ;;  %16009 = vmatprep.mubr.msk.bf16.mxu0 %vm18132_vm1, %v18130_v20 }
0x3238   : > { %v11823_v33 = vpop.f32.mrb[133].mxu1 }
0x3239   : > { %14529 = vmatpush3.bf16.msra.mxu1 %v17417_v28  ;;  %15996 = vmatpush3.bf16.msra.mxu0 %v17418_v29  ;;  %v11921_v32 = vpack.c.bf16 %v15985_v60, %v11823_v33 }
0x323a   : > { %14530 = vmatprep.subr.bf16.mxu1 %v17419_v31  ;;  %15997 = vmatprep.subr.bf16.mxu0 %v18130_v20 }
0x323b   : > { %12492 = vmatprep.mubr.bf16.mxu1 %v11921_v32 }
0x323d   : > { %14531 = vmatpush3.bf16.msra.mxu1 %v17420_v37  ;;  %15998 = vmatpush3.bf16.msra.mxu0 %v17421_v40 }
0x323e   : > { %14532 = vmatprep.subr.bf16.mxu1 %v17422_v34  ;;  %15999 = vmatprep.subr.bf16.mxu0 %v18130_v20 }
0x3241   : > { %14533 = vmatpush3.bf16.msra.mxu1 %v17423_v54  ;;  %16000 = vmatpush3.bf16.msra.mxu0 %v17424_v43 }
0x3242   : > { %14534 = vmatprep.subr.bf16.mxu1 %v17425_v58  ;;  %16001 = vmatprep.subr.bf16.mxu0 %v18130_v20 }
0x3245   : > { %14535 = vmatpush3.bf16.msra.mxu1 %v17426_v63  ;;  %16002 = vmatpush3.bf16.msra.mxu0 %v17427_v27 }
0x3246   : > { %14536 = vmatprep.subr.bf16.mxu1 %v17428_v46  ;;  %16003 = vmatprep.subr.bf16.mxu0 %v18130_v20 }
0x3249   : > { %14537 = vmatpush3.bf16.msra.mxu1 %v17429_v35  ;;  %16004 = vmatpush3.bf16.msra.mxu0 %v17430_v39 }
0x324a   : > { %16005 = vmatprep.subr.bf16.mxu0 %v18130_v20 }
0x324c   : > { %12493 = vmatmul.mubr.bf16.vlgmr.msra.gmra.mrb[140].mxu1 %v11920_v30 }
0x324d   : > { %16006 = vmatpush3.bf16.msra.mxu0 %v17431_v44 }
0x324e   : > { %16007 = vmatprep.subr.bf16.mxu0 %v18130_v20 }
0x3251   : > { %16008 = vmatpush3.bf16.msra.mxu0 %v17432_v49 }
0x3254   : > { %16010 = vmatmul.mubr.bf16.vlgmr.msra.gmra.mrb[148].mxu0 %v11922_v4 }
0x32ff   : > { %v14494_v2 = vpop.f32.mrb[136].mxu1 }
0x3300   : > { %v14495_v5 = vpop.f32.mrb[137].mxu1 }
0x3301   : > { %v14496_v36 = vadd.f32 %v14495_v5, %v14494_v2  ;;  %v14497_v52 = vpop.f32.mrb[138].mxu1 }
0x3302   : > { %v14498_v48 = vpop.f32.mrb[139].mxu1 }
0x3303   : > { %v14499_v38 = vadd.f32 %v14498_v48, %v14497_v52  ;;  %v12413_v45 = vadd.f32 %v14496_v36, %v13352_v41 }
0x3305   : > { %v12416_v16 = vadd.f32 %v14499_v38, %v13352_v41 }
0x3307   : > { %v14516_v8 = vpop.f32.mrb[144].mxu0 }
0x3308   : > { %v14517_v53 = vpop.f32.mrb[145].mxu0 }
0x3309   : > { %v14518_v47 = vadd.f32 %v14517_v53, %v14516_v8  ;;  %v14519_v11 = vpop.f32.mrb[146].mxu0 }
0x330a   : > { %v14520_v56 = vpop.f32.mrb[147].mxu0 }
0x330b   : > { %v12454_v20 = vadd.f32 %v14518_v47, %v12413_v45  ;;  %v14521_v50 = vadd.f32 %v14520_v56, %v14519_v11 }
0x330d   : > { %v12457_v59 = vadd.f32 %v14521_v50, %v12416_v16 }
0x331f   : > { %v14538_v51 = vpop.f32.mrb[140].mxu1 }
0x3320   : > { %v14539_v57 = vpop.f32.mrb[141].mxu1 }
0x3321   : > { %v14540_v55 = vadd.f32 %v14539_v57, %v14538_v51  ;;  %v14541_v61 = vpop.f32.mrb[142].mxu1 }
0x3322   : > { %v14542_v62 = vpop.f32.mrb[143].mxu1 }
0x3323   : > { %v14543_v0 = vadd.f32 %v14542_v62, %v14541_v61  ;;  %v12495_v3 = vadd.f32 %v14540_v55, %v12454_v20 }
0x3325   : > { %v12498_v1 = vadd.f32 %v14543_v0, %v12457_v59 }
0x3327   : > { %v12535_v4 = vpop.f32.mrb[148].mxu0 }
0x3328   : > { %v12536_v6 = vadd.f32 %v12535_v4, %v12495_v3  ;;  %v16011_v7 = vpop.f32.mrb[149].mxu0 }
0x3329   : > { %v12538_v10 = vpop.f32.mrb[150].mxu0 }
0x332a   : > { %17459 = vtanh.f32 %v12536_v6  ;;  %v12539_v9 = vadd.f32 %v12538_v10, %v12498_v1  ;;  %v16012_v12 = vpop.f32.mrb[151].mxu0 }
0x332c   : > { %17461 = vtanh.f32 %v12539_v9 }
0x3334   : > { %v17460_v13 = vpop.eup %17459 }
0x3335   : > { %12544 = vst.msk [vmem:[%s1249_s1] sm:$0xff] %vm1889_vm3, %v17460_v13 }
0x3336   : > { %v17462_v14 = vpop.eup %17461 }
0x3337   : > { %12545 = vst.msk [vmem:[%s1249_s1 + $0x8] sm:$0xff] %vm1889_vm3, %v17462_v14 }
0x3338 PF: > { %s84_s22 = sadd.s32 1, %s18073_s22  }
0x3339   : > { %p81_p13 = scmp.ge.s32.totalorder %s84_s22, 4  }
0x333b   :  { %83 = sbr.rel (!%p81_p13) target bundleno = 66 (0x42), region = 330 }
0x3342   :  { %12567 = vsyncpa [#allocation3], 1 }
0x3343   :  { %12569 = vsyncpa [#allocation3 + $0x1], 1 }
0x3344   :  { %12570 = vsyncpa [#allocation5], 1 }
0x3345   :  { %12571 = vsyncpa [#allocation8], 1 }
0x3346   :  { %12572 = vsyncpa [#allocation11], 1 }
0x3347   :  { %12573 = vsyncpa [#allocation14], 1 }
0x3348   :  { %12574 = vsyncpa [#allocation17], 1 }
0x3349   :  { %12575 = vsyncpa [#allocation20], 1 }
0x334a   :  { %12576 = vsyncpa [#allocation23], 1 }
0x334b   :  { %12577 = vsyncpa [#allocation26], 1 }
0x334c   :  { %12578 = vsyncpa [#allocation29], 1 }
0x334d   :  { %12579 = vsyncpa [#allocation32], 1 }

</bundles_post_ra>
